<compile_context>
chip_gen: v5e
topology: v5e:2x2
jax: 0.10.0
libtpu: 0.0.40
codegen_flags: <defaults>
</compile_context>

<pallas_src>
import functools
import math

import jax
import jax.numpy as jnp
from jax import lax
from jax.experimental import pallas as pl
from jax.experimental.pallas import tpu as pltpu

EPS = 1e-5
LANE = 128


def _round_up(v, m):
    return (v + m - 1) // m * m


def _strip_rows(h, w, n_imgs):
    """Rows per grid strip: enough grid steps for pipelining / megacore balance while
    keeping the per-step matmul M dimension (rows * w) >= 128."""
    th = h
    while th % 2 == 0 and n_imgs * (h // th) < 8 and (th // 2) * w >= 128:
        th //= 2
    return th


def _partial_stats(y):
    """Per-block (sum, sum-of-squares) in f32; finalized globally in the wrapper."""
    s1 = jnp.sum(y, axis=0, keepdims=True)
    s2 = jnp.sum(y * y, axis=0, keepdims=True)
    return jnp.concatenate([s1, s2], axis=0)            # (2, C)


def _pad_lanes(x2d, c_to):
    """Zero-pad the lane (channel) dim of a 2-D value up to c_to (in VMEM)."""
    c = x2d.shape[-1]
    if c_to == c:
        return x2d
    z = jnp.zeros((x2d.shape[0], c_to - c), x2d.dtype)
    return jnp.concatenate([x2d, z], axis=-1)


# --------------------------- Pass A: conv1 (1x1) [+ projection conv] ----------
def _conv1_kernel(x_ref, wa_ref, *rest, stride, has_proj, fuse_proj):
    _, TH, W, Cin = x_ref.shape
    Cin_p = wa_ref.shape[0]
    xb = _pad_lanes(x_ref[0].astype(jnp.bfloat16).reshape(TH * W, Cin), Cin_p)

    if has_proj and fuse_proj:
        # stride == 1: single MXU pass of x against [w1 | wp]  (N = Cmid_p + Cout_p).
        y1_ref, s1_ref, yp_ref, sp_ref = rest
        cmid_p = y1_ref.shape[-1]
        cout = yp_ref.shape[-1]
        full = jnp.dot(xb, wa_ref[...], preferred_element_type=jnp.float32)
        y = full[:, :cmid_p]
        r = full[:, cmid_p:cmid_p + cout]
        y1_ref[0] = y.reshape(TH, W, cmid_p).astype(y1_ref.dtype)
        s1_ref[0, 0] = _partial_stats(y)
        yp_ref[0] = r.reshape(TH, W, cout).astype(yp_ref.dtype)
        sp_ref[0, 0] = _partial_stats(r)
        return

    if has_proj:
        wp_ref, y1_ref, s1_ref, yp_ref, sp_ref = rest
    else:
        y1_ref, s1_ref = rest

    y = jnp.dot(xb, wa_ref[...], preferred_element_type=jnp.float32)
    y1_ref[0] = y.reshape(TH, W, y.shape[-1]).astype(y1_ref.dtype)
    s1_ref[0, 0] = _partial_stats(y)

    if has_proj:
        # stride > 1 projection (grid is per-image here, so TH == H).
        s = stride
        cout = yp_ref.shape[-1]
        Ho = (TH - 1) // s + 1
        Wo = (W - 1) // s + 1
        # TODO(synk): replace the value-level [::s] subsampling with strided pl.ds loads.
        xs = x_ref[0][::s, ::s, :].astype(jnp.bfloat16).reshape(Ho * Wo, Cin)
        xs = _pad_lanes(xs, Cin_p)
        r = jnp.dot(xs, wp_ref[...], preferred_element_type=jnp.float32)[:, :cout]
        yp_ref[0] = r.reshape(Ho, Wo, cout).astype(yp_ref.dtype)
        sp_ref[0, 0] = _partial_stats(r)


# --------------------------- Pass B: bn1 + relu -> conv2 (3x3) ----------------
def _conv2_kernel(y1_ref, sc_ref, sh_ref, w2_ref, y2_ref, s2_ref, pad_ref, *, stride):
    _, H, W, C = y1_ref.shape
    _, Ho, Wo, _ = y2_ref.shape
    s = stride

    # BN1 with global scale/shift (precomputed in the wrapper) + ReLU, cast once.
    a = jnp.maximum(y1_ref[0] * sc_ref[...] + sh_ref[...], 0.0).astype(jnp.bfloat16)

    # Zero halo: pad W in-register, then one dense (H, W+2, C) store + two row stores
    # (no masked per-column stores - keeps the store slot free on v5e).
    zc = jnp.zeros((H, 1, C), jnp.bfloat16)
    zr = jnp.zeros((1, W + 2, C), jnp.bfloat16)
    pad_ref[1:H + 1, :, :] = jnp.concatenate([zc, a, zc], axis=1)
    pad_ref[0:1, :, :] = zr
    pad_ref[H + 1:H + 2, :, :] = zr

    # 3x3 conv as 9 accumulated MXU matmuls over shifted taps of the padded slab
    # (no 9x im2col activation copy; each matmul contracts K = C).
    acc = jnp.zeros((Ho * Wo, C), jnp.float32)
    span_h = (Ho - 1) * s + 1
    span_w = (Wo - 1) * s + 1
    for kh in range(3):
        for kw in range(3):
            if s == 1:
                tap = pad_ref[kh:kh + Ho, kw:kw + Wo, :]
            else:
                # TODO(synk): use strided pl.ds ref loads for the stride>1 taps.
                tap = pad_ref[kh:kh + span_h, kw:kw + span_w, :][::s, ::s, :]
            acc = acc + jnp.dot(tap.reshape(Ho * Wo, C), w2_ref[kh * 3 + kw],
                                preferred_element_type=jnp.float32)

    y2_ref[0] = acc.reshape(Ho, Wo, C).astype(y2_ref.dtype)
    s2_ref[0] = _partial_stats(acc)


# --------------------------- Pass C: bn2 + relu -> conv3 (1x1) ----------------
def _conv3_kernel(y2_ref, sc_ref, sh_ref, w3_ref, y3_ref, s3_ref):
    _, TH, Wo, C = y2_ref.shape
    cout = y3_ref.shape[-1]
    a = jnp.maximum(y2_ref[0] * sc_ref[...] + sh_ref[...], 0.0)
    a = a.astype(jnp.bfloat16).reshape(TH * Wo, C)
    y = jnp.dot(a, w3_ref[...], preferred_element_type=jnp.float32)[:, :cout]
    y3_ref[0] = y.reshape(TH, Wo, cout).astype(y3_ref.dtype)
    s3_ref[0, 0] = _partial_stats(y)


# --------------------------- Pass D: bn3 (+ bn_proj) + add + relu -------------
def _residual_kernel(*refs, has_proj):
    if has_proj:
        y3_ref, sc3_ref, sh3_ref, r_ref, scp_ref, shp_ref, o_ref = refs
        res = r_ref[0] * scp_ref[...] + shp_ref[...]
    else:
        y3_ref, sc3_ref, sh3_ref, r_ref, o_ref = refs
        res = r_ref[0].astype(jnp.float32)              # identity shortcut (raw x)
    y = y3_ref[0] * sc3_ref[...] + sh3_ref[...]
    o_ref[0] = jnp.maximum(y + res, 0.0).astype(o_ref.dtype)


# ------------------------------ host-side helpers -----------------------------
def _bn_scale_shift(stats, gamma, beta, count):
    """Turn per-block (sum, sumsq) partials into the global BN scale/shift."""
    c = stats.shape[-1]
    s = stats.reshape(-1, 2, c).sum(axis=0)
    mean = s[0] / count
    # TODO(synk): switch to a Welford-style merge if activations are far from zero-mean
    # (E[x^2]-E[x]^2 in f32 can cancel for |mean| >> std).
    var = jnp.maximum(s[1] / count - mean * mean, 0.0)
    scale = gamma.reshape(-1) * lax.rsqrt(var + EPS)
    shift = beta.reshape(-1) - mean * scale
    return (scale.reshape(1, -1).astype(jnp.float32),
            shift.reshape(1, -1).astype(jnp.float32))


_VMEM_CAP = None


def _vmem_cap_bytes():
    """Per-generation scoped-VMEM cap: physical capacity minus headroom for
    compiler-internal scratch (v7x: ~56 MiB, v5e/v6e: up to ~112 MiB)."""
    global _VMEM_CAP
    if _VMEM_CAP is None:
        try:
            cap = int(pltpu.get_tpu_info().vmem_capacity_bytes) - (8 << 20)
        except Exception:
            cap = 64 << 20                      # conservative: fits every generation
        _VMEM_CAP = int(max(min(cap, 112 << 20), 32 << 20))
    return _VMEM_CAP


def _cparams(block_bytes, n_grid_dims, scratch_bytes=0):
    est = 2 * int(block_bytes) + int(scratch_bytes) + (16 << 20)
    return pltpu.CompilerParams(
        dimension_semantics=("parallel",) * n_grid_dims,
        vmem_limit_bytes=int(min(max(est, 32 << 20), _vmem_cap_bytes())))


def prepare_params(params, *, stride=1):
    """One-time parameter prep (channel padding, bf16 cast, per-tap conv2 layout,
    [w1|wp] fusion).  Hoisted out of bottleneck_forward so the per-call work is just
    the four pallas_call passes."""
    cin, mid = params["w1"].shape
    cout = params["w3"].shape[1]
    has_proj = (stride != 1) or (cin != cout)
    cin_p, cmid_p, cout_p = (_round_up(c, LANE) for c in (cin, mid, cout))
    bf16 = jnp.bfloat16

    def pad_w(w, r, c):
        return jnp.pad(w, ((0, r - w.shape[0]), (0, c - w.shape[1]))).astype(bf16)

    def pad_gamma(g, c):
        return jnp.pad(g.reshape(1, -1), ((0, 0), (0, c - g.size)),
                       constant_values=1.0).astype(jnp.float32)

    def pad_beta(b, c):
        return jnp.pad(b.reshape(1, -1), ((0, 0), (0, c - b.size))).astype(jnp.float32)

    w2 = jnp.pad(params["w2"],
                 ((0, 0), (0, 0), (0, cmid_p - mid), (0, cmid_p - mid)))
    pp = {
        "w1": pad_w(params["w1"], cin_p, cmid_p),
        "w2": w2.astype(bf16).reshape(9, cmid_p, cmid_p),   # per-tap (C, C) weights
        "w3": pad_w(params["w3"], cmid_p, cout_p),
        "g1": pad_gamma(params["g1"], cmid_p), "b1": pad_beta(params["b1"], cmid_p),
        "g2": pad_gamma(params["g2"], cmid_p), "b2": pad_beta(params["b2"], cmid_p),
        "g3": params["g3"].reshape(1, -1).astype(jnp.float32),
        "b3": params["b3"].reshape(1, -1).astype(jnp.float32),
    }
    if has_proj:
        wp = pad_w(params["wp"], cin_p, cout_p)
        if stride == 1:
            pp["w1p"] = jnp.concatenate([pp["w1"], wp], axis=1)   # fused [w1 | wp]
            del pp["w1"]
        else:
            pp["wp"] = wp
        pp["gp"] = params["gp"].reshape(1, -1).astype(jnp.float32)
        pp["bp"] = params["bp"].reshape(1, -1).astype(jnp.float32)
    return pp


def bottleneck_forward(x, pp, *, stride=1):
    """Bottleneck forward (training-mode BN) from prepared params `pp`."""
    N, H, W, Cin = x.shape
    f32, bf16 = jnp.float32, jnp.bfloat16
    cmid_p = pp["g1"].shape[1]
    cout = pp["g3"].shape[1]
    has_proj = "gp" in pp
    fuse_proj = has_proj and stride == 1
    if not has_proj:
        assert stride == 1 and Cin == cout
    Ho = (H - 1) // stride + 1
    Wo = (W - 1) // stride + 1

    wa = pp["w1p"] if fuse_proj else pp["w1"]
    cin_p = wa.shape[0]

    # grids: (image, row-strip); conv2 stays per-image (3x3 halo).
    th_a = _strip_rows(H, W, N) if stride == 1 else H
    sa = H // th_a
    th_o = _strip_rows(Ho, Wo, N)
    so = Ho // th_o

    def strip_spec(rows, cols, ch):          # 2-D (image, strip) grid
        return pl.BlockSpec((1, rows, cols, ch), lambda n, s: (n, s, 0, 0))

    def stat_spec(ch):
        return pl.BlockSpec((1, 1, 2, ch), lambda n, s: (n, s, 0, 0))

    def full_spec(shape):                    # small operand resident across the grid
        return pl.BlockSpec(shape, lambda *_: (0,) * len(shape))

    # ---------------- Pass A : conv1 (1x1) [+ projection 1x1] -------------------
    a_args = [x, wa]
    a_in = [strip_spec(th_a, W, Cin), full_spec(wa.shape)]
    a_out_shape = [jax.ShapeDtypeStruct((N, H, W, cmid_p), bf16),
                   jax.ShapeDtypeStruct((N, sa, 2, cmid_p), f32)]
    a_out = [strip_spec(th_a, W, cmid_p), stat_spec(cmid_p)]
    flops_a = 2 * N * H * W * cin_p * wa.shape[1]
    blk_a = th_a * W * (Cin * 4 + cmid_p * 2) + int(wa.size) * 2 + 2 * cmid_p * 4
    if has_proj:
        if not fuse_proj:
            a_args.append(pp["wp"])
            a_in.append(full_spec(pp["wp"].shape))
            flops_a += 2 * N * Ho * Wo * cin_p * pp["wp"].shape[1]
            blk_a += int(pp["wp"].size) * 2
        a_out_shape += [jax.ShapeDtypeStruct((N, Ho, Wo, cout), bf16),
                        jax.ShapeDtypeStruct((N, sa, 2, cout), f32)]
        a_out += [strip_spec(Ho // sa, Wo, cout), stat_spec(cout)]
        blk_a += (Ho // sa) * Wo * cout * 2 + 2 * cout * 4
    bytes_a = (int(x.size) * 4 + sum(int(a.size) * 2 for a in a_args[1:])
               + sum(math.prod(o.shape) * jnp.dtype(o.dtype).itemsize
                     for o in a_out_shape))
    outs = pl.pallas_call(
        functools.partial(_conv1_kernel, stride=stride, has_proj=has_proj,
                          fuse_proj=fuse_proj),
        grid=(N, sa),
        in_specs=a_in,
        out_specs=tuple(a_out),
        out_shape=tuple(a_out_shape),
        compiler_params=_cparams(blk_a, 2),
        cost_estimate=pl.CostEstimate(flops=flops_a, transcendentals=0,
                                      bytes_accessed=bytes_a),
    )(*a_args)
    if has_proj:
        y1_raw, st1, proj_raw, stp = outs
    else:
        y1_raw, st1 = outs
    sc1, sh1 = _bn_scale_shift(st1, pp["g1"], pp["b1"], N * H * W)

    # ---------------- Pass B : bn1 + relu -> conv2 (3x3, stride) ----------------
    # TODO(synk): tile conv2 over halo-overlapping row strips (manual DMA) so small-N
    # batches still pipeline / balance across megacore TensorCores.
    blk_b = (H * W * cmid_p * 2 + Ho * Wo * cmid_p * 6 + int(pp["w2"].size) * 2
             + 2 * cmid_p * 4)
    scratch_b = (H + 2) * (W + 2) * cmid_p * 2
    bytes_b = ((N * H * W + N * Ho * Wo) * cmid_p * 2 + int(pp["w2"].size) * 2
               + 2 * N * 2 * cmid_p * 4)
    y2_raw, st2 = pl.pallas_call(
        functools.partial(_conv2_kernel, stride=stride),
        grid=(N,),
        in_specs=[pl.BlockSpec((1, H, W, cmid_p), lambda n: (n, 0, 0, 0)),
                  full_spec((1, cmid_p)), full_spec((1, cmid_p)),
                  full_spec(pp["w2"].shape)],
        out_specs=(pl.BlockSpec((1, Ho, Wo, cmid_p), lambda n: (n, 0, 0, 0)),
                   pl.BlockSpec((1, 2, cmid_p), lambda n: (n, 0, 0))),
        out_shape=(jax.ShapeDtypeStruct((N, Ho, Wo, cmid_p), bf16),
                   jax.ShapeDtypeStruct((N, 2, cmid_p), f32)),
        scratch_shapes=[pltpu.VMEM((H + 2, W + 2, cmid_p), bf16)],
        compiler_params=_cparams(blk_b, 1, scratch_b),
        cost_estimate=pl.CostEstimate(flops=2 * N * Ho * Wo * 9 * cmid_p * cmid_p,
                                      transcendentals=0, bytes_accessed=bytes_b),
    )(y1_raw, sc1, sh1, pp["w2"])
    sc2, sh2 = _bn_scale_shift(st2, pp["g2"], pp["b2"], N * Ho * Wo)

    # ---------------- Pass C : bn2 + relu -> conv3 (1x1) ------------------------
    blk_c = th_o * Wo * (cmid_p * 2 + cout * 2) + int(pp["w3"].size) * 2 + 2 * cout * 4
    bytes_c = N * Ho * Wo * (cmid_p + cout) * 2 + int(pp["w3"].size) * 2
    y3_raw, st3 = pl.pallas_call(
        _conv3_kernel,
        grid=(N, so),
        in_specs=[strip_spec(th_o, Wo, cmid_p), full_spec((1, cmid_p)),
                  full_spec((1, cmid_p)), full_spec(pp["w3"].shape)],
        out_specs=(strip_spec(th_o, Wo, cout), stat_spec(cout)),
        out_shape=(jax.ShapeDtypeStruct((N, Ho, Wo, cout), bf16),
                   jax.ShapeDtypeStruct((N, so, 2, cout), f32)),
        compiler_params=_cparams(blk_c, 2),
        cost_estimate=pl.CostEstimate(
            flops=2 * N * Ho * Wo * cmid_p * pp["w3"].shape[1],
            transcendentals=0, bytes_accessed=bytes_c),
    )(y2_raw, sc2, sh2, pp["w3"])
    sc3, sh3 = _bn_scale_shift(st3, pp["g3"], pp["b3"], N * Ho * Wo)

    # ---------------- Pass D : bn3 (+ bn_proj) + residual add + relu ------------
    d_args = [y3_raw, sc3, sh3]
    d_in = [strip_spec(th_o, Wo, cout), full_spec((1, cout)), full_spec((1, cout))]
    if has_proj:
        scp, shp = _bn_scale_shift(stp, pp["gp"], pp["bp"], N * Ho * Wo)
        d_args += [proj_raw, scp, shp]
        d_in += [strip_spec(th_o, Wo, cout), full_spec((1, cout)),
                 full_spec((1, cout))]
    else:
        d_args.append(x)                     # identity shortcut: raw (unpadded) x
        d_in.append(strip_spec(th_o, W, Cin))
    blk_d = th_o * Wo * cout * 8 + th_o * W * Cin * 4
    bytes_d = N * Ho * Wo * cout * 8 + (0 if has_proj else int(x.size) * 4)
    out = pl.pallas_call(
        functools.partial(_residual_kernel, has_proj=has_proj),
        grid=(N, so),
        in_specs=d_in,
        out_specs=strip_spec(th_o, Wo, cout),
        out_shape=jax.ShapeDtypeStruct((N, Ho, Wo, cout), f32),
        compiler_params=_cparams(blk_d, 2),
        cost_estimate=pl.CostEstimate(flops=4 * N * Ho * Wo * cout,
                                      transcendentals=0, bytes_accessed=bytes_d),
    )(*d_args)
    return out


def init_params(key, cin, cout, *, stride=1):
    mid = cout // 4
    k1, k2, k3, k4 = jax.random.split(key, 4)
    p = {
        "w1": jax.random.normal(k1, (cin, mid), jnp.float32) * 0.1,
        "g1": jnp.ones((1, mid), jnp.float32),
        "b1": jnp.zeros((1, mid), jnp.float32),
        "w2": jax.random.normal(k2, (3, 3, mid, mid), jnp.float32) * 0.1,
        "g2": jnp.ones((1, mid), jnp.float32),
        "b2": jnp.zeros((1, mid), jnp.float32),
        "w3": jax.random.normal(k3, (mid, cout), jnp.float32) * 0.1,
        "g3": jnp.ones((1, cout), jnp.float32),
        "b3": jnp.zeros((1, cout), jnp.float32),
    }
    if stride != 1 or cin != cout:
        p["wp"] = jax.random.normal(k4, (cin, cout), jnp.float32) * 0.1
        p["gp"] = jnp.ones((1, cout), jnp.float32)
        p["bp"] = jnp.zeros((1, cout), jnp.float32)
    return p


def reference_forward(x, params, *, stride=1, bf16_intermediates=True):
    """Pure-JAX reference of the PyTorch Bottleneck forward (training-mode BN).

    Convs use bf16 operands with f32 accumulation.  With bf16_intermediates=True the
    conv outputs are rounded to bf16 before the BN affine is applied (BN statistics
    always use the f32 values), mirroring the kernel's bf16 inter-pass activations."""
    bf16 = jnp.bfloat16

    def conv(a, w, s, padding):
        return lax.conv_general_dilated(
            a.astype(bf16), w.astype(bf16), (s, s), padding,
            dimension_numbers=("NHWC", "HWIO", "NHWC"),
            preferred_element_type=jnp.float32)

    def bn(y, g, b):
        mean = y.mean(axis=(0, 1, 2), keepdims=True)
        var = ((y - mean) ** 2).mean(axis=(0, 1, 2), keepdims=True)
        scale = g.reshape(1, 1, 1, -1) * lax.rsqrt(var + EPS)
        shift = b.reshape(1, 1, 1, -1) - mean * scale
        yq = y.astype(bf16).astype(jnp.float32) if bf16_intermediates else y
        return yq * scale + shift

    cin = x.shape[-1]
    mid = params["w1"].shape[1]
    cout = params["w3"].shape[1]

    y = conv(x, params["w1"].reshape(1, 1, cin, mid), 1, "VALID")
    y = jax.nn.relu(bn(y, params["g1"], params["b1"]))
    y = conv(y, params["w2"], stride, ((1, 1), (1, 1)))
    y = jax.nn.relu(bn(y, params["g2"], params["b2"]))
    y = conv(y, params["w3"].reshape(1, 1, mid, cout), 1, "VALID")
    y = bn(y, params["g3"], params["b3"])
    if "wp" in params:
        r = bn(conv(x, params["wp"].reshape(1, 1, cin, cout), stride, "VALID"),
               params["gp"], params["bp"])
    else:
        r = x
    return jax.nn.relu(y + r)


if __name__ == "__main__":
    key = jax.random.PRNGKey(0)
    kx, kp = jax.random.split(key)
    N, H, W = 2, 16, 16

    def run_case(cin, cout, stride):
        x = jax.random.normal(kx, (N, H, W, cin), jnp.float32)
        params = init_params(kp, cin, cout, stride=stride)
        pp = prepare_params(params, stride=stride)               # hoisted weight prep
        fwd = jax.jit(functools.partial(bottleneck_forward, stride=stride))
        out = jax.block_until_ready(fwd(x, pp))

        # Reference in the kernel's mixed-precision policy (bf16 inter-pass
        # activations).  Residual f32 rounding-order differences (MXU matmuls vs
        # lax.conv) can flip isolated bf16 roundings, so allow ~1% tolerance.
        ref = jax.block_until_ready(reference_forward(x, params, stride=stride))
        assert out.shape == ref.shape, (out.shape, ref.shape)
        err = float(jnp.max(jnp.abs(out - ref)))
        assert jnp.allclose(out, ref, atol=2e-2, rtol=2e-2), err

        # Semantic sanity vs. a full-f32-intermediate reference: the kernel output
        # stays within a few percent of the activation scale.
        ref32 = reference_forward(x, params, stride=stride, bf16_intermediates=False)
        err32 = float(jnp.max(jnp.abs(out - ref32)))
        scale = float(jnp.max(jnp.abs(ref32))) + 1.0
        assert err32 < 0.05 * scale, (err32, scale)

    # Case 1: projection shortcut (Cin != Cout), stride 1 -> fused [w1|wp] pass A.
    run_case(8, 16, 1)
    # Case 2: identity shortcut (Cin == Cout, stride 1).
    run_case(16, 16, 1)

    print("KERNEL_OK")
</pallas_src>

<mosaic_0001>
module attributes {stable_mosaic.version = 11 : i64} {
  func.func @_conv1_kernel(%arg0: i32, %arg1: i32, %arg2: memref<1x8x16x8xf32, #tpu.memory_space<vmem>>, %arg3: memref<128x256xbf16, #tpu.memory_space<vmem>>, %arg4: memref<1x8x16x128xbf16, #tpu.memory_space<vmem>>, %arg5: memref<1x1x2x128xf32, #tpu.memory_space<vmem>>, %arg6: memref<1x8x16x16xbf16, #tpu.memory_space<vmem>>, %arg7: memref<1x1x2x16xf32, #tpu.memory_space<vmem>>) attributes {dimension_semantics = [#tpu.dimension_semantics<parallel>, #tpu.dimension_semantics<parallel>], iteration_bounds = array<i64: 2, 2>, scalar_prefetch = 0 : i64, scratch_operands = 0 : i64, tpu.core_type = #tpu.core_type<tc>, window_params = [{transform_indices = @transform_0, window_bounds = array<i64: 1, 8, 16, 8>}, {pipeline_mode = #tpu.pipeline_mode<synchronous>, transform_indices = @transform_1, window_bounds = array<i64: 128, 256>}, {transform_indices = @transform_2, window_bounds = array<i64: 1, 8, 16, 128>}, {transform_indices = @transform_3, window_bounds = array<i64: 1, 1, 2, 128>}, {transform_indices = @transform_4, window_bounds = array<i64: 1, 8, 16, 16>}, {transform_indices = @transform_5, window_bounds = array<i64: 1, 1, 2, 16>}]} {
    %c0 = arith.constant 0 : index
    %c0_0 = arith.constant 0 : index
    %c0_1 = arith.constant 0 : index
    %c0_2 = arith.constant 0 : index
    %0 = vector.load %arg2[%c0, %c0_0, %c0_1, %c0_2] : memref<1x8x16x8xf32, #tpu.memory_space<vmem>>, vector<1x8x16x8xf32>
    %1 = vector.shape_cast %0 : vector<1x8x16x8xf32> to vector<8x16x8xf32>
    %2 = arith.truncf %1 : vector<8x16x8xf32> to vector<8x16x8xbf16>
    %3 = vector.shape_cast %2 : vector<8x16x8xbf16> to vector<128x8xbf16>
    %cst = arith.constant 0.000000e+00 : bf16
    %4 = vector.broadcast %cst : bf16 to vector<128x120xbf16>
    %5 = tpu.concatenate %3, %4 in 1 : vector<128x8xbf16>, vector<128x120xbf16> -> vector<128x128xbf16>
    %c0_3 = arith.constant 0 : index
    %c0_4 = arith.constant 0 : index
    %6 = vector.load %arg3[%c0_3, %c0_4] : memref<128x256xbf16, #tpu.memory_space<vmem>>, vector<128x256xbf16>
    %cst_5 = arith.constant dense<0.000000e+00> : vector<128x256xf32>
    %7 = tpu.matmul %5, %6, %cst_5 {dimension_numbers = #tpu.dot_dimension_numbers<[1], [0], [0], [1], [0, 0, 1, 1], [], []>} : vector<128x128xbf16>, vector<128x256xbf16>, vector<128x256xf32> -> vector<128x256xf32>
    %8 = vector.extract_strided_slice %7 {offsets = [0, 0], sizes = [128, 128], strides = [1, 1]} : vector<128x256xf32> to vector<128x128xf32>
    %9 = vector.extract_strided_slice %7 {offsets = [0, 128], sizes = [128, 16], strides = [1, 1]} : vector<128x256xf32> to vector<128x16xf32>
    %10 = vector.shape_cast %8 : vector<128x128xf32> to vector<8x16x128xf32>
    %11 = arith.truncf %10 : vector<8x16x128xf32> to vector<8x16x128xbf16>
    %c0_6 = arith.constant 0 : index
    %c0_7 = arith.constant 0 : index
    %c0_8 = arith.constant 0 : index
    %c0_9 = arith.constant 0 : index
    %12 = vector.load %arg4[%c0_6, %c0_7, %c0_8, %c0_9] : memref<1x8x16x128xbf16, #tpu.memory_space<vmem>>, vector<1x8x16x128xbf16>
    %13 = vector.shape_cast %12 : vector<1x8x16x128xbf16> to vector<8x16x128xbf16>
    %14 = vector.shape_cast %11 : vector<8x16x128xbf16> to vector<1x8x16x128xbf16>
    tpu.vector_store %arg4[%c0_6, %c0_7, %c0_8, %c0_9], %14 {strides = array<i32>} : memref<1x8x16x128xbf16, #tpu.memory_space<vmem>>, vector<1x8x16x128xbf16>,
    %cst_10 = arith.constant dense<0.000000e+00> : vector<128xf32>
    %15 = vector.multi_reduction <add>, %8, %cst_10 [0] : vector<128x128xf32> to vector<128xf32>
    %16 = vector.shape_cast %15 : vector<128xf32> to vector<1x128xf32>
    %17 = arith.mulf %8, %8 : vector<128x128xf32>
    %cst_11 = arith.constant dense<0.000000e+00> : vector<128xf32>
    %18 = vector.multi_reduction <add>, %17, %cst_11 [0] : vector<128x128xf32> to vector<128xf32>
    %19 = vector.shape_cast %18 : vector<128xf32> to vector<1x128xf32>
    %20 = tpu.concatenate %16, %19 in 0 : vector<1x128xf32>, vector<1x128xf32> -> vector<2x128xf32>
    %c0_12 = arith.constant 0 : index
    %c0_13 = arith.constant 0 : index
    %c0_14 = arith.constant 0 : index
    %c0_15 = arith.constant 0 : index
    %21 = vector.load %arg5[%c0_12, %c0_13, %c0_14, %c0_15] : memref<1x1x2x128xf32, #tpu.memory_space<vmem>>, vector<1x1x2x128xf32>
    %22 = vector.shape_cast %21 : vector<1x1x2x128xf32> to vector<2x128xf32>
    %23 = vector.shape_cast %20 : vector<2x128xf32> to vector<1x1x2x128xf32>
    tpu.vector_store %arg5[%c0_12, %c0_13, %c0_14, %c0_15], %23 {strides = array<i32>} : memref<1x1x2x128xf32, #tpu.memory_space<vmem>>, vector<1x1x2x128xf32>,
    %24 = vector.shape_cast %9 : vector<128x16xf32> to vector<8x16x16xf32>
    %25 = arith.truncf %24 : vector<8x16x16xf32> to vector<8x16x16xbf16>
    %c0_16 = arith.constant 0 : index
    %c0_17 = arith.constant 0 : index
    %c0_18 = arith.constant 0 : index
    %c0_19 = arith.constant 0 : index
    %26 = vector.load %arg6[%c0_16, %c0_17, %c0_18, %c0_19] : memref<1x8x16x16xbf16, #tpu.memory_space<vmem>>, vector<1x8x16x16xbf16>
    %27 = vector.shape_cast %26 : vector<1x8x16x16xbf16> to vector<8x16x16xbf16>
    %28 = vector.shape_cast %25 : vector<8x16x16xbf16> to vector<1x8x16x16xbf16>
    tpu.vector_store %arg6[%c0_16, %c0_17, %c0_18, %c0_19], %28 {strides = array<i32>} : memref<1x8x16x16xbf16, #tpu.memory_space<vmem>>, vector<1x8x16x16xbf16>,
    %cst_20 = arith.constant dense<0.000000e+00> : vector<16xf32>
    %29 = vector.multi_reduction <add>, %9, %cst_20 [0] : vector<128x16xf32> to vector<16xf32>
    %30 = vector.shape_cast %29 : vector<16xf32> to vector<1x16xf32>
    %31 = arith.mulf %9, %9 : vector<128x16xf32>
    %cst_21 = arith.constant dense<0.000000e+00> : vector<16xf32>
    %32 = vector.multi_reduction <add>, %31, %cst_21 [0] : vector<128x16xf32> to vector<16xf32>
    %33 = vector.shape_cast %32 : vector<16xf32> to vector<1x16xf32>
    %34 = tpu.concatenate %30, %33 in 0 : vector<1x16xf32>, vector<1x16xf32> -> vector<2x16xf32>
    %c0_22 = arith.constant 0 : index
    %c0_23 = arith.constant 0 : index
    %c0_24 = arith.constant 0 : index
    %c0_25 = arith.constant 0 : index
    %35 = vector.load %arg7[%c0_22, %c0_23, %c0_24, %c0_25] : memref<1x1x2x16xf32, #tpu.memory_space<vmem>>, vector<1x1x2x16xf32>
    %36 = vector.shape_cast %35 : vector<1x1x2x16xf32> to vector<2x16xf32>
    %37 = vector.shape_cast %34 : vector<2x16xf32> to vector<1x1x2x16xf32>
    tpu.vector_store %arg7[%c0_22, %c0_23, %c0_24, %c0_25], %37 {strides = array<i32>} : memref<1x1x2x16xf32, #tpu.memory_space<vmem>>, vector<1x1x2x16xf32>,
    return
  }
  func.func @transform_0(%arg0: i32, %arg1: i32) -> (i32, i32, i32, i32) {
    %c0_i32 = arith.constant 0 : i32
    %c0_i32_0 = arith.constant 0 : i32
    %c0_i32_1 = arith.constant 0 : i32
    return %arg0, %arg1, %c0_i32, %c0_i32_0 : i32, i32, i32, i32
  }
  func.func @transform_1(%arg0: i32, %arg1: i32) -> (i32, i32) {
    %c0_i32 = arith.constant 0 : i32
    %c0_i32_0 = arith.constant 0 : i32
    %c0_i32_1 = arith.constant 0 : i32
    return %c0_i32, %c0_i32_0 : i32, i32
  }
  func.func @transform_2(%arg0: i32, %arg1: i32) -> (i32, i32, i32, i32) {
    %c0_i32 = arith.constant 0 : i32
    %c0_i32_0 = arith.constant 0 : i32
    %c0_i32_1 = arith.constant 0 : i32
    return %arg0, %arg1, %c0_i32, %c0_i32_0 : i32, i32, i32, i32
  }
  func.func @transform_3(%arg0: i32, %arg1: i32) -> (i32, i32, i32, i32) {
    %c0_i32 = arith.constant 0 : i32
    %c0_i32_0 = arith.constant 0 : i32
    %c0_i32_1 = arith.constant 0 : i32
    return %arg0, %arg1, %c0_i32, %c0_i32_0 : i32, i32, i32, i32
  }
  func.func @transform_4(%arg0: i32, %arg1: i32) -> (i32, i32, i32, i32) {
    %c0_i32 = arith.constant 0 : i32
    %c0_i32_0 = arith.constant 0 : i32
    %c0_i32_1 = arith.constant 0 : i32
    return %arg0, %arg1, %c0_i32, %c0_i32_0 : i32, i32, i32, i32
  }
  func.func @transform_5(%arg0: i32, %arg1: i32) -> (i32, i32, i32, i32) {
    %c0_i32 = arith.constant 0 : i32
    %c0_i32_0 = arith.constant 0 : i32
    %c0_i32_1 = arith.constant 0 : i32
    return %arg0, %arg1, %c0_i32, %c0_i32_0 : i32, i32, i32, i32
  }
}

module attributes {stable_mosaic.version = 11 : i64} {
  func.func @_conv2_kernel(%arg0: i32, %arg1: memref<1x16x16x128xbf16, #tpu.memory_space<vmem>>, %arg2: memref<1x128xf32, #tpu.memory_space<vmem>>, %arg3: memref<1x128xf32, #tpu.memory_space<vmem>>, %arg4: memref<9x128x128xbf16, #tpu.memory_space<vmem>>, %arg5: memref<1x16x16x128xbf16, #tpu.memory_space<vmem>>, %arg6: memref<1x2x128xf32, #tpu.memory_space<vmem>>, %arg7: memref<18x18x128xbf16, #tpu.memory_space<vmem>>) attributes {dimension_semantics = [#tpu.dimension_semantics<parallel>], iteration_bounds = array<i64: 2>, scalar_prefetch = 0 : i64, scratch_operands = 1 : i64, tpu.core_type = #tpu.core_type<tc>, window_params = [{transform_indices = @transform_0, window_bounds = array<i64: 1, 16, 16, 128>}, {pipeline_mode = #tpu.pipeline_mode<synchronous>, transform_indices = @transform_1, window_bounds = array<i64: 1, 128>}, {pipeline_mode = #tpu.pipeline_mode<synchronous>, transform_indices = @transform_2, window_bounds = array<i64: 1, 128>}, {pipeline_mode = #tpu.pipeline_mode<synchronous>, transform_indices = @transform_3, window_bounds = array<i64: 9, 128, 128>}, {transform_indices = @transform_4, window_bounds = array<i64: 1, 16, 16, 128>}, {transform_indices = @transform_5, window_bounds = array<i64: 1, 2, 128>}]} {
    %c0 = arith.constant 0 : index
    %c0_0 = arith.constant 0 : index
    %c0_1 = arith.constant 0 : index
    %c0_2 = arith.constant 0 : index
    %0 = vector.load %arg1[%c0, %c0_0, %c0_1, %c0_2] : memref<1x16x16x128xbf16, #tpu.memory_space<vmem>>, vector<1x16x16x128xbf16>
    %1 = vector.shape_cast %0 : vector<1x16x16x128xbf16> to vector<16x16x128xbf16>
    %c0_3 = arith.constant 0 : index
    %c0_4 = arith.constant 0 : index
    %2 = vector.load %arg2[%c0_3, %c0_4] : memref<1x128xf32, #tpu.memory_space<vmem>>, vector<1x128xf32>
    %3 = arith.extf %1 : vector<16x16x128xbf16> to vector<16x16x128xf32>
    %4 = vector.shape_cast %2 : vector<1x128xf32> to vector<1x1x128xf32>
    %5 = vector.broadcast %4 : vector<1x1x128xf32> to vector<16x16x128xf32>
    %6 = arith.mulf %3, %5 : vector<16x16x128xf32>
    %c0_5 = arith.constant 0 : index
    %c0_6 = arith.constant 0 : index
    %7 = vector.load %arg3[%c0_5, %c0_6] : memref<1x128xf32, #tpu.memory_space<vmem>>, vector<1x128xf32>
    %8 = vector.shape_cast %7 : vector<1x128xf32> to vector<1x1x128xf32>
    %9 = vector.broadcast %8 : vector<1x1x128xf32> to vector<16x16x128xf32>
    %10 = arith.addf %6, %9 : vector<16x16x128xf32>
    %cst = arith.constant 0.000000e+00 : f32
    %11 = vector.broadcast %cst : f32 to vector<16x16x128xf32>
    %12 = arith.maximumf %10, %11 : vector<16x16x128xf32>
    %13 = arith.truncf %12 : vector<16x16x128xf32> to vector<16x16x128xbf16>
    %cst_7 = arith.constant 0.000000e+00 : bf16
    %14 = vector.broadcast %cst_7 : bf16 to vector<16x1x128xbf16>
    %cst_8 = arith.constant 0.000000e+00 : bf16
    %15 = vector.broadcast %cst_8 : bf16 to vector<1x18x128xbf16>
    %16 = tpu.concatenate %14, %13, %14 in 1 : vector<16x1x128xbf16>, vector<16x16x128xbf16>, vector<16x1x128xbf16> -> vector<16x18x128xbf16>
    %c1 = arith.constant 1 : index
    %c0_9 = arith.constant 0 : index
    %c0_10 = arith.constant 0 : index
    %17 = vector.load %arg7[%c1, %c0_9, %c0_10] : memref<18x18x128xbf16, #tpu.memory_space<vmem>>, vector<16x18x128xbf16>
    tpu.vector_store %arg7[%c1, %c0_9, %c0_10], %16 {strides = array<i32>} : memref<18x18x128xbf16, #tpu.memory_space<vmem>>, vector<16x18x128xbf16>,
    %c0_11 = arith.constant 0 : index
    %c0_12 = arith.constant 0 : index
    %c0_13 = arith.constant 0 : index
    %18 = vector.load %arg7[%c0_11, %c0_12, %c0_13] : memref<18x18x128xbf16, #tpu.memory_space<vmem>>, vector<1x18x128xbf16>
    tpu.vector_store %arg7[%c0_11, %c0_12, %c0_13], %15 {strides = array<i32>} : memref<18x18x128xbf16, #tpu.memory_space<vmem>>, vector<1x18x128xbf16>,
    %c17 = arith.constant 17 : index
    %c0_14 = arith.constant 0 : index
    %c0_15 = arith.constant 0 : index
    %19 = vector.load %arg7[%c17, %c0_14, %c0_15] : memref<18x18x128xbf16, #tpu.memory_space<vmem>>, vector<1x18x128xbf16>
    tpu.vector_store %arg7[%c17, %c0_14, %c0_15], %15 {strides = array<i32>} : memref<18x18x128xbf16, #tpu.memory_space<vmem>>, vector<1x18x128xbf16>,
    %cst_16 = arith.constant 0.000000e+00 : f32
    %20 = vector.broadcast %cst_16 : f32 to vector<256x128xf32>
    %c0_17 = arith.constant 0 : index
    %c0_18 = arith.constant 0 : index
    %c0_19 = arith.constant 0 : index
    %21 = vector.load %arg7[%c0_17, %c0_18, %c0_19] : memref<18x18x128xbf16, #tpu.memory_space<vmem>>, vector<16x16x128xbf16>
    %22 = vector.shape_cast %21 : vector<16x16x128xbf16> to vector<256x128xbf16>
    %c0_20 = arith.constant 0 : index
    %c0_21 = arith.constant 0 : index
    %c0_22 = arith.constant 0 : index
    %23 = vector.load %arg4[%c0_20, %c0_21, %c0_22] : memref<9x128x128xbf16, #tpu.memory_space<vmem>>, vector<1x128x128xbf16>
    %24 = vector.shape_cast %23 : vector<1x128x128xbf16> to vector<128x128xbf16>
    %cst_23 = arith.constant dense<0.000000e+00> : vector<256x128xf32>
    %25 = tpu.matmul %22, %24, %cst_23 {dimension_numbers = #tpu.dot_dimension_numbers<[1], [0], [0], [1], [0, 0, 1, 1], [], []>} : vector<256x128xbf16>, vector<128x128xbf16>, vector<256x128xf32> -> vector<256x128xf32>
    %26 = arith.addf %20, %25 : vector<256x128xf32>
    %c0_24 = arith.constant 0 : index
    %c1_25 = arith.constant 1 : index
    %c0_26 = arith.constant 0 : index
    %27 = vector.load %arg7[%c0_24, %c1_25, %c0_26] : memref<18x18x128xbf16, #tpu.memory_space<vmem>>, vector<16x16x128xbf16>
    %28 = vector.shape_cast %27 : vector<16x16x128xbf16> to vector<256x128xbf16>
    %c1_27 = arith.constant 1 : index
    %c0_28 = arith.constant 0 : index
    %c0_29 = arith.constant 0 : index
    %29 = vector.load %arg4[%c1_27, %c0_28, %c0_29] : memref<9x128x128xbf16, #tpu.memory_space<vmem>>, vector<1x128x128xbf16>
    %30 = vector.shape_cast %29 : vector<1x128x128xbf16> to vector<128x128xbf16>
    %cst_30 = arith.constant dense<0.000000e+00> : vector<256x128xf32>
    %31 = tpu.matmul %28, %30, %cst_30 {dimension_numbers = #tpu.dot_dimension_numbers<[1], [0], [0], [1], [0, 0, 1, 1], [], []>} : vector<256x128xbf16>, vector<128x128xbf16>, vector<256x128xf32> -> vector<256x128xf32>
    %32 = arith.addf %26, %31 : vector<256x128xf32>
    %c0_31 = arith.constant 0 : index
    %c2 = arith.constant 2 : index
    %c0_32 = arith.constant 0 : index
    %33 = vector.load %arg7[%c0_31, %c2, %c0_32] : memref<18x18x128xbf16, #tpu.memory_space<vmem>>, vector<16x16x128xbf16>
    %34 = vector.shape_cast %33 : vector<16x16x128xbf16> to vector<256x128xbf16>
    %c2_33 = arith.constant 2 : index
    %c0_34 = arith.constant 0 : index
    %c0_35 = arith.constant 0 : index
    %35 = vector.load %arg4[%c2_33, %c0_34, %c0_35] : memref<9x128x128xbf16, #tpu.memory_space<vmem>>, vector<1x128x128xbf16>
    %36 = vector.shape_cast %35 : vector<1x128x128xbf16> to vector<128x128xbf16>
    %cst_36 = arith.constant dense<0.000000e+00> : vector<256x128xf32>
    %37 = tpu.matmul %34, %36, %cst_36 {dimension_numbers = #tpu.dot_dimension_numbers<[1], [0], [0], [1], [0, 0, 1, 1], [], []>} : vector<256x128xbf16>, vector<128x128xbf16>, vector<256x128xf32> -> vector<256x128xf32>
    %38 = arith.addf %32, %37 : vector<256x128xf32>
    %c1_37 = arith.constant 1 : index
    %c0_38 = arith.constant 0 : index
    %c0_39 = arith.constant 0 : index
    %39 = vector.load %arg7[%c1_37, %c0_38, %c0_39] : memref<18x18x128xbf16, #tpu.memory_space<vmem>>, vector<16x16x128xbf16>
    %40 = vector.shape_cast %39 : vector<16x16x128xbf16> to vector<256x128xbf16>
    %c3 = arith.constant 3 : index
    %c0_40 = arith.constant 0 : index
    %c0_41 = arith.constant 0 : index
    %41 = vector.load %arg4[%c3, %c0_40, %c0_41] : memref<9x128x128xbf16, #tpu.memory_space<vmem>>, vector<1x128x128xbf16>
    %42 = vector.shape_cast %41 : vector<1x128x128xbf16> to vector<128x128xbf16>
    %cst_42 = arith.constant dense<0.000000e+00> : vector<256x128xf32>
    %43 = tpu.matmul %40, %42, %cst_42 {dimension_numbers = #tpu.dot_dimension_numbers<[1], [0], [0], [1], [0, 0, 1, 1], [], []>} : vector<256x128xbf16>, vector<128x128xbf16>, vector<256x128xf32> -> vector<256x128xf32>
    %44 = arith.addf %38, %43 : vector<256x128xf32>
    %c1_43 = arith.constant 1 : index
    %c1_44 = arith.constant 1 : index
    %c0_45 = arith.constant 0 : index
    %45 = vector.load %arg7[%c1_43, %c1_44, %c0_45] : memref<18x18x128xbf16, #tpu.memory_space<vmem>>, vector<16x16x128xbf16>
    %46 = vector.shape_cast %45 : vector<16x16x128xbf16> to vector<256x128xbf16>
    %c4 = arith.constant 4 : index
    %c0_46 = arith.constant 0 : index
    %c0_47 = arith.constant 0 : index
    %47 = vector.load %arg4[%c4, %c0_46, %c0_47] : memref<9x128x128xbf16, #tpu.memory_space<vmem>>, vector<1x128x128xbf16>
    %48 = vector.shape_cast %47 : vector<1x128x128xbf16> to vector<128x128xbf16>
    %cst_48 = arith.constant dense<0.000000e+00> : vector<256x128xf32>
    %49 = tpu.matmul %46, %48, %cst_48 {dimension_numbers = #tpu.dot_dimension_numbers<[1], [0], [0], [1], [0, 0, 1, 1], [], []>} : vector<256x128xbf16>, vector<128x128xbf16>, vector<256x128xf32> -> vector<256x128xf32>
    %50 = arith.addf %44, %49 : vector<256x128xf32>
    %c1_49 = arith.constant 1 : index
    %c2_50 = arith.constant 2 : index
    %c0_51 = arith.constant 0 : index
    %51 = vector.load %arg7[%c1_49, %c2_50, %c0_51] : memref<18x18x128xbf16, #tpu.memory_space<vmem>>, vector<16x16x128xbf16>
    %52 = vector.shape_cast %51 : vector<16x16x128xbf16> to vector<256x128xbf16>
    %c5 = arith.constant 5 : index
    %c0_52 = arith.constant 0 : index
    %c0_53 = arith.constant 0 : index
    %53 = vector.load %arg4[%c5, %c0_52, %c0_53] : memref<9x128x128xbf16, #tpu.memory_space<vmem>>, vector<1x128x128xbf16>
    %54 = vector.shape_cast %53 : vector<1x128x128xbf16> to vector<128x128xbf16>
    %cst_54 = arith.constant dense<0.000000e+00> : vector<256x128xf32>
    %55 = tpu.matmul %52, %54, %cst_54 {dimension_numbers = #tpu.dot_dimension_numbers<[1], [0], [0], [1], [0, 0, 1, 1], [], []>} : vector<256x128xbf16>, vector<128x128xbf16>, vector<256x128xf32> -> vector<256x128xf32>
    %56 = arith.addf %50, %55 : vector<256x128xf32>
    %c2_55 = arith.constant 2 : index
    %c0_56 = arith.constant 0 : index
    %c0_57 = arith.constant 0 : index
    %57 = vector.load %arg7[%c2_55, %c0_56, %c0_57] : memref<18x18x128xbf16, #tpu.memory_space<vmem>>, vector<16x16x128xbf16>
    %58 = vector.shape_cast %57 : vector<16x16x128xbf16> to vector<256x128xbf16>
    %c6 = arith.constant 6 : index
    %c0_58 = arith.constant 0 : index
    %c0_59 = arith.constant 0 : index
    %59 = vector.load %arg4[%c6, %c0_58, %c0_59] : memref<9x128x128xbf16, #tpu.memory_space<vmem>>, vector<1x128x128xbf16>
    %60 = vector.shape_cast %59 : vector<1x128x128xbf16> to vector<128x128xbf16>
    %cst_60 = arith.constant dense<0.000000e+00> : vector<256x128xf32>
    %61 = tpu.matmul %58, %60, %cst_60 {dimension_numbers = #tpu.dot_dimension_numbers<[1], [0], [0], [1], [0, 0, 1, 1], [], []>} : vector<256x128xbf16>, vector<128x128xbf16>, vector<256x128xf32> -> vector<256x128xf32>
    %62 = arith.addf %56, %61 : vector<256x128xf32>
    %c2_61 = arith.constant 2 : index
    %c1_62 = arith.constant 1 : index
    %c0_63 = arith.constant 0 : index
    %63 = vector.load %arg7[%c2_61, %c1_62, %c0_63] : memref<18x18x128xbf16, #tpu.memory_space<vmem>>, vector<16x16x128xbf16>
    %64 = vector.shape_cast %63 : vector<16x16x128xbf16> to vector<256x128xbf16>
    %c7 = arith.constant 7 : index
    %c0_64 = arith.constant 0 : index
    %c0_65 = arith.constant 0 : index
    %65 = vector.load %arg4[%c7, %c0_64, %c0_65] : memref<9x128x128xbf16, #tpu.memory_space<vmem>>, vector<1x128x128xbf16>
    %66 = vector.shape_cast %65 : vector<1x128x128xbf16> to vector<128x128xbf16>
    %cst_66 = arith.constant dense<0.000000e+00> : vector<256x128xf32>
    %67 = tpu.matmul %64, %66, %cst_66 {dimension_numbers = #tpu.dot_dimension_numbers<[1], [0], [0], [1], [0, 0, 1, 1], [], []>} : vector<256x128xbf16>, vector<128x128xbf16>, vector<256x128xf32> -> vector<256x128xf32>
    %68 = arith.addf %62, %67 : vector<256x128xf32>
    %c2_67 = arith.constant 2 : index
    %c2_68 = arith.constant 2 : index
    %c0_69 = arith.constant 0 : index
    %69 = vector.load %arg7[%c2_67, %c2_68, %c0_69] : memref<18x18x128xbf16, #tpu.memory_space<vmem>>, vector<16x16x128xbf16>
    %70 = vector.shape_cast %69 : vector<16x16x128xbf16> to vector<256x128xbf16>
    %c8 = arith.constant 8 : index
    %c0_70 = arith.constant 0 : index
    %c0_71 = arith.constant 0 : index
    %71 = vector.load %arg4[%c8, %c0_70, %c0_71] : memref<9x128x128xbf16, #tpu.memory_space<vmem>>, vector<1x128x128xbf16>
    %72 = vector.shape_cast %71 : vector<1x128x128xbf16> to vector<128x128xbf16>
    %cst_72 = arith.constant dense<0.000000e+00> : vector<256x128xf32>
    %73 = tpu.matmul %70, %72, %cst_72 {dimension_numbers = #tpu.dot_dimension_numbers<[1], [0], [0], [1], [0, 0, 1, 1], [], []>} : vector<256x128xbf16>, vector<128x128xbf16>, vector<256x128xf32> -> vector<256x128xf32>
    %74 = arith.addf %68, %73 : vector<256x128xf32>
    %75 = vector.shape_cast %74 : vector<256x128xf32> to vector<16x16x128xf32>
    %76 = arith.truncf %75 : vector<16x16x128xf32> to vector<16x16x128xbf16>
    %c0_73 = arith.constant 0 : index
    %c0_74 = arith.constant 0 : index
    %c0_75 = arith.constant 0 : index
    %c0_76 = arith.constant 0 : index
    %77 = vector.load %arg5[%c0_73, %c0_74, %c0_75, %c0_76] : memref<1x16x16x128xbf16, #tpu.memory_space<vmem>>, vector<1x16x16x128xbf16>
    %78 = vector.shape_cast %77 : vector<1x16x16x128xbf16> to vector<16x16x128xbf16>
    %79 = vector.shape_cast %76 : vector<16x16x128xbf16> to vector<1x16x16x128xbf16>
    tpu.vector_store %arg5[%c0_73, %c0_74, %c0_75, %c0_76], %79 {strides = array<i32>} : memref<1x16x16x128xbf16, #tpu.memory_space<vmem>>, vector<1x16x16x128xbf16>,
    %cst_77 = arith.constant dense<0.000000e+00> : vector<128xf32>
    %80 = vector.multi_reduction <add>, %74, %cst_77 [0] : vector<256x128xf32> to vector<128xf32>
    %81 = vector.shape_cast %80 : vector<128xf32> to vector<1x128xf32>
    %82 = arith.mulf %74, %74 : vector<256x128xf32>
    %cst_78 = arith.constant dense<0.000000e+00> : vector<128xf32>
    %83 = vector.multi_reduction <add>, %82, %cst_78 [0] : vector<256x128xf32> to vector<128xf32>
    %84 = vector.shape_cast %83 : vector<128xf32> to vector<1x128xf32>
    %85 = tpu.concatenate %81, %84 in 0 : vector<1x128xf32>, vector<1x128xf32> -> vector<2x128xf32>
    %c0_79 = arith.constant 0 : index
    %c0_80 = arith.constant 0 : index
    %c0_81 = arith.constant 0 : index
    %86 = vector.load %arg6[%c0_79, %c0_80, %c0_81] : memref<1x2x128xf32, #tpu.memory_space<vmem>>, vector<1x2x128xf32>
    %87 = vector.shape_cast %86 : vector<1x2x128xf32> to vector<2x128xf32>
    %88 = vector.shape_cast %85 : vector<2x128xf32> to vector<1x2x128xf32>
    tpu.vector_store %arg6[%c0_79, %c0_80, %c0_81], %88 {strides = array<i32>} : memref<1x2x128xf32, #tpu.memory_space<vmem>>, vector<1x2x128xf32>,
    return
  }
  func.func @transform_0(%arg0: i32) -> (i32, i32, i32, i32) {
    %c0_i32 = arith.constant 0 : i32
    %c0_i32_0 = arith.constant 0 : i32
    %c0_i32_1 = arith.constant 0 : i32
    %c0_i32_2 = arith.constant 0 : i32
    return %arg0, %c0_i32, %c0_i32_0, %c0_i32_1 : i32, i32, i32, i32
  }
  func.func @transform_1(%arg0: i32) -> (i32, i32) {
    %c0_i32 = arith.constant 0 : i32
    %c0_i32_0 = arith.constant 0 : i32
    %c0_i32_1 = arith.constant 0 : i32
    return %c0_i32, %c0_i32_0 : i32, i32
  }
  func.func @transform_2(%arg0: i32) -> (i32, i32) {
    %c0_i32 = arith.constant 0 : i32
    %c0_i32_0 = arith.constant 0 : i32
    %c0_i32_1 = arith.constant 0 : i32
    return %c0_i32, %c0_i32_0 : i32, i32
  }
  func.func @transform_3(%arg0: i32) -> (i32, i32, i32) {
    %c0_i32 = arith.constant 0 : i32
    %c0_i32_0 = arith.constant 0 : i32
    %c0_i32_1 = arith.constant 0 : i32
    %c0_i32_2 = arith.constant 0 : i32
    return %c0_i32, %c0_i32_0, %c0_i32_1 : i32, i32, i32
  }
  func.func @transform_4(%arg0: i32) -> (i32, i32, i32, i32) {
    %c0_i32 = arith.constant 0 : i32
    %c0_i32_0 = arith.constant 0 : i32
    %c0_i32_1 = arith.constant 0 : i32
    %c0_i32_2 = arith.constant 0 : i32
    return %arg0, %c0_i32, %c0_i32_0, %c0_i32_1 : i32, i32, i32, i32
  }
  func.func @transform_5(%arg0: i32) -> (i32, i32, i32) {
    %c0_i32 = arith.constant 0 : i32
    %c0_i32_0 = arith.constant 0 : i32
    %c0_i32_1 = arith.constant 0 : i32
    return %arg0, %c0_i32, %c0_i32_0 : i32, i32, i32
  }
}

module attributes {stable_mosaic.version = 11 : i64} {
  func.func @_residual_kernel(%arg0: i32, %arg1: i32, %arg2: memref<1x8x16x16xbf16, #tpu.memory_space<vmem>>, %arg3: memref<1x16xf32, #tpu.memory_space<vmem>>, %arg4: memref<1x16xf32, #tpu.memory_space<vmem>>, %arg5: memref<1x8x16x16xbf16, #tpu.memory_space<vmem>>, %arg6: memref<1x16xf32, #tpu.memory_space<vmem>>, %arg7: memref<1x16xf32, #tpu.memory_space<vmem>>, %arg8: memref<1x8x16x16xf32, #tpu.memory_space<vmem>>) attributes {dimension_semantics = [#tpu.dimension_semantics<parallel>, #tpu.dimension_semantics<parallel>], iteration_bounds = array<i64: 2, 2>, scalar_prefetch = 0 : i64, scratch_operands = 0 : i64, tpu.core_type = #tpu.core_type<tc>, window_params = [{transform_indices = @transform_0, window_bounds = array<i64: 1, 8, 16, 16>}, {pipeline_mode = #tpu.pipeline_mode<synchronous>, transform_indices = @transform_1, window_bounds = array<i64: 1, 16>}, {pipeline_mode = #tpu.pipeline_mode<synchronous>, transform_indices = @transform_2, window_bounds = array<i64: 1, 16>}, {transform_indices = @transform_3, window_bounds = array<i64: 1, 8, 16, 16>}, {pipeline_mode = #tpu.pipeline_mode<synchronous>, transform_indices = @transform_4, window_bounds = array<i64: 1, 16>}, {pipeline_mode = #tpu.pipeline_mode<synchronous>, transform_indices = @transform_5, window_bounds = array<i64: 1, 16>}, {transform_indices = @transform_6, window_bounds = array<i64: 1, 8, 16, 16>}]} {
    %c0 = arith.constant 0 : index
    %c0_0 = arith.constant 0 : index
    %c0_1 = arith.constant 0 : index
    %c0_2 = arith.constant 0 : index
    %0 = vector.load %arg5[%c0, %c0_0, %c0_1, %c0_2] : memref<1x8x16x16xbf16, #tpu.memory_space<vmem>>, vector<1x8x16x16xbf16>
    %1 = vector.shape_cast %0 : vector<1x8x16x16xbf16> to vector<8x16x16xbf16>
    %c0_3 = arith.constant 0 : index
    %c0_4 = arith.constant 0 : index
    %2 = vector.load %arg6[%c0_3, %c0_4] : memref<1x16xf32, #tpu.memory_space<vmem>>, vector<1x16xf32>
    %3 = arith.extf %1 : vector<8x16x16xbf16> to vector<8x16x16xf32>
    %4 = vector.shape_cast %2 : vector<1x16xf32> to vector<1x1x16xf32>
    %5 = vector.broadcast %4 : vector<1x1x16xf32> to vector<8x16x16xf32>
    %6 = arith.mulf %3, %5 : vector<8x16x16xf32>
    %c0_5 = arith.constant 0 : index
    %c0_6 = arith.constant 0 : index
    %7 = vector.load %arg7[%c0_5, %c0_6] : memref<1x16xf32, #tpu.memory_space<vmem>>, vector<1x16xf32>
    %8 = vector.shape_cast %7 : vector<1x16xf32> to vector<1x1x16xf32>
    %9 = vector.broadcast %8 : vector<1x1x16xf32> to vector<8x16x16xf32>
    %10 = arith.addf %6, %9 : vector<8x16x16xf32>
    %c0_7 = arith.constant 0 : index
    %c0_8 = arith.constant 0 : index
    %c0_9 = arith.constant 0 : index
    %c0_10 = arith.constant 0 : index
    %11 = vector.load %arg2[%c0_7, %c0_8, %c0_9, %c0_10] : memref<1x8x16x16xbf16, #tpu.memory_space<vmem>>, vector<1x8x16x16xbf16>
    %12 = vector.shape_cast %11 : vector<1x8x16x16xbf16> to vector<8x16x16xbf16>
    %c0_11 = arith.constant 0 : index
    %c0_12 = arith.constant 0 : index
    %13 = vector.load %arg3[%c0_11, %c0_12] : memref<1x16xf32, #tpu.memory_space<vmem>>, vector<1x16xf32>
    %14 = arith.extf %12 : vector<8x16x16xbf16> to vector<8x16x16xf32>
    %15 = vector.shape_cast %13 : vector<1x16xf32> to vector<1x1x16xf32>
    %16 = vector.broadcast %15 : vector<1x1x16xf32> to vector<8x16x16xf32>
    %17 = arith.mulf %14, %16 : vector<8x16x16xf32>
    %c0_13 = arith.constant 0 : index
    %c0_14 = arith.constant 0 : index
    %18 = vector.load %arg4[%c0_13, %c0_14] : memref<1x16xf32, #tpu.memory_space<vmem>>, vector<1x16xf32>
    %19 = vector.shape_cast %18 : vector<1x16xf32> to vector<1x1x16xf32>
    %20 = vector.broadcast %19 : vector<1x1x16xf32> to vector<8x16x16xf32>
    %21 = arith.addf %17, %20 : vector<8x16x16xf32>
    %22 = arith.addf %21, %10 : vector<8x16x16xf32>
    %cst = arith.constant 0.000000e+00 : f32
    %23 = vector.broadcast %cst : f32 to vector<8x16x16xf32>
    %24 = arith.maximumf %22, %23 : vector<8x16x16xf32>
    %c0_15 = arith.constant 0 : index
    %c0_16 = arith.constant 0 : index
    %c0_17 = arith.constant 0 : index
    %c0_18 = arith.constant 0 : index
    %25 = vector.load %arg8[%c0_15, %c0_16, %c0_17, %c0_18] : memref<1x8x16x16xf32, #tpu.memory_space<vmem>>, vector<1x8x16x16xf32>
    %26 = vector.shape_cast %25 : vector<1x8x16x16xf32> to vector<8x16x16xf32>
    %27 = vector.shape_cast %24 : vector<8x16x16xf32> to vector<1x8x16x16xf32>
    tpu.vector_store %arg8[%c0_15, %c0_16, %c0_17, %c0_18], %27 {strides = array<i32>} : memref<1x8x16x16xf32, #tpu.memory_space<vmem>>, vector<1x8x16x16xf32>,
    return
  }
  func.func @transform_0(%arg0: i32, %arg1: i32) -> (i32, i32, i32, i32) {
    %c0_i32 = arith.constant 0 : i32
    %c0_i32_0 = arith.constant 0 : i32
    %c0_i32_1 = arith.constant 0 : i32
    return %arg0, %arg1, %c0_i32, %c0_i32_0 : i32, i32, i32, i32
  }
  func.func @transform_1(%arg0: i32, %arg1: i32) -> (i32, i32) {
    %c0_i32 = arith.constant 0 : i32
    %c0_i32_0 = arith.constant 0 : i32
    %c0_i32_1 = arith.constant 0 : i32
    return %c0_i32, %c0_i32_0 : i32, i32
  }
  func.func @transform_2(%arg0: i32, %arg1: i32) -> (i32, i32) {
    %c0_i32 = arith.constant 0 : i32
    %c0_i32_0 = arith.constant 0 : i32
    %c0_i32_1 = arith.constant 0 : i32
    return %c0_i32, %c0_i32_0 : i32, i32
  }
  func.func @transform_3(%arg0: i32, %arg1: i32) -> (i32, i32, i32, i32) {
    %c0_i32 = arith.constant 0 : i32
    %c0_i32_0 = arith.constant 0 : i32
    %c0_i32_1 = arith.constant 0 : i32
    return %arg0, %arg1, %c0_i32, %c0_i32_0 : i32, i32, i32, i32
  }
  func.func @transform_4(%arg0: i32, %arg1: i32) -> (i32, i32) {
    %c0_i32 = arith.constant 0 : i32
    %c0_i32_0 = arith.constant 0 : i32
    %c0_i32_1 = arith.constant 0 : i32
    return %c0_i32, %c0_i32_0 : i32, i32
  }
  func.func @transform_5(%arg0: i32, %arg1: i32) -> (i32, i32) {
    %c0_i32 = arith.constant 0 : i32
    %c0_i32_0 = arith.constant 0 : i32
    %c0_i32_1 = arith.constant 0 : i32
    return %c0_i32, %c0_i32_0 : i32, i32
  }
  func.func @transform_6(%arg0: i32, %arg1: i32) -> (i32, i32, i32, i32) {
    %c0_i32 = arith.constant 0 : i32
    %c0_i32_0 = arith.constant 0 : i32
    %c0_i32_1 = arith.constant 0 : i32
    return %arg0, %arg1, %c0_i32, %c0_i32_0 : i32, i32, i32, i32
  }
}

module attributes {stable_mosaic.version = 11 : i64} {
  func.func @_conv3_kernel(%arg0: i32, %arg1: i32, %arg2: memref<1x8x16x128xbf16, #tpu.memory_space<vmem>>, %arg3: memref<1x128xf32, #tpu.memory_space<vmem>>, %arg4: memref<1x128xf32, #tpu.memory_space<vmem>>, %arg5: memref<128x128xbf16, #tpu.memory_space<vmem>>, %arg6: memref<1x8x16x16xbf16, #tpu.memory_space<vmem>>, %arg7: memref<1x1x2x16xf32, #tpu.memory_space<vmem>>) attributes {dimension_semantics = [#tpu.dimension_semantics<parallel>, #tpu.dimension_semantics<parallel>], iteration_bounds = array<i64: 2, 2>, scalar_prefetch = 0 : i64, scratch_operands = 0 : i64, tpu.core_type = #tpu.core_type<tc>, window_params = [{transform_indices = @transform_0, window_bounds = array<i64: 1, 8, 16, 128>}, {pipeline_mode = #tpu.pipeline_mode<synchronous>, transform_indices = @transform_1, window_bounds = array<i64: 1, 128>}, {pipeline_mode = #tpu.pipeline_mode<synchronous>, transform_indices = @transform_2, window_bounds = array<i64: 1, 128>}, {pipeline_mode = #tpu.pipeline_mode<synchronous>, transform_indices = @transform_3, window_bounds = array<i64: 128, 128>}, {transform_indices = @transform_4, window_bounds = array<i64: 1, 8, 16, 16>}, {transform_indices = @transform_5, window_bounds = array<i64: 1, 1, 2, 16>}]} {
    %c0 = arith.constant 0 : index
    %c0_0 = arith.constant 0 : index
    %c0_1 = arith.constant 0 : index
    %c0_2 = arith.constant 0 : index
    %0 = vector.load %arg2[%c0, %c0_0, %c0_1, %c0_2] : memref<1x8x16x128xbf16, #tpu.memory_space<vmem>>, vector<1x8x16x128xbf16>
    %1 = vector.shape_cast %0 : vector<1x8x16x128xbf16> to vector<8x16x128xbf16>
    %c0_3 = arith.constant 0 : index
    %c0_4 = arith.constant 0 : index
    %2 = vector.load %arg3[%c0_3, %c0_4] : memref<1x128xf32, #tpu.memory_space<vmem>>, vector<1x128xf32>
    %3 = arith.extf %1 : vector<8x16x128xbf16> to vector<8x16x128xf32>
    %4 = vector.shape_cast %2 : vector<1x128xf32> to vector<1x1x128xf32>
    %5 = vector.broadcast %4 : vector<1x1x128xf32> to vector<8x16x128xf32>
    %6 = arith.mulf %3, %5 : vector<8x16x128xf32>
    %c0_5 = arith.constant 0 : index
    %c0_6 = arith.constant 0 : index
    %7 = vector.load %arg4[%c0_5, %c0_6] : memref<1x128xf32, #tpu.memory_space<vmem>>, vector<1x128xf32>
    %8 = vector.shape_cast %7 : vector<1x128xf32> to vector<1x1x128xf32>
    %9 = vector.broadcast %8 : vector<1x1x128xf32> to vector<8x16x128xf32>
    %10 = arith.addf %6, %9 : vector<8x16x128xf32>
    %cst = arith.constant 0.000000e+00 : f32
    %11 = vector.broadcast %cst : f32 to vector<8x16x128xf32>
    %12 = arith.maximumf %10, %11 : vector<8x16x128xf32>
    %13 = arith.truncf %12 : vector<8x16x128xf32> to vector<8x16x128xbf16>
    %14 = vector.shape_cast %13 : vector<8x16x128xbf16> to vector<128x128xbf16>
    %c0_7 = arith.constant 0 : index
    %c0_8 = arith.constant 0 : index
    %15 = vector.load %arg5[%c0_7, %c0_8] : memref<128x128xbf16, #tpu.memory_space<vmem>>, vector<128x128xbf16>
    %cst_9 = arith.constant dense<0.000000e+00> : vector<128x128xf32>
    %16 = tpu.matmul %14, %15, %cst_9 {dimension_numbers = #tpu.dot_dimension_numbers<[1], [0], [0], [1], [0, 0, 1, 1], [], []>} : vector<128x128xbf16>, vector<128x128xbf16>, vector<128x128xf32> -> vector<128x128xf32>
    %17 = vector.extract_strided_slice %16 {offsets = [0, 0], sizes = [128, 16], strides = [1, 1]} : vector<128x128xf32> to vector<128x16xf32>
    %18 = vector.shape_cast %17 : vector<128x16xf32> to vector<8x16x16xf32>
    %19 = arith.truncf %18 : vector<8x16x16xf32> to vector<8x16x16xbf16>
    %c0_10 = arith.constant 0 : index
    %c0_11 = arith.constant 0 : index
    %c0_12 = arith.constant 0 : index
    %c0_13 = arith.constant 0 : index
    %20 = vector.load %arg6[%c0_10, %c0_11, %c0_12, %c0_13] : memref<1x8x16x16xbf16, #tpu.memory_space<vmem>>, vector<1x8x16x16xbf16>
    %21 = vector.shape_cast %20 : vector<1x8x16x16xbf16> to vector<8x16x16xbf16>
    %22 = vector.shape_cast %19 : vector<8x16x16xbf16> to vector<1x8x16x16xbf16>
    tpu.vector_store %arg6[%c0_10, %c0_11, %c0_12, %c0_13], %22 {strides = array<i32>} : memref<1x8x16x16xbf16, #tpu.memory_space<vmem>>, vector<1x8x16x16xbf16>,
    %cst_14 = arith.constant dense<0.000000e+00> : vector<16xf32>
    %23 = vector.multi_reduction <add>, %17, %cst_14 [0] : vector<128x16xf32> to vector<16xf32>
    %24 = vector.shape_cast %23 : vector<16xf32> to vector<1x16xf32>
    %25 = arith.mulf %17, %17 : vector<128x16xf32>
    %cst_15 = arith.constant dense<0.000000e+00> : vector<16xf32>
    %26 = vector.multi_reduction <add>, %25, %cst_15 [0] : vector<128x16xf32> to vector<16xf32>
    %27 = vector.shape_cast %26 : vector<16xf32> to vector<1x16xf32>
    %28 = tpu.concatenate %24, %27 in 0 : vector<1x16xf32>, vector<1x16xf32> -> vector<2x16xf32>
    %c0_16 = arith.constant 0 : index
    %c0_17 = arith.constant 0 : index
    %c0_18 = arith.constant 0 : index
    %c0_19 = arith.constant 0 : index
    %29 = vector.load %arg7[%c0_16, %c0_17, %c0_18, %c0_19] : memref<1x1x2x16xf32, #tpu.memory_space<vmem>>, vector<1x1x2x16xf32>
    %30 = vector.shape_cast %29 : vector<1x1x2x16xf32> to vector<2x16xf32>
    %31 = vector.shape_cast %28 : vector<2x16xf32> to vector<1x1x2x16xf32>
    tpu.vector_store %arg7[%c0_16, %c0_17, %c0_18, %c0_19], %31 {strides = array<i32>} : memref<1x1x2x16xf32, #tpu.memory_space<vmem>>, vector<1x1x2x16xf32>,
    return
  }
  func.func @transform_0(%arg0: i32, %arg1: i32) -> (i32, i32, i32, i32) {
    %c0_i32 = arith.constant 0 : i32
    %c0_i32_0 = arith.constant 0 : i32
    %c0_i32_1 = arith.constant 0 : i32
    return %arg0, %arg1, %c0_i32, %c0_i32_0 : i32, i32, i32, i32
  }
  func.func @transform_1(%arg0: i32, %arg1: i32) -> (i32, i32) {
    %c0_i32 = arith.constant 0 : i32
    %c0_i32_0 = arith.constant 0 : i32
    %c0_i32_1 = arith.constant 0 : i32
    return %c0_i32, %c0_i32_0 : i32, i32
  }
  func.func @transform_2(%arg0: i32, %arg1: i32) -> (i32, i32) {
    %c0_i32 = arith.constant 0 : i32
    %c0_i32_0 = arith.constant 0 : i32
    %c0_i32_1 = arith.constant 0 : i32
    return %c0_i32, %c0_i32_0 : i32, i32
  }
  func.func @transform_3(%arg0: i32, %arg1: i32) -> (i32, i32) {
    %c0_i32 = arith.constant 0 : i32
    %c0_i32_0 = arith.constant 0 : i32
    %c0_i32_1 = arith.constant 0 : i32
    return %c0_i32, %c0_i32_0 : i32, i32
  }
  func.func @transform_4(%arg0: i32, %arg1: i32) -> (i32, i32, i32, i32) {
    %c0_i32 = arith.constant 0 : i32
    %c0_i32_0 = arith.constant 0 : i32
    %c0_i32_1 = arith.constant 0 : i32
    return %arg0, %arg1, %c0_i32, %c0_i32_0 : i32, i32, i32, i32
  }
  func.func @transform_5(%arg0: i32, %arg1: i32) -> (i32, i32, i32, i32) {
    %c0_i32 = arith.constant 0 : i32
    %c0_i32_0 = arith.constant 0 : i32
    %c0_i32_1 = arith.constant 0 : i32
    return %arg0, %arg1, %c0_i32, %c0_i32_0 : i32, i32, i32, i32
  }
}

</mosaic_0001>

<bundles_post_ra>
// kernel: bottleneck_forward.4
= control target key start
LH: loop header
LB: loop body
LE: loop exit
PB: predicated region body
PF: predicated region fallthrough
CT: control target
= control target key end

     0   :  { %s1389_s18 = smov 0   ;;  %s1391_s19 = smov 0   ;;  %s1776_s0 = inlined_call_operand.vmem [shape: f32[2,16,16,8], index: 0, kind: input, shape index: {}]   ;;  %s1777_s1 = inlined_call_operand.vmem [shape: bf16[128,256], index: 1, kind: input, shape index: {}]   ;;  %s1778_s2 = inlined_call_operand.vmem [shape: bf16[2,16,16,128], index: 2, kind: output, shape index: {0}]   ;;  %s1779_s3 = inlined_call_operand.vmem [shape: f32[2,2,2,128], index: 3, kind: output, shape index: {1}]   ;;  %s1780_s4 = inlined_call_operand.vmem [shape: bf16[2,16,16,16], index: 4, kind: output, shape index: {2}]   ;;  %s1781_s5 = inlined_call_operand.vmem [shape: f32[2,2,2,16], index: 5, kind: output, shape index: {3}]  }
   0x1   :  { %s1393_s20 = smov 0   ;;  %s1395_s21 = smov 0  }
   0x2   :  { %s1397_s22 = smov 0  }
   0x3 LB: > { %s25_s23 = sadd.s32 1, %s1349_s20  ;;  %s28_s24 = sadd.s32 1, %s1353_s21  ;;  %s1357_s22 = sphi %s1397_s22, %s16_s22   ;;  %s1353_s21 = sphi %s1395_s21, %s1785_s21   ;;  %s1349_s20 = sphi %s1393_s20, %s1784_s20   ;;  %s1345_s19 = sphi %s1391_s19, %s1783_s19   ;;  %s1341_s18 = sphi %s1389_s18, %s1782_s18  }
   0x4   : > { %p26_p0 = scmp.ge.s32.totalorder %s25_s23, 2  ;;  %p1101_p1 = scmp.ge.s32.totalorder %s1357_s22, 1 }
   0x5   : > { %p222_p2 = scmp.lt.s32.totalorder %s1357_s22, 5 }
   0x6   : > { %s1787_s23 = smov (%p26_p0, %s25_s23), 0  ;;  %s1789_s24 = smov (!%p26_p0, %s28_s24), %s1353_s21 }
   0x7   : > { %p223_p3 = pnand %p1101_p1, %p222_p2  ;;  %p30_p4 = scmp.ge.s32.totalorder %s1789_s24, 2 }
   0x8   : > { %s1102_s14 = sshll.u32 (!%p223_p3), %s1341_s18, 3  ;;  %p287_p5 = scmp.lt.s32.totalorder (!%p223_p3), %s1345_s19, 1 }
   0x9   : > { %s1791_s24 = smov (%p30_p4, %s1789_s24), 0  ;;  %226 = sbr.rel (%p223_p3) target bundleno = 266 (0x10a), region = 28 }
   0xa   : > { %p289_p6 = scmp.lt.s32.totalorder (!%p223_p3), %s1102_s14, 15  ;;  %p310_p7 = scmp.lt.s32.totalorder (!%p223_p3), %s1341_s18, 1 }
   0xe   : > { %v1176_v0 = vld [vmem:[%s1777_s1 + $0x70] sm:$0xf]  ;;  %v1215_v1 = vld [vmem:[%s1777_s1 + $0x74] sm:$0xf0]  ;;  %v1214_v2 = vld [vmem:[%s1777_s1 + $0x74] sm:$0xf] }
   0xf   : > { %v1177_v3 = vor.u32 %v1215_v1, %v1176_v0  ;;  %v1178_v4 = vld [vmem:[%s1777_s1 + $0x78] sm:$0xf0]  ;;  %v1168_v5 = vld [vmem:[%s1777_s1 + $0x60] sm:$0xf]  ;;  %v1213_v6 = vld [vmem:[%s1777_s1 + $0x64] sm:$0xf0] }
  0x10   : > { %v1181_v7 = vor.u32 %v1214_v2, %v1178_v4  ;;  %v1212_v8 = vld [vmem:[%s1777_s1 + $0x64] sm:$0xf]  ;;  %v1170_v9 = vld [vmem:[%s1777_s1 + $0x68] sm:$0xf0]  ;;  %v1169_v10 = vor.u32 %v1213_v6, %v1168_v5  ;;  %v1160_v12 = vld [vmem:[%s1777_s1 + $0x50] sm:$0xf] }
  0x11   : > { %530 = vmatpush.bf16.msra.mxu0 %v1177_v3  ;;  %1263 = vmatpush.bf16.msra.mxu2 %v1177_v3  ;;  %v1173_v11 = vor.u32 %v1212_v8, %v1170_v9  ;;  %v1211_v13 = vld [vmem:[%s1777_s1 + $0x54] sm:$0xf0]  ;;  %v1210_v14 = vld [vmem:[%s1777_s1 + $0x54] sm:$0xf]  ;;  %v1162_v15 = vld [vmem:[%s1777_s1 + $0x58] sm:$0xf0] }
  0x12   : > { %579 = vmatpush.bf16.msra.mxu1 %v1181_v7  ;;  %1271 = vmatpush.bf16.msra.mxu3 %v1181_v7  ;;  %v1161_v16 = vor.u32 %v1211_v13, %v1160_v12  ;;  %v1165_v17 = vor.u32 %v1210_v14, %v1162_v15  ;;  %v1152_v18 = vld [vmem:[%s1777_s1 + $0x40] sm:$0xf]  ;;  %v1209_v19 = vld [vmem:[%s1777_s1 + $0x44] sm:$0xf0]  ;;  %v1208_v20 = vld [vmem:[%s1777_s1 + $0x44] sm:$0xf] }
  0x13   : > { %v1154_v21 = vld [vmem:[%s1777_s1 + $0x48] sm:$0xf0]  ;;  %v1153_v22 = vor.u32 %v1209_v19, %v1152_v18  ;;  %v1144_v24 = vld [vmem:[%s1777_s1 + $0x30] sm:$0xf]  ;;  %v1207_v25 = vld [vmem:[%s1777_s1 + $0x34] sm:$0xf0] }
  0x14   : > { %v1157_v23 = vor.u32 %v1208_v20, %v1154_v21  ;;  %s1793_s19 = smov (!%p287_p5, %s1345_s19), 1  ;;  %v1206_v26 = vld [vmem:[%s1777_s1 + $0x34] sm:$0xf]  ;;  %v1146_v27 = vld [vmem:[%s1777_s1 + $0x38] sm:$0xf0]  ;;  %s1795_s14 = smov (!%p289_p6, %s1102_s14), 15  ;;  %v1145_v28 = vor.u32 %v1207_v25, %v1144_v24 }
  0x15   : > { %531 = vmatpush.bf16.msra.mxu0 %v1169_v10  ;;  %1264 = vmatpush.bf16.msra.mxu2 %v1169_v10  ;;  %s1104_s30 = sshll.u32 %s1793_s19, 5  ;;  %s1103_s6 = sshll.u32 %s1795_s14, 1  ;;  %v1149_v29 = vor.u32 %v1206_v26, %v1146_v27  ;;  %v1136_v30 = vld [vmem:[%s1777_s1 + $0x20] sm:$0xf]  ;;  %v1205_v31 = vld [vmem:[%s1777_s1 + $0x24] sm:$0xf0] }
  0x16   : > { %580 = vmatpush.bf16.msra.mxu1 %v1173_v11  ;;  %1272 = vmatpush.bf16.msra.mxu3 %v1173_v11  ;;  %s1495_s11 = sadd.s32 %s1104_s30, %s1103_s6  ;;  %v1204_v32 = vld [vmem:[%s1777_s1 + $0x24] sm:$0xf]  ;;  %v1138_v33 = vld [vmem:[%s1777_s1 + $0x28] sm:$0xf0]  ;;  %v1137_v34 = vor.u32 %v1205_v31, %v1136_v30  ;;  %v1128_v39 = vld [vmem:[%s1777_s1 + $0x10] sm:$0xf] }
  0x17   : > { %s1105_s16 = sshll.u32 %s1495_s11, 3  ;;  %v1141_v38 = vor.u32 %v1204_v32, %v1138_v33  ;;  %v1203_v40 = vld [vmem:[%s1777_s1 + $0x14] sm:$0xf0]  ;;  %v1202_v42 = vld [vmem:[%s1777_s1 + $0x14] sm:$0xf]  ;;  %vm408_vm0 = vcmask 64512  }
  0x18   : > { %s1507_s26 = scalar_lea.vmem %s1776_s0, %s1105_s16  ;;  %v1130_v43 = vld [vmem:[%s1777_s1 + $0x18] sm:$0xf0]  ;;  %v1129_v48 = vor.u32 %v1203_v40, %v1128_v39  ;;  %v1120_v50 = vld [vmem:[%s1777_s1] sm:$0xf]  ;;  %v1201_v51 = vld [vmem:[%s1777_s1 + $0x4] sm:$0xf0] }
  0x19   : > { %532 = vmatpush.bf16.msra.mxu0 %v1161_v16  ;;  %1265 = vmatpush.bf16.msra.mxu2 %v1161_v16  ;;  %v336_v35 = vld [vmem:[%s1507_s26] sm:$0xff]  ;;  %v337_v36 = vld [vmem:[%s1507_s26 + $0x8] sm:$0xff]  ;;  %v1133_v49 = vor.u32 %v1202_v42, %v1130_v43  ;;  %v1121_v58 = vor.u32 %v1201_v51, %v1120_v50  ;;  %v338_v62 = vld [vmem:[%s1507_s26 + $0x10] sm:$0xff]  ;;  %s1109_s27 = sshll.u32 %s1495_s11, 2  ;;  %vm737_vm1 = vcmask 125952   ;;  %vm754_vm2 = vcmask 130048  }
  0x1a   : > { %581 = vmatpush.bf16.msra.mxu1 %v1165_v17  ;;  %1273 = vmatpush.bf16.msra.mxu3 %v1165_v17  ;;  %v344_v37 = vld [vmem:[%s1507_s26 + $0x40] sm:$0xff]  ;;  %v345_v41 = vld [vmem:[%s1507_s26 + $0x48] sm:$0xff]  ;;  %v352_v44 = vpack.c.bf16 %v336_v35, %v336_v35  ;;  %v353_v45 = vpack.c.bf16 %v337_v36, %v337_v36  ;;  %v339_v63 = vld [vmem:[%s1507_s26 + $0x18] sm:$0xff]  ;;  %v354_v2 = vpack.c.bf16 %v338_v62, %v338_v62  ;;  %s1571_s29 = scalar_lea.vmem %s1780_s4, %s1109_s27  ;;  %s1586_s6 = scalar_lea.vmem %s1778_s2, %s1109_s27  ;;  %vm718_vm3 = vcmask 1040384  }
  0x1b   : > { %v360_v46 = vpack.c.bf16 %v344_v37, %v344_v37  ;;  %v361_v47 = vpack.c.bf16 %v345_v41, %v345_v41  ;;  %v1200_v52 = vld [vmem:[%s1777_s1 + $0x4] sm:$0xf]  ;;  %v1122_v53 = vld [vmem:[%s1777_s1 + $0x8] sm:$0xf0]  ;;  %v346_v0 = vld [vmem:[%s1507_s26 + $0x50] sm:$0xff]  ;;  %v355_v3 = vpack.c.bf16 %v339_v63, %v339_v63  ;;  %s1797_s18 = smov (!%p310_p7, %s1341_s18), 1 }
  0x1c   : > { %v384_v54 = vunpack.c.l.b16 %v352_v44  ;;  %v385_v55 = vunpack.c.l.b16 %v353_v45  ;;  %v1125_v59 = vor.u32 %v1200_v52, %v1122_v53  ;;  %v347_v1 = vld [vmem:[%s1507_s26 + $0x58] sm:$0xff]  ;;  %v362_v4 = vpack.c.bf16 %v346_v0, %v346_v0  ;;  %v340_v12 = vld [vmem:[%s1507_s26 + $0x20] sm:$0xff]  ;;  %v341_v13 = vld [vmem:[%s1507_s26 + $0x28] sm:$0xff]  ;;  %s1110_s7 = sshll.u32 %s1793_s19, 1 }
  0x1d   : > { %533 = vmatpush.bf16.msra.mxu0 %v1153_v22  ;;  %1266 = vmatpush.bf16.msra.mxu2 %v1153_v22  ;;  %v392_v56 = vunpack.c.l.b16 %v360_v46  ;;  %v393_v57 = vunpack.c.l.b16 %v361_v47  ;;  %v363_v5 = vpack.c.bf16 %v347_v1, %v347_v1  ;;  %v386_v6 = vunpack.c.l.b16 %v354_v2  ;;  %v348_v14 = vld [vmem:[%s1507_s26 + $0x60] sm:$0xff]  ;;  %v349_v15 = vld [vmem:[%s1507_s26 + $0x68] sm:$0xff]  ;;  %v342_v26 = vld [vmem:[%s1507_s26 + $0x30] sm:$0xff]  ;;  %s313_s8 = sadd.s32 %s1110_s7, %s1797_s18 }
  0x1e   : > { %582 = vmatpush.bf16.msra.mxu1 %v1157_v23  ;;  %1274 = vmatpush.bf16.msra.mxu3 %v1157_v23  ;;  %v400_v60 = vpack.c.b16 %v385_v55, %v384_v54  ;;  %v387_v7 = vunpack.c.l.b16 %v355_v3  ;;  %v394_v8 = vunpack.c.l.b16 %v362_v4  ;;  %v356_v16 = vpack.c.bf16 %v340_v12, %v340_v12  ;;  %v343_v27 = vld [vmem:[%s1507_s26 + $0x38] sm:$0xff]  ;;  %s1111_s9 = sshll.u32 %s313_s8, 1 }
  0x1f   : > { %v404_v61 = vpack.c.b16 %v393_v57, %v392_v56  ;;  %v395_v9 = vunpack.c.l.b16 %v363_v5  ;;  %v357_v17 = vpack.c.bf16 %v341_v13, %v341_v13  ;;  %v364_v18 = vpack.c.bf16 %v348_v14, %v348_v14  ;;  %s315_s12 = scalar_lea.vmem %s1779_s3, %s1111_s9  ;;  %s334_s15 = scalar_lea.vmem %s1781_s5, %s1111_s9 }
  0x20   : > { %v401_v10 = vpack.c.b16 %v387_v7, %v386_v6  ;;  %v365_v19 = vpack.c.bf16 %v349_v15, %v349_v15  ;;  %v388_v20 = vunpack.c.l.b16 %v356_v16  ;;  %v358_v30 = vpack.c.bf16 %v342_v26, %v342_v26 }
  0x21   : > { %534 = vmatpush.bf16.msra.mxu0 %v1145_v28  ;;  %1267 = vmatpush.bf16.msra.mxu2 %v1145_v28  ;;  %v405_v11 = vpack.c.b16 %v395_v9, %v394_v8  ;;  %v389_v21 = vunpack.c.l.b16 %v357_v17  ;;  %v396_v22 = vunpack.c.l.b16 %v364_v18  ;;  %v350_v28 = vld [vmem:[%s1507_s26 + $0x70] sm:$0xff]  ;;  %v359_v31 = vpack.c.bf16 %v343_v27, %v343_v27 }
  0x22   : > { %583 = vmatpush.bf16.msra.mxu1 %v1149_v29  ;;  %1275 = vmatpush.bf16.msra.mxu3 %v1149_v29  ;;  %v397_v23 = vunpack.c.l.b16 %v365_v19  ;;  %v351_v29 = vld [vmem:[%s1507_s26 + $0x78] sm:$0xff]  ;;  %v366_v32 = vpack.c.bf16 %v350_v28, %v350_v28  ;;  %vm846_vm4 = vcmask 123904  }
  0x23   : > { %v402_v24 = vpack.c.b16 %v389_v21, %v388_v20  ;;  %v367_v33 = vpack.c.bf16 %v351_v29, %v351_v29  ;;  %v391_v35 = vunpack.c.l.b16 %v359_v31 }
  0x24   : > { %v406_v25 = vpack.c.b16 %v397_v23, %v396_v22  ;;  %v398_v36 = vunpack.c.l.b16 %v366_v32 }
  0x25   : > { %535 = vmatpush.bf16.msra.mxu0 %v1137_v34  ;;  %1268 = vmatpush.bf16.msra.mxu2 %v1137_v34  ;;  %v390_v34 = vunpack.c.l.b16 %v358_v30  ;;  %v399_v37 = vunpack.c.l.b16 %v367_v33 }
  0x26   : > { %584 = vmatpush.bf16.msra.mxu1 %v1141_v38  ;;  %1276 = vmatpush.bf16.msra.mxu3 %v1141_v38 }
  0x27   : > { %v403_v38 = vpack.c.b16 %v391_v35, %v390_v34  ;;  %v407_v39 = vpack.c.b16 %v399_v37, %v398_v36 }
  0x29   : > { %536 = vmatpush.bf16.msra.mxu0 %v1129_v48  ;;  %1269 = vmatpush.bf16.msra.mxu2 %v1129_v48 }
  0x2a   : > { %585 = vmatpush.bf16.msra.mxu1 %v1133_v49  ;;  %1277 = vmatpush.bf16.msra.mxu3 %v1133_v49 }
  0x2d   : > { %537 = vmatpush.bf16.msra.mxu0 %v1121_v58  ;;  %1270 = vmatpush.bf16.msra.mxu2 %v1121_v58 }
  0x2e   : > { %586 = vmatpush.bf16.msra.mxu1 %v1125_v59  ;;  %1278 = vmatpush.bf16.msra.mxu3 %v1125_v59 }
  0x30   : > { %1182 = vmatmul.msk.bf16.vlgmr.msra.gmra.mxu0 %vm408_vm0, %v400_v60  ;;  %1186 = vmatmul.msk.bf16.vlgmr.msra.gmra.mxu2 %vm408_vm0, %v404_v61 }
  0x31   : > { %1190 = vmatmul.msk.bf16.vlgmr.msra.gmra.mxu1 %vm408_vm0, %v400_v60  ;;  %1194 = vmatmul.msk.bf16.vlgmr.msra.gmra.mxu3 %vm408_vm0, %v404_v61 }
  0x40   : > { %1183 = vmatmul.msk.bf16.gmra.mxu0 %vm408_vm0, %v401_v10  ;;  %1187 = vmatmul.msk.bf16.gmra.mxu2 %vm408_vm0, %v405_v11 }
  0x41   : > { %1191 = vmatmul.msk.bf16.gmra.mxu1 %vm408_vm0, %v401_v10  ;;  %1195 = vmatmul.msk.bf16.gmra.mxu3 %vm408_vm0, %v405_v11 }
  0x50   : > { %1184 = vmatmul.msk.bf16.gmra.mxu0 %vm408_vm0, %v402_v24  ;;  %1188 = vmatmul.msk.bf16.gmra.mxu2 %vm408_vm0, %v406_v25 }
  0x51   : > { %1192 = vmatmul.msk.bf16.gmra.mxu1 %vm408_vm0, %v402_v24  ;;  %1196 = vmatmul.msk.bf16.gmra.mxu3 %vm408_vm0, %v406_v25 }
  0x60   : > { %1185 = vmatmul.msk.bf16.gmra.mxu0 %vm408_vm0, %v403_v38  ;;  %1189 = vmatmul.msk.bf16.gmra.mxu2 %vm408_vm0, %v407_v39 }
  0x61   : > { %1193 = vmatmul.msk.bf16.gmra.mxu1 %vm408_vm0, %v403_v38  ;;  %1197 = vmatmul.msk.bf16.gmra.mxu3 %vm408_vm0, %v407_v39 }
  0xad   : > { %v1566_v40 = vpop.f32.mrf.mxu0 }
  0xae   : > { %v1573_v41 = vpop.f32.mrf.mxu1  ;;  %v681_v19 = vmul.f32 %v1566_v40, %v1566_v40 }
  0xaf   : > { %v721_v42 = vpack.c.bf16 %v1573_v41, %v1573_v41  ;;  %v792_v12 = vmul.f32 %v1573_v41, %v1573_v41  ;;  %v755_v22 = vsel %vm754_vm2, %v1573_v41, 0.0 }
  0xb1   : > { %738 = vst.msk [vmem:[%s1571_s29] sm:$0xf] %vm737_vm1, %v721_v42  ;;  %v808_v24 = vsel %vm754_vm2, %v792_v12, 0.0 }
  0xb3   : > { %v1579_v43 = vpop.f32.mrf.mxu2 }
  0xb4   : > { %v1581_v44 = vpop.f32.mrf.mxu3 }
  0xb5   : > { %v541_v45 = vpop.f32.mrf.mxu0  ;;  %v729_v46 = vpack.c.bf16 %v1581_v44, %v1581_v44 }
  0xb6   : > { %v1219_v47 = vpack.c.bf16 %v541_v45, %v1566_v40  ;;  %v590_v48 = vpop.f32.mrf.mxu1  ;;  %v682_v13 = vmul.f32 %v541_v45, %v541_v45  ;;  %v660_v25 = vadd.f32 %v541_v45, %v1566_v40 }
  0xb7   : > { %v722_v49 = vpack.c.bf16 %v590_v48, %v590_v48  ;;  %746 = vst.msk [vmem:[%s1571_s29 + $0x20] sm:$0xf] %vm737_vm1, %v729_v46  ;;  %v793_v8 = vmul.f32 %v590_v48, %v590_v48  ;;  %v756_v16 = vsel %vm754_vm2, %v590_v48, 0.0 }
  0xb8   : > { %1220 = vst [vmem:[%s1586_s6] sm:$0xff] %v1219_v47   ;;  %v697_v26 = vadd.f32 %v682_v13, %v681_v19  ;;  %v757_v27 = vadd.f32 %v756_v16, %v755_v22  ;;  %v800_v16 = vmul.f32 %v1581_v44, %v1581_v44 }
  0xb9   : > { %739 = vst.msk [vmem:[%s1571_s29 + $0x4] sm:$0xf] %vm737_vm1, %v722_v49  ;;  %v809_v20 = vsel %vm754_vm2, %v793_v8, 0.0 }
  0xba   : > { %v810_v28 = vadd.f32 %v809_v20, %v808_v24 }
  0xbb   : > { %v1596_v50 = vpop.f32.mrf.mxu2 }
  0xbc   : > { %v1598_v51 = vpop.f32.mrf.mxu3  ;;  %v1239_v52 = vpack.c.bf16 %v1596_v50, %v1579_v43 }
  0xbd   : > { %v544_v53 = vpop.f32.mrf.mxu0  ;;  %v730_v54 = vpack.c.bf16 %v1598_v51, %v1598_v51 }
  0xbe   : > { %v593_v55 = vpop.f32.mrf.mxu1  ;;  %1259 = vst [vmem:[%s1586_s6 + $0x20] sm:$0xff] %v1239_v52   ;;  %v683_v21 = vmul.f32 %v544_v53, %v544_v53  ;;  %v661_v33 = vadd.f32 %v660_v25, %v544_v53 }
  0xbf   : > { %v723_v56 = vpack.c.bf16 %v593_v55, %v593_v55  ;;  %747 = vst.msk [vmem:[%s1571_s29 + $0x24] sm:$0xf] %vm737_vm1, %v730_v54  ;;  %v794_v17 = vmul.f32 %v593_v55, %v593_v55  ;;  %v758_v29 = vsel %vm754_vm2, %v593_v55, 0.0 }
  0xc0   : > { %v698_v34 = vadd.f32 %v697_v26, %v683_v21  ;;  %v759_v45 = vadd.f32 %v758_v29, %v757_v27 }
  0xc1   : > { %740 = vst.msk [vmem:[%s1571_s29 + $0x8] sm:$0xf] %vm737_vm1, %v723_v56  ;;  %v811_v30 = vsel %vm754_vm2, %v794_v17, 0.0 }
  0xc2   : > { %v812_v46 = vadd.f32 %v811_v30, %v810_v28  ;;  %v801_v28 = vmul.f32 %v1598_v51, %v1598_v51 }
  0xc3   : > { %v1609_v57 = vpop.f32.mrf.mxu2 }
  0xc4   : > { %v1611_v58 = vpop.f32.mrf.mxu3 }
  0xc5   : > { %v546_v59 = vpop.f32.mrf.mxu0  ;;  %v731_v60 = vpack.c.bf16 %v1611_v58, %v1611_v58 }
  0xc6   : > { %v1224_v61 = vpack.c.bf16 %v546_v59, %v544_v53  ;;  %v595_v62 = vpop.f32.mrf.mxu1  ;;  %v684_v31 = vmul.f32 %v546_v59, %v546_v59  ;;  %v662_v47 = vadd.f32 %v661_v33, %v546_v59 }
  0xc7   : > { %v724_v63 = vpack.c.bf16 %v595_v62, %v595_v62  ;;  %748 = vst.msk [vmem:[%s1571_s29 + $0x28] sm:$0xf] %vm737_vm1, %v731_v60  ;;  %v795_v23 = vmul.f32 %v595_v62, %v595_v62  ;;  %v760_v38 = vsel %vm754_vm2, %v595_v62, 0.0 }
  0xc8   : > { %1256 = vst [vmem:[%s1586_s6 + $0x8] sm:$0xff] %v1224_v61   ;;  %v699_v52 = vadd.f32 %v698_v34, %v684_v31  ;;  %v761_v56 = vadd.f32 %v760_v38, %v759_v45  ;;  %v823_v38 = vsel %vm754_vm2, %v800_v16, 0.0 }
  0xc9   : > { %741 = vst.msk [vmem:[%s1571_s29 + $0xc] sm:$0xf] %vm737_vm1, %v724_v63  ;;  %v813_v39 = vsel %vm754_vm2, %v795_v23, 0.0 }
  0xca   : > { %v814_v60 = vadd.f32 %v813_v39, %v812_v46  ;;  %v772_v39 = vsel %vm754_vm2, %v1598_v51, 0.0  ;;  %v802_v51 = vmul.f32 %v1611_v58, %v1611_v58 }
  0xcb   : > { %v1620_v0 = vpop.f32.mrf.mxu2 }
  0xcc   : > { %v1622_v1 = vpop.f32.mrf.mxu3  ;;  %v1244_v2 = vpack.c.bf16 %v1620_v0, %v1609_v57 }
  0xcd   : > { %v549_v3 = vpop.f32.mrf.mxu0  ;;  %v732_v4 = vpack.c.bf16 %v1622_v1, %v1622_v1 }
  0xce   : > { %v598_v5 = vpop.f32.mrf.mxu1  ;;  %1260 = vst [vmem:[%s1586_s6 + $0x28] sm:$0xff] %v1244_v2   ;;  %v685_v40 = vmul.f32 %v549_v3, %v549_v3  ;;  %v663_v61 = vadd.f32 %v662_v47, %v549_v3 }
  0xcf   : > { %v725_v6 = vpack.c.bf16 %v598_v5, %v598_v5  ;;  %749 = vst.msk [vmem:[%s1571_s29 + $0x2c] sm:$0xf] %vm737_vm1, %v732_v4  ;;  %v796_v35 = vmul.f32 %v598_v5, %v598_v5  ;;  %v762_v53 = vsel %vm754_vm2, %v598_v5, 0.0 }
  0xd0   : > { %v700_v63 = vadd.f32 %v699_v52, %v685_v40  ;;  %v690_v40 = vmul.f32 %v1596_v50, %v1596_v50 }
  0xd1   : > { %742 = vst.msk [vmem:[%s1571_s29 + $0x10] sm:$0xf] %vm737_vm1, %v725_v6  ;;  %v815_v62 = vsel %vm754_vm2, %v796_v35, 0.0  ;;  %v763_v6 = vadd.f32 %v762_v53, %v761_v56 }
  0xd2   : > { %v816_v12 = vadd.f32 %v815_v62, %v814_v60  ;;  %v803_v60 = vmul.f32 %v1622_v1, %v1622_v1 }
  0xd3   : > { %v1633_v7 = vpop.f32.mrf.mxu2 }
  0xd4   : > { %v1635_v9 = vpop.f32.mrf.mxu3 }
  0xd5   : > { %v551_v10 = vpop.f32.mrf.mxu0  ;;  %v733_v11 = vpack.c.bf16 %v1635_v9, %v1635_v9 }
  0xd6   : > { %v1229_v14 = vpack.c.bf16 %v551_v10, %v549_v3  ;;  %v600_v15 = vpop.f32.mrf.mxu1  ;;  %v686_v54 = vmul.f32 %v551_v10, %v551_v10  ;;  %v664_v8 = vadd.f32 %v663_v61, %v551_v10  ;;  %v692_v61 = vmul.f32 %v1620_v0, %v1620_v0 }
  0xd7   : > { %v726_v18 = vpack.c.bf16 %v600_v15, %v600_v15  ;;  %750 = vst.msk [vmem:[%s1571_s29 + $0x30] sm:$0xf] %vm737_vm1, %v733_v11  ;;  %v797_v48 = vmul.f32 %v600_v15, %v600_v15  ;;  %v764_v2 = vsel %vm754_vm2, %v600_v15, 0.0  ;;  %v689_v11 = vmul.f32 %v1579_v43, %v1579_v43 }
  0xd8   : > { %1257 = vst [vmem:[%s1586_s6 + $0x10] sm:$0xff] %v1229_v14   ;;  %v701_v13 = vadd.f32 %v700_v63, %v686_v54  ;;  %v770_v15 = vsel %vm754_vm2, %v1581_v44, 0.0  ;;  %v765_v17 = vadd.f32 %v764_v2, %v763_v6  ;;  %v776_v6 = vsel %vm754_vm2, %v1622_v1, 0.0 }
  0xd9   : > { %743 = vst.msk [vmem:[%s1571_s29 + $0x14] sm:$0xf] %vm737_vm1, %v726_v18  ;;  %v817_v5 = vsel %vm754_vm2, %v797_v48, 0.0  ;;  %v774_v48 = vsel %vm754_vm2, %v1611_v58, 0.0 }
  0xda   : > { %v818_v19 = vadd.f32 %v817_v5, %v816_v12  ;;  %v693_v5 = vmul.f32 %v1633_v7, %v1633_v7 }
  0xdb   : > { %v1656_v32 = vpop.f32.mrf.mxu2 }
  0xdc   : > { %v1658_v36 = vpop.f32.mrf.mxu3  ;;  %v1249_v37 = vpack.c.bf16 %v1656_v32, %v1633_v7  ;;  %v694_v16 = vmul.f32 %v1656_v32, %v1656_v32 }
  0xdd   : > { %v554_v41 = vpop.f32.mrf.mxu0  ;;  %v734_v42 = vpack.c.bf16 %v1658_v36, %v1658_v36  ;;  %v805_v1 = vmul.f32 %v1658_v36, %v1658_v36 }
  0xde   : > { %v603_v49 = vpop.f32.mrf.mxu1  ;;  %1261 = vst [vmem:[%s1586_s6 + $0x30] sm:$0xff] %v1249_v37   ;;  %v687_v59 = vmul.f32 %v554_v41, %v554_v41  ;;  %v665_v18 = vadd.f32 %v664_v8, %v554_v41  ;;  %v804_v8 = vmul.f32 %v1635_v9, %v1635_v9 }
  0xdf   : > { %v727_v55 = vpack.c.bf16 %v603_v49, %v603_v49  ;;  %751 = vst.msk [vmem:[%s1571_s29 + $0x34] sm:$0xf] %vm737_vm1, %v734_v42  ;;  %v798_v4 = vmul.f32 %v603_v49, %v603_v49  ;;  %v766_v3 = vsel %vm754_vm2, %v603_v49, 0.0  ;;  %v691_v49 = vmul.f32 %v1609_v57, %v1609_v57 }
  0xe0   : > { %v702_v20 = vadd.f32 %v701_v13, %v687_v59  ;;  %v767_v24 = vadd.f32 %v766_v3, %v765_v17 }
  0xe1   : > { %744 = vst.msk [vmem:[%s1571_s29 + $0x18] sm:$0xf] %vm737_vm1, %v727_v55  ;;  %v819_v21 = vsel %vm754_vm2, %v798_v4, 0.0  ;;  %v827_v4 = vsel %vm754_vm2, %v802_v51, 0.0 }
  0xe2   : > { %v820_v33 = vadd.f32 %v819_v21, %v818_v19  ;;  %v780_v21 = vsel %vm754_vm2, %v1658_v36, 0.0 }
  0xe3   : > { %v1678_v14 = vpop.f32.mrf.mxu2 }
  0xe4   : > { %v1684_v10 = vpop.f32.mrf.mxu3 }
  0xe5   : > { %v556_v22 = vpop.f32.mrf.mxu0  ;;  %v735_v23 = vpack.c.bf16 %v1684_v10, %v1684_v10 }
  0xe6   : > { %v1234_v25 = vpack.c.bf16 %v556_v22, %v554_v41  ;;  %v666_v26 = vadd.f32 %v665_v18, %v556_v22  ;;  %v688_v27 = vmul.f32 %v556_v22, %v556_v22  ;;  %v605_v44 = vpop.f32.mrf.mxu1  ;;  %v695_v22 = vmul.f32 %v1678_v14, %v1678_v14 }
  0xe7   : > { %v728_v29 = vpack.c.bf16 %v605_v44, %v605_v44  ;;  %v768_v30 = vsel %vm754_vm2, %v605_v44, 0.0  ;;  %v799_v31 = vmul.f32 %v605_v44, %v605_v44  ;;  %752 = vst.msk [vmem:[%s1571_s29 + $0x38] sm:$0xf] %vm737_vm1, %v735_v23 }
  0xe8   : > { %1258 = vst [vmem:[%s1586_s6 + $0x18] sm:$0xff] %v1234_v25   ;;  %v667_v34 = vadd.f32 %v666_v26, %v1579_v43  ;;  %v703_v35 = vadd.f32 %v702_v20, %v688_v27  ;;  %v769_v37 = vadd.f32 %v768_v30, %v767_v24  ;;  %v825_v43 = vsel %vm754_vm2, %v801_v28, 0.0 }
  0xe9   : > { %745 = vst.msk [vmem:[%s1571_s29 + $0x1c] sm:$0xf] %vm737_vm1, %v728_v29  ;;  %v821_v41 = vsel %vm754_vm2, %v799_v31, 0.0  ;;  %v782_v27 = vsel %vm754_vm2, %v1684_v10, 0.0 }
  0xea   : > { %v668_v42 = vadd.f32 %v667_v34, %v1596_v50  ;;  %v704_v45 = vadd.f32 %v703_v35, %v689_v11  ;;  %v771_v46 = vadd.f32 %v770_v15, %v769_v37  ;;  %v822_v47 = vadd.f32 %v821_v41, %v820_v33 }
  0xeb   : > { %v576_v52 = vpop.f32.mrf.mxu2  ;;  %v778_v15 = vsel %vm754_vm2, %v1635_v9, 0.0  ;;  %v806_v9 = vmul.f32 %v1684_v10, %v1684_v10 }
  0xec   : > { %v669_v53 = vadd.f32 %v668_v42, %v1609_v57  ;;  %v705_v54 = vadd.f32 %v704_v45, %v690_v40  ;;  %v773_v50 = vadd.f32 %v772_v39, %v771_v46  ;;  %v824_v55 = vadd.f32 %v823_v38, %v822_v47  ;;  %v625_v56 = vpop.f32.mrf.mxu3 }
  0xed   : > { %v736_v62 = vpack.c.bf16 %v625_v56, %v625_v56  ;;  %v1254_v58 = vpack.c.bf16 %v576_v52, %v1678_v14  ;;  %v807_v44 = vmul.f32 %v625_v56, %v625_v56  ;;  %v696_v28 = vmul.f32 %v576_v52, %v576_v52 }
  0xee   : > { %v706_v63 = vadd.f32 %v705_v54, %v691_v49  ;;  %v775_v2 = vadd.f32 %v774_v48, %v773_v50  ;;  %v826_v59 = vadd.f32 %v825_v43, %v824_v55  ;;  %v670_v57 = vadd.f32 %v669_v53, %v1620_v0 }
  0xef   : > { %753 = vst.msk [vmem:[%s1571_s29 + $0x3c] sm:$0xf] %vm737_vm1, %v736_v62  ;;  %v829_v0 = vsel %vm754_vm2, %v803_v60, 0.0  ;;  %v835_v33 = vsel %vm754_vm2, %v806_v9, 0.0  ;;  %v784_v34 = vsel %vm754_vm2, %v625_v56, 0.0  ;;  %v837_v39 = vsel %vm754_vm2, %v807_v44, 0.0 }
  0xf0   : > { %v828_v11 = vadd.f32 %v827_v4, %v826_v59  ;;  %v777_v12 = vadd.f32 %v776_v6, %v775_v2  ;;  %v671_v13 = vadd.f32 %v670_v57, %v1633_v7  ;;  %v707_v3 = vadd.f32 %v706_v63, %v692_v61  ;;  %1262 = vst [vmem:[%s1586_s6 + $0x38] sm:$0xff] %v1254_v58  }
  0xf1   : > { %v831_v7 = vsel %vm754_vm2, %v804_v8, 0.0 }
  0xf2   : > { %v779_v17 = vadd.f32 %v778_v15, %v777_v12  ;;  %v830_v18 = vadd.f32 %v829_v0, %v828_v11  ;;  %v672_v19 = vadd.f32 %v671_v13, %v1656_v32  ;;  %v708_v20 = vadd.f32 %v707_v3, %v693_v5 }
  0xf3   : > { %v833_v32 = vsel %vm754_vm2, %v805_v1, 0.0 }
  0xf4   : > { %v781_v23 = vadd.f32 %v780_v21, %v779_v17  ;;  %v832_v24 = vadd.f32 %v831_v7, %v830_v18  ;;  %v673_v25 = vadd.f32 %v672_v19, %v1678_v14  ;;  %v709_v26 = vadd.f32 %v708_v20, %v694_v16 }
  0xf6   : > { %v783_v36 = vadd.f32 %v782_v27, %v781_v23  ;;  %v834_v29 = vadd.f32 %v833_v32, %v832_v24  ;;  %v710_v30 = vadd.f32 %v709_v26, %v695_v22  ;;  %v674_v31 = vadd.f32 %v673_v25, %v576_v52 }
  0xf8   : > { %v836_v14 = vadd.f32 %v835_v33, %v834_v29  ;;  %v785_v35 = vadd.f32 %v784_v34, %v783_v36  ;;  %v675_v37 = vrot.slane %v674_v31, 4  ;;  %v711_v38 = vadd.f32 %v710_v30, %v696_v28 }
  0xfa   : > { %v786_v10 = vrot.slane %v785_v35, 4  ;;  %v838_v40 = vadd.f32 %v837_v39, %v836_v14  ;;  %v676_v41 = vadd.f32 %v675_v37, %v674_v31  ;;  %v712_v42 = vrot.slane %v711_v38, 4 }
  0xfc   : > { %v787_v45 = vadd.f32 %v786_v10, %v785_v35  ;;  %v839_v46 = vrot.slane %v838_v40, 4  ;;  %v677_v47 = vrot.slane %v676_v41, 2  ;;  %v713_v43 = vadd.f32 %v712_v42, %v711_v38 }
  0xfe   : > { %v788_v48 = vrot.slane %v787_v45, 2  ;;  %v840_v51 = vadd.f32 %v839_v46, %v838_v40  ;;  %v678_v49 = vadd.f32 %v677_v47, %v676_v41  ;;  %v714_v52 = vrot.slane %v713_v43, 2 }
 0x100   : > { %v789_v53 = vadd.f32 %v788_v48, %v787_v45  ;;  %v841_v54 = vrot.slane %v840_v51, 2  ;;  %v679_v50 = vrot.slane %v678_v49, 1  ;;  %v715_v55 = vadd.f32 %v714_v52, %v713_v43 }
 0x102   : > { %v790_v56 = vrot.slane %v789_v53, 1  ;;  %v842_v60 = vadd.f32 %v841_v54, %v840_v51  ;;  %v716_v61 = vrot.slane %v715_v55, 1  ;;  %v680_v58 = vadd.f32 %v679_v50, %v678_v49 }
 0x104   : > { %v843_v62 = vrot.slane %v842_v60, 1  ;;  %v717_v63 = vadd.f32 %v716_v61, %v715_v55  ;;  %v791_v2 = vadd.f32 %v790_v56, %v789_v53 }
 0x106   : > { %v844_v59 = vadd.f32 %v843_v62, %v842_v60  ;;  %v719_v57 = vsel %vm718_vm3, %v680_v58, %v717_v63 }
 0x107   : > { %720 = vst [vmem:[%s315_s12] sm:$0x3] %v719_v57 }
 0x108   : > { %v845_v4 = vsel %vm718_vm3, %v791_v2, %v844_v59 }
 0x109   : > { %847 = vst.msk [vmem:[%s334_s15] sm:$0x3] %vm846_vm4, %v845_v4 }
 0x10a PF: > { %s16_s22 = sadd.s32 1, %s1357_s22   ;;  %s1782_s18 = smov %s1349_s20 }
 0x10b   : > { %p13_p8 = scmp.ge.s32.totalorder %s16_s22, 6   ;;  %s1783_s19 = smov %s1353_s21 }
 0x10c   : > { %s1784_s20 = smov %s1787_s23  ;;  %s1785_s21 = smov %s1791_s24 }
 0x10d   :  { %15 = sbr.rel (!%p13_p8) target bundleno = 3 (0x3), region = 94 }

// kernel: bottleneck_forward.7
= control target key start
LH: loop header
LB: loop body
LE: loop exit
PB: predicated region body
PF: predicated region fallthrough
CT: control target
= control target key end

     0   :  { %11 = vsyncpa [#allocation3], 0  ;;  %s1218_s0 = inlined_call_operand.vmem [shape: bf16[2,16,16,16], index: 0, kind: input, shape index: {}]   ;;  %s1219_s1 = inlined_call_operand.vmem [shape: f32[1,16], index: 1, kind: input, shape index: {}]   ;;  %s1220_s2 = inlined_call_operand.vmem [shape: f32[1,16], index: 2, kind: input, shape index: {}]   ;;  %s1221_s3 = inlined_call_operand.vmem [shape: bf16[2,16,16,16], index: 3, kind: input, shape index: {}]   ;;  %s1222_s4 = inlined_call_operand.vmem [shape: f32[1,16], index: 4, kind: input, shape index: {}]   ;;  %s1223_s5 = inlined_call_operand.vmem [shape: f32[1,16], index: 5, kind: input, shape index: {}]   ;;  %s1224_s6 = inlined_call_operand.hbm [shape: f32[2,16,16,16], index: 6, kind: output, shape index: {}]  }
   0x1   :  { %13 = vsyncpa [#allocation3 + $0x1], 0  ;;  %s951_s21 = smov 0   ;;  %s953_s22 = smov 0  }
   0x2   :  { %s955_s23 = smov 0   ;;  %s957_s24 = smov 0  }
   0x3   :  { %s959_s25 = smov 0   ;;  %s961_s26 = smov 0  }
   0x4   :  { %s963_s27 = smov 0   ;;  %s965_s28 = smov 0  }
   0x5 LB: > { %1228 = sst [smem:[#allocation5_spill]] %s908_s27  ;;  %s641_s29 = sadd.s32 4294967295, %s912_s28   ;;  %s912_s28 = sphi %s965_s28, %s19_s28   ;;  %s908_s27 = sphi %s963_s27, %s1235_s27   ;;  %s904_s26 = sphi %s961_s26, %s1240_s26   ;;  %s900_s25 = sphi %s959_s25, %s1233_s25   ;;  %s896_s24 = sphi %s957_s24, %s1239_s24   ;;  %s892_s23 = sphi %s955_s23, %s1238_s23   ;;  %s888_s22 = sphi %s953_s22, %s1237_s22   ;;  %s884_s21 = sphi %s951_s21, %s1236_s21  }
   0x6   : > { %s642_s30 = sadd.s32 4294967294, %s912_s28   ;;  %s28_s7 = sadd.s32 1, %s904_s26 }
   0x7   : > { %p29_p0 = scmp.ge.s32.totalorder %s28_s7, 2  ;;  %s31_s8 = sadd.s32 1, %s908_s27 }
   0x8   : > { %p190_p1 = scmp.ne.s32.totalorder %s892_s23, %s888_s22  ;;  %p191_p2 = scmp.eq.s32.totalorder %s641_s29, 3 }
   0x9   : > { %s1242_s7 = smov (%p29_p0, %s28_s7), 0  ;;  %s1244_s8 = smov (!%p29_p0, %s31_s8), %s908_s27 }
   0xa   : > { %1229 = sst [smem:[#allocation6_spill]] %s1242_s7  ;;  %s176_s9 = ssub.s32 %s904_s26, %s1242_s7 }
   0xb   : > { %p1002_p3 = por %p191_p2, %p190_p1  ;;  %p33_p4 = scmp.ge.s32.totalorder %s1244_s8, 2 }
   0xc   : > { %p196_p5 = scmp.ne.s32.totalorder %s888_s22, %s884_s21  ;;  %p197_p6 = scmp.eq.s32.totalorder %s642_s30, 3 }
   0xd   : > { %p645_p7 = scmp.ge.s32.totalorder %s912_s28, 1  ;;  %s1246_s8 = smov (%p33_p4, %s1244_s8), 0 }
   0xe   : > { %1231 = sst [smem:[#allocation7_spill]] %s1246_s8  ;;  %p1011_p8 = por %p197_p6, %p196_p5 }
   0xf   : > { %p255_p9 = scmp.lt.s32.totalorder %s912_s28, 5  ;;  %s175_s12 = ssub.s32 %s908_s27, %s1246_s8 }
  0x10   : > { %s180_s13 = sadd.s32 1, %s892_s23  ;;  %s177_s14 = sor.u32 %s176_s9, %s175_s12 }
  0x11   : > { %p256_p10 = pnand %p645_p7, %p255_p9  ;;  %p178_p11 = scmp.eq.s32.totalorder %s177_s14, 0 }
  0x12   : > { %s647_s16 = sshll.u32 (!%p256_p10), %s896_s24, 3  ;;  %p301_p12 = scmp.lt.s32.totalorder (!%p256_p10), %s900_s25, 1 }
  0x13   : > { %s1020_s15 = scalar_select %p178_p11, %s892_s23, %s180_s13  }
  0x14   : > { %259 = sbr.rel (%p256_p10) target bundleno = 73 (0x49), region = 44  ;;  %p303_p13 = scmp.lt.s32.totalorder (!%p256_p10), %s647_s16, 15 }
  0x15   : > { %s662_s30 = sshll.u32 (!%p256_p10), %s896_s24, 4  ;;  %s658_s12 = sshll.u32 (!%p256_p10), %s900_s25, 5 }
  0x16   : > { %s529_s24 = sadd.s32 (!%p256_p10), %s662_s30, %s658_s12  ;;  %s838_s30 = scalar_lea.hbm (!%p256_p10), %s1224_s6, 512 }
  0x19   : > { %s302_s17 = scalar_select %p301_p12, %s900_s25, 1  ;;  %v1038_v0 = vld [vmem:[%s1222_s4] ss:$0 sm:$0xff]  ;;  %vm499_vm0 = vcmask 130048  }
  0x1a   : > { %s1248_s16 = smov (!%p303_p13, %s647_s16), 15  ;;  %v1043_v1 = vld [vmem:[%s1219_s1] ss:$0 sm:$0xff]  ;;  %s659_s25 = sshll.u32 %s529_s24, 3 }
  0x1b   : > { %s649_s18 = sshll.u32 %s302_s17, 5  ;;  %s648_s19 = sshll.u32 %s1248_s16, 1  ;;  %v1051_v6 = vld [vmem:[%s1223_s5] ss:$0 sm:$0xff] }
  0x1c   : > { %s307_s20 = sadd.s32 %s649_s18, %s648_s19  ;;  %v1056_v8 = vld [vmem:[%s1220_s2] ss:$0 sm:$0xff]  ;;  %s297_s19 = sand.u32 1, %s888_s22  }
  0x1d   : > { %s650_s29 = sshll.u32 %s307_s20, 2  ;;  %s646_s20 = sshll.u32 %s297_s19, 7 }
  0x1e   : > { %s1028_s9 = scalar_lea.vmem %s1218_s0, %s650_s29  ;;  %s1033_s14 = scalar_lea.vmem %s1221_s3, %s650_s29 }
  0x1f   : > { %v664_v2 = vld [vmem:[%s1033_s14] sm:$0xff]   ;;  %v727_v4 = vld [vmem:[%s1033_s14 + $0x8] sm:$0xff]   ;;  %v728_v24 = vld [vmem:[%s1033_s14 + $0x10] sm:$0xff]   ;;  %s1087_s29 = scalar_lea.vmem [#allocation2], %s646_s20  ;;  %s517_s8 = scalar_lea.sflag [#allocation3], %s297_s19 }
  0x20   : > { %v696_v3 = vld [vmem:[%s1028_s9] sm:$0xff]   ;;  %v665_v5 = vunpack.c.l.bf16 %v664_v2  ;;  %v666_v9 = vunpack.c.h.bf16 %v664_v2  ;;  %v734_v11 = vld [vmem:[%s1028_s9 + $0x8] sm:$0xff]   ;;  %v669_v12 = vunpack.c.l.bf16 %v727_v4  ;;  %v670_v14 = vunpack.c.h.bf16 %v727_v4  ;;  %v735_v25 = vld [vmem:[%s1028_s9 + $0x10] sm:$0xff]   ;;  %s532_s16 = sshll.u32 %s1087_s29, 4  ;;  %s533_s16 = int_to_ptr.vmem [resolvable:$true] %s532_s16 }
  0x21   : > { %v697_v7 = vunpack.c.l.bf16 %v696_v3  ;;  %v698_v10 = vunpack.c.h.bf16 %v696_v3  ;;  %v701_v13 = vunpack.c.l.bf16 %v734_v11  ;;  %v702_v15 = vunpack.c.h.bf16 %v734_v11  ;;  %v729_v42 = vld [vmem:[%s1033_s14 + $0x18] sm:$0xff]   ;;  %v730_v52 = vld [vmem:[%s1033_s14 + $0x20] sm:$0xff]  }
  0x22   : > { %v359_v16 = vmul.f32 %v1038_v0, %v665_v5  ;;  %v360_v18 = vmul.f32 %v1038_v0, %v666_v9  ;;  %v361_v20 = vmul.f32 %v1038_v0, %v669_v12  ;;  %v362_v22 = vmul.f32 %v1038_v0, %v670_v14  ;;  %v736_v43 = vld [vmem:[%s1028_s9 + $0x18] sm:$0xff]   ;;  %v737_v57 = vld [vmem:[%s1028_s9 + $0x20] sm:$0xff]   ;;  %v731_v14 = vld [vmem:[%s1033_s14 + $0x28] sm:$0xff]  }
  0x23   : > { %v431_v17 = vmul.f32 %v1043_v1, %v697_v7  ;;  %v432_v19 = vmul.f32 %v1043_v1, %v698_v10  ;;  %v433_v21 = vmul.f32 %v1043_v1, %v701_v13  ;;  %v434_v23 = vmul.f32 %v1043_v1, %v702_v15  ;;  %v738_v15 = vld [vmem:[%s1028_s9 + $0x28] sm:$0xff]  }
  0x24   : > { %v379_v26 = vadd.f32 %v1051_v6, %v359_v16  ;;  %v380_v28 = vadd.f32 %v1051_v6, %v360_v18  ;;  %v381_v30 = vadd.f32 %v1051_v6, %v361_v20  ;;  %v382_v32 = vadd.f32 %v1051_v6, %v362_v22 }
  0x25   : > { %v451_v27 = vadd.f32 %v1056_v8, %v431_v17  ;;  %v452_v29 = vadd.f32 %v1056_v8, %v432_v19  ;;  %v453_v31 = vadd.f32 %v1056_v8, %v433_v21  ;;  %v454_v33 = vadd.f32 %v1056_v8, %v434_v23 }
  0x26   : > { %v673_v36 = vunpack.c.l.bf16 %v728_v24  ;;  %v705_v37 = vunpack.c.l.bf16 %v735_v25  ;;  %v674_v40 = vunpack.c.h.bf16 %v728_v24  ;;  %v706_v41 = vunpack.c.h.bf16 %v735_v25 }
  0x27   : > { %v467_v34 = vadd.f32 %v451_v27, %v379_v26  ;;  %v468_v35 = vadd.f32 %v452_v29, %v380_v28  ;;  %v469_v38 = vadd.f32 %v453_v31, %v381_v30  ;;  %v470_v39 = vadd.f32 %v454_v33, %v382_v32  ;;  %v732_v32 = vld [vmem:[%s1033_s14 + $0x30] sm:$0xff]  }
  0x28   : > { %v363_v46 = vmul.f32 %v1038_v0, %v673_v36  ;;  %v435_v47 = vmul.f32 %v1043_v1, %v705_v37  ;;  %v364_v50 = vmul.f32 %v1038_v0, %v674_v40  ;;  %v436_v51 = vmul.f32 %v1043_v1, %v706_v41  ;;  %v739_v37 = vld [vmem:[%s1028_s9 + $0x30] sm:$0xff]  }
  0x29   : > { %v483_v44 = vmax.f32 %v467_v34, 0.0  ;;  %v484_v45 = vmax.f32 %v468_v35, 0.0  ;;  %v485_v48 = vmax.f32 %v469_v38, 0.0  ;;  %v486_v49 = vmax.f32 %v470_v39, 0.0 }
  0x2a   : > { %v383_v53 = vadd.f32 %v1051_v6, %v363_v46  ;;  %v455_v54 = vadd.f32 %v1056_v8, %v435_v47  ;;  %v677_v55 = vunpack.c.l.bf16 %v729_v42  ;;  %v709_v56 = vunpack.c.l.bf16 %v736_v43  ;;  %v733_v46 = vld [vmem:[%s1033_s14 + $0x38] sm:$0xff]   ;;  %s531_s14 = scalar_lea.hbm %s1224_s6, %s659_s25 }
  0x2b   : > { %500 = vst.msk [vmem:[%s1087_s29] sm:$0xff] %vm499_vm0, %v483_v44  ;;  %v384_v58 = vadd.f32 %v1051_v6, %v364_v50  ;;  %v456_v59 = vadd.f32 %v1056_v8, %v436_v51  ;;  %v678_v60 = vunpack.c.h.bf16 %v729_v42  ;;  %v710_v61 = vunpack.c.h.bf16 %v736_v43  ;;  %s534_s17 = sshll.u32 %s531_s14, 4  ;;  %s535_s17 = int_to_ptr.hbm [resolvable:$true] %s534_s17 }
  0x2c   : > { %501 = vst.msk [vmem:[%s1087_s29 + $0x8] sm:$0xff] %vm499_vm0, %v484_v45  ;;  %v471_v62 = vadd.f32 %v455_v54, %v383_v53  ;;  %v365_v63 = vmul.f32 %v1038_v0, %v677_v55  ;;  %v437_v2 = vmul.f32 %v1043_v1, %v709_v56  ;;  %v681_v3 = vunpack.c.l.bf16 %v730_v52  ;;  %v740_v55 = vld [vmem:[%s1028_s9 + $0x38] sm:$0xff]   ;;  %s832_s18 = sshra.s32 %s535_s17, 4  ;;  %s833_s18 = int_to_ptr.hbm [resolvable:$true] %s832_s18 }
  0x2d   : > { %502 = vst.msk [vmem:[%s1087_s29 + $0x10] sm:$0xff] %vm499_vm0, %v485_v48  ;;  %v472_v4 = vadd.f32 %v456_v59, %v384_v58  ;;  %v366_v5 = vmul.f32 %v1038_v0, %v678_v60  ;;  %v438_v7 = vmul.f32 %v1043_v1, %v710_v61  ;;  %v713_v9 = vunpack.c.l.bf16 %v737_v57  ;;  %s834_s27 = scalar_lea.hbm %s833_s18, 128  ;;  %p839_p4 = scmp.lt.s32.totalorder %s833_s18, %s1224_s6 }
  0x2e   : > { %503 = vst.msk [vmem:[%s1087_s29 + $0x18] sm:$0xff] %vm499_vm0, %v486_v49  ;;  %v487_v10 = vmax.f32 %v471_v62, 0.0  ;;  %v385_v11 = vadd.f32 %v1051_v6, %v365_v63  ;;  %v457_v12 = vadd.f32 %v1056_v8, %v437_v2  ;;  %v367_v13 = vmul.f32 %v1038_v0, %v681_v3  ;;  %p835_p0 = scmp.ne.s32.totalorder %s833_s18, %s834_s27  ;;  %p840_p5 = scmp.lt.s32.totalorder %s838_s30, %s834_s27 }
  0x2f   : > { %v488_v16 = vmax.f32 %v472_v4, 0.0  ;;  %v386_v17 = vadd.f32 %v1051_v6, %v366_v5  ;;  %v458_v18 = vadd.f32 %v1056_v8, %v438_v7  ;;  %v439_v19 = vmul.f32 %v1043_v1, %v713_v9 }
  0x30   : > { %504 = vst.msk [vmem:[%s1087_s29 + $0x20] sm:$0xff] %vm499_vm0, %v487_v10  ;;  %v473_v20 = vadd.f32 %v457_v12, %v385_v11  ;;  %v387_v21 = vadd.f32 %v1051_v6, %v367_v13  ;;  %v682_v22 = vunpack.c.h.bf16 %v730_v52  ;;  %v714_v23 = vunpack.c.h.bf16 %v737_v57  ;;  %p836_p1 = pnand %p835_p0, %p1002_p3  ;;  %p841_p6 = por %p840_p5, %p839_p4 }
  0x31   : > { %505 = vst.msk [vmem:[%s1087_s29 + $0x28] sm:$0xff] %vm499_vm0, %v488_v16  ;;  %v474_v24 = vadd.f32 %v458_v18, %v386_v17  ;;  %v459_v25 = vadd.f32 %v1056_v8, %v439_v19  ;;  %v685_v26 = vunpack.c.l.bf16 %v731_v14  ;;  %v717_v27 = vunpack.c.l.bf16 %v738_v15 }
  0x32   : > { %v489_v28 = vmax.f32 %v473_v20, 0.0  ;;  %v368_v29 = vmul.f32 %v1038_v0, %v682_v22  ;;  %v440_v30 = vmul.f32 %v1043_v1, %v714_v23  ;;  %v686_v31 = vunpack.c.h.bf16 %v731_v14  ;;  %p837_p2 = pneg %p836_p1 }
  0x33   : > { %v490_v33 = vmax.f32 %v474_v24, 0.0  ;;  %v475_v34 = vadd.f32 %v459_v25, %v387_v21  ;;  %v369_v35 = vmul.f32 %v1038_v0, %v685_v26  ;;  %v441_v36 = vmul.f32 %v1043_v1, %v717_v27 }
  0x34   : > { %506 = vst.msk [vmem:[%s1087_s29 + $0x30] sm:$0xff] %vm499_vm0, %v489_v28  ;;  %v388_v38 = vadd.f32 %v1051_v6, %v368_v29  ;;  %v460_v39 = vadd.f32 %v1056_v8, %v440_v30  ;;  %v370_v40 = vmul.f32 %v1038_v0, %v686_v31  ;;  %v718_v41 = vunpack.c.h.bf16 %v738_v15  ;;  %p842_p7 = pnand %p841_p6, %p837_p2 }
  0x35   : > { %507 = vst.msk [vmem:[%s1087_s29 + $0x38] sm:$0xff] %vm499_vm0, %v490_v33  ;;  %v491_v42 = vmax.f32 %v475_v34, 0.0  ;;  %v389_v43 = vadd.f32 %v1051_v6, %v369_v35  ;;  %v461_v44 = vadd.f32 %v1056_v8, %v441_v36  ;;  %v689_v45 = vunpack.c.l.bf16 %v732_v32 }
  0x36   : > { %v476_v47 = vadd.f32 %v460_v39, %v388_v38  ;;  %v390_v48 = vadd.f32 %v1051_v6, %v370_v40  ;;  %v442_v49 = vmul.f32 %v1043_v1, %v718_v41  ;;  %v721_v50 = vunpack.c.l.bf16 %v739_v37 }
  0x37   : > { %508 = vst.msk [vmem:[%s1087_s29 + $0x40] sm:$0xff] %vm499_vm0, %v491_v42  ;;  %v477_v51 = vadd.f32 %v461_v44, %v389_v43  ;;  %v371_v52 = vmul.f32 %v1038_v0, %v689_v45  ;;  %v690_v53 = vunpack.c.h.bf16 %v732_v32  ;;  %v722_v54 = vunpack.c.h.bf16 %v739_v37 }
  0x38   : > { %v492_v56 = vmax.f32 %v476_v47, 0.0  ;;  %v462_v57 = vadd.f32 %v1056_v8, %v442_v49  ;;  %v443_v58 = vmul.f32 %v1043_v1, %v721_v50  ;;  %v693_v59 = vunpack.c.l.bf16 %v733_v46 }
  0x39   : > { %v493_v60 = vmax.f32 %v477_v51, 0.0  ;;  %v391_v61 = vadd.f32 %v1051_v6, %v371_v52  ;;  %v372_v62 = vmul.f32 %v1038_v0, %v690_v53  ;;  %v444_v63 = vmul.f32 %v1043_v1, %v722_v54 }
  0x3a   : > { %509 = vst.msk [vmem:[%s1087_s29 + $0x48] sm:$0xff] %vm499_vm0, %v492_v56  ;;  %v478_v2 = vadd.f32 %v462_v57, %v390_v48  ;;  %v463_v3 = vadd.f32 %v1056_v8, %v443_v58  ;;  %v373_v4 = vmul.f32 %v1038_v0, %v693_v59  ;;  %v725_v5 = vunpack.c.l.bf16 %v740_v55 }
  0x3b   : > { %510 = vst.msk [vmem:[%s1087_s29 + $0x50] sm:$0xff] %vm499_vm0, %v493_v60  ;;  %v392_v7 = vadd.f32 %v1051_v6, %v372_v62  ;;  %v464_v9 = vadd.f32 %v1056_v8, %v444_v63  ;;  %v694_v10 = vunpack.c.h.bf16 %v733_v46  ;;  %v726_v11 = vunpack.c.h.bf16 %v740_v55 }
  0x3c   : > { %v494_v12 = vmax.f32 %v478_v2, 0.0  ;;  %v479_v13 = vadd.f32 %v463_v3, %v391_v61  ;;  %v393_v14 = vadd.f32 %v1051_v6, %v373_v4  ;;  %v445_v15 = vmul.f32 %v1043_v1, %v725_v5 }
  0x3d   : > { %v480_v16 = vadd.f32 %v464_v9, %v392_v7  ;;  %v374_v17 = vmul.f32 %v1038_v0, %v694_v10  ;;  %v446_v18 = vmul.f32 %v1043_v1, %v726_v11 }
  0x3e   : > { %511 = vst.msk [vmem:[%s1087_s29 + $0x58] sm:$0xff] %vm499_vm0, %v494_v12  ;;  %v495_v19 = vmax.f32 %v479_v13, 0.0  ;;  %v465_v20 = vadd.f32 %v1056_v8, %v445_v15 }
  0x3f   : > { %v496_v21 = vmax.f32 %v480_v16, 0.0  ;;  %v394_v22 = vadd.f32 %v1051_v6, %v374_v17  ;;  %v466_v23 = vadd.f32 %v1056_v8, %v446_v18 }
  0x40   : > { %512 = vst.msk [vmem:[%s1087_s29 + $0x60] sm:$0xff] %vm499_vm0, %v495_v19  ;;  %v481_v0 = vadd.f32 %v465_v20, %v393_v14 }
  0x41   : > { %513 = vst.msk [vmem:[%s1087_s29 + $0x68] sm:$0xff] %vm499_vm0, %v496_v21  ;;  %v482_v1 = vadd.f32 %v466_v23, %v394_v22 }
  0x42   : > { %v497_v24 = vmax.f32 %v481_v0, 0.0 }
  0x43   : > { %v498_v25 = vmax.f32 %v482_v1, 0.0 }
  0x44   : > { %514 = vst.msk [vmem:[%s1087_s29 + $0x70] sm:$0xff] %vm499_vm0, %v497_v24 }
  0x45   : > { %515 = vst.msk [vmem:[%s1087_s29 + $0x78] sm:$0xff] %vm499_vm0, %v498_v25 }
  0x46   : > { %845 = shalt.err (!%p842_p7)
}
  0x47   : > { %s914_s19 = smov 128   ;;  %s915_s29 = smov 8  }
  0x48   : > { %741 = dma.vmem_to_hbm [thread:$0]  (%p1002_p3), %s533_s16, 2048, %s535_s17, %s517_s8, %s914_s19, %s914_s19, %s915_s29  }
  0x49 PF: > { %p747_p9 = scmp.ge.s32.totalorder %s912_s28, 2  ;;  %s549_s25 = sand.u32 1, %s884_s21  }
  0x4a   : > { %s550_s9 = scalar_lea.sflag [#allocation3], %s549_s25 }
  0x4b   : > { %p744_p10 = pnand %p747_p9, %p1011_p8 }
  0x4d   : > { %p745_p11 = pneg %p744_p10 }
  0x4f   : > { %879 = dma.done.wait (%p745_p11), %s550_s9, 2048  }
  0x50   : > { %881 = vsyncadd (%p745_p11), %s550_s9, 4294965248  ;;  %s19_s28 = sadd.s32 1, %s912_s28   ;;  %s1233_s25 = sld [smem:[#allocation5_spill]] }
  0x51   : > { %p16_p12 = scmp.ge.s32.totalorder %s19_s28, 6   ;;  %s1234_s10 = sld [smem:[#allocation6_spill]] }
  0x52   : > { %s1235_s27 = sld [smem:[#allocation7_spill]]  ;;  %s1236_s21 = smov %s888_s22 }
  0x53   : > { %s1237_s22 = smov %s892_s23  ;;  %s1238_s23 = smov %s1020_s15 }
  0x54   : > { %s1239_s24 = smov %s904_s26  ;;  %18 = sbr.rel (!%p16_p12) target bundleno = 5 (0x5), region = 82 }
  0x57   : > { %s1240_s26 = smov %s1234_s10 }
  0x59   :  { %556 = vsyncpa [#allocation3], 1 }
  0x5a   :  { %558 = vsyncpa [#allocation3 + $0x1], 1 }

// kernel: bottleneck_forward.6
= control target key start
LH: loop header
LB: loop body
LE: loop exit
PB: predicated region body
PF: predicated region fallthrough
CT: control target
= control target key end

     0   :  { %s1061_s18 = smov 0   ;;  %s1063_s19 = smov 0   ;;  %s1308_s0 = inlined_call_operand.vmem [shape: bf16[2,16,16,128], index: 0, kind: input, shape index: {}]   ;;  %s1309_s1 = inlined_call_operand.vmem [shape: f32[1,128], index: 1, kind: input, shape index: {}]   ;;  %s1310_s2 = inlined_call_operand.vmem [shape: f32[1,128], index: 2, kind: input, shape index: {}]   ;;  %s1311_s3 = inlined_call_operand.vmem [shape: bf16[128,128], index: 3, kind: input, shape index: {}]   ;;  %s1312_s4 = inlined_call_operand.vmem [shape: bf16[2,16,16,16], index: 4, kind: output, shape index: {0}]   ;;  %s1313_s5 = inlined_call_operand.vmem [shape: f32[2,2,2,16], index: 5, kind: output, shape index: {1}]  }
   0x1   :  { %s1065_s20 = smov 0   ;;  %s1067_s21 = smov 0  }
   0x2   :  { %s1069_s22 = smov 0  }
   0x3 LB: > { %s25_s23 = sadd.s32 1, %s1021_s20  ;;  %s28_s24 = sadd.s32 1, %s1025_s21  ;;  %s1029_s22 = sphi %s1069_s22, %s16_s22   ;;  %s1025_s21 = sphi %s1067_s21, %s1317_s21   ;;  %s1021_s20 = sphi %s1065_s20, %s1316_s20   ;;  %s1017_s19 = sphi %s1063_s19, %s1315_s19   ;;  %s1013_s18 = sphi %s1061_s18, %s1314_s18  }
   0x4   : > { %p26_p0 = scmp.ge.s32.totalorder %s25_s23, 2  ;;  %p833_p1 = scmp.ge.s32.totalorder %s1029_s22, 1 }
   0x5   : > { %p214_p2 = scmp.lt.s32.totalorder %s1029_s22, 5 }
   0x6   : > { %s1319_s23 = smov (%p26_p0, %s25_s23), 0  ;;  %s1321_s24 = smov (!%p26_p0, %s28_s24), %s1025_s21 }
   0x7   : > { %p215_p3 = pnand %p833_p1, %p214_p2  ;;  %p30_p4 = scmp.ge.s32.totalorder %s1321_s24, 2 }
   0x8   : > { %s834_s27 = sshll.u32 (!%p215_p3), %s1013_s18, 3  ;;  %p261_p5 = scmp.lt.s32.totalorder (!%p215_p3), %s1017_s19, 1 }
   0x9   : > { %s1323_s24 = smov (%p30_p4, %s1321_s24), 0  ;;  %218 = sbr.rel (%p215_p3) target bundleno = 239 (0xef), region = 36 }
   0xa   : > { %p263_p6 = scmp.lt.s32.totalorder (!%p215_p3), %s834_s27, 15  ;;  %p284_p7 = scmp.lt.s32.totalorder (!%p215_p3), %s1013_s18, 1 }
   0xe   : > { %v885_v0 = vld [vmem:[%s1311_s3 + $0x38] sm:$0xff]  ;;  %v884_v1 = vld [vmem:[%s1311_s3 + $0x30] sm:$0xff]  ;;  %s1325_s19 = smov (!%p261_p5, %s1017_s19), 1  ;;  %s1327_s27 = smov (!%p263_p6, %s834_s27), 15  ;;  %v883_v2 = vld [vmem:[%s1311_s3 + $0x28] sm:$0xff]  ;;  %vm571_vm0 = vcmask 125952  }
   0xf   : > { %506 = vmatpush.bf16.msra.mxu0 %v885_v0  ;;  %925 = vmatpush.bf16.msra.mxu1 %v885_v0  ;;  %s836_s30 = sshll.u32 %s1325_s19, 5  ;;  %s835_s6 = sshll.u32 %s1327_s27, 1  ;;  %v1119_v3 = vld [vmem:[%s1309_s1] ss:$0 sm:$0xff]  ;;  %v881_v26 = vld [vmem:[%s1311_s3 + $0x18] sm:$0xff]  ;;  %v880_v42 = vld [vmem:[%s1311_s3 + $0x10] sm:$0xff] }
  0x10   : > { %926 = vmatpush.bf16.msra.mxu2 %v885_v0  ;;  %927 = vmatpush.bf16.msra.mxu3 %v885_v0  ;;  %s1106_s9 = sadd.s32 %s836_s30, %s835_s6  ;;  %v882_v7 = vld [vmem:[%s1311_s3 + $0x20] sm:$0xff]  ;;  %v879_v57 = vld [vmem:[%s1311_s3 + $0x8] sm:$0xff]  ;;  %vm588_vm1 = vcmask 130048   ;;  %s1329_s18 = smov (!%p284_p7, %s1013_s18), 1  ;;  %vm679_vm2 = vcmask 1040384   ;;  %vm681_vm3 = vcmask 123904  }
  0x11   : > { %s837_s10 = sshll.u32 %s1106_s9, 2  ;;  %v1130_v10 = vld [vmem:[%s1310_s2] ss:$0 sm:$0xff]  ;;  %s842_s9 = sshll.u32 %s1325_s19, 1 }
  0x12   : > { %s1114_s13 = scalar_lea.vmem %s1308_s0, %s837_s10  ;;  %s1186_s14 = scalar_lea.vmem %s1312_s4, %s837_s10 }
  0x13   : > { %507 = vmatpush.bf16.msra.mxu0 %v884_v1  ;;  %928 = vmatpush.bf16.msra.mxu1 %v884_v1  ;;  %v887_v4 = vld [vmem:[%s1114_s13] sm:$0xff]   ;;  %v919_v5 = vld [vmem:[%s1114_s13 + $0x10] sm:$0xff]   ;;  %v918_v41 = vld [vmem:[%s1114_s13 + $0x8] sm:$0xff]   ;;  %s287_s10 = sadd.s32 %s842_s9, %s1329_s18 }
  0x14   : > { %929 = vmatpush.bf16.msra.mxu2 %v884_v1  ;;  %930 = vmatpush.bf16.msra.mxu3 %v884_v1  ;;  %v921_v6 = vld [vmem:[%s1114_s13 + $0x20] sm:$0xff]   ;;  %v888_v8 = vunpack.c.l.bf16 %v887_v4  ;;  %v889_v9 = vunpack.c.h.bf16 %v887_v4  ;;  %v896_v11 = vunpack.c.l.bf16 %v919_v5  ;;  %v897_v12 = vunpack.c.h.bf16 %v919_v5  ;;  %v923_v13 = vld [vmem:[%s1114_s13 + $0x30] sm:$0xff]   ;;  %v920_v54 = vld [vmem:[%s1114_s13 + $0x18] sm:$0xff]   ;;  %s843_s15 = sshll.u32 %s287_s10, 1 }
  0x15   : > { %v904_v14 = vunpack.c.l.bf16 %v921_v6  ;;  %v905_v15 = vunpack.c.h.bf16 %v921_v6  ;;  %v912_v16 = vunpack.c.l.bf16 %v923_v13  ;;  %v913_v17 = vunpack.c.h.bf16 %v923_v13  ;;  %v922_v56 = vld [vmem:[%s1114_s13 + $0x28] sm:$0xff]   ;;  %v924_v62 = vld [vmem:[%s1114_s13 + $0x38] sm:$0xff]   ;;  %v878_v13 = vld [vmem:[%s1311_s3] sm:$0xff]  ;;  %s289_s25 = scalar_lea.vmem %s1313_s5, %s843_s15 }
  0x16   : > { %v326_v18 = vmul.f32 %v1119_v3, %v888_v8  ;;  %v327_v19 = vmul.f32 %v1119_v3, %v889_v9  ;;  %v330_v20 = vmul.f32 %v1119_v3, %v896_v11  ;;  %v331_v21 = vmul.f32 %v1119_v3, %v897_v12 }
  0x17   : > { %508 = vmatpush.bf16.msra.mxu0 %v883_v2  ;;  %931 = vmatpush.bf16.msra.mxu1 %v883_v2  ;;  %v334_v22 = vmul.f32 %v1119_v3, %v904_v14  ;;  %v335_v23 = vmul.f32 %v1119_v3, %v905_v15  ;;  %v338_v24 = vmul.f32 %v1119_v3, %v912_v16  ;;  %v892_v52 = vunpack.c.l.bf16 %v918_v41 }
  0x18   : > { %932 = vmatpush.bf16.msra.mxu2 %v883_v2  ;;  %933 = vmatpush.bf16.msra.mxu3 %v883_v2  ;;  %v339_v25 = vmul.f32 %v1119_v3, %v913_v17  ;;  %v346_v27 = vadd.f32 %v1130_v10, %v326_v18  ;;  %v347_v28 = vadd.f32 %v1130_v10, %v327_v19  ;;  %v893_v53 = vunpack.c.h.bf16 %v918_v41 }
  0x19   : > { %v350_v29 = vadd.f32 %v1130_v10, %v330_v20  ;;  %v351_v30 = vadd.f32 %v1130_v10, %v331_v21  ;;  %v354_v31 = vadd.f32 %v1130_v10, %v334_v22  ;;  %v355_v32 = vadd.f32 %v1130_v10, %v335_v23 }
  0x1a   : > { %v362_v33 = vmax.f32 %v346_v27, 0.0  ;;  %v363_v34 = vmax.f32 %v347_v28, 0.0  ;;  %v358_v36 = vadd.f32 %v1130_v10, %v338_v24  ;;  %v359_v40 = vadd.f32 %v1130_v10, %v339_v25 }
  0x1b   : > { %509 = vmatpush.bf16.msra.mxu0 %v882_v7  ;;  %934 = vmatpush.bf16.msra.mxu1 %v882_v7  ;;  %v366_v35 = vmax.f32 %v350_v29, 0.0  ;;  %v367_v37 = vmax.f32 %v351_v30, 0.0  ;;  %v370_v38 = vmax.f32 %v354_v31, 0.0  ;;  %v371_v39 = vmax.f32 %v355_v32, 0.0 }
  0x1c   : > { %935 = vmatpush.bf16.msra.mxu2 %v882_v7  ;;  %936 = vmatpush.bf16.msra.mxu3 %v882_v7  ;;  %v378_v43 = vpack.c.bf16 %v362_v33, %v362_v33  ;;  %v379_v44 = vpack.c.bf16 %v363_v34, %v363_v34  ;;  %v374_v46 = vmax.f32 %v358_v36, 0.0  ;;  %v375_v50 = vmax.f32 %v359_v40, 0.0 }
  0x1d   : > { %v382_v45 = vpack.c.bf16 %v366_v35, %v366_v35  ;;  %v383_v47 = vpack.c.bf16 %v367_v37, %v367_v37  ;;  %v386_v48 = vpack.c.bf16 %v370_v38, %v370_v38  ;;  %v387_v49 = vpack.c.bf16 %v371_v39, %v371_v39 }
  0x1e   : > { %v390_v51 = vpack.c.bf16 %v374_v46, %v374_v46  ;;  %v391_v55 = vpack.c.bf16 %v375_v50, %v375_v50  ;;  %v426_v58 = vunpack.c.l.b16 %v378_v43  ;;  %v427_v59 = vunpack.c.l.b16 %v379_v44 }
  0x1f   : > { %510 = vmatpush.bf16.msra.mxu0 %v881_v26  ;;  %937 = vmatpush.bf16.msra.mxu1 %v881_v26  ;;  %v430_v60 = vunpack.c.l.b16 %v382_v45  ;;  %v431_v61 = vunpack.c.l.b16 %v383_v47  ;;  %v434_v63 = vunpack.c.l.b16 %v386_v48  ;;  %v435_v0 = vunpack.c.l.b16 %v387_v49 }
  0x20   : > { %938 = vmatpush.bf16.msra.mxu2 %v881_v26  ;;  %939 = vmatpush.bf16.msra.mxu3 %v881_v26  ;;  %v438_v1 = vunpack.c.l.b16 %v390_v51  ;;  %v900_v2 = vunpack.c.l.bf16 %v920_v54  ;;  %v328_v4 = vmul.f32 %v1119_v3, %v892_v52  ;;  %v329_v5 = vmul.f32 %v1119_v3, %v893_v53 }
  0x21   : > { %v901_v6 = vunpack.c.h.bf16 %v920_v54  ;;  %v908_v7 = vunpack.c.l.bf16 %v922_v56  ;;  %v439_v8 = vunpack.c.l.b16 %v391_v55  ;;  %v909_v11 = vunpack.c.h.bf16 %v922_v56 }
  0x22   : > { %v332_v9 = vmul.f32 %v1119_v3, %v900_v2  ;;  %v916_v12 = vunpack.c.l.bf16 %v924_v62  ;;  %v442_v16 = vpack.c.b16 %v427_v59, %v426_v58  ;;  %v917_v18 = vunpack.c.h.bf16 %v924_v62 }
  0x23   : > { %511 = vmatpush.bf16.msra.mxu0 %v880_v42  ;;  %940 = vmatpush.bf16.msra.mxu1 %v880_v42  ;;  %v333_v14 = vmul.f32 %v1119_v3, %v901_v6  ;;  %v336_v15 = vmul.f32 %v1119_v3, %v908_v7  ;;  %v337_v17 = vmul.f32 %v1119_v3, %v909_v11 }
  0x24   : > { %941 = vmatpush.bf16.msra.mxu2 %v880_v42  ;;  %942 = vmatpush.bf16.msra.mxu3 %v880_v42  ;;  %v340_v19 = vmul.f32 %v1119_v3, %v916_v12  ;;  %v444_v20 = vpack.c.b16 %v431_v61, %v430_v60  ;;  %v446_v21 = vpack.c.b16 %v435_v0, %v434_v63 }
  0x25   : > { %v348_v22 = vadd.f32 %v1130_v10, %v328_v4  ;;  %v349_v23 = vadd.f32 %v1130_v10, %v329_v5  ;;  %v448_v24 = vpack.c.b16 %v439_v8, %v438_v1  ;;  %v352_v25 = vadd.f32 %v1130_v10, %v332_v9 }
  0x26   : > { %v353_v26 = vadd.f32 %v1130_v10, %v333_v14  ;;  %v341_v27 = vmul.f32 %v1119_v3, %v917_v18  ;;  %v356_v28 = vadd.f32 %v1130_v10, %v336_v15  ;;  %v357_v29 = vadd.f32 %v1130_v10, %v337_v17 }
  0x27   : > { %512 = vmatpush.bf16.msra.mxu0 %v879_v57  ;;  %943 = vmatpush.bf16.msra.mxu1 %v879_v57  ;;  %v360_v30 = vadd.f32 %v1130_v10, %v340_v19  ;;  %v364_v32 = vmax.f32 %v348_v22, 0.0  ;;  %v365_v33 = vmax.f32 %v349_v23, 0.0  ;;  %v368_v34 = vmax.f32 %v352_v25, 0.0 }
  0x28   : > { %944 = vmatpush.bf16.msra.mxu2 %v879_v57  ;;  %945 = vmatpush.bf16.msra.mxu3 %v879_v57  ;;  %v361_v31 = vadd.f32 %v1130_v10, %v341_v27  ;;  %v369_v35 = vmax.f32 %v353_v26, 0.0  ;;  %v372_v3 = vmax.f32 %v356_v28, 0.0  ;;  %v373_v36 = vmax.f32 %v357_v29, 0.0 }
  0x29   : > { %v376_v37 = vmax.f32 %v360_v30, 0.0  ;;  %v380_v39 = vpack.c.bf16 %v364_v32, %v364_v32  ;;  %v381_v40 = vpack.c.bf16 %v365_v33, %v365_v33  ;;  %v384_v41 = vpack.c.bf16 %v368_v34, %v368_v34 }
  0x2a   : > { %v377_v38 = vmax.f32 %v361_v31, 0.0  ;;  %v385_v42 = vpack.c.bf16 %v369_v35, %v369_v35  ;;  %v388_v43 = vpack.c.bf16 %v372_v3, %v372_v3  ;;  %v389_v44 = vpack.c.bf16 %v373_v36, %v373_v36 }
  0x2b   : > { %513 = vmatpush.bf16.msra.mxu0 %v878_v13  ;;  %946 = vmatpush.bf16.msra.mxu1 %v878_v13  ;;  %v392_v45 = vpack.c.bf16 %v376_v37, %v376_v37  ;;  %v428_v46 = vunpack.c.l.b16 %v380_v39  ;;  %v429_v47 = vunpack.c.l.b16 %v381_v40  ;;  %v432_v48 = vunpack.c.l.b16 %v384_v41 }
  0x2c   : > { %947 = vmatpush.bf16.msra.mxu2 %v878_v13  ;;  %948 = vmatpush.bf16.msra.mxu3 %v878_v13  ;;  %v393_v10 = vpack.c.bf16 %v377_v38, %v377_v38  ;;  %v433_v49 = vunpack.c.l.b16 %v385_v42  ;;  %v436_v50 = vunpack.c.l.b16 %v388_v43  ;;  %v437_v51 = vunpack.c.l.b16 %v389_v44 }
  0x2d   : > { %v440_v52 = vunpack.c.l.b16 %v392_v45  ;;  %v443_v54 = vpack.c.b16 %v429_v47, %v428_v46 }
  0x2e   : > { %514 = vmatmul.bf16.vlgmr.msra.gmra.mxu0 %v442_v16  ;;  %524 = vmatmul.bf16.vlgmr.msra.gmra.mxu1 %v444_v20  ;;  %v441_v53 = vunpack.c.l.b16 %v393_v10  ;;  %v445_v55 = vpack.c.b16 %v433_v49, %v432_v48  ;;  %v447_v56 = vpack.c.b16 %v437_v51, %v436_v50 }
  0x2f   : > { %534 = vmatmul.bf16.vlgmr.msra.gmra.mxu2 %v446_v21  ;;  %544 = vmatmul.bf16.vlgmr.msra.gmra.mxu3 %v448_v24 }
  0x30   : > { %v449_v57 = vpack.c.b16 %v441_v53, %v440_v52 }
  0x3e   : > { %519 = vmatmul.bf16.gmra.mxu0 %v443_v54  ;;  %529 = vmatmul.bf16.gmra.mxu1 %v445_v55 }
  0x3f   : > { %539 = vmatmul.bf16.gmra.mxu2 %v447_v56  ;;  %549 = vmatmul.bf16.gmra.mxu3 %v449_v57 }
  0xab   : > { %v515_v58 = vpop.f32.mrf.mxu0  ;;  %v525_v59 = vpop.f32.mrf.mxu1 }
  0xac   : > { %v555_v60 = vpack.c.bf16 %v515_v58, %v515_v58  ;;  %v559_v61 = vpack.c.bf16 %v525_v59, %v525_v59  ;;  %v626_v17 = vmul.f32 %v515_v58, %v515_v58  ;;  %v589_v20 = vsel %vm588_vm1, %v515_v58, 0.0 }
  0xad   : > { %v630_v25 = vmul.f32 %v525_v59, %v525_v59  ;;  %v596_v40 = vsel %vm588_vm1, %v525_v59, 0.0 }
  0xae   : > { %572 = vst.msk [vmem:[%s1186_s14] sm:$0xf] %vm571_vm0, %v555_v60  ;;  %v642_v24 = vsel %vm588_vm1, %v626_v17, 0.0 }
  0xaf   : > { %576 = vst.msk [vmem:[%s1186_s14 + $0x10] sm:$0xf] %vm571_vm0, %v559_v61  ;;  %v649_v45 = vsel %vm588_vm1, %v630_v25, 0.0 }
  0xb2   : > { %v1192_v62 = vpop.f32.mrf.mxu2  ;;  %v1194_v63 = vpop.f32.mrf.mxu3 }
  0xb3   : > { %v517_v0 = vpop.f32.mrf.mxu0  ;;  %v527_v1 = vpop.f32.mrf.mxu1  ;;  %v563_v2 = vpack.c.bf16 %v1192_v62, %v1192_v62  ;;  %v567_v6 = vpack.c.bf16 %v1194_v63, %v1194_v63  ;;  %v634_v57 = vmul.f32 %v1192_v62, %v1192_v62 }
  0xb4   : > { %v556_v4 = vpack.c.bf16 %v517_v0, %v517_v0  ;;  %v560_v5 = vpack.c.bf16 %v527_v1, %v527_v1  ;;  %v627_v13 = vmul.f32 %v517_v0, %v517_v0  ;;  %v590_v18 = vsel %vm588_vm1, %v517_v0, 0.0 }
  0xb5   : > { %580 = vst.msk [vmem:[%s1186_s14 + $0x20] sm:$0xf] %vm571_vm0, %v563_v2  ;;  %v591_v23 = vadd.f32 %v590_v18, %v589_v20  ;;  %v631_v41 = vmul.f32 %v527_v1, %v527_v1  ;;  %v598_v10 = vsel %vm588_vm1, %v527_v1, 0.0  ;;  %v604_v1 = vsel %vm588_vm1, %v1192_v62, 0.0 }
  0xb6   : > { %573 = vst.msk [vmem:[%s1186_s14 + $0x4] sm:$0xf] %vm571_vm0, %v556_v4  ;;  %v643_v21 = vsel %vm588_vm1, %v627_v13, 0.0 }
  0xb7   : > { %577 = vst.msk [vmem:[%s1186_s14 + $0x14] sm:$0xf] %vm571_vm0, %v560_v5  ;;  %v644_v29 = vadd.f32 %v643_v21, %v642_v24  ;;  %v651_v49 = vsel %vm588_vm1, %v631_v41, 0.0 }
  0xb8   : > { %584 = vst.msk [vmem:[%s1186_s14 + $0x30] sm:$0xf] %vm571_vm0, %v567_v6 }
  0xba   : > { %v1208_v7 = vpop.f32.mrf.mxu2  ;;  %v1210_v8 = vpop.f32.mrf.mxu3 }
  0xbb   : > { %v520_v9 = vpop.f32.mrf.mxu0  ;;  %v530_v11 = vpop.f32.mrf.mxu1  ;;  %v564_v12 = vpack.c.bf16 %v1208_v7, %v1208_v7  ;;  %v568_v16 = vpack.c.bf16 %v1210_v8, %v1210_v8  ;;  %v635_v2 = vmul.f32 %v1208_v7, %v1208_v7  ;;  %v639_v24 = vmul.f32 %v1210_v8, %v1210_v8 }
  0xbc   : > { %v557_v14 = vpack.c.bf16 %v520_v9, %v520_v9  ;;  %v561_v15 = vpack.c.bf16 %v530_v11, %v530_v11  ;;  %v628_v19 = vmul.f32 %v520_v9, %v520_v9  ;;  %v592_v22 = vsel %vm588_vm1, %v520_v9, 0.0 }
  0xbd   : > { %581 = vst.msk [vmem:[%s1186_s14 + $0x24] sm:$0xf] %vm571_vm0, %v564_v12  ;;  %v593_v30 = vadd.f32 %v592_v22, %v591_v23  ;;  %v632_v46 = vmul.f32 %v530_v11, %v530_v11  ;;  %v600_v50 = vsel %vm588_vm1, %v530_v11, 0.0  ;;  %v657_v9 = vsel %vm588_vm1, %v634_v57, 0.0 }
  0xbe   : > { %574 = vst.msk [vmem:[%s1186_s14 + $0x8] sm:$0xf] %vm571_vm0, %v557_v14  ;;  %v645_v26 = vsel %vm588_vm1, %v628_v19, 0.0  ;;  %v606_v11 = vsel %vm588_vm1, %v1208_v7, 0.0  ;;  %v638_v19 = vmul.f32 %v1194_v63, %v1194_v63  ;;  %v612_v7 = vsel %vm588_vm1, %v1194_v63, 0.0 }
  0xbf   : > { %578 = vst.msk [vmem:[%s1186_s14 + $0x18] sm:$0xf] %vm571_vm0, %v561_v15  ;;  %v646_v38 = vadd.f32 %v645_v26, %v644_v29  ;;  %v653_v58 = vsel %vm588_vm1, %v632_v46, 0.0  ;;  %v659_v15 = vsel %vm588_vm1, %v635_v2, 0.0  ;;  %v667_v63 = vsel %vm588_vm1, %v639_v24, 0.0 }
  0xc0   : > { %585 = vst.msk [vmem:[%s1186_s14 + $0x34] sm:$0xf] %vm571_vm0, %v568_v16  ;;  %v665_v29 = vsel %vm588_vm1, %v638_v19, 0.0 }
  0xc2   : > { %v540_v27 = vpop.f32.mrf.mxu2  ;;  %v1230_v28 = vpop.f32.mrf.mxu3 }
  0xc3   : > { %v522_v31 = vpop.f32.mrf.mxu0  ;;  %v532_v32 = vpop.f32.mrf.mxu1  ;;  %v565_v33 = vpack.c.bf16 %v540_v27, %v540_v27  ;;  %v569_v34 = vpack.c.bf16 %v1230_v28, %v1230_v28  ;;  %v636_v12 = vmul.f32 %v540_v27, %v540_v27  ;;  %v608_v62 = vsel %vm588_vm1, %v540_v27, 0.0 }
  0xc4   : > { %v558_v35 = vpack.c.bf16 %v522_v31, %v522_v31  ;;  %v594_v3 = vsel %vm588_vm1, %v522_v31, 0.0  ;;  %v629_v36 = vmul.f32 %v522_v31, %v522_v31  ;;  %v562_v37 = vpack.c.bf16 %v532_v32, %v532_v32 }
  0xc5   : > { %v595_v39 = vadd.f32 %v594_v3, %v593_v30  ;;  %582 = vst.msk [vmem:[%s1186_s14 + $0x28] sm:$0xf] %vm571_vm0, %v565_v33  ;;  %v633_v51 = vmul.f32 %v532_v32, %v532_v32  ;;  %v602_v59 = vsel %vm588_vm1, %v532_v32, 0.0  ;;  %v661_v20 = vsel %vm588_vm1, %v636_v12, 0.0 }
  0xc6   : > { %575 = vst.msk [vmem:[%s1186_s14 + $0xc] sm:$0xf] %vm571_vm0, %v558_v35  ;;  %v647_v42 = vsel %vm588_vm1, %v629_v36, 0.0  ;;  %v614_v30 = vsel %vm588_vm1, %v1210_v8, 0.0  ;;  %v640_v31 = vmul.f32 %v1230_v28, %v1230_v28 }
  0xc7   : > { %v597_v43 = vadd.f32 %v596_v40, %v595_v39  ;;  %v648_v44 = vadd.f32 %v647_v42, %v646_v38  ;;  %579 = vst.msk [vmem:[%s1186_s14 + $0x1c] sm:$0xf] %vm571_vm0, %v562_v37  ;;  %v655_v4 = vsel %vm588_vm1, %v633_v51, 0.0 }
  0xc8   : > { %586 = vst.msk [vmem:[%s1186_s14 + $0x38] sm:$0xf] %vm571_vm0, %v569_v34  ;;  %v616_v34 = vsel %vm588_vm1, %v1230_v28, 0.0  ;;  %v669_v37 = vsel %vm588_vm1, %v640_v31, 0.0 }
  0xc9   : > { %v650_v47 = vadd.f32 %v649_v45, %v648_v44  ;;  %v599_v48 = vadd.f32 %v598_v10, %v597_v43 }
  0xca   : > { %v542_v52 = vpop.f32.mrf.mxu2  ;;  %v552_v53 = vpop.f32.mrf.mxu3 }
  0xcb   : > { %v601_v54 = vadd.f32 %v600_v50, %v599_v48  ;;  %v652_v55 = vadd.f32 %v651_v49, %v650_v47  ;;  %v566_v56 = vpack.c.bf16 %v542_v52, %v542_v52  ;;  %v570_v60 = vpack.c.bf16 %v552_v53, %v552_v53 }
  0xcc   : > { %v637_v16 = vmul.f32 %v542_v52, %v542_v52  ;;  %v610_v21 = vsel %vm588_vm1, %v542_v52, 0.0  ;;  %v641_v35 = vmul.f32 %v552_v53, %v552_v53  ;;  %v618_v38 = vsel %vm588_vm1, %v552_v53, 0.0 }
  0xcd   : > { %v603_v61 = vadd.f32 %v602_v59, %v601_v54  ;;  %v654_v0 = vadd.f32 %v653_v58, %v652_v55  ;;  %583 = vst.msk [vmem:[%s1186_s14 + $0x2c] sm:$0xf] %vm571_vm0, %v566_v56 }
  0xce   : > { %587 = vst.msk [vmem:[%s1186_s14 + $0x3c] sm:$0xf] %vm571_vm0, %v570_v60  ;;  %v663_v25 = vsel %vm588_vm1, %v637_v16, 0.0  ;;  %v671_v40 = vsel %vm588_vm1, %v641_v35, 0.0 }
  0xcf   : > { %v605_v5 = vadd.f32 %v604_v1, %v603_v61  ;;  %v656_v6 = vadd.f32 %v655_v4, %v654_v0 }
  0xd1   : > { %v658_v13 = vadd.f32 %v657_v9, %v656_v6  ;;  %v607_v14 = vadd.f32 %v606_v11, %v605_v5 }
  0xd3   : > { %v609_v17 = vadd.f32 %v608_v62, %v607_v14  ;;  %v660_v18 = vadd.f32 %v659_v15, %v658_v13 }
  0xd5   : > { %v662_v22 = vadd.f32 %v661_v20, %v660_v18  ;;  %v611_v23 = vadd.f32 %v610_v21, %v609_v17 }
  0xd7   : > { %v613_v26 = vadd.f32 %v612_v7, %v611_v23  ;;  %v664_v27 = vadd.f32 %v663_v25, %v662_v22 }
  0xd9   : > { %v666_v32 = vadd.f32 %v665_v29, %v664_v27  ;;  %v615_v33 = vadd.f32 %v614_v30, %v613_v26 }
  0xdb   : > { %v617_v3 = vadd.f32 %v616_v34, %v615_v33  ;;  %v668_v36 = vadd.f32 %v667_v63, %v666_v32 }
  0xdd   : > { %v670_v8 = vadd.f32 %v669_v37, %v668_v36  ;;  %v619_v39 = vadd.f32 %v618_v38, %v617_v3 }
  0xdf   : > { %v620_v41 = vrot.slane %v619_v39, 4  ;;  %v672_v42 = vadd.f32 %v671_v40, %v670_v8 }
  0xe1   : > { %v621_v43 = vadd.f32 %v620_v41, %v619_v39  ;;  %v673_v44 = vrot.slane %v672_v42, 4 }
  0xe3   : > { %v622_v45 = vrot.slane %v621_v43, 2  ;;  %v674_v28 = vadd.f32 %v673_v44, %v672_v42 }
  0xe5   : > { %v623_v10 = vadd.f32 %v622_v45, %v621_v43  ;;  %v675_v46 = vrot.slane %v674_v28, 2 }
  0xe7   : > { %v624_v47 = vrot.slane %v623_v10, 1  ;;  %v676_v48 = vadd.f32 %v675_v46, %v674_v28 }
  0xe9   : > { %v677_v49 = vrot.slane %v676_v48, 1  ;;  %v625_v50 = vadd.f32 %v624_v47, %v623_v10 }
  0xeb   : > { %v678_v51 = vadd.f32 %v677_v49, %v676_v48 }
  0xed   : > { %v680_v52 = vsel %vm679_vm2, %v625_v50, %v678_v51 }
  0xee   : > { %682 = vst.msk [vmem:[%s289_s25] sm:$0x3] %vm681_vm3, %v680_v52 }
  0xef PF: > { %s16_s22 = sadd.s32 1, %s1029_s22   ;;  %s1314_s18 = smov %s1021_s20 }
  0xf0   : > { %p13_p8 = scmp.ge.s32.totalorder %s16_s22, 6   ;;  %s1315_s19 = smov %s1025_s21 }
  0xf1   : > { %s1316_s20 = smov %s1319_s23  ;;  %s1317_s21 = smov %s1323_s24 }
  0xf2   :  { %15 = sbr.rel (!%p13_p8) target bundleno = 3 (0x3), region = 78 }

// kernel: bottleneck_forward.5
= control target key start
LH: loop header
LB: loop body
LE: loop exit
PB: predicated region body
PF: predicated region fallthrough
CT: control target
= control target key end

     0   :  { %s6445_s18 = smov 0   ;;  %s7912_s0 = inlined_call_operand.vmem [shape: bf16[2,16,16,128], index: 0, kind: input, shape index: {}]   ;;  %s7913_s1 = inlined_call_operand.vmem [shape: f32[1,128], index: 1, kind: input, shape index: {}]   ;;  %s7914_s2 = inlined_call_operand.vmem [shape: f32[1,128], index: 2, kind: input, shape index: {}]   ;;  %s7915_s3 = inlined_call_operand.vmem [shape: bf16[9,128,128], index: 3, kind: input, shape index: {}]   ;;  %s7916_s4 = inlined_call_operand.vmem [shape: bf16[2,16,16,128], index: 4, kind: output, shape index: {0}]   ;;  %s7917_s5 = inlined_call_operand.vmem [shape: f32[2,2,128], index: 5, kind: output, shape index: {1}]  }
   0x1 LB: > { %s5347_s19 = sadd.s32 4294967295, %s6412_s18   ;;  %p5351_p0 = scmp.ge.s32.totalorder %s6412_s18, 1  ;;  %s6412_s18 = sphi %s6445_s18, %s16_s18  }
   0x2   : > { %p190_p1 = scmp.lt.s32.totalorder %s6412_s18, 3 }
   0x4   : > { %p191_p2 = pnand %p5351_p0, %p190_p1 }
   0x6   : > { %194 = sbr.rel (%p191_p2) target bundleno = 875 (0x36b), region = 36 }
   0xb   : > { %v6048_v0 = vld [vmem:[%s7915_s3 + $0x78] sm:$0xff]  ;;  %p222_p3 = scmp.lt.s32.totalorder %s5347_s19, 1  ;;  %v6047_v1 = vld [vmem:[%s7915_s3 + $0x70] sm:$0xff]  ;;  %v6046_v2 = vld [vmem:[%s7915_s3 + $0x68] sm:$0xff]  ;;  %v6414_v26 = vmov 0   ;;  %vm661_vm0 = vcmask 1040384  }
   0xc   : > { %6311 = vmatpush.bf16.msra.mxu1 %v6048_v0  ;;  %6312 = vmatpush.bf16.msra.mxu2 %v6048_v0  ;;  %v6475_v3 = vld [vmem:[%s7913_s1] ss:$0 sm:$0xff]  ;;  %921 = vst [vmem:[#allocation2] sm:$0xf] %v6414_v26  ;;  %vm662_vm1 = vsmask.f32 256 }
   0xd   : > { %s7937_s19 = smov (!%p222_p3, %s5347_s19), 1  ;;  %6313 = vmatpush.bf16.msra.mxu3 %v6048_v0  ;;  %1508 = vmatpush.bf16.msra.mxu0 %v6048_v0  ;;  %v6483_v9 = vld [vmem:[%s7914_s2] ss:$0 sm:$0xff]  ;;  %922 = vst [vmem:[#allocation2 + $0x4] sm:$0xf] %v6414_v26  ;;  %v6044_v35 = vld [vmem:[%s7915_s3 + $0x58] sm:$0xff]  ;;  %vm6521_vm4 = vmand %vm661_vm0, %vm662_vm1 }
   0xe   : > { %s6015_s24 = sshll.u32 %s7937_s19, 7  ;;  %v6045_v19 = vld [vmem:[%s7915_s3 + $0x60] sm:$0xff]  ;;  %923 = vst [vmem:[#allocation2 + $0x8] sm:$0x1] %v6414_v26  ;;  %vm992_vm2 = vsmask.f32 3328 }
   0xf   : > { %s6470_s29 = scalar_lea.vmem %s7912_s0, %s6015_s24  ;;  %925 = vst [vmem:[#allocation2 + $0xcc] sm:$0xf] %v6414_v26  ;;  %vm993_vm3 = vsmask.f32 7440  ;;  %v6043_v51 = vld [vmem:[%s7915_s3 + $0x50] sm:$0xff]  ;;  %vm1878_vm6 = vcmask 1042432   ;;  %s7698_s9 = scalar_lea.vmem %s7916_s4, %s6015_s24 }
  0x10   : > { %6314 = vmatpush.bf16.msra.mxu1 %v6047_v1  ;;  %6315 = vmatpush.bf16.msra.mxu2 %v6047_v1  ;;  %v6283_v4 = vld [vmem:[%s6470_s29 + $0x18] sm:$0xff]   ;;  %v6284_v12 = vld [vmem:[%s6470_s29 + $0x20] sm:$0xff]   ;;  %926 = vst [vmem:[#allocation2 + $0xd0] sm:$0xf] %v6414_v26  ;;  %vm6535_vm5 = vmor %vm992_vm2, %vm993_vm3  ;;  %vm1879_vm7 = vcmask 1046532   ;;  %s5356_s24 = sshll.u32 %s7937_s19, 1 }
  0x11   : > { %v6287_v5 = vld [vmem:[%s6470_s29 + $0x38] sm:$0xff]   ;;  %6316 = vmatpush.bf16.msra.mxu3 %v6047_v1  ;;  %1509 = vmatpush.bf16.msra.mxu0 %v6047_v1  ;;  %v6151_v7 = vunpack.c.l.bf16 %v6283_v4  ;;  %v6152_v8 = vunpack.c.h.bf16 %v6283_v4  ;;  %v6155_v22 = vunpack.c.l.bf16 %v6284_v12  ;;  %v6156_v30 = vunpack.c.h.bf16 %v6284_v12  ;;  %927 = vst [vmem:[#allocation2 + $0xd4] sm:$0x1] %v6414_v26  ;;  %vm6914_vm8 = vmor %vm1878_vm6, %vm1879_vm7  ;;  %s235_s12 = scalar_lea.vmem %s7917_s5, %s5356_s24 }
  0x12   : > { %v6291_v6 = vld [vmem:[%s6470_s29 + $0x58] sm:$0xff]   ;;  %v6167_v10 = vunpack.c.l.bf16 %v6287_v5  ;;  %v6168_v11 = vunpack.c.h.bf16 %v6287_v5 }
  0x13   : > { %v6183_v13 = vunpack.c.l.bf16 %v6291_v6  ;;  %v6184_v14 = vunpack.c.h.bf16 %v6291_v6  ;;  %v311_v15 = vmul.f32 %v6475_v3, %v6151_v7  ;;  %v312_v16 = vmul.f32 %v6475_v3, %v6152_v8  ;;  %v928_v55 = vld [vmem:[#allocation2] sm:$0xf]  ;;  %v6042_v8 = vld [vmem:[%s7915_s3 + $0x48] sm:$0xff] }
  0x14   : > { %v319_v17 = vmul.f32 %v6475_v3, %v6167_v10  ;;  %v320_v18 = vmul.f32 %v6475_v3, %v6168_v11  ;;  %6317 = vmatpush.bf16.msra.mxu1 %v6046_v2  ;;  %6318 = vmatpush.bf16.msra.mxu2 %v6046_v2  ;;  %v313_v34 = vmul.f32 %v6475_v3, %v6155_v22  ;;  %v929_v58 = vld [vmem:[#allocation2 + $0x4] sm:$0xf]  ;;  %v996_v59 = vshrl.u32 %v928_v55, 16 }
  0x15   : > { %v327_v20 = vmul.f32 %v6475_v3, %v6183_v13  ;;  %v328_v21 = vmul.f32 %v6475_v3, %v6184_v14  ;;  %6319 = vmatpush.bf16.msra.mxu3 %v6046_v2  ;;  %1510 = vmatpush.bf16.msra.mxu0 %v6046_v2  ;;  %v347_v23 = vadd.f32 %v6483_v9, %v311_v15  ;;  %v999_v60 = vshll.u32 %v928_v55, 16  ;;  %v6514_v5 = vld [vmem:[#allocation2 + $0x8] sm:$0x1] }
  0x16   : > { %v348_v24 = vadd.f32 %v6483_v9, %v312_v16  ;;  %v355_v25 = vadd.f32 %v6483_v9, %v319_v17  ;;  %v356_v27 = vadd.f32 %v6483_v9, %v320_v18  ;;  %v314_v39 = vmul.f32 %v6475_v3, %v6156_v30 }
  0x17   : > { %v363_v28 = vadd.f32 %v6483_v9, %v327_v20  ;;  %v364_v29 = vadd.f32 %v6483_v9, %v328_v21  ;;  %v379_v31 = vmax.f32 %v347_v23, 0.0  ;;  %v349_v46 = vadd.f32 %v6483_v9, %v313_v34 }
  0x18   : > { %v380_v32 = vmax.f32 %v348_v24, 0.0  ;;  %v387_v33 = vmax.f32 %v355_v25, 0.0  ;;  %6320 = vmatpush.bf16.msra.mxu1 %v6045_v19  ;;  %6321 = vmatpush.bf16.msra.mxu2 %v6045_v19  ;;  %v388_v36 = vmax.f32 %v356_v27, 0.0  ;;  %v6508_v50 = vadd.f32 %v6483_v9, %v314_v39  ;;  %v6041_v27 = vld [vmem:[%s7915_s3 + $0x40] sm:$0xff] }
  0x19   : > { %v395_v37 = vmax.f32 %v363_v28, 0.0  ;;  %v396_v38 = vmax.f32 %v364_v29, 0.0  ;;  %6322 = vmatpush.bf16.msra.mxu3 %v6045_v19  ;;  %1511 = vmatpush.bf16.msra.mxu0 %v6045_v19  ;;  %v411_v40 = vpack.c.bf16 %v379_v31, %v379_v31  ;;  %v381_v56 = vmax.f32 %v349_v46, 0.0  ;;  %v6080_v46 = vld [vmem:[%s7915_s3 + $0xf8] sm:$0xff] }
  0x1a   : > { %v412_v41 = vpack.c.bf16 %v380_v32, %v380_v32  ;;  %v419_v42 = vpack.c.bf16 %v387_v33, %v387_v33  ;;  %v420_v43 = vpack.c.bf16 %v388_v36, %v388_v36  ;;  %v382_v61 = vmax.f32 %v6508_v50, 0.0 }
  0x1b   : > { %v427_v44 = vpack.c.bf16 %v395_v37, %v395_v37  ;;  %v428_v45 = vpack.c.bf16 %v396_v38, %v396_v38  ;;  %v475_v47 = vunpack.c.l.b16 %v411_v40  ;;  %v1005_v0 = vshll.u32 %v929_v58, 16 }
  0x1c   : > { %v476_v48 = vunpack.c.l.b16 %v412_v41  ;;  %v483_v49 = vunpack.c.l.b16 %v419_v42  ;;  %6323 = vmatpush.bf16.msra.mxu1 %v6044_v35  ;;  %6324 = vmatpush.bf16.msra.mxu2 %v6044_v35  ;;  %v484_v52 = vunpack.c.l.b16 %v420_v43  ;;  %v1009_v1 = vshrl.u32 %v929_v58, 16 }
  0x1d   : > { %v491_v53 = vunpack.c.l.b16 %v427_v44  ;;  %v492_v54 = vunpack.c.l.b16 %v428_v45  ;;  %6325 = vmatpush.bf16.msra.mxu3 %v6044_v35  ;;  %1512 = vmatpush.bf16.msra.mxu0 %v6044_v35  ;;  %v998_v6 = vrot.slane %v996_v59, 4  ;;  %v1001_v7 = vrot.slane %v999_v60, 5  ;;  %v6056_v45 = vld [vmem:[%s7915_s3 + $0xb8] sm:$0xff]  ;;  %v6292_v59 = vld [vmem:[%s6470_s29 + $0x60] sm:$0xff]  }
  0x1e   : > { %v504_v57 = vpack.c.b16 %v476_v48, %v475_v47  ;;  %v508_v62 = vpack.c.b16 %v484_v52, %v483_v49  ;;  %v1007_v16 = vrot.slane %v1005_v0, 5  ;;  %v1011_v17 = vrot.slane %v1009_v1, 4  ;;  %v6040_v47 = vld [vmem:[%s7915_s3 + $0x38] sm:$0xff]  ;;  %v6055_v1 = vld [vmem:[%s7915_s3 + $0xb0] sm:$0xff] }
  0x1f   : > { %v512_v63 = vpack.c.b16 %v492_v54, %v491_v53  ;;  %v1002_v15 = vor.u32 %v1001_v7, %v998_v6  ;;  %v1015_v21 = vshll.u32 %v6514_v5, 16  ;;  %v6526_v22 = vpack.c.bf16 %v381_v56, %v381_v56  ;;  %v6088_v53 = vld [vmem:[%s7915_s3 + $0x138] sm:$0xff]  ;;  %v6288_v54 = vld [vmem:[%s6470_s29 + $0x40] sm:$0xff]   ;;  %v6039_v6 = vld [vmem:[%s7915_s3 + $0x30] sm:$0xff] }
  0x20   : > { %v539_v2 = vshrl.u32 %v504_v57, 16  ;;  %v542_v4 = vshll.u32 %v504_v57, 16  ;;  %6326 = vmatpush.bf16.msra.mxu1 %v6043_v51  ;;  %6327 = vmatpush.bf16.msra.mxu2 %v6043_v51  ;;  %v567_v10 = vshrl.u32 %v508_v62, 16  ;;  %v570_v11 = vshll.u32 %v508_v62, 16 }
  0x21   : > { %v595_v12 = vshrl.u32 %v512_v63, 16  ;;  %v598_v13 = vshll.u32 %v512_v63, 16  ;;  %6328 = vmatpush.bf16.msra.mxu3 %v6043_v51  ;;  %1513 = vmatpush.bf16.msra.mxu0 %v6043_v51  ;;  %v1003_v25 = vrot.slane %v1002_v15, 4  ;;  %v1012_v26 = vor.u32 %v1011_v17, %v1007_v16 }
  0x22   : > { %v541_v14 = vrot.slane %v539_v2, 7  ;;  %v569_v19 = vrot.slane %v567_v10, 7  ;;  %v1017_v63 = vrot.slane %v1015_v21, 5  ;;  %v6079_v2 = vld [vmem:[%s7915_s3 + $0xf0] sm:$0xff]  ;;  %v414_v7 = vpack.c.bf16 %v382_v61, %v382_v61 }
  0x23   : > { %v597_v20 = vrot.slane %v595_v12, 7  ;;  %v1008_v36 = vsel %vm6535_vm5, %v1003_v25, %v1007_v16  ;;  %v1013_v58 = vrot.slane %v1012_v26, 4  ;;  %v6171_v10 = vunpack.c.l.bf16 %v6288_v54 }
  0x24   : > { %v544_v23 = vor.u32 %v542_v4, %v541_v14  ;;  %v683_v24 = vsel %vm6521_vm4, %v541_v14, 0  ;;  %6329 = vmatpush.bf16.msra.mxu1 %v6042_v8  ;;  %6330 = vmatpush.bf16.msra.mxu2 %v6042_v8  ;;  %v572_v30 = vor.u32 %v570_v11, %v569_v19  ;;  %v687_v31 = vsel %vm6521_vm4, %v569_v19, 0  ;;  %v6572_v4 = vld [vmem:[%s6470_s29] sm:$0xff]  }
  0x25   : > { %v739_v28 = vunpack.c.l.b16 %v683_v24  ;;  %v600_v32 = vor.u32 %v598_v13, %v597_v20  ;;  %6331 = vmatpush.bf16.msra.mxu3 %v6042_v8  ;;  %1514 = vmatpush.bf16.msra.mxu0 %v6042_v8  ;;  %v751_v34 = vunpack.c.l.b16 %v687_v31  ;;  %v691_v35 = vsel %vm6521_vm4, %v597_v20, 0 }
  0x26   : > { %v667_v33 = vsel %vm6521_vm4, 0, %v544_v23  ;;  %v671_v40 = vsel %vm6521_vm4, 0, %v572_v30  ;;  %v763_v57 = vunpack.c.l.b16 %v691_v35  ;;  %v1396_v0 = vunpack.c.l.b16 %v1008_v36 }
  0x27   : > { %v737_v37 = vunpack.c.l.b16 %v667_v33  ;;  %v738_v38 = vunpack.c.h.b16 %v667_v33  ;;  %v787_v39 = vpack.c.b16 %v739_v28, %v739_v28  ;;  %v749_v41 = vunpack.c.l.b16 %v671_v40 }
  0x28   : > { %v750_v42 = vunpack.c.h.b16 %v671_v40  ;;  %v799_v43 = vpack.c.b16 %v751_v34, %v751_v34  ;;  %v675_v44 = vsel %vm6521_vm4, 0, %v600_v32  ;;  %6332 = vmatpush.bf16.msra.mxu1 %v6041_v27  ;;  %6333 = vmatpush.bf16.msra.mxu2 %v6041_v27  ;;  %v811_v5 = vpack.c.b16 %v763_v57, %v763_v57 }
  0x29   : > { %v785_v48 = vpack.c.b16 %v737_v37, %v737_v37  ;;  %v786_v49 = vpack.c.b16 %v738_v38, %v738_v38  ;;  %884 = vst [vmem:[#allocation2 + $0x38] sm:$0x1] %v787_v39  ;;  %v761_v51 = vunpack.c.l.b16 %v675_v44  ;;  %v762_v52 = vunpack.c.h.b16 %v675_v44  ;;  %6334 = vmatpush.bf16.msra.mxu3 %v6041_v27  ;;  %1515 = vmatpush.bf16.msra.mxu0 %v6041_v27 }
  0x2a   : > { %v797_v55 = vpack.c.b16 %v749_v41, %v749_v41  ;;  %v798_v56 = vpack.c.b16 %v750_v42, %v750_v42  ;;  %896 = vst [vmem:[#allocation2 + $0x68] sm:$0x1] %v799_v43  ;;  %v477_v8 = vunpack.c.l.b16 %v6526_v22  ;;  %v1018_v11 = vsel %vm6535_vm5, %v1013_v58, %v1017_v63 }
  0x2b   : > { %882 = vst [vmem:[#allocation2 + $0x30] sm:$0xf] %v785_v48  ;;  %v809_v60 = vpack.c.b16 %v761_v51, %v761_v51  ;;  %v810_v62 = vpack.c.b16 %v762_v52, %v762_v52  ;;  %v6172_v12 = vunpack.c.h.bf16 %v6288_v54  ;;  %v6187_v13 = vunpack.c.l.bf16 %v6292_v59 }
  0x2c   : > { %2122 = vmatpush.bf16.msrb.mxu2 %v6056_v45  ;;  %883 = vst [vmem:[#allocation2 + $0x34] sm:$0xf] %v786_v49  ;;  %1741 = vmatpush.bf16.msrb.mxu1 %v6040_v47  ;;  %v6188_v14 = vunpack.c.h.bf16 %v6292_v59  ;;  %v1397_v15 = vunpack.c.l.b16 %v1018_v11  ;;  %v478_v16 = vunpack.c.l.b16 %v414_v7  ;;  %v321_v17 = vmul.f32 %v6475_v3, %v6171_v10 }
  0x2d   : > { %2436 = vmatpush.bf16.msrb.mxu3 %v6080_v46  ;;  %3118 = vmatpush.bf16.msrb.mxu0 %v6088_v53  ;;  %894 = vst [vmem:[#allocation2 + $0x60] sm:$0xf] %v797_v55  ;;  %v6139_v19 = vunpack.c.l.bf16 %v6572_v4  ;;  %v322_v50 = vmul.f32 %v6475_v3, %v6172_v12  ;;  %v329_v61 = vmul.f32 %v6475_v3, %v6187_v13  ;;  %v6140_v25 = vunpack.c.h.bf16 %v6572_v4 }
  0x2e   : > { %895 = vst [vmem:[#allocation2 + $0x64] sm:$0xf] %v798_v56  ;;  %v330_v20 = vmul.f32 %v6475_v3, %v6188_v14  ;;  %v1428_v22 = vpack.c.b16 %v1397_v15, %v1396_v0  ;;  %v6588_v23 = vpack.c.b16 %v478_v16, %v477_v8  ;;  %v6591_v24 = vadd.f32 %v6483_v9, %v321_v17 }
  0x2f   : > { %906 = vst [vmem:[#allocation2 + $0x90] sm:$0xf] %v809_v60  ;;  %v6595_v28 = vadd.f32 %v6483_v9, %v322_v50  ;;  %v6598_v30 = vadd.f32 %v6483_v9, %v329_v61 }
  0x30   : > { %2123 = vmatpush.bf16.msrb.mxu2 %v6055_v1  ;;  %v980_v21 = vld [vmem:[#allocation2 + $0x38] sm:$0x1]  ;;  %907 = vst [vmem:[#allocation2 + $0x94] sm:$0xf] %v810_v62  ;;  %1742 = vmatpush.bf16.msrb.mxu1 %v6039_v6  ;;  %v6601_v31 = vadd.f32 %v6483_v9, %v330_v20  ;;  %v546_v34 = vshrl.u32 %v6588_v23, 16  ;;  %v549_v35 = vshll.u32 %v6588_v23, 16 }
  0x31   : > { %2437 = vmatpush.bf16.msrb.mxu3 %v6079_v2  ;;  %v1111_v26 = vshll.u32 %v980_v21, 16  ;;  %v984_v27 = vld [vmem:[#allocation2 + $0x68] sm:$0x1]  ;;  %908 = vst [vmem:[#allocation2 + $0x98] sm:$0x1] %v811_v5  ;;  %1516 = vmatmul.bf16.vlgmr.msra.gmra.mxu0 %v1428_v22  ;;  %v389_v36 = vmax.f32 %v6591_v24, 0.0 }
  0x32   : > { %v936_v32 = vld [vmem:[#allocation2 + $0x30] sm:$0xf]  ;;  %v1207_v33 = vshll.u32 %v984_v27, 16  ;;  %v390_v41 = vmax.f32 %v6595_v28, 0.0  ;;  %v548_v46 = vrot.slane %v546_v34, 7  ;;  %v305_v28 = vmul.f32 %v6475_v3, %v6139_v19 }
  0x33   : > { %v937_v37 = vld [vmem:[#allocation2 + $0x34] sm:$0xf]  ;;  %v1092_v38 = vshrl.u32 %v936_v32, 16  ;;  %v1095_v39 = vshll.u32 %v936_v32, 16  ;;  %v1113_v40 = vrot.slane %v1111_v26, 5 }
  0x34   : > { %v1101_v42 = vshll.u32 %v937_v37, 16  ;;  %v1105_v43 = vshrl.u32 %v937_v37, 16  ;;  %v944_v44 = vld [vmem:[#allocation2 + $0x60] sm:$0xf]  ;;  %v1209_v45 = vrot.slane %v1207_v33, 5 }
  0x35   : > { %v1094_v47 = vrot.slane %v1092_v38, 4  ;;  %v1097_v48 = vrot.slane %v1095_v39, 5  ;;  %v945_v49 = vld [vmem:[#allocation2 + $0x64] sm:$0xf]  ;;  %v1188_v51 = vshrl.u32 %v944_v44, 16  ;;  %v1191_v52 = vshll.u32 %v944_v44, 16 }
  0x36   : > { %v1103_v53 = vrot.slane %v1101_v42, 5  ;;  %v1107_v54 = vrot.slane %v1105_v43, 4  ;;  %v1197_v55 = vshll.u32 %v945_v49, 16  ;;  %v1201_v56 = vshrl.u32 %v945_v49, 16  ;;  %v952_v57 = vld [vmem:[#allocation2 + $0x90] sm:$0xf] }
  0x37   : > { %v1098_v58 = vor.u32 %v1097_v48, %v1094_v47  ;;  %v1190_v59 = vrot.slane %v1188_v51, 4  ;;  %v1193_v60 = vrot.slane %v1191_v52, 5  ;;  %v953_v62 = vld [vmem:[#allocation2 + $0x94] sm:$0xf]  ;;  %v1284_v63 = vshrl.u32 %v952_v57, 16 }
  0x38   : > { %v1108_v0 = vor.u32 %v1107_v54, %v1103_v53  ;;  %v1199_v1 = vrot.slane %v1197_v55, 5  ;;  %v1203_v2 = vrot.slane %v1201_v56, 4  ;;  %v988_v5 = vld [vmem:[#allocation2 + $0x98] sm:$0x1]  ;;  %v1287_v6 = vshll.u32 %v952_v57, 16  ;;  %v6285_v56 = vld [vmem:[%s6470_s29 + $0x28] sm:$0xff]  }
  0x39   : > { %v1099_v7 = vrot.slane %v1098_v58, 4  ;;  %v1194_v8 = vor.u32 %v1193_v60, %v1190_v59  ;;  %v1286_v10 = vrot.slane %v1284_v63, 4  ;;  %v1293_v11 = vshll.u32 %v953_v62, 16 }
  0x3a   : > { %v1109_v12 = vrot.slane %v1108_v0, 4  ;;  %v1204_v13 = vor.u32 %v1203_v2, %v1199_v1  ;;  %v1289_v14 = vrot.slane %v1287_v6, 5  ;;  %v1297_v15 = vshrl.u32 %v953_v62, 16 }
  0x3b   : > { %v1104_v16 = vsel %vm6535_vm5, %v1099_v7, %v1103_v53  ;;  %v1195_v17 = vrot.slane %v1194_v8, 4  ;;  %v1295_v50 = vrot.slane %v1293_v11, 5  ;;  %v1303_v61 = vshll.u32 %v988_v5, 16  ;;  %v6637_v7 = vld [vmem:[%s6470_s29 + $0x48] sm:$0xff]  }
  0x3c   : > { %v1114_v20 = vsel %vm6535_vm5, %v1109_v12, %v1113_v40  ;;  %v1404_v21 = vunpack.c.l.b16 %v1104_v16  ;;  %v1205_v22 = vrot.slane %v1204_v13, 4  ;;  %v1290_v23 = vor.u32 %v1289_v14, %v1286_v10 }
  0x3d   : > { %v1405_v24 = vunpack.c.l.b16 %v1114_v20  ;;  %v1200_v26 = vsel %vm6535_vm5, %v1195_v17, %v1199_v1  ;;  %v1299_v27 = vrot.slane %v1297_v15, 4  ;;  %v1305_v32 = vrot.slane %v1303_v61, 5 }
  0x3e   : > { %v1210_v33 = vsel %vm6535_vm5, %v1205_v22, %v1209_v45  ;;  %v1412_v34 = vunpack.c.l.b16 %v1200_v26  ;;  %v1291_v37 = vrot.slane %v1290_v23, 4  ;;  %v551_v38 = vor.u32 %v549_v35, %v548_v46 }
  0x3f   : > { %v1432_v39 = vpack.c.b16 %v1405_v24, %v1404_v21  ;;  %v1413_v42 = vunpack.c.l.b16 %v1210_v33  ;;  %v1300_v43 = vor.u32 %v1299_v27, %v1295_v50  ;;  %v684_v40 = vsel %vm6521_vm4, %v548_v46, 0 }
  0x40   : > { %v1296_v44 = vsel %vm6535_vm5, %v1291_v37, %v1295_v50  ;;  %v668_v47 = vsel %vm6521_vm4, 0, %v551_v38  ;;  %v742_v48 = vunpack.c.l.b16 %v684_v40  ;;  %v421_v49 = vpack.c.bf16 %v389_v36, %v389_v36 }
  0x41   : > { %1536 = vmatmul.bf16.vlgmr.msra.gmra.mxu1 %v1432_v39  ;;  %v1436_v45 = vpack.c.b16 %v1413_v42, %v1412_v34  ;;  %v1301_v51 = vrot.slane %v1300_v43, 4  ;;  %v1420_v52 = vunpack.c.l.b16 %v1296_v44  ;;  %v740_v35 = vunpack.c.l.b16 %v668_v47 }
  0x42   : > { %v741_v53 = vunpack.c.h.b16 %v668_v47  ;;  %v790_v54 = vpack.c.b16 %v742_v48, %v742_v48  ;;  %v422_v55 = vpack.c.bf16 %v390_v41, %v390_v41  ;;  %v485_v46 = vunpack.c.l.b16 %v421_v49  ;;  %v6054_v47 = vld [vmem:[%s7915_s3 + $0xa8] sm:$0xff] }
  0x43   : > { %1556 = vmatmul.bf16.vlgmr.msra.gmra.mxu2 %v1436_v45  ;;  %v1306_v57 = vsel %vm6535_vm5, %v1301_v51, %v1305_v32  ;;  %v788_v58 = vpack.c.b16 %v740_v35, %v740_v35  ;;  %v397_v36 = vmax.f32 %v6598_v30, 0.0  ;;  %v398_v59 = vmax.f32 %v6601_v31, 0.0 }
  0x44   : > { %v1421_v60 = vunpack.c.l.b16 %v1306_v57  ;;  %v789_v62 = vpack.c.b16 %v741_v53, %v741_v53  ;;  %887 = vst [vmem:[#allocation2 + $0x44] sm:$0x1] %v790_v54  ;;  %v486_v63 = vunpack.c.l.b16 %v422_v55  ;;  %v306_v1 = vmul.f32 %v6475_v3, %v6140_v25  ;;  %2124 = vmatpush.bf16.msrb.mxu2 %v6054_v47 }
  0x45   : > { %885 = vst [vmem:[#allocation2 + $0x3c] sm:$0xf] %v788_v58  ;;  %v429_v41 = vpack.c.bf16 %v397_v36, %v397_v36  ;;  %v430_v0 = vpack.c.bf16 %v398_v59, %v398_v59  ;;  %v6159_v2 = vunpack.c.l.bf16 %v6285_v56  ;;  %v341_v5 = vadd.f32 %v6483_v9, %v305_v28 }
  0x46   : > { %v1440_v30 = vpack.c.b16 %v1421_v60, %v1420_v52  ;;  %886 = vst [vmem:[#allocation2 + $0x40] sm:$0xf] %v789_v62  ;;  %v509_v31 = vpack.c.b16 %v486_v63, %v485_v46  ;;  %v6160_v6 = vunpack.c.h.bf16 %v6285_v56  ;;  %v342_v19 = vadd.f32 %v6483_v9, %v306_v1 }
  0x47   : > { %v493_v8 = vunpack.c.l.b16 %v429_v41  ;;  %v494_v10 = vunpack.c.l.b16 %v430_v0  ;;  %v315_v11 = vmul.f32 %v6475_v3, %v6159_v2  ;;  %v373_v13 = vmax.f32 %v341_v5, 0.0 }
  0x48   : > { %1576 = vmatmul.bf16.vlgmr.msra.gmra.mxu3 %v1440_v30  ;;  %v574_v12 = vshrl.u32 %v509_v31, 16  ;;  %v577_v4 = vshll.u32 %v509_v31, 16  ;;  %v316_v25 = vmul.f32 %v6475_v3, %v6160_v6  ;;  %v374_v15 = vmax.f32 %v342_v19, 0.0 }
  0x49   : > { %v513_v14 = vpack.c.b16 %v494_v10, %v493_v8  ;;  %v351_v16 = vadd.f32 %v6483_v9, %v315_v11  ;;  %v6175_v17 = vunpack.c.l.bf16 %v6637_v7  ;;  %v405_v61 = vpack.c.bf16 %v373_v13, %v373_v13 }
  0x4a   : > { %v576_v50 = vrot.slane %v574_v12, 7  ;;  %v352_v20 = vadd.f32 %v6483_v9, %v316_v25  ;;  %v6176_v21 = vunpack.c.h.bf16 %v6637_v7  ;;  %v406_v26 = vpack.c.bf16 %v374_v15, %v374_v15 }
  0x4b   : > { %v981_v22 = vld [vmem:[#allocation2 + $0x44] sm:$0x1]  ;;  %v602_v23 = vshrl.u32 %v513_v14, 16  ;;  %v605_v24 = vshll.u32 %v513_v14, 16  ;;  %v383_v27 = vmax.f32 %v351_v16, 0.0  ;;  %v469_v38 = vunpack.c.l.b16 %v405_v61  ;;  %v6665_v16 = vld [vmem:[%s6470_s29 + $0x8] sm:$0xff]  }
  0x4c   : > { %v938_v32 = vld [vmem:[#allocation2 + $0x3c] sm:$0xf]  ;;  %v1135_v33 = vshll.u32 %v981_v22, 16  ;;  %v579_v34 = vor.u32 %v577_v4, %v576_v50  ;;  %v688_v37 = vsel %vm6521_vm4, %v576_v50, 0  ;;  %v470_v41 = vunpack.c.l.b16 %v406_v26  ;;  %v6660_v4 = vld [vmem:[%s6470_s29 + $0x68] sm:$0xff]  }
  0x4d   : > { %v939_v39 = vld [vmem:[#allocation2 + $0x40] sm:$0xf]  ;;  %v1116_v42 = vshrl.u32 %v938_v32, 16  ;;  %v1119_v43 = vshll.u32 %v938_v32, 16  ;;  %v754_v40 = vunpack.c.l.b16 %v688_v37  ;;  %v604_v44 = vrot.slane %v602_v23, 7 }
  0x4e   : > { %v1125_v48 = vshll.u32 %v939_v39, 16  ;;  %v1129_v49 = vshrl.u32 %v939_v39, 16  ;;  %v1137_v45 = vrot.slane %v1135_v33, 5  ;;  %v672_v51 = vsel %vm6521_vm4, 0, %v579_v34  ;;  %v6078_v34 = vld [vmem:[%s7915_s3 + $0xe8] sm:$0xff] }
  0x4f   : > { %v1118_v52 = vrot.slane %v1116_v42, 4  ;;  %v1121_v35 = vrot.slane %v1119_v43, 5  ;;  %v752_v53 = vunpack.c.l.b16 %v672_v51  ;;  %v753_v54 = vunpack.c.h.b16 %v672_v51  ;;  %2438 = vmatpush.bf16.msrb.mxu3 %v6078_v34 }
  0x50   : > { %v1127_v55 = vrot.slane %v1125_v48, 5  ;;  %v1131_v46 = vrot.slane %v1129_v49, 4  ;;  %v802_v56 = vpack.c.b16 %v754_v40, %v754_v40  ;;  %v607_v57 = vor.u32 %v605_v24, %v604_v44  ;;  %v6038_v40 = vld [vmem:[%s7915_s3 + $0x28] sm:$0xff] }
  0x51   : > { %v1122_v58 = vor.u32 %v1121_v35, %v1118_v52  ;;  %v800_v36 = vpack.c.b16 %v752_v53, %v752_v53  ;;  %v801_v59 = vpack.c.b16 %v753_v54, %v753_v54  ;;  %v692_v60 = vsel %vm6521_vm4, %v604_v44, 0  ;;  %v6053_v44 = vld [vmem:[%s7915_s3 + $0xa0] sm:$0xff]  ;;  %1743 = vmatpush.bf16.msrb.mxu1 %v6038_v40 }
  0x52   : > { %v1132_v62 = vor.u32 %v1131_v46, %v1127_v55  ;;  %899 = vst [vmem:[#allocation2 + $0x74] sm:$0x1] %v802_v56  ;;  %v676_v63 = vsel %vm6521_vm4, 0, %v607_v57  ;;  %v766_v28 = vunpack.c.l.b16 %v692_v60  ;;  %v384_v30 = vmax.f32 %v352_v20, 0.0  ;;  %v6077_v52 = vld [vmem:[%s7915_s3 + $0xe0] sm:$0xff]  ;;  %v6086_v56 = vld [vmem:[%s7915_s3 + $0x128] sm:$0xff]  ;;  %2125 = vmatpush.bf16.msrb.mxu2 %v6053_v44 }
  0x53   : > { %v1123_v0 = vrot.slane %v1122_v58, 4  ;;  %897 = vst [vmem:[#allocation2 + $0x6c] sm:$0xf] %v800_v36  ;;  %v764_v1 = vunpack.c.l.b16 %v676_v63  ;;  %v765_v2 = vunpack.c.h.b16 %v676_v63  ;;  %v501_v6 = vpack.c.b16 %v470_v41, %v469_v38  ;;  %v6037_v57 = vld [vmem:[%s7915_s3 + $0x20] sm:$0xff]  ;;  %2439 = vmatpush.bf16.msrb.mxu3 %v6077_v52 }
  0x54   : > { %v1133_v31 = vrot.slane %v1132_v62, 4  ;;  %898 = vst [vmem:[#allocation2 + $0x70] sm:$0xf] %v801_v59  ;;  %v814_v5 = vpack.c.b16 %v766_v28, %v766_v28  ;;  %v415_v8 = vpack.c.bf16 %v383_v27, %v383_v27  ;;  %v416_v12 = vpack.c.bf16 %v384_v30, %v384_v30 }
  0x55   : > { %v1128_v10 = vsel %vm6535_vm5, %v1123_v0, %v1127_v55  ;;  %v812_v19 = vpack.c.b16 %v764_v1, %v764_v1  ;;  %v813_v11 = vpack.c.b16 %v765_v2, %v765_v2  ;;  %v518_v14 = vshrl.u32 %v501_v6, 16  ;;  %1744 = vmatpush.bf16.msrb.mxu1 %v6037_v57 }
  0x56   : > { %v1138_v13 = vsel %vm6535_vm5, %v1133_v31, %v1137_v45  ;;  %v1406_v25 = vunpack.c.l.b16 %v1128_v10  ;;  %911 = vst [vmem:[#allocation2 + $0xa4] sm:$0x1] %v814_v5  ;;  %v521_v15 = vshll.u32 %v501_v6, 16  ;;  %v479_v61 = vunpack.c.l.b16 %v415_v8 }
  0x57   : > { %v1407_v50 = vunpack.c.l.b16 %v1138_v13  ;;  %909 = vst [vmem:[#allocation2 + $0x9c] sm:$0xf] %v812_v19  ;;  %v480_v20 = vunpack.c.l.b16 %v416_v12  ;;  %v323_v22 = vmul.f32 %v6475_v3, %v6175_v17  ;;  %v520_v23 = vrot.slane %v518_v14, 7  ;;  %v6087_v17 = vld [vmem:[%s7915_s3 + $0x130] sm:$0xff] }
  0x58   : > { %910 = vst [vmem:[#allocation2 + $0xa0] sm:$0xf] %v813_v11  ;;  %v324_v24 = vmul.f32 %v6475_v3, %v6176_v21  ;;  %v6191_v26 = vunpack.c.l.bf16 %v6660_v4  ;;  %v6192_v27 = vunpack.c.h.bf16 %v6660_v4  ;;  %v6143_v21 = vunpack.c.l.bf16 %v6665_v16  ;;  %3119 = vmatpush.bf16.msrb.mxu0 %v6087_v17 }
  0x59   : > { %v1433_v32 = vpack.c.b16 %v1407_v50, %v1406_v25  ;;  %v985_v33 = vld [vmem:[#allocation2 + $0x74] sm:$0x1]  ;;  %v6681_v37 = vpack.c.b16 %v480_v20, %v479_v61  ;;  %v6684_v7 = vadd.f32 %v6483_v9, %v323_v22  ;;  %v523_v42 = vor.u32 %v521_v15, %v520_v23 }
  0x5a   : > { %v946_v38 = vld [vmem:[#allocation2 + $0x6c] sm:$0xf]  ;;  %v1231_v39 = vshll.u32 %v985_v33, 16  ;;  %v680_v43 = vsel %vm6521_vm4, %v520_v23, 0  ;;  %v6696_v47 = vadd.f32 %v6483_v9, %v324_v24  ;;  %v6702_v35 = vmul.f32 %v6475_v3, %v6191_v26 }
  0x5b   : > { %1541 = vmatmul.bf16.gmra.mxu1 %v1433_v32  ;;  %v947_v48 = vld [vmem:[#allocation2 + $0x70] sm:$0xf]  ;;  %v1212_v49 = vshrl.u32 %v946_v38, 16  ;;  %v1215_v45 = vshll.u32 %v946_v38, 16  ;;  %v730_v51 = vunpack.c.l.b16 %v680_v43  ;;  %v664_v46 = vsel %vm6521_vm4, 0, %v523_v42 }
  0x5c   : > { %v1221_v53 = vshll.u32 %v947_v48, 16  ;;  %v1225_v54 = vshrl.u32 %v947_v48, 16  ;;  %v1233_v55 = vrot.slane %v1231_v39, 5  ;;  %v728_v60 = vunpack.c.l.b16 %v664_v46  ;;  %3120 = vmatpush.bf16.msrb.mxu0 %v6086_v56 }
  0x5d   : > { %v1214_v58 = vrot.slane %v1212_v49, 4  ;;  %v1217_v36 = vrot.slane %v1215_v45, 5  ;;  %v989_v59 = vld [vmem:[#allocation2 + $0xa4] sm:$0x1]  ;;  %v729_v62 = vunpack.c.h.b16 %v664_v46  ;;  %v778_v1 = vpack.c.b16 %v730_v51, %v730_v51 }
  0x5e   : > { %v1223_v63 = vrot.slane %v1221_v53, 5  ;;  %v1227_v28 = vrot.slane %v1225_v54, 4  ;;  %v954_v41 = vld [vmem:[#allocation2 + $0x9c] sm:$0xf]  ;;  %v1327_v0 = vshll.u32 %v989_v59, 16  ;;  %v776_v6 = vpack.c.b16 %v728_v60, %v728_v60 }
  0x5f   : > { %v1218_v2 = vor.u32 %v1217_v36, %v1214_v58  ;;  %v955_v30 = vld [vmem:[#allocation2 + $0xa0] sm:$0xf]  ;;  %v1308_v31 = vshrl.u32 %v954_v41, 16  ;;  %v1311_v5 = vshll.u32 %v954_v41, 16  ;;  %875 = vst [vmem:[#allocation2 + $0x14] sm:$0x1] %v778_v1  ;;  %v777_v14 = vpack.c.b16 %v729_v62, %v729_v62 }
  0x60   : > { %v1228_v8 = vor.u32 %v1227_v28, %v1223_v63  ;;  %v1317_v10 = vshll.u32 %v955_v30, 16  ;;  %v1321_v19 = vshrl.u32 %v955_v30, 16  ;;  %v1329_v11 = vrot.slane %v1327_v0, 5  ;;  %873 = vst [vmem:[#allocation2 + $0xc] sm:$0xf] %v776_v6 }
  0x61   : > { %v1219_v12 = vrot.slane %v1218_v2, 4  ;;  %v1310_v13 = vrot.slane %v1308_v31, 4  ;;  %v1313_v25 = vrot.slane %v1311_v5, 5  ;;  %v553_v20 = vshrl.u32 %v6681_v37, 16  ;;  %874 = vst [vmem:[#allocation2 + $0x10] sm:$0xf] %v777_v14 }
  0x62   : > { %v1229_v15 = vrot.slane %v1228_v8, 4  ;;  %v1319_v50 = vrot.slane %v1317_v10, 5  ;;  %v1323_v61 = vrot.slane %v1321_v19, 4  ;;  %v556_v24 = vshll.u32 %v6681_v37, 16  ;;  %v6739_v5 = vld [vmem:[%s6470_s29 + $0x30] sm:$0xff]  }
  0x63   : > { %v1224_v22 = vsel %vm6535_vm5, %v1219_v12, %v1223_v63  ;;  %v1314_v23 = vor.u32 %v1313_v25, %v1310_v13  ;;  %v391_v26 = vmax.f32 %v6684_v7, 0.0  ;;  %v555_v17 = vrot.slane %v553_v20, 7 }
  0x64   : > { %v1234_v32 = vsel %vm6535_vm5, %v1229_v15, %v1233_v55  ;;  %v1414_v33 = vunpack.c.l.b16 %v1224_v22  ;;  %v1324_v34 = vor.u32 %v1323_v61, %v1319_v50  ;;  %v392_v42 = vmax.f32 %v6696_v47, 0.0 }
  0x65   : > { %v1415_v38 = vunpack.c.l.b16 %v1234_v32  ;;  %v1315_v39 = vrot.slane %v1314_v23, 4  ;;  %v423_v43 = vpack.c.bf16 %v391_v26, %v391_v26  ;;  %v558_v44 = vor.u32 %v556_v24, %v555_v17  ;;  %v6760_v24 = vld [vmem:[%s7914_s2] ss:$0 sm:$0xff] }
  0x66   : > { %v1325_v40 = vrot.slane %v1324_v34, 4  ;;  %v685_v48 = vsel %vm6521_vm4, %v555_v17, 0  ;;  %v332_v37 = vmul.f32 %v6475_v3, %v6192_v27  ;;  %v6727_v45 = vld [vmem:[#allocation2 + $0x14] sm:$0x1]  ;;  %v424_v52 = vpack.c.bf16 %v392_v42, %v392_v42 }
  0x67   : > { %v1437_v7 = vpack.c.b16 %v1415_v38, %v1414_v33  ;;  %v1320_v49 = vsel %vm6535_vm5, %v1315_v39, %v1319_v50  ;;  %v745_v51 = vunpack.c.l.b16 %v685_v48  ;;  %v930_v54 = vld [vmem:[#allocation2 + $0xc] sm:$0xf]  ;;  %v1039_v55 = vshll.u32 %v6727_v45, 16 }
  0x68   : > { %v1330_v47 = vsel %vm6535_vm5, %v1325_v40, %v1329_v11  ;;  %v1422_v53 = vunpack.c.l.b16 %v1320_v49  ;;  %v669_v4 = vsel %vm6521_vm4, 0, %v558_v44  ;;  %v1020_v46 = vshrl.u32 %v930_v54, 16  ;;  %v6734_v58 = vld [vmem:[#allocation2 + $0x10] sm:$0xf] }
  0x69   : > { %1561 = vmatmul.bf16.gmra.mxu2 %v1437_v7  ;;  %v1423_v27 = vunpack.c.l.b16 %v1330_v47  ;;  %v1023_v56 = vshll.u32 %v930_v54, 16  ;;  %v743_v57 = vunpack.c.l.b16 %v669_v4  ;;  %v1041_v36 = vrot.slane %v1039_v55, 5 }
  0x6a   : > { %v744_v59 = vunpack.c.h.b16 %v669_v4  ;;  %v793_v60 = vpack.c.b16 %v745_v51, %v745_v51  ;;  %v487_v62 = vunpack.c.l.b16 %v423_v43  ;;  %v1022_v28 = vrot.slane %v1020_v46, 4 }
  0x6b   : > { %v1441_v63 = vpack.c.b16 %v1423_v27, %v1422_v53  ;;  %v1025_v41 = vrot.slane %v1023_v56, 5  ;;  %v1029_v0 = vshll.u32 %v6734_v58, 16  ;;  %v1033_v1 = vshrl.u32 %v6734_v58, 16 }
  0x6c   : > { %v791_v2 = vpack.c.b16 %v743_v57, %v743_v57  ;;  %v792_v30 = vpack.c.b16 %v744_v59, %v744_v59  ;;  %890 = vst [vmem:[#allocation2 + $0x50] sm:$0x1] %v793_v60  ;;  %v488_v31 = vunpack.c.l.b16 %v424_v52  ;;  %v367_v10 = vadd.f32 %v6483_v9, %v6702_v35 }
  0x6d   : > { %1581 = vmatmul.bf16.gmra.mxu3 %v1441_v63  ;;  %v1026_v6 = vor.u32 %v1025_v41, %v1022_v28  ;;  %v1031_v8 = vrot.slane %v1029_v0, 5  ;;  %v368_v19 = vadd.f32 %v6483_v9, %v332_v37  ;;  %v1035_v11 = vrot.slane %v1033_v1, 4  ;;  %v6752_v9 = vld [vmem:[%s7913_s1] ss:$0 sm:$0xff] }
  0x6e   : > { %888 = vst [vmem:[#allocation2 + $0x48] sm:$0xf] %v791_v2  ;;  %v510_v12 = vpack.c.b16 %v488_v31, %v487_v62  ;;  %v6144_v13 = vunpack.c.h.bf16 %v6665_v16  ;;  %v307_v25 = vmul.f32 %v6475_v3, %v6143_v21  ;;  %v399_v15 = vmax.f32 %v367_v10, 0.0 }
  0x6f   : > { %v1027_v14 = vrot.slane %v1026_v6, 4  ;;  %889 = vst [vmem:[#allocation2 + $0x4c] sm:$0xf] %v792_v30  ;;  %v400_v50 = vmax.f32 %v368_v19, 0.0  ;;  %v6163_v61 = vunpack.c.l.bf16 %v6739_v5  ;;  %v1036_v20 = vor.u32 %v1035_v11, %v1031_v8  ;;  %v6772_v30 = vld [vmem:[%s6470_s29 + $0x50] sm:$0xff]  }
  0x70   : > { %v581_v22 = vshrl.u32 %v510_v12, 16  ;;  %v584_v35 = vshll.u32 %v510_v12, 16  ;;  %v308_v23 = vmul.f32 %v6752_v9, %v6144_v13  ;;  %v431_v3 = vpack.c.bf16 %v399_v15, %v399_v15 }
  0x71   : > { %v1032_v16 = vsel %vm6535_vm5, %v1027_v14, %v1031_v8  ;;  %v432_v21 = vpack.c.bf16 %v400_v50, %v400_v50  ;;  %v343_v26 = vadd.f32 %v6760_v24, %v307_v25  ;;  %v1037_v32 = vrot.slane %v1036_v20, 4  ;;  %v6052_v8 = vld [vmem:[%s7915_s3 + $0x98] sm:$0xff] }
  0x72   : > { %v1398_v33 = vunpack.c.l.b16 %v1032_v16  ;;  %v583_v34 = vrot.slane %v581_v22, 7  ;;  %v344_v17 = vadd.f32 %v6760_v24, %v308_v23  ;;  %v495_v39 = vunpack.c.l.b16 %v431_v3  ;;  %2126 = vmatpush.bf16.msrb.mxu2 %v6052_v8  ;;  %v6084_v8 = vld [vmem:[%s7915_s3 + $0x118] sm:$0xff] }
  0x73   : > { %v982_v38 = vld [vmem:[#allocation2 + $0x50] sm:$0x1]  ;;  %v496_v42 = vunpack.c.l.b16 %v432_v21  ;;  %v375_v43 = vmax.f32 %v343_v26, 0.0  ;;  %v6164_v40 = vunpack.c.h.bf16 %v6739_v5  ;;  %v1042_v44 = vsel %vm6535_vm5, %v1037_v32, %v1041_v36 }
  0x74   : > { %v1159_v48 = vshll.u32 %v982_v38, 16  ;;  %v586_v37 = vor.u32 %v584_v35, %v583_v34  ;;  %v689_v7 = vsel %vm6521_vm4, %v583_v34, 0  ;;  %v1399_v49 = vunpack.c.l.b16 %v1042_v44 }
  0x75   : > { %v940_v51 = vld [vmem:[#allocation2 + $0x48] sm:$0xf]  ;;  %v757_v52 = vunpack.c.l.b16 %v689_v7  ;;  %v514_v47 = vpack.c.b16 %v496_v42, %v495_v39  ;;  %v376_v53 = vmax.f32 %v344_v17, 0.0  ;;  %v407_v10 = vpack.c.bf16 %v375_v43, %v375_v43 }
  0x76   : > { %v941_v54 = vld [vmem:[#allocation2 + $0x4c] sm:$0xf]  ;;  %v1140_v55 = vshrl.u32 %v940_v51, 16  ;;  %v1143_v4 = vshll.u32 %v940_v51, 16  ;;  %v1161_v27 = vrot.slane %v1159_v48, 5  ;;  %v673_v46 = vsel %vm6521_vm4, 0, %v586_v37 }
  0x77   : > { %v1429_v56 = vpack.c.b16 %v1399_v49, %v1398_v33  ;;  %v1149_v57 = vshll.u32 %v941_v54, 16  ;;  %v1153_v36 = vshrl.u32 %v941_v54, 16  ;;  %v755_v59 = vunpack.c.l.b16 %v673_v46 }
  0x78   : > { %v1142_v60 = vrot.slane %v1140_v55, 4  ;;  %v1145_v62 = vrot.slane %v1143_v4, 5  ;;  %v756_v63 = vunpack.c.h.b16 %v673_v46  ;;  %v805_v28 = vpack.c.b16 %v757_v52, %v757_v52  ;;  %v6085_v46 = vld [vmem:[%s7915_s3 + $0x120] sm:$0xff] }
  0x79   : > { %1521 = vmatmul.bf16.gmra.mxu0 %v1429_v56  ;;  %v1151_v41 = vrot.slane %v1149_v57, 5  ;;  %v1155_v0 = vrot.slane %v1153_v36, 4  ;;  %v803_v1 = vpack.c.b16 %v755_v59, %v755_v59  ;;  %v609_v2 = vshrl.u32 %v514_v47, 16 }
  0x7a   : > { %v1146_v31 = vor.u32 %v1145_v62, %v1142_v60  ;;  %v804_v5 = vpack.c.b16 %v756_v63, %v756_v63  ;;  %902 = vst [vmem:[#allocation2 + $0x80] sm:$0x1] %v805_v28  ;;  %v612_v6 = vshll.u32 %v514_v47, 16  ;;  %v408_v12 = vpack.c.bf16 %v376_v53, %v376_v53  ;;  %v6076_v53 = vld [vmem:[%s7915_s3 + $0xd8] sm:$0xff]  ;;  %3121 = vmatpush.bf16.msrb.mxu0 %v6085_v46 }
  0x7b   : > { %v1156_v19 = vor.u32 %v1155_v0, %v1151_v41  ;;  %900 = vst [vmem:[#allocation2 + $0x78] sm:$0xf] %v803_v1  ;;  %v611_v11 = vrot.slane %v609_v2, 7  ;;  %v317_v13 = vmul.f32 %v6752_v9, %v6163_v61  ;;  %v471_v14 = vunpack.c.l.b16 %v407_v10  ;;  %2440 = vmatpush.bf16.msrb.mxu3 %v6076_v53  ;;  %v6036_v60 = vld [vmem:[%s7915_s3 + $0x18] sm:$0xff]  ;;  %v6051_v1 = vld [vmem:[%s7915_s3 + $0x90] sm:$0xff] }
  0x7c   : > { %v1147_v25 = vrot.slane %v1146_v31, 4  ;;  %901 = vst [vmem:[#allocation2 + $0x7c] sm:$0xf] %v804_v5  ;;  %v318_v15 = vmul.f32 %v6752_v9, %v6164_v40  ;;  %v6179_v50 = vunpack.c.l.bf16 %v6772_v30  ;;  %v472_v23 = vunpack.c.l.b16 %v408_v12  ;;  %1745 = vmatpush.bf16.msrb.mxu1 %v6036_v60  ;;  %v6035_v10 = vld [vmem:[%s7915_s3 + $0x10] sm:$0xff]  ;;  %2127 = vmatpush.bf16.msrb.mxu2 %v6051_v1 }
  0x7d   : > { %v1157_v20 = vrot.slane %v1156_v19, 4  ;;  %v614_v22 = vor.u32 %v612_v6, %v611_v11  ;;  %v693_v35 = vsel %vm6521_vm4, %v611_v11, 0  ;;  %v353_v61 = vadd.f32 %v6760_v24, %v317_v13  ;;  %v6075_v6 = vld [vmem:[%s7915_s3 + $0xd0] sm:$0xff] }
  0x7e   : > { %v1152_v16 = vsel %vm6535_vm5, %v1147_v25, %v1151_v41  ;;  %v769_v3 = vunpack.c.l.b16 %v693_v35  ;;  %v354_v21 = vadd.f32 %v6760_v24, %v318_v15  ;;  %v502_v34 = vpack.c.b16 %v472_v23, %v471_v14  ;;  %3122 = vmatpush.bf16.msrb.mxu0 %v6084_v8 }
  0x7f   : > { %v1162_v26 = vsel %vm6535_vm5, %v1157_v20, %v1161_v27  ;;  %v1408_v32 = vunpack.c.l.b16 %v1152_v16  ;;  %v677_v33 = vsel %vm6521_vm4, 0, %v614_v22  ;;  %v385_v48 = vmax.f32 %v353_v61, 0.0  ;;  %2441 = vmatpush.bf16.msrb.mxu3 %v6075_v6 }
  0x80   : > { %v1409_v17 = vunpack.c.l.b16 %v1162_v26  ;;  %v767_v38 = vunpack.c.l.b16 %v677_v33  ;;  %v768_v39 = vunpack.c.h.b16 %v677_v33  ;;  %v817_v42 = vpack.c.b16 %v769_v3, %v769_v3  ;;  %1746 = vmatpush.bf16.msrb.mxu1 %v6035_v10 }
  0x81   : > { %v986_v43 = vld [vmem:[#allocation2 + $0x80] sm:$0x1]  ;;  %v525_v40 = vshrl.u32 %v502_v34, 16  ;;  %v528_v44 = vshll.u32 %v502_v34, 16  ;;  %v386_v37 = vmax.f32 %v354_v21, 0.0  ;;  %v417_v56 = vpack.c.bf16 %v385_v48, %v385_v48 }
  0x82   : > { %v1434_v7 = vpack.c.b16 %v1409_v17, %v1408_v32  ;;  %v948_v49 = vld [vmem:[#allocation2 + $0x78] sm:$0xf]  ;;  %v1255_v51 = vshll.u32 %v986_v43, 16  ;;  %v815_v52 = vpack.c.b16 %v767_v38, %v767_v38  ;;  %v816_v47 = vpack.c.b16 %v768_v39, %v768_v39  ;;  %914 = vst [vmem:[#allocation2 + $0xb0] sm:$0x1] %v817_v42 }
  0x83   : > { %v949_v54 = vld [vmem:[#allocation2 + $0x7c] sm:$0xf]  ;;  %v1236_v55 = vshrl.u32 %v948_v49, 16  ;;  %v1239_v4 = vshll.u32 %v948_v49, 16  ;;  %v527_v27 = vrot.slane %v525_v40, 7  ;;  %v418_v62 = vpack.c.bf16 %v386_v37, %v386_v37 }
  0x84   : > { %1546 = vmatmul.bf16.gmra.mxu1 %v1434_v7  ;;  %v1245_v57 = vshll.u32 %v949_v54, 16  ;;  %v1249_v36 = vshrl.u32 %v949_v54, 16  ;;  %v1257_v59 = vrot.slane %v1255_v51, 5  ;;  %912 = vst [vmem:[#allocation2 + $0xa8] sm:$0xf] %v815_v52  ;;  %v481_v19 = vunpack.c.l.b16 %v417_v56  ;;  %v6294_v54 = vld [vmem:[%s6470_s29 + $0x70] sm:$0xff]  }
  0x85   : > { %v1238_v63 = vrot.slane %v1236_v55, 4  ;;  %v1241_v28 = vrot.slane %v1239_v4, 5  ;;  %913 = vst [vmem:[#allocation2 + $0xac] sm:$0xf] %v816_v47  ;;  %v530_v41 = vor.u32 %v528_v44, %v527_v27  ;;  %v681_v0 = vsel %vm6521_vm4, %v527_v27, 0 }
  0x86   : > { %v1247_v2 = vrot.slane %v1245_v57, 5  ;;  %v1251_v31 = vrot.slane %v1249_v36, 4  ;;  %v733_v5 = vunpack.c.l.b16 %v681_v0  ;;  %v482_v13 = vunpack.c.l.b16 %v418_v62 }
  0x87   : > { %v1242_v11 = vor.u32 %v1241_v28, %v1238_v63  ;;  %v665_v12 = vsel %vm6521_vm4, 0, %v530_v41  ;;  %v6180_v25 = vunpack.c.h.bf16 %v6772_v30  ;;  %v325_v3 = vmul.f32 %v6752_v9, %v6179_v50 }
  0x88   : > { %v1252_v14 = vor.u32 %v1251_v31, %v1247_v2  ;;  %v731_v15 = vunpack.c.l.b16 %v665_v12  ;;  %v732_v20 = vunpack.c.h.b16 %v665_v12  ;;  %v781_v22 = vpack.c.b16 %v733_v5, %v733_v5 }
  0x89   : > { %v1243_v35 = vrot.slane %v1242_v11, 4  ;;  %v990_v23 = vld [vmem:[#allocation2 + $0xb0] sm:$0x1]  ;;  %v507_v16 = vpack.c.b16 %v482_v13, %v481_v19  ;;  %v326_v61 = vmul.f32 %v6752_v9, %v6180_v25  ;;  %v361_v42 = vadd.f32 %v6760_v24, %v325_v3 }
  0x8a   : > { %v1253_v21 = vrot.slane %v1252_v14, 4  ;;  %v1351_v26 = vshll.u32 %v990_v23, 16  ;;  %v779_v32 = vpack.c.b16 %v731_v15, %v731_v15  ;;  %v780_v33 = vpack.c.b16 %v732_v20, %v732_v20  ;;  %878 = vst [vmem:[#allocation2 + $0x20] sm:$0x1] %v781_v22 }
  0x8b   : > { %v1248_v34 = vsel %vm6535_vm5, %v1243_v35, %v1247_v2  ;;  %v956_v17 = vld [vmem:[#allocation2 + $0xa8] sm:$0xf]  ;;  %v560_v38 = vshrl.u32 %v507_v16, 16  ;;  %v563_v39 = vshll.u32 %v507_v16, 16  ;;  %v362_v53 = vadd.f32 %v6760_v24, %v326_v61 }
  0x8c   : > { %v1258_v30 = vsel %vm6535_vm5, %v1253_v21, %v1257_v59  ;;  %v1416_v50 = vunpack.c.l.b16 %v1248_v34  ;;  %v957_v43 = vld [vmem:[#allocation2 + $0xac] sm:$0xf]  ;;  %v1332_v40 = vshrl.u32 %v956_v17, 16  ;;  %v1335_v44 = vshll.u32 %v956_v17, 16  ;;  %876 = vst [vmem:[#allocation2 + $0x18] sm:$0xf] %v779_v32 }
  0x8d   : > { %v1417_v48 = vunpack.c.l.b16 %v1258_v30  ;;  %v1341_v37 = vshll.u32 %v957_v43, 16  ;;  %v1345_v7 = vshrl.u32 %v957_v43, 16  ;;  %v1353_v49 = vrot.slane %v1351_v26, 5  ;;  %877 = vst [vmem:[#allocation2 + $0x1c] sm:$0xf] %v780_v33  ;;  %v6282_v21 = vld [vmem:[%s6470_s29 + $0x10] sm:$0xff]  }
  0x8e   : > { %v1334_v51 = vrot.slane %v1332_v40, 4  ;;  %v1337_v52 = vrot.slane %v1335_v44, 5  ;;  %v562_v47 = vrot.slane %v560_v38, 7  ;;  %v393_v46 = vmax.f32 %v361_v42, 0.0 }
  0x8f   : > { %v1438_v55 = vpack.c.b16 %v1417_v48, %v1416_v50  ;;  %v1343_v4 = vrot.slane %v1341_v37, 5  ;;  %v1347_v27 = vrot.slane %v1345_v7, 4  ;;  %v394_v59 = vmax.f32 %v362_v53, 0.0 }
  0x90   : > { %v1338_v56 = vor.u32 %v1337_v52, %v1334_v51  ;;  %v565_v57 = vor.u32 %v563_v39, %v562_v47  ;;  %v686_v36 = vsel %vm6521_vm4, %v562_v47, 0  ;;  %v425_v28 = vpack.c.bf16 %v393_v46, %v393_v46 }
  0x91   : > { %1566 = vmatmul.bf16.gmra.mxu2 %v1438_v55  ;;  %v1348_v60 = vor.u32 %v1347_v27, %v1343_v4  ;;  %v6829_v62 = vld [vmem:[#allocation2 + $0x20] sm:$0x1]  ;;  %v748_v63 = vunpack.c.l.b16 %v686_v36  ;;  %v6195_v41 = vunpack.c.l.bf16 %v6294_v54  ;;  %v426_v31 = vpack.c.bf16 %v394_v59, %v394_v59 }
  0x92   : > { %v1339_v0 = vrot.slane %v1338_v56, 4  ;;  %v1063_v1 = vshll.u32 %v6829_v62, 16  ;;  %v670_v2 = vsel %vm6521_vm4, 0, %v565_v57  ;;  %v489_v34 = vunpack.c.l.b16 %v425_v28 }
  0x93   : > { %v1349_v5 = vrot.slane %v1348_v60, 4  ;;  %v932_v6 = vld [vmem:[#allocation2 + $0x18] sm:$0xf]  ;;  %v746_v8 = vunpack.c.l.b16 %v670_v2  ;;  %v747_v10 = vunpack.c.h.b16 %v670_v2  ;;  %v796_v19 = vpack.c.b16 %v748_v63, %v748_v63 }
  0x94   : > { %v1344_v11 = vsel %vm6535_vm5, %v1339_v0, %v1343_v4  ;;  %v6836_v12 = vld [vmem:[#allocation2 + $0x1c] sm:$0xf]  ;;  %v1044_v13 = vshrl.u32 %v932_v6, 16  ;;  %v1047_v25 = vshll.u32 %v932_v6, 16  ;;  %v1065_v14 = vrot.slane %v1063_v1, 5 }
  0x95   : > { %v1354_v15 = vsel %vm6535_vm5, %v1349_v5, %v1353_v49  ;;  %v1424_v20 = vunpack.c.l.b16 %v1344_v11  ;;  %v1053_v22 = vshll.u32 %v6836_v12, 16  ;;  %v1057_v35 = vshrl.u32 %v6836_v12, 16  ;;  %893 = vst [vmem:[#allocation2 + $0x5c] sm:$0x1] %v796_v19 }
  0x96   : > { %v1425_v23 = vunpack.c.l.b16 %v1354_v15  ;;  %v1046_v16 = vrot.slane %v1044_v13, 4  ;;  %v1049_v3 = vrot.slane %v1047_v25, 5  ;;  %v794_v61 = vpack.c.b16 %v746_v8, %v746_v8 }
  0x97   : > { %v1055_v26 = vrot.slane %v1053_v22, 5  ;;  %v1059_v32 = vrot.slane %v1057_v35, 4  ;;  %v795_v33 = vpack.c.b16 %v747_v10, %v747_v10  ;;  %v490_v39 = vunpack.c.l.b16 %v426_v31 }
  0x98   : > { %v1442_v17 = vpack.c.b16 %v1425_v23, %v1424_v20  ;;  %v1050_v38 = vor.u32 %v1049_v3, %v1046_v16  ;;  %891 = vst [vmem:[#allocation2 + $0x54] sm:$0xf] %v794_v61  ;;  %v6196_v42 = vunpack.c.h.bf16 %v6294_v54  ;;  %v333_v50 = vmul.f32 %v6752_v9, %v6195_v41 }
  0x99   : > { %v1060_v30 = vor.u32 %v1059_v32, %v1055_v26  ;;  %892 = vst [vmem:[#allocation2 + $0x58] sm:$0xf] %v795_v33  ;;  %v6147_v43 = vunpack.c.l.bf16 %v6282_v21  ;;  %v6148_v40 = vunpack.c.h.bf16 %v6282_v21  ;;  %v511_v48 = vpack.c.b16 %v490_v39, %v489_v34 }
  0x9a   : > { %1586 = vmatmul.bf16.gmra.mxu3 %v1442_v17  ;;  %v1051_v44 = vrot.slane %v1050_v38, 4  ;;  %v334_v37 = vmul.f32 %v6752_v9, %v6196_v42  ;;  %v369_v49 = vadd.f32 %v6760_v24, %v333_v50 }
  0x9b   : > { %v1061_v7 = vrot.slane %v1060_v30, 4  ;;  %v309_v51 = vmul.f32 %v6752_v9, %v6147_v43  ;;  %v310_v52 = vmul.f32 %v6752_v9, %v6148_v40  ;;  %v588_v54 = vshrl.u32 %v511_v48, 16 }
  0x9c   : > { %v1056_v47 = vsel %vm6535_vm5, %v1051_v44, %v1055_v26  ;;  %v6850_v53 = vld [vmem:[#allocation2 + $0x5c] sm:$0x1]  ;;  %v591_v55 = vshll.u32 %v511_v48, 16  ;;  %v370_v4 = vadd.f32 %v6760_v24, %v334_v37  ;;  %v401_v57 = vmax.f32 %v369_v49, 0.0  ;;  %v6050_v37 = vld [vmem:[%s7915_s3 + $0x88] sm:$0xff] }
  0x9d   : > { %v1066_v27 = vsel %vm6535_vm5, %v1061_v7, %v1065_v14  ;;  %v1400_v46 = vunpack.c.l.b16 %v1056_v47  ;;  %v1183_v56 = vshll.u32 %v6850_v53, 16  ;;  %v590_v59 = vrot.slane %v588_v54, 7  ;;  %2128 = vmatpush.bf16.msrb.mxu2 %v6050_v37 }
  0x9e   : > { %v1401_v36 = vunpack.c.l.b16 %v1066_v27  ;;  %v402_v60 = vmax.f32 %v370_v4, 0.0  ;;  %v433_v28 = vpack.c.bf16 %v401_v57, %v401_v57  ;;  %v345_v41 = vadd.f32 %v6760_v24, %v309_v51 }
  0x9f   : > { %v942_v9 = vld [vmem:[#allocation2 + $0x54] sm:$0xf]  ;;  %v1185_v63 = vrot.slane %v1183_v56, 5  ;;  %v346_v0 = vadd.f32 %v6760_v24, %v310_v52  ;;  %v593_v6 = vor.u32 %v591_v55, %v590_v59  ;;  %v690_v19 = vsel %vm6521_vm4, %v590_v59, 0 }
  0xa0   : > { %v1430_v1 = vpack.c.b16 %v1401_v36, %v1400_v46  ;;  %v6858_v2 = vld [vmem:[#allocation2 + $0x58] sm:$0xf]  ;;  %v1164_v31 = vshrl.u32 %v942_v9, 16  ;;  %v1167_v5 = vshll.u32 %v942_v9, 16  ;;  %v434_v11 = vpack.c.bf16 %v402_v60, %v402_v60 }
  0xa1   : > { %v1173_v8 = vshll.u32 %v6858_v2, 16  ;;  %v1177_v10 = vshrl.u32 %v6858_v2, 16  ;;  %v674_v24 = vsel %vm6521_vm4, 0, %v593_v6  ;;  %v760_v14 = vunpack.c.l.b16 %v690_v19 }
  0xa2   : > { %1526 = vmatmul.bf16.gmra.mxu0 %v1430_v1  ;;  %v1166_v13 = vrot.slane %v1164_v31, 4  ;;  %v1169_v25 = vrot.slane %v1167_v5, 5  ;;  %v758_v22 = vunpack.c.l.b16 %v674_v24  ;;  %v759_v35 = vunpack.c.h.b16 %v674_v24 }
  0xa3   : > { %v1175_v15 = vrot.slane %v1173_v8, 5  ;;  %v1179_v20 = vrot.slane %v1177_v10, 4  ;;  %v808_v16 = vpack.c.b16 %v760_v14, %v760_v14  ;;  %v497_v3 = vunpack.c.l.b16 %v433_v28 }
  0xa4   : > { %v1170_v23 = vor.u32 %v1169_v25, %v1166_v13  ;;  %v498_v61 = vunpack.c.l.b16 %v434_v11  ;;  %v806_v26 = vpack.c.b16 %v758_v22, %v758_v22  ;;  %v807_v32 = vpack.c.b16 %v759_v35, %v759_v35  ;;  %v6074_v11 = vld [vmem:[%s7915_s3 + $0xc8] sm:$0xff]  ;;  %v6083_v13 = vld [vmem:[%s7915_s3 + $0x110] sm:$0xff]  ;;  %v6073_v35 = vld [vmem:[%s7915_s3 + $0xc0] sm:$0xff] }
  0xa5   : > { %v1180_v21 = vor.u32 %v1179_v20, %v1175_v15  ;;  %v377_v33 = vmax.f32 %v345_v41, 0.0  ;;  %905 = vst [vmem:[#allocation2 + $0x8c] sm:$0x1] %v808_v16  ;;  %v378_v38 = vmax.f32 %v346_v0, 0.0  ;;  %v6034_v25 = vld [vmem:[%s7915_s3 + $0x8] sm:$0xff]  ;;  %v6049_v20 = vld [vmem:[%s7915_s3 + $0x80] sm:$0xff]  ;;  %2442 = vmatpush.bf16.msrb.mxu3 %v6074_v11  ;;  %3123 = vmatpush.bf16.msrb.mxu0 %v6083_v13 }
  0xa6   : > { %v1171_v34 = vrot.slane %v1170_v23, 4  ;;  %v515_v17 = vpack.c.b16 %v498_v61, %v497_v3  ;;  %903 = vst [vmem:[#allocation2 + $0x84] sm:$0xf] %v806_v26  ;;  %v6082_v23 = vld [vmem:[%s7915_s3 + $0x108] sm:$0xff]  ;;  %1747 = vmatpush.bf16.msrb.mxu1 %v6034_v25  ;;  %2129 = vmatpush.bf16.msrb.mxu2 %v6049_v20  ;;  %v6033_v26 = vld [vmem:[%s7915_s3] sm:$0xff] }
  0xa7   : > { %v1181_v39 = vrot.slane %v1180_v21, 4  ;;  %v409_v42 = vpack.c.bf16 %v377_v33, %v377_v33  ;;  %904 = vst [vmem:[#allocation2 + $0x88] sm:$0xf] %v807_v32  ;;  %v410_v40 = vpack.c.bf16 %v378_v38, %v378_v38 }
  0xa8   : > { %v1176_v30 = vsel %vm6535_vm5, %v1171_v34, %v1175_v15  ;;  %v616_v50 = vshrl.u32 %v515_v17, 16  ;;  %v619_v43 = vshll.u32 %v515_v17, 16 }
  0xa9   : > { %v1186_v44 = vsel %vm6535_vm5, %v1181_v39, %v1185_v63  ;;  %v1410_v48 = vunpack.c.l.b16 %v1176_v30  ;;  %v473_v7 = vunpack.c.l.b16 %v409_v42  ;;  %v474_v52 = vunpack.c.l.b16 %v410_v40  ;;  %2443 = vmatpush.bf16.msrb.mxu3 %v6073_v35  ;;  %3124 = vmatpush.bf16.msrb.mxu0 %v6082_v23  ;;  %v6096_v35 = vld [vmem:[%s7915_s3 + $0x178] sm:$0xff] }
  0xaa   : > { %v1411_v49 = vunpack.c.l.b16 %v1186_v44  ;;  %v618_v51 = vrot.slane %v616_v50, 7  ;;  %v6081_v50 = vld [vmem:[%s7915_s3 + $0x100] sm:$0xff]  ;;  %1748 = vmatpush.bf16.msrb.mxu1 %v6033_v26  ;;  %v6136_v26 = vld [vmem:[%s7915_s3 + $0x238] sm:$0xff] }
  0xab   : > { %v503_v4 = vpack.c.b16 %v474_v52, %v473_v7 }
  0xac   : > { %v1435_v47 = vpack.c.b16 %v1411_v49, %v1410_v48  ;;  %v621_v54 = vor.u32 %v619_v43, %v618_v51  ;;  %v694_v55 = vsel %vm6521_vm4, %v618_v51, 0  ;;  %v987_v27 = vld [vmem:[#allocation2 + $0x8c] sm:$0x1]  ;;  %v1830_v43 = vld [vmem:[#allocation2] sm:$0xe]  ;;  %v6120_v51 = vld [vmem:[%s7915_s3 + $0x1b8] sm:$0xff] }
  0xad   : > { %v772_v46 = vunpack.c.l.b16 %v694_v55  ;;  %v950_v56 = vld [vmem:[#allocation2 + $0x84] sm:$0xf]  ;;  %v1279_v57 = vshll.u32 %v987_v27, 16  ;;  %v532_v59 = vshrl.u32 %v503_v4, 16  ;;  %v535_v5 = vshll.u32 %v503_v4, 16  ;;  %3125 = vmatpush.bf16.msrb.mxu0 %v6081_v50  ;;  %3859 = vmatpush.bf16.msra.mxu2 %v6120_v51 }
  0xae   : > { %1551 = vmatmul.bf16.gmra.mxu1 %v1435_v47  ;;  %v678_v36 = vsel %vm6521_vm4, 0, %v621_v54  ;;  %v951_v60 = vld [vmem:[#allocation2 + $0x88] sm:$0xf]  ;;  %v1260_v9 = vshrl.u32 %v950_v56, 16  ;;  %v1263_v63 = vshll.u32 %v950_v56, 16  ;;  %v6017_v47 = vld [vmem:[#allocation2] sm:$0xff] }
  0xaf   : > { %v770_v28 = vunpack.c.l.b16 %v678_v36  ;;  %v771_v41 = vunpack.c.h.b16 %v678_v36  ;;  %v1269_v0 = vshll.u32 %v951_v60, 16  ;;  %v1273_v1 = vshrl.u32 %v951_v60, 16  ;;  %v6348_v55 = vld [vmem:[#allocation2 + $0x4] sm:$0xf]  ;;  %3544 = vmatpush.bf16.msra.mxu1 %v6096_v35 }
  0xb0   : > { %v820_v31 = vpack.c.b16 %v772_v46, %v772_v46  ;;  %v1262_v6 = vrot.slane %v1260_v9, 4  ;;  %v1265_v8 = vrot.slane %v1263_v63, 5  ;;  %v534_v15 = vrot.slane %v532_v59, 7 }
  0xb1   : > { %v818_v10 = vpack.c.b16 %v770_v28, %v770_v28  ;;  %v819_v19 = vpack.c.b16 %v771_v41, %v771_v41  ;;  %v1271_v24 = vrot.slane %v1269_v0, 5  ;;  %v1275_v14 = vrot.slane %v1273_v1, 4  ;;  %v6349_v41 = vld [vmem:[#allocation2 + $0x8] sm:$0x1]  ;;  %4967 = vmatpush.bf16.msra.mxu0 %v6136_v26 }
  0xb2   : > { %917 = vst [vmem:[#allocation2 + $0xbc] sm:$0x1] %v820_v31  ;;  %v1266_v22 = vor.u32 %v1265_v8, %v1262_v6  ;;  %v1281_v3 = vrot.slane %v1279_v57, 5  ;;  %v537_v61 = vor.u32 %v535_v5, %v534_v15  ;;  %v682_v21 = vsel %vm6521_vm4, %v534_v15, 0  ;;  %v2557_v8 = vld [vmem:[#allocation2 + $0xc] sm:$0xf] }
  0xb3   : > { %915 = vst [vmem:[#allocation2 + $0xb4] sm:$0xf] %v818_v10  ;;  %v1276_v16 = vor.u32 %v1275_v14, %v1271_v24  ;;  %v736_v33 = vunpack.c.l.b16 %v682_v21  ;;  %v5501_v54 = vrot.slane %v1830_v43, 9  ;;  %v1883_v4 = vrot.slane %v6348_v55, 5 }
  0xb4   : > { %916 = vst [vmem:[#allocation2 + $0xb8] sm:$0xf] %v819_v19  ;;  %v1267_v32 = vrot.slane %v1266_v22, 4  ;;  %v666_v17 = vsel %vm6521_vm4, 0, %v537_v61  ;;  %v1886_v0 = vrot.slane %v6349_v41, 5  ;;  %v2606_v15 = vshrl.u32 %v2557_v8, 16 }
  0xb5   : > { %v1277_v34 = vrot.slane %v1276_v16, 4  ;;  %v734_v39 = vunpack.c.l.b16 %v666_v17  ;;  %v735_v42 = vunpack.c.h.b16 %v666_v17  ;;  %v784_v30 = vpack.c.b16 %v736_v33, %v736_v33  ;;  %v2558_v19 = vld [vmem:[#allocation2 + $0x10] sm:$0xf]  ;;  %v6128_v22 = vld [vmem:[%s7915_s3 + $0x1f8] sm:$0xff]  ;;  %v1831_v41 = vld [vmem:[#allocation2 + $0xc] sm:$0xe] }
  0xb6   : > { %v1272_v38 = vsel %vm6535_vm5, %v1267_v32, %v1271_v24  ;;  %v1884_v5 = vsel %vm6914_vm8, %v5501_v54, %v1883_v4  ;;  %v1885_v6 = vrot.slane %v1883_v4, 4  ;;  %v2609_v20 = vshll.u32 %v2557_v8, 16  ;;  %4541 = vmatpush.bf16.msra.mxu3 %v6128_v22 }
  0xb7   : > { %v1282_v40 = vsel %vm6535_vm5, %v1277_v34, %v1281_v3  ;;  %v1418_v44 = vunpack.c.l.b16 %v1272_v38  ;;  %v782_v7 = vpack.c.b16 %v734_v39, %v734_v39  ;;  %v783_v49 = vpack.c.b16 %v735_v42, %v735_v42  ;;  %881 = vst [vmem:[#allocation2 + $0x2c] sm:$0x1] %v784_v30 }
  0xb8   : > { %v1419_v48 = vunpack.c.l.b16 %v1282_v40  ;;  %v2010_v14 = vunpack.c.l.b16 %v1884_v5  ;;  %v1887_v3 = vsel %vm6914_vm8, %v1885_v6, %v1886_v0  ;;  %v2615_v61 = vshll.u32 %v2558_v19, 16 }
  0xb9   : > { %v991_v37 = vld [vmem:[#allocation2 + $0xbc] sm:$0x1]  ;;  %879 = vst [vmem:[#allocation2 + $0x24] sm:$0xf] %v782_v7  ;;  %v2619_v21 = vshrl.u32 %v2558_v19, 16  ;;  %v5502_v8 = vrot.slane %v1831_v41, 9 }
  0xba   : > { %v958_v52 = vld [vmem:[#allocation2 + $0xb4] sm:$0xf]  ;;  %v1439_v27 = vpack.c.b16 %v1419_v48, %v1418_v44  ;;  %v1375_v9 = vshll.u32 %v991_v37, 16  ;;  %880 = vst [vmem:[#allocation2 + $0x28] sm:$0xf] %v783_v49  ;;  %v2011_v48 = vunpack.c.l.b16 %v1887_v3  ;;  %v2617_v4 = vrot.slane %v2615_v61, 5 }
  0xbb   : > { %v959_v46 = vld [vmem:[#allocation2 + $0xb8] sm:$0xf]  ;;  %v1356_v56 = vshrl.u32 %v958_v52, 16  ;;  %v1359_v57 = vshll.u32 %v958_v52, 16  ;;  %v2608_v52 = vrot.slane %v2606_v15, 4  ;;  %v1893_v19 = vrot.slane %v6727_v45, 5 }
  0xbc   : > { %v1365_v59 = vshll.u32 %v959_v46, 16  ;;  %v1369_v60 = vshrl.u32 %v959_v46, 16  ;;  %1571 = vmatmul.bf16.gmra.mxu2 %v1439_v27  ;;  %v1377_v13 = vrot.slane %v1375_v9, 5  ;;  %v2621_v27 = vrot.slane %v2619_v21, 4  ;;  %v1832_v15 = vld [vmem:[#allocation2 + $0x18] sm:$0xe] }
  0xbd   : > { %v1358_v63 = vrot.slane %v1356_v56, 4  ;;  %v1361_v28 = vrot.slane %v1359_v57, 5  ;;  %v2042_v56 = vpack.c.b16 %v2011_v48, %v2010_v14  ;;  %v2559_v57 = vld [vmem:[#allocation2 + $0x14] sm:$0x1]  ;;  %v1890_v9 = vrot.slane %v6734_v58, 5 }
  0xbe   : > { %v1367_v1 = vrot.slane %v1365_v59, 5  ;;  %v1371_v31 = vrot.slane %v1369_v60, 4  ;;  %1749 = vmatmul.bf16.vlgmr.msrb.gmra.mxu1 %v6017_v47  ;;  %v6920_v25 = vld [vmem:[#allocation2 + $0x2c] sm:$0x1]  ;;  %v2611_v47 = vrot.slane %v2609_v20, 5  ;;  %v2625_v5 = vshll.u32 %v2559_v57, 16 }
  0xbf   : > { %v1362_v10 = vor.u32 %v1361_v28, %v1358_v63  ;;  %v1087_v38 = vshll.u32 %v6920_v25, 16  ;;  %v6018_v60 = vld [vmem:[#allocation2 + $0xc] sm:$0xff]  ;;  %v2560_v14 = vld [vmem:[#allocation2 + $0x18] sm:$0xf]  ;;  %v1897_v20 = vrot.slane %v6836_v12, 5  ;;  %v1900_v22 = vrot.slane %v6829_v62, 5 }
  0xc0   : > { %v1372_v11 = vor.u32 %v1371_v31, %v1367_v1  ;;  %v934_v16 = vld [vmem:[#allocation2 + $0x24] sm:$0xf]  ;;  %v2612_v28 = vor.u32 %v2611_v47, %v2608_v52  ;;  %v2622_v31 = vor.u32 %v2621_v27, %v2617_v4  ;;  %v1891_v35 = vsel %vm6914_vm8, %v5502_v8, %v1890_v9  ;;  %v2561_v3 = vld [vmem:[#allocation2 + $0x1c] sm:$0xf]  ;;  %v6057_v62 = vld [vmem:[#allocation2 + $0xc] sm:$0xff] }
  0xc1   : > { %v1363_v24 = vrot.slane %v1362_v10, 4  ;;  %v6935_v33 = vld [vmem:[#allocation2 + $0x28] sm:$0xf]  ;;  %v1068_v34 = vshrl.u32 %v934_v16, 16  ;;  %v1071_v17 = vshll.u32 %v934_v16, 16  ;;  %v1089_v55 = vrot.slane %v1087_v38, 5 }
  0xc2   : > { %v1373_v23 = vrot.slane %v1372_v11, 4  ;;  %v1077_v30 = vshll.u32 %v6935_v33, 16  ;;  %v1081_v50 = vshrl.u32 %v6935_v33, 16  ;;  %v1892_v10 = vrot.slane %v1890_v9, 4  ;;  %v6019_v47 = vld [vmem:[#allocation2 + $0x18] sm:$0xff]  ;;  %v6095_v57 = vld [vmem:[%s7915_s3 + $0x170] sm:$0xff] }
  0xc3   : > { %v1368_v32 = vsel %vm6535_vm5, %v1363_v24, %v1367_v1  ;;  %v1070_v40 = vrot.slane %v1068_v34, 4  ;;  %v1073_v44 = vrot.slane %v1071_v17, 5  ;;  %v2613_v58 = vrot.slane %v2612_v28, 4  ;;  %v2563_v28 = vld [vmem:[#allocation2 + $0x24] sm:$0xf]  ;;  %3545 = vmatpush.bf16.msra.mxu1 %v6095_v57 }
  0xc4   : > { %v1378_v39 = vsel %vm6535_vm5, %v1373_v23, %v1377_v13  ;;  %v1426_v42 = vunpack.c.l.b16 %v1368_v32  ;;  %v1079_v37 = vrot.slane %v1077_v30, 5  ;;  %v1083_v7 = vrot.slane %v1081_v50, 4  ;;  %v2564_v41 = vld [vmem:[#allocation2 + $0x28] sm:$0xf] }
  0xc5   : > { %v1427_v43 = vunpack.c.l.b16 %v1378_v39  ;;  %v1074_v51 = vor.u32 %v1073_v44, %v1070_v40  ;;  %v2623_v13 = vrot.slane %v2622_v31, 4  ;;  %v2627_v24 = vrot.slane %v2625_v5, 5 }
  0xc6   : > { %v1084_v54 = vor.u32 %v1083_v7, %v1079_v37  ;;  %v1894_v23 = vsel %vm6914_vm8, %v1892_v10, %v1893_v19  ;;  %v5503_v16 = vrot.slane %v1832_v15, 9  ;;  %v1899_v45 = vrot.slane %v1897_v20, 4 }
  0xc7   : > { %v1443_v49 = vpack.c.b16 %v1427_v43, %v1426_v42  ;;  %v1075_v46 = vrot.slane %v1074_v51, 4  ;;  %v2618_v61 = vsel %vm6535_vm5, %v2613_v58, %v2617_v4  ;;  %v2628_v21 = vsel %vm6535_vm5, %v2623_v13, %v2627_v24  ;;  %v2565_v24 = vld [vmem:[#allocation2 + $0x2c] sm:$0x1] }
  0xc8   : > { %v1085_v59 = vrot.slane %v1084_v54, 4  ;;  %v2630_v26 = vshrl.u32 %v2560_v14, 16  ;;  %v1898_v12 = vsel %vm6914_vm8, %v5503_v16, %v1897_v20  ;;  %v2012_v32 = vunpack.c.l.b16 %v1891_v35  ;;  %v2562_v54 = vld [vmem:[#allocation2 + $0x20] sm:$0x1]  ;;  %v6020_v20 = vld [vmem:[#allocation2 + $0x24] sm:$0xff] }
  0xc9   : > { %1591 = vmatmul.bf16.gmra.mxu3 %v1443_v49  ;;  %v1080_v63 = vsel %vm6535_vm5, %v1075_v46, %v1079_v37  ;;  %v2013_v34 = vunpack.c.l.b16 %v1894_v23  ;;  %v1901_v17 = vsel %vm6914_vm8, %v1899_v45, %v1900_v22  ;;  %v2014_v38 = vunpack.c.l.b16 %v1898_v12  ;;  %v6119_v37 = vld [vmem:[%s7915_s3 + $0x1b0] sm:$0xff]  ;;  %v1833_v35 = vld [vmem:[#allocation2 + $0x24] sm:$0xe] }
  0xca   : > { %v1090_v0 = vsel %vm6535_vm5, %v1085_v59, %v1089_v55  ;;  %v1402_v1 = vunpack.c.l.b16 %v1080_v63  ;;  %v2633_v39 = vshll.u32 %v2560_v14, 16  ;;  %v2639_v42 = vshll.u32 %v2561_v3, 16  ;;  %3860 = vmatpush.bf16.msra.mxu2 %v6119_v37  ;;  %v6135_v59 = vld [vmem:[%s7915_s3 + $0x230] sm:$0xff] }
  0xcb   : > { %v1403_v6 = vunpack.c.l.b16 %v1090_v0  ;;  %v2643_v30 = vshrl.u32 %v2561_v3, 16  ;;  %v2015_v50 = vunpack.c.l.b16 %v1901_v17  ;;  %v3006_v40 = vunpack.c.l.b16 %v2618_v61  ;;  %4968 = vmatpush.bf16.msra.mxu0 %v6135_v59  ;;  %v6058_v0 = vld [vmem:[#allocation2 + $0x18] sm:$0xff]  ;;  %v1834_v59 = vld [vmem:[#allocation2 + $0x30] sm:$0xe] }
  0xcc   : > { %2130 = vmatmul.bf16.vlgmr.msrb.gmra.mxu2 %v2042_v56  ;;  %v3007_v44 = vunpack.c.l.b16 %v2628_v21  ;;  %v2043_v48 = vpack.c.b16 %v2013_v34, %v2012_v32  ;;  %v2632_v7 = vrot.slane %v2630_v26, 4  ;;  %v2635_v49 = vrot.slane %v2633_v39, 5  ;;  %v6127_v56 = vld [vmem:[%s7915_s3 + $0x1f0] sm:$0xff] }
  0xcd   : > { %v1431_v11 = vpack.c.b16 %v1403_v6, %v1402_v1  ;;  %v2044_v43 = vpack.c.b16 %v2015_v50, %v2014_v38  ;;  %v2641_v51 = vrot.slane %v2639_v42, 5  ;;  %v2645_v52 = vrot.slane %v2643_v30, 4  ;;  %4542 = vmatpush.bf16.msra.mxu3 %v6127_v56  ;;  %v2567_v38 = vld [vmem:[#allocation2 + $0x34] sm:$0xf]  ;;  %v6059_v30 = vld [vmem:[#allocation2 + $0x24] sm:$0xff] }
  0xce   : > { %1754 = vmatmul.bf16.gmra.mxu1 %v6018_v60  ;;  %v3038_v55 = vpack.c.b16 %v3007_v44, %v3006_v40  ;;  %v2636_v4 = vor.u32 %v2635_v49, %v2632_v7  ;;  %v2649_v46 = vshll.u32 %v2562_v54, 16  ;;  %v2654_v1 = vshrl.u32 %v2563_v28, 16  ;;  %v6988_v49 = vpop.f32.mrf.mxu1  ;;  %v6118_v54 = vld [vmem:[%s7915_s3 + $0x1a8] sm:$0xff]  ;;  %v6350_v56 = vld [vmem:[#allocation2 + $0x34] sm:$0xf] }
  0xcf   : > { %1531 = vmatmul.bf16.gmra.mxu0 %v1431_v11  ;;  %v2646_v27 = vor.u32 %v2645_v52, %v2641_v51  ;;  %v2657_v31 = vshll.u32 %v2563_v28, 16  ;;  %v2663_v8 = vshll.u32 %v2564_v41, 16  ;;  %v2667_v10 = vshrl.u32 %v2564_v41, 16  ;;  %3861 = vmatpush.bf16.msra.mxu2 %v6118_v54 }
  0xd0   : > { %v2637_v60 = vrot.slane %v2636_v4, 4  ;;  %v2651_v63 = vrot.slane %v2649_v46, 5  ;;  %v2656_v58 = vrot.slane %v2654_v1, 4  ;;  %v1904_v22 = vrot.slane %v6935_v33, 5  ;;  %v6021_v46 = vld [vmem:[#allocation2 + $0x30] sm:$0xff] }
  0xd1   : > { %v2647_v9 = vrot.slane %v2646_v27, 4  ;;  %v2659_v13 = vrot.slane %v2657_v31, 5  ;;  %v2665_v14 = vrot.slane %v2663_v8, 5  ;;  %v2669_v15 = vrot.slane %v2667_v10, 4  ;;  %v6351_v1 = vld [vmem:[#allocation2 + $0x38] sm:$0x1] }
  0xd2   : > { %v2642_v5 = vsel %vm6535_vm5, %v2637_v60, %v2641_v51  ;;  %v2673_v3 = vshll.u32 %v2565_v24, 16  ;;  %v5504_v61 = vrot.slane %v1833_v35, 9  ;;  %v1906_v21 = vrot.slane %v1904_v22, 4  ;;  %v6094_v8 = vld [vmem:[%s7915_s3 + $0x168] sm:$0xff]  ;;  %v2569_v24 = vld [vmem:[#allocation2 + $0x3c] sm:$0xf] }
  0xd3   : > { %v2652_v6 = vsel %vm6535_vm5, %v2647_v9, %v2651_v63  ;;  %v3008_v19 = vunpack.c.l.b16 %v2642_v5  ;;  %v2660_v16 = vor.u32 %v2659_v13, %v2656_v58  ;;  %v2670_v45 = vor.u32 %v2669_v15, %v2665_v14  ;;  %v6134_v10 = vld [vmem:[%s7915_s3 + $0x228] sm:$0xff]  ;;  %v2570_v15 = vld [vmem:[#allocation2 + $0x40] sm:$0xf]  ;;  %3546 = vmatpush.bf16.msra.mxu1 %v6094_v8  ;;  %v6060_v35 = vld [vmem:[#allocation2 + $0x30] sm:$0xff] }
  0xd4   : > { %v3009_v11 = vunpack.c.l.b16 %v2652_v6  ;;  %v1907_v26 = vrot.slane %v6920_v25, 5  ;;  %v2675_v34 = vrot.slane %v2673_v3, 5  ;;  %v1905_v17 = vsel %vm6914_vm8, %v5504_v61, %v1904_v22  ;;  %v6126_v6 = vld [vmem:[%s7915_s3 + $0x1e8] sm:$0xff]  ;;  %v7010_v22 = vpop.f32.mrf.mxu2  ;;  %4969 = vmatpush.bf16.msra.mxu0 %v6134_v10 }
  0xd5   : > { %v2661_v12 = vrot.slane %v2660_v16, 4  ;;  %v2671_v32 = vrot.slane %v2670_v45, 4  ;;  %v2016_v50 = vunpack.c.l.b16 %v1905_v17  ;;  %v2687_v44 = vshll.u32 %v2567_v38, 16  ;;  %4543 = vmatpush.bf16.msra.mxu3 %v6126_v6 }
  0xd6   : > { %v3039_v23 = vpack.c.b16 %v3009_v11, %v3008_v19  ;;  %v1908_v33 = vsel %vm6914_vm8, %v1906_v21, %v1907_v26  ;;  %v1911_v57 = vrot.slane %v6350_v56, 5  ;;  %v5505_v41 = vrot.slane %v1834_v59, 9 }
  0xd7   : > { %v2666_v25 = vsel %vm6535_vm5, %v2661_v12, %v2665_v14  ;;  %v2676_v40 = vsel %vm6535_vm5, %v2671_v32, %v2675_v34  ;;  %v2689_v4 = vrot.slane %v2687_v44, 5  ;;  %v1914_v31 = vrot.slane %v6351_v1, 5  ;;  %v7006_v14 = vpop.f32.mrf.mxu1 }
  0xd8   : > { %v3010_v51 = vunpack.c.l.b16 %v2666_v25  ;;  %v3011_v52 = vunpack.c.l.b16 %v2676_v40  ;;  %v1912_v58 = vsel %vm6914_vm8, %v5505_v41, %v1911_v57  ;;  %v2702_v3 = vshrl.u32 %v2569_v24, 16  ;;  %v1835_v25 = vld [vmem:[#allocation2 + $0x3c] sm:$0xe] }
  0xd9   : > { %2444 = vmatmul.bf16.vlgmr.msrb.gmra.mxu3 %v6057_v62  ;;  %v2566_v62 = vld [vmem:[#allocation2 + $0x30] sm:$0xf]  ;;  %v2705_v45 = vshll.u32 %v2569_v24, 16  ;;  %v2711_v21 = vshll.u32 %v2570_v15, 16  ;;  %v2715_v26 = vshrl.u32 %v2570_v15, 16 }
  0xda   : > { %v2678_v39 = vshrl.u32 %v2566_v62, 16  ;;  %v2681_v42 = vshll.u32 %v2566_v62, 16  ;;  %v3040_v9 = vpack.c.b16 %v3011_v52, %v3010_v51  ;;  %v2704_v34 = vrot.slane %v2702_v3, 4 }
  0xdb   : > { %v2707_v17 = vrot.slane %v2705_v45, 5  ;;  %v5506_v51 = vrot.slane %v1835_v25, 9  ;;  %v6125_v25 = vld [vmem:[%s7915_s3 + $0x1e0] sm:$0xff] }
  0xdc   : > { %2135 = vmatmul.bf16.gmra.mxu2 %v2043_v48  ;;  %v2691_v48 = vshrl.u32 %v2567_v38, 16  ;;  %v2680_v37 = vrot.slane %v2678_v39, 4  ;;  %v2683_v7 = vrot.slane %v2681_v42, 5  ;;  %v2713_v38 = vrot.slane %v2711_v21, 5  ;;  %v6354_v21 = vld [vmem:[#allocation2 + $0x4c] sm:$0xf]  ;;  %4544 = vmatpush.bf16.msra.mxu3 %v6125_v25 }
  0xdd   : > { %v2717_v39 = vrot.slane %v2715_v26, 4  ;;  %v2708_v44 = vor.u32 %v2707_v17, %v2704_v34  ;;  %v1925_v26 = vrot.slane %v6354_v21, 5 }
  0xde   : > { %1759 = vmatmul.bf16.gmra.mxu1 %v6019_v47  ;;  %v2693_v27 = vrot.slane %v2691_v48, 4  ;;  %v2684_v60 = vor.u32 %v2683_v7, %v2680_v37  ;;  %v7016_v7 = vpop.f32.mrf.mxu2 }
  0xdf   : > { %3126 = vmatmul.bf16.vlgmr.msrb.gmra.mxu0 %v3038_v55  ;;  %v2568_v55 = vld [vmem:[#allocation2 + $0x38] sm:$0x1]  ;;  %v7014_v42 = vpop.f32.mrf.mxu1  ;;  %v2718_v37 = vor.u32 %v2717_v39, %v2713_v38  ;;  %v1927_v39 = vrot.slane %v1925_v26, 4 }
  0xe0   : > { %v2697_v63 = vshll.u32 %v2568_v55, 16  ;;  %v2694_v28 = vor.u32 %v2693_v27, %v2689_v4  ;;  %v2685_v5 = vrot.slane %v2684_v60, 4  ;;  %v7018_v55 = vpop.f32.mrf.mxu3  ;;  %v2572_v27 = vld [vmem:[#allocation2 + $0x48] sm:$0xf] }
  0xe1   : > { %v2719_v56 = vrot.slane %v2718_v37, 4  ;;  %v2729_v41 = vshll.u32 %v2572_v27, 16 }
  0xe2   : > { %v2695_v19 = vrot.slane %v2694_v28, 4  ;;  %v2699_v11 = vrot.slane %v2697_v63, 5  ;;  %v2573_v63 = vld [vmem:[#allocation2 + $0x4c] sm:$0xf]  ;;  %v2726_v28 = vshrl.u32 %v2572_v27, 16 }
  0xe3   : > { %v2735_v8 = vshll.u32 %v2573_v63, 16  ;;  %v2739_v10 = vshrl.u32 %v2573_v63, 16  ;;  %v2576_v27 = vld [vmem:[#allocation2 + $0x58] sm:$0xf] }
  0xe4   : > { %v2700_v61 = vsel %vm6535_vm5, %v2695_v19, %v2699_v11  ;;  %v2728_v19 = vrot.slane %v2726_v28, 4  ;;  %v2731_v11 = vrot.slane %v2729_v41, 5 }
  0xe5   : > { %v3013_v62 = vunpack.c.l.b16 %v2700_v61  ;;  %v2741_v3 = vrot.slane %v2739_v10, 4  ;;  %v6023_v61 = vld [vmem:[#allocation2 + $0x48] sm:$0xff] }
  0xe9   : > { %2449 = vmatmul.bf16.gmra.mxu3 %v6058_v0  ;;  %v1913_v0 = vrot.slane %v1911_v57, 4 }
  0xeb   : > { %v1915_v13 = vsel %vm6914_vm8, %v1913_v0, %v1914_v31  ;;  %v6061_v0 = vld [vmem:[#allocation2 + $0x3c] sm:$0xff] }
  0xec   : > { %2140 = vmatmul.bf16.gmra.mxu2 %v2044_v43  ;;  %v2017_v43 = vunpack.c.l.b16 %v1908_v33  ;;  %v2019_v16 = vunpack.c.l.b16 %v1915_v13  ;;  %v2571_v33 = vld [vmem:[#allocation2 + $0x44] sm:$0x1] }
  0xed   : > { %v2721_v48 = vshll.u32 %v2571_v33, 16 }
  0xee   : > { %1764 = vmatmul.bf16.gmra.mxu1 %v6020_v20  ;;  %v2045_v47 = vpack.c.b16 %v2017_v43, %v2016_v50  ;;  %v2690_v20 = vsel %vm6535_vm5, %v2685_v5, %v2689_v4  ;;  %v6352_v50 = vld [vmem:[#allocation2 + $0x40] sm:$0xf]  ;;  %v2709_v4 = vrot.slane %v2708_v44, 4 }
  0xef   : > { %3131 = vmatmul.bf16.gmra.mxu0 %v3039_v23  ;;  %v2018_v23 = vunpack.c.l.b16 %v1912_v58  ;;  %v3012_v12 = vunpack.c.l.b16 %v2690_v20  ;;  %v1918_v43 = vrot.slane %v6352_v50, 5  ;;  %v2723_v57 = vrot.slane %v2721_v48, 5  ;;  %v7032_v58 = vpop.f32.mrf.mxu2  ;;  %v6117_v20 = vld [vmem:[%s7915_s3 + $0x1a0] sm:$0xff] }
  0xf0   : > { %v2714_v5 = vsel %vm6535_vm5, %v2709_v4, %v2713_v38  ;;  %3862 = vmatpush.bf16.msra.mxu2 %v6117_v20  ;;  %v6133_v44 = vld [vmem:[%s7915_s3 + $0x220] sm:$0xff]  ;;  %v1932_v20 = vrot.slane %v6858_v2, 5 }
  0xf1   : > { %v2046_v32 = vpack.c.b16 %v2019_v16, %v2018_v23  ;;  %v3041_v40 = vpack.c.b16 %v3013_v62, %v3012_v12  ;;  %v1920_v52 = vrot.slane %v1918_v43, 4  ;;  %v1919_v59 = vsel %vm6914_vm8, %v5506_v51, %v1918_v43  ;;  %v2574_v23 = vld [vmem:[#allocation2 + $0x50] sm:$0x1]  ;;  %v1836_v12 = vld [vmem:[#allocation2 + $0x48] sm:$0xe]  ;;  %4970 = vmatpush.bf16.msra.mxu0 %v6133_v44 }
  0xf2   : > { %v2020_v1 = vunpack.c.l.b16 %v1919_v59  ;;  %v2724_v6 = vsel %vm6535_vm5, %v2719_v56, %v2723_v57  ;;  %v3014_v13 = vunpack.c.l.b16 %v2714_v5  ;;  %v2737_v16 = vrot.slane %v2735_v8, 5  ;;  %v6062_v59 = vld [vmem:[#allocation2 + $0x48] sm:$0xff] }
  0xf3   : > { %v3015_v24 = vunpack.c.l.b16 %v2724_v6  ;;  %v2745_v17 = vshll.u32 %v2574_v23, 16  ;;  %v5507_v38 = vrot.slane %v1836_v12, 9  ;;  %v2763_v5 = vshrl.u32 %v2576_v27, 16  ;;  %v6024_v12 = vld [vmem:[#allocation2 + $0x54] sm:$0xff] }
  0xf4   : > { %v2742_v33 = vor.u32 %v2741_v3, %v2737_v16 }
  0xf5   : > { %v3042_v34 = vpack.c.b16 %v3015_v24, %v3014_v13  ;;  %v2747_v37 = vrot.slane %v2745_v17, 5  ;;  %v2577_v13 = vld [vmem:[#allocation2 + $0x5c] sm:$0x1] }
  0xf6   : > { %v2743_v48 = vrot.slane %v2742_v33, 4  ;;  %v1934_v33 = vrot.slane %v1932_v20, 4 }
  0xf7   : > { %v7052_v51 = vpop.f32.mrf.mxu2 }
  0xf9   : > { %2454 = vmatmul.bf16.gmra.mxu3 %v6059_v30  ;;  %v6022_v30 = vld [vmem:[#allocation2 + $0x3c] sm:$0xff] }
  0xfc   : > { %2145 = vmatmul.bf16.gmra.mxu2 %v2045_v47  ;;  %v6353_v47 = vld [vmem:[#allocation2 + $0x44] sm:$0x1] }
  0xfd   : > { %v1921_v54 = vrot.slane %v6353_v47, 5 }
  0xfe   : > { %1769 = vmatmul.bf16.gmra.mxu1 %v6021_v46  ;;  %v7020_v46 = vpop.f32.mrf.mxu0 }
  0xff   : > { %3136 = vmatmul.bf16.gmra.mxu0 %v3040_v9  ;;  %v1922_v60 = vsel %vm6914_vm8, %v1920_v52, %v1921_v54  ;;  %v7026_v9 = vpop.f32.mrf.mxu1  ;;  %v1926_v52 = vsel %vm6914_vm8, %v5507_v38, %v1925_v26  ;;  %v2575_v54 = vld [vmem:[#allocation2 + $0x54] sm:$0xf]  ;;  %v2769_v26 = vshll.u32 %v2577_v13, 16  ;;  %v1935_v38 = vrot.slane %v6850_v53, 5  ;;  %v6356_v13 = vld [vmem:[#allocation2 + $0x64] sm:$0xf] }
 0x100   : > { %v2021_v31 = vunpack.c.l.b16 %v1922_v60  ;;  %v2022_v60 = vunpack.c.l.b16 %v1926_v52  ;;  %v2750_v28 = vshrl.u32 %v2575_v54, 16  ;;  %v2753_v41 = vshll.u32 %v2575_v54, 16  ;;  %v6063_v54 = vld [vmem:[#allocation2 + $0x54] sm:$0xff] }
 0x101   : > { %v2771_v25 = vrot.slane %v2769_v26, 5  ;;  %v1936_v44 = vsel %vm6914_vm8, %v1934_v33, %v1935_v38  ;;  %v6357_v38 = vld [vmem:[#allocation2 + $0x68] sm:$0x1] }
 0x102   : > { %v2047_v15 = vpack.c.b16 %v2021_v31, %v2020_v1  ;;  %v2748_v1 = vsel %vm6535_vm5, %v2743_v48, %v2747_v37  ;;  %v2759_v31 = vshll.u32 %v2576_v27, 16 }
 0x103   : > { %v3017_v8 = vunpack.c.l.b16 %v2748_v1 }
 0x104   : > { %v2761_v24 = vrot.slane %v2759_v31, 5 }
 0x106   : > { %v7041_v62 = vpop.f32.mrf.mxu0 }
 0x107   : > { %v7039_v45 = vpop.f32.mrf.mxu1 }
 0x109   : > { %2459 = vmatmul.bf16.gmra.mxu3 %v6060_v35  ;;  %v7037_v35 = vpop.f32.mrf.mxu3 }
 0x10c   : > { %2150 = vmatmul.bf16.gmra.mxu2 %v2046_v32  ;;  %v2732_v32 = vor.u32 %v2731_v11, %v2728_v19  ;;  %v2752_v19 = vrot.slane %v2750_v28, 4  ;;  %v2755_v11 = vrot.slane %v2753_v41, 5 }
 0x10e   : > { %1774 = vmatmul.bf16.gmra.mxu1 %v6022_v30  ;;  %v6355_v30 = vld [vmem:[#allocation2 + $0x50] sm:$0x1]  ;;  %v2733_v43 = vrot.slane %v2732_v32, 4  ;;  %v2756_v21 = vor.u32 %v2755_v11, %v2752_v19  ;;  %v2580_v19 = vld [vmem:[#allocation2 + $0x68] sm:$0x1] }
 0x10f   : > { %3141 = vmatmul.bf16.gmra.mxu0 %v3041_v40  ;;  %v1928_v50 = vrot.slane %v6355_v30, 5  ;;  %v6093_v40 = vld [vmem:[%s7915_s3 + $0x160] sm:$0xff]  ;;  %v7058_v4 = vpop.f32.mrf.mxu1 }
 0x110   : > { %3547 = vmatpush.bf16.msra.mxu1 %v6093_v40  ;;  %v2738_v56 = vsel %vm6535_vm5, %v2733_v43, %v2737_v16  ;;  %v1837_v16 = vld [vmem:[#allocation2 + $0x54] sm:$0xe]  ;;  %v2757_v2 = vrot.slane %v2756_v21, 4  ;;  %v2578_v30 = vld [vmem:[#allocation2 + $0x60] sm:$0xf]  ;;  %v2793_v21 = vshll.u32 %v2580_v19, 16 }
 0x111   : > { %v1929_v47 = vsel %vm6914_vm8, %v1927_v39, %v1928_v50  ;;  %v7062_v57 = vpop.f32.mrf.mxu3  ;;  %v3016_v6 = vunpack.c.l.b16 %v2738_v56  ;;  %v5508_v17 = vrot.slane %v1837_v16, 9  ;;  %v2579_v50 = vld [vmem:[#allocation2 + $0x64] sm:$0xf]  ;;  %v2774_v37 = vshrl.u32 %v2578_v30, 16 }
 0x112   : > { %v2023_v63 = vunpack.c.l.b16 %v1929_v47  ;;  %v2777_v52 = vshll.u32 %v2578_v30, 16  ;;  %v2783_v53 = vshll.u32 %v2579_v50, 16  ;;  %v2787_v47 = vshrl.u32 %v2579_v50, 16  ;;  %v6116_v30 = vld [vmem:[%s7915_s3 + $0x198] sm:$0xff] }
 0x113   : > { %v1933_v40 = vsel %vm6914_vm8, %v5508_v17, %v1932_v20  ;;  %v2025_v56 = vunpack.c.l.b16 %v1936_v44  ;;  %v2776_v41 = vrot.slane %v2774_v37, 4  ;;  %v1838_v20 = vld [vmem:[#allocation2 + $0x60] sm:$0xe]  ;;  %3863 = vmatpush.bf16.msra.mxu2 %v6116_v30  ;;  %v6124_v44 = vld [vmem:[%s7915_s3 + $0x1d8] sm:$0xff] }
 0x114   : > { %v2048_v10 = vpack.c.b16 %v2023_v63, %v2022_v60  ;;  %v7071_v3 = vpop.f32.mrf.mxu2  ;;  %v2024_v27 = vunpack.c.l.b16 %v1933_v40  ;;  %v2779_v1 = vrot.slane %v2777_v52, 5  ;;  %v2785_v31 = vrot.slane %v2783_v53, 5  ;;  %v6092_v37 = vld [vmem:[%s7915_s3 + $0x158] sm:$0xff]  ;;  %4545 = vmatpush.bf16.msra.mxu3 %v6124_v44  ;;  %v6026_v44 = vld [vmem:[#allocation2 + $0x6c] sm:$0xff] }
 0x115   : > { %v5509_v17 = vrot.slane %v1838_v20, 9  ;;  %3548 = vmatpush.bf16.msra.mxu1 %v6092_v37 }
 0x116   : > { %v2780_v16 = vor.u32 %v2779_v1, %v2776_v41 }
 0x118   : > { %v2781_v50 = vrot.slane %v2780_v16, 4 }
 0x119   : > { %2464 = vmatmul.bf16.gmra.mxu3 %v6061_v0  ;;  %v7064_v0 = vpop.f32.mrf.mxu0  ;;  %v7073_v32 = vpop.f32.mrf.mxu3 }
 0x11c   : > { %2155 = vmatmul.bf16.gmra.mxu2 %v2047_v15  ;;  %v2765_v15 = vrot.slane %v2763_v5, 4  ;;  %v7088_v63 = vpop.f32.mrf.mxu2  ;;  %v2789_v5 = vrot.slane %v2787_v47, 4 }
 0x11e   : > { %1779 = vmatmul.bf16.gmra.mxu1 %v6023_v61  ;;  %v3043_v61 = vpack.c.b16 %v3017_v8, %v3016_v6 }
 0x11f   : > { %3146 = vmatmul.bf16.gmra.mxu0 %v3042_v34  ;;  %v2766_v34 = vor.u32 %v2765_v15, %v2761_v24 }
 0x121   : > { %v7076_v39 = vpop.f32.mrf.mxu0  ;;  %v2767_v43 = vrot.slane %v2766_v34, 4  ;;  %v7090_v28 = vpop.f32.mrf.mxu3  ;;  %v6025_v34 = vld [vmem:[#allocation2 + $0x60] sm:$0xff] }
 0x123   : > { %v2772_v60 = vsel %vm6535_vm5, %v2767_v43, %v2771_v25  ;;  %v2795_v25 = vrot.slane %v2793_v21, 5 }
 0x124   : > { %v3019_v8 = vunpack.c.l.b16 %v2772_v60 }
 0x129   : > { %2469 = vmatmul.bf16.gmra.mxu3 %v6062_v59  ;;  %v2762_v59 = vsel %vm6535_vm5, %v2757_v2, %v2761_v24  ;;  %v7092_v11 = vpop.f32.mrf.mxu0  ;;  %v1939_v24 = vrot.slane %v6356_v13, 5  ;;  %v1942_v2 = vrot.slane %v6357_v38, 5  ;;  %v7108_v52 = vpop.f32.mrf.mxu3  ;;  %v6132_v13 = vld [vmem:[%s7915_s3 + $0x218] sm:$0xff] }
 0x12a   : > { %v3018_v6 = vunpack.c.l.b16 %v2762_v59  ;;  %v2786_v59 = vsel %vm6535_vm5, %v2781_v50, %v2785_v31  ;;  %4971 = vmatpush.bf16.msra.mxu0 %v6132_v13 }
 0x12b   : > { %v7069_v23 = vpop.f32.mrf.mxu1  ;;  %v1941_v33 = vrot.slane %v1939_v24, 4  ;;  %v1940_v53 = vsel %vm6914_vm8, %v5509_v17, %v1939_v24  ;;  %v3020_v24 = vunpack.c.l.b16 %v2786_v59  ;;  %v6359_v59 = vld [vmem:[#allocation2 + $0x74] sm:$0x1] }
 0x12c   : > { %2160 = vmatmul.bf16.gmra.mxu2 %v2048_v10  ;;  %v2049_v10 = vpack.c.b16 %v2025_v56, %v2024_v27 }
 0x12d   : > { %v1943_v47 = vsel %vm6914_vm8, %v1941_v33, %v1942_v2  ;;  %v2583_v33 = vld [vmem:[#allocation2 + $0x74] sm:$0x1]  ;;  %v1839_v2 = vld [vmem:[#allocation2 + $0x6c] sm:$0xe] }
 0x12e   : > { %1784 = vmatmul.bf16.gmra.mxu1 %v6024_v12  ;;  %v3044_v12 = vpack.c.b16 %v3019_v8, %v3018_v6  ;;  %v2026_v6 = vunpack.c.l.b16 %v1940_v53  ;;  %v2027_v8 = vunpack.c.l.b16 %v1943_v47  ;;  %v2817_v53 = vshll.u32 %v2583_v33, 16 }
 0x12f   : > { %3151 = vmatmul.bf16.gmra.mxu0 %v3043_v61  ;;  %v2790_v61 = vor.u32 %v2789_v5, %v2785_v31  ;;  %v6064_v5 = vld [vmem:[#allocation2 + $0x60] sm:$0xff]  ;;  %v5510_v47 = vrot.slane %v1839_v2, 9 }
 0x130   : > { %v2050_v31 = vpack.c.b16 %v2027_v8, %v2026_v6 }
 0x131   : > { %v2791_v43 = vrot.slane %v2790_v61, 4  ;;  %v7116_v56 = vpop.f32.mrf.mxu0 }
 0x133   : > { %v7082_v48 = vpop.f32.mrf.mxu1  ;;  %v2796_v60 = vsel %vm6535_vm5, %v2791_v43, %v2795_v25 }
 0x139   : > { %2474 = vmatmul.bf16.gmra.mxu3 %v6063_v54  ;;  %v2582_v54 = vld [vmem:[#allocation2 + $0x70] sm:$0xf] }
 0x13a   : > { %v2811_v19 = vshrl.u32 %v2582_v54, 16 }
 0x13b   : > { %v1750_v15 = vpop.f32.mrf.mxu1 }
 0x13c   : > { %v7095_v26 = vadd.f32 %v1750_v15, %v7020_v46  ;;  %2165 = vmatmul.bf16.gmra.mxu2 %v2049_v10  ;;  %v2581_v46 = vld [vmem:[#allocation2 + $0x6c] sm:$0xf]  ;;  %v2807_v10 = vshll.u32 %v2582_v54, 16  ;;  %v3021_v15 = vunpack.c.l.b16 %v2796_v60  ;;  %v1949_v60 = vrot.slane %v6359_v59, 5 }
 0x13d   : > { %v2798_v41 = vshrl.u32 %v2581_v46, 16  ;;  %v2801_v1 = vshll.u32 %v2581_v46, 16 }
 0x13e   : > { %1789 = vmatmul.bf16.gmra.mxu1 %v6025_v34  ;;  %v2809_v21 = vrot.slane %v2807_v10, 5  ;;  %v6358_v34 = vld [vmem:[#allocation2 + $0x70] sm:$0xf]  ;;  %v3045_v43 = vpack.c.b16 %v3021_v15, %v3020_v24  ;;  %v2819_v10 = vrot.slane %v2817_v53, 5 }
 0x13f   : > { %v7100_v40 = vpop.f32.mrf.mxu2  ;;  %3156 = vmatmul.bf16.gmra.mxu0 %v3044_v12  ;;  %v2800_v16 = vrot.slane %v2798_v41, 4  ;;  %v2803_v61 = vrot.slane %v2801_v1, 5  ;;  %v2813_v12 = vrot.slane %v2811_v19, 4  ;;  %v1946_v17 = vrot.slane %v6358_v34, 5  ;;  %v2584_v1 = vld [vmem:[#allocation2 + $0x78] sm:$0xf] }
 0x140   : > { %v2822_v24 = vshrl.u32 %v2584_v1, 16  ;;  %v2825_v15 = vshll.u32 %v2584_v1, 16  ;;  %v6065_v34 = vld [vmem:[#allocation2 + $0x6c] sm:$0xff] }
 0x141   : > { %v2804_v25 = vor.u32 %v2803_v61, %v2800_v16  ;;  %v2814_v46 = vor.u32 %v2813_v12, %v2809_v21  ;;  %v1948_v54 = vrot.slane %v1946_v17, 4  ;;  %v1947_v19 = vsel %vm6914_vm8, %v5510_v47, %v1946_v17 }
 0x142   : > { %v2028_v33 = vunpack.c.l.b16 %v1947_v19 }
 0x143   : > { %v7114_v27 = vpop.f32.mrf.mxu1  ;;  %v2805_v6 = vrot.slane %v2804_v25, 4  ;;  %v2815_v8 = vrot.slane %v2814_v46, 4  ;;  %v1950_v13 = vsel %vm6914_vm8, %v1948_v54, %v1949_v60  ;;  %v2824_v25 = vrot.slane %v2822_v24, 4  ;;  %v2586_v54 = vld [vmem:[#allocation2 + $0x80] sm:$0x1] }
 0x144   : > { %v2827_v46 = vrot.slane %v2825_v15, 5  ;;  %v6027_v15 = vld [vmem:[#allocation2 + $0x78] sm:$0xff] }
 0x145   : > { %v2810_v2 = vsel %vm6535_vm5, %v2805_v6, %v2809_v21  ;;  %v2820_v17 = vsel %vm6535_vm5, %v2815_v8, %v2819_v10  ;;  %v1840_v10 = vld [vmem:[#allocation2 + $0x78] sm:$0xe] }
 0x146   : > { %v3022_v59 = vunpack.c.l.b16 %v2810_v2  ;;  %v3023_v60 = vunpack.c.l.b16 %v2820_v17  ;;  %v2828_v21 = vor.u32 %v2827_v46, %v2824_v25  ;;  %v6361_v2 = vld [vmem:[#allocation2 + $0x80] sm:$0x1] }
 0x147   : > { %v7125_v20 = vpop.f32.mrf.mxu2 }
 0x148   : > { %v2829_v17 = vrot.slane %v2828_v21, 4 }
 0x149   : > { %2479 = vmatmul.bf16.gmra.mxu3 %v6064_v5  ;;  %v2585_v5 = vld [vmem:[#allocation2 + $0x7c] sm:$0xf] }
 0x14a   : > { %v2831_v16 = vshll.u32 %v2585_v5, 16 }
 0x14b   : > { %v1755_v38 = vpop.f32.mrf.mxu1 }
 0x14c   : > { %v7127_v30 = vpop.f32.mrf.mxu3  ;;  %v7130_v50 = vadd.f32 %v1755_v38, %v7064_v0  ;;  %2170 = vmatmul.bf16.gmra.mxu2 %v2050_v31  ;;  %v7132_v37 = vpop.f32.mrf.mxu0  ;;  %v2835_v31 = vshrl.u32 %v2585_v5, 16  ;;  %v2029_v38 = vunpack.c.l.b16 %v1950_v13  ;;  %v6360_v5 = vld [vmem:[#allocation2 + $0x7c] sm:$0xf]  ;;  %v2841_v13 = vshll.u32 %v2586_v54, 16  ;;  %v6091_v54 = vld [vmem:[%s7915_s3 + $0x150] sm:$0xff] }
 0x14d   : > { %v1953_v19 = vrot.slane %v6360_v5, 5  ;;  %3549 = vmatpush.bf16.msra.mxu1 %v6091_v54  ;;  %v2589_v54 = vld [vmem:[#allocation2 + $0x8c] sm:$0x1] }
 0x14e   : > { %1794 = vmatmul.bf16.gmra.mxu1 %v6026_v44  ;;  %v2833_v44 = vrot.slane %v2831_v16, 5  ;;  %v2837_v53 = vrot.slane %v2835_v31, 4  ;;  %v2051_v1 = vpack.c.b16 %v2029_v38, %v2028_v33  ;;  %v5511_v31 = vrot.slane %v1840_v10, 9  ;;  %v6115_v38 = vld [vmem:[%s7915_s3 + $0x190] sm:$0xff] }
 0x14f   : > { %v2131_v41 = vpop.f32.mrf.mxu2  ;;  %3161 = vmatmul.bf16.gmra.mxu0 %v3045_v43  ;;  %v1753_v43 = vadd.f32 %v7114_v27, %v7041_v62  ;;  %v3046_v27 = vpack.c.b16 %v3023_v60, %v3022_v59  ;;  %v1956_v33 = vrot.slane %v6361_v2, 5  ;;  %v2843_v25 = vrot.slane %v2841_v13, 5  ;;  %3864 = vmatpush.bf16.msra.mxu2 %v6115_v38 }
 0x150   : > { %v2211_v0 = vadd.f32 %v2131_v41, %v7095_v26  ;;  %v2838_v6 = vor.u32 %v2837_v53, %v2833_v44  ;;  %v2588_v53 = vld [vmem:[#allocation2 + $0x88] sm:$0xf]  ;;  %v1954_v59 = vsel %vm6914_vm8, %v5511_v31, %v1953_v19 }
 0x153   : > { %v7139_v61 = vpop.f32.mrf.mxu1 }
 0x154   : > { %v7141_v12 = vpop.f32.mrf.mxu3  ;;  %v7143_v26 = vpop.f32.mrf.mxu0 }
 0x155   : > { %7924 = vst [vmem:[#allocation3_spill] sm:$0xff] %v7141_v12 }
 0x157   : > { %v2133_v47 = vpop.f32.mrf.mxu2 }
 0x158   : > { %v2212_v41 = vadd.f32 %v2133_v47, %v1753_v43  ;;  %v2839_v43 = vrot.slane %v2838_v6, 4  ;;  %v6123_v47 = vld [vmem:[%s7915_s3 + $0x1d0] sm:$0xff] }
 0x159   : > { %2484 = vmatmul.bf16.gmra.mxu3 %v6065_v34  ;;  %v1955_v34 = vrot.slane %v1953_v19, 4 }
 0x15a   : > { %4546 = vmatpush.bf16.msra.mxu3 %v6123_v47 }
 0x15b   : > { %v1760_v8 = vpop.f32.mrf.mxu1  ;;  %v1957_v60 = vsel %vm6914_vm8, %v1955_v34, %v1956_v33  ;;  %v1758_v34 = vadd.f32 %v7139_v61, %v7076_v39 }
 0x15c   : > { %v2445_v12 = vpop.f32.mrf.mxu3  ;;  %v7152_v62 = vadd.f32 %v1760_v8, %v7092_v11  ;;  %2175 = vmatmul.bf16.gmra.mxu2 %v2051_v1  ;;  %v3127_v16 = vpop.f32.mrf.mxu0  ;;  %v2834_v1 = vsel %vm6535_vm5, %v2829_v17, %v2833_v44  ;;  %v2855_v8 = vshll.u32 %v2588_v53, 16  ;;  %v6131_v44 = vld [vmem:[%s7915_s3 + $0x210] sm:$0xff] }
 0x15d   : > { %v2525_v24 = vadd.f32 %v2445_v12, %v2211_v0  ;;  %v2587_v0 = vld [vmem:[#allocation2 + $0x84] sm:$0xf]  ;;  %v3024_v33 = vunpack.c.l.b16 %v2834_v1  ;;  %4972 = vmatpush.bf16.msra.mxu0 %v6131_v44 }
 0x15e   : > { %1799 = vmatmul.bf16.gmra.mxu1 %v6027_v15  ;;  %v2846_v6 = vshrl.u32 %v2587_v0, 16  ;;  %v2849_v13 = vshll.u32 %v2587_v0, 16  ;;  %v2031_v15 = vunpack.c.l.b16 %v1957_v60  ;;  %v1841_v60 = vld [vmem:[#allocation2 + $0x84] sm:$0xe] }
 0x15f   : > { %v7157_v46 = vadd.f32 %v3127_v16, %v2525_v24  ;;  %v2136_v11 = vpop.f32.mrf.mxu2  ;;  %3166 = vmatmul.bf16.gmra.mxu0 %v3046_v27  ;;  %v6066_v27 = vld [vmem:[#allocation2 + $0x78] sm:$0xff]  ;;  %v2030_v24 = vunpack.c.l.b16 %v1954_v59  ;;  %v2859_v16 = vshrl.u32 %v2588_v53, 16  ;;  %v6362_v53 = vld [vmem:[#allocation2 + $0x88] sm:$0xf] }
 0x160   : > { %v2213_v12 = vadd.f32 %v2136_v11, %v7130_v50  ;;  %v2844_v50 = vsel %vm6535_vm5, %v2839_v43, %v2843_v25  ;;  %v2851_v43 = vrot.slane %v2849_v13, 5  ;;  %v2857_v11 = vrot.slane %v2855_v8, 5 }
 0x161   : > { %v3025_v38 = vunpack.c.l.b16 %v2844_v50  ;;  %v2052_v25 = vpack.c.b16 %v2031_v15, %v2030_v24  ;;  %v2861_v0 = vrot.slane %v2859_v16, 4  ;;  %v1960_v47 = vrot.slane %v6362_v53, 5  ;;  %v6363_v24 = vld [vmem:[#allocation2 + $0x8c] sm:$0x1] }
 0x162   : > { %v1963_v15 = vrot.slane %v6363_v24, 5 }
 0x163   : > { %v1762_v5 = vpop.f32.mrf.mxu1  ;;  %v3047_v61 = vpack.c.b16 %v3025_v38, %v3024_v33  ;;  %v1962_v8 = vrot.slane %v1960_v47, 4 }
 0x164   : > { %v2447_v21 = vpop.f32.mrf.mxu3  ;;  %v7175_v10 = vadd.f32 %v1762_v5, %v7116_v56  ;;  %v3129_v31 = vpop.f32.mrf.mxu0  ;;  %v2848_v56 = vrot.slane %v2846_v6, 4  ;;  %v6028_v6 = vld [vmem:[#allocation2 + $0x84] sm:$0xff] }
 0x165   : > { %v2526_v19 = vadd.f32 %v2447_v21, %v2212_v41  ;;  %v2862_v21 = vor.u32 %v2861_v0, %v2857_v11 }
 0x166   : > { %v2852_v50 = vor.u32 %v2851_v43, %v2848_v56  ;;  %v2591_v56 = vld [vmem:[#allocation2 + $0x94] sm:$0xf] }
 0x167   : > { %v7182_v2 = vadd.f32 %v3129_v31, %v2526_v19  ;;  %v2138_v17 = vpop.f32.mrf.mxu2  ;;  %v2865_v19 = vshll.u32 %v2589_v54, 16 }
 0x168   : > { %v2214_v41 = vadd.f32 %v2138_v17, %v1758_v34  ;;  %v2853_v44 = vrot.slane %v2852_v50, 4  ;;  %v2590_v34 = vld [vmem:[#allocation2 + $0x90] sm:$0xf]  ;;  %v1964_v17 = vsel %vm6914_vm8, %v1962_v8, %v1963_v15  ;;  %v2879_v50 = vshll.u32 %v2591_v56, 16 }
 0x169   : > { %2489 = vmatmul.bf16.gmra.mxu3 %v6066_v27  ;;  %v5512_v27 = vrot.slane %v1841_v60, 9  ;;  %v2867_v33 = vrot.slane %v2865_v19, 5  ;;  %v2870_v0 = vshrl.u32 %v2590_v34, 16  ;;  %v2873_v53 = vshll.u32 %v2590_v34, 16  ;;  %v6067_v60 = vld [vmem:[#allocation2 + $0x84] sm:$0xff] }
 0x16a   : > { %v7204_v15 = vrot.slane %v2879_v50, 5 }
 0x16b   : > { %v1765_v59 = vpop.f32.mrf.mxu1  ;;  %v1961_v38 = vsel %vm6914_vm8, %v5512_v27, %v1960_v47  ;;  %v2872_v19 = vrot.slane %v2870_v0, 4  ;;  %v2875_v27 = vrot.slane %v2873_v53, 5 }
 0x16c   : > { %v2450_v5 = vpop.f32.mrf.mxu3  ;;  %v7185_v39 = vadd.f32 %v1765_v59, %v7132_v37  ;;  %2180 = vmatmul.bf16.gmra.mxu2 %v2052_v25  ;;  %v3132_v13 = vpop.f32.mrf.mxu0 }
 0x16d   : > { %v2527_v1 = vadd.f32 %v2450_v5, %v2213_v12  ;;  %v2863_v12 = vrot.slane %v2862_v21, 4  ;;  %v2033_v5 = vunpack.c.l.b16 %v1964_v17  ;;  %v2883_v21 = vshrl.u32 %v2591_v56, 16 }
 0x16e   : > { %1804 = vmatmul.bf16.gmra.mxu1 %v6028_v6  ;;  %v2876_v17 = vor.u32 %v2875_v27, %v2872_v19  ;;  %v2594_v19 = vld [vmem:[#allocation2 + $0xa0] sm:$0xf]  ;;  %v6122_v27 = vld [vmem:[%s7915_s3 + $0x1c8] sm:$0xff] }
 0x16f   : > { %v7187_v16 = vadd.f32 %v3132_v13, %v2527_v1  ;;  %v2141_v31 = vpop.f32.mrf.mxu2  ;;  %3171 = vmatmul.bf16.gmra.mxu0 %v3047_v61  ;;  %v2858_v1 = vsel %vm6535_vm5, %v2853_v44, %v2857_v11  ;;  %v2868_v47 = vsel %vm6535_vm5, %v2863_v12, %v2867_v33  ;;  %v1842_v11 = vld [vmem:[#allocation2 + $0x90] sm:$0xe]  ;;  %v6364_v44 = vld [vmem:[#allocation2 + $0x94] sm:$0xf]  ;;  %v2592_v12 = vld [vmem:[#allocation2 + $0x98] sm:$0x1]  ;;  %4547 = vmatpush.bf16.msra.mxu3 %v6122_v27 }
 0x170   : > { %v2215_v37 = vadd.f32 %v2141_v31, %v7152_v62  ;;  %v2032_v62 = vunpack.c.l.b16 %v1961_v38  ;;  %v2885_v31 = vrot.slane %v2883_v21, 4  ;;  %v1967_v34 = vrot.slane %v6364_v44, 5  ;;  %v6295_v44 = vld [vmem:[%s6470_s29 + $0x78] sm:$0xff]  }
 0x171   : > { %v5513_v0 = vrot.slane %v1842_v11, 9 }
 0x172   : > { %v2053_v24 = vpack.c.b16 %v2033_v5, %v2032_v62  ;;  %v6365_v62 = vld [vmem:[#allocation2 + $0x98] sm:$0x1] }
 0x173   : > { %v1767_v43 = vpop.f32.mrf.mxu1  ;;  %v1970_v5 = vrot.slane %v6365_v62, 5 }
 0x174   : > { %v2452_v25 = vpop.f32.mrf.mxu3  ;;  %v7195_v54 = vadd.f32 %v1767_v43, %v7143_v26  ;;  %v3134_v61 = vpop.f32.mrf.mxu0  ;;  %v3026_v26 = vunpack.c.l.b16 %v2858_v1  ;;  %v2593_v1 = vld [vmem:[#allocation2 + $0x9c] sm:$0xf] }
 0x175   : > { %v2528_v59 = vadd.f32 %v2452_v25, %v2214_v41  ;;  %v3027_v41 = vunpack.c.l.b16 %v2868_v47  ;;  %v6029_v25 = vld [vmem:[#allocation2 + $0x90] sm:$0xff]  ;;  %v2894_v11 = vshrl.u32 %v2593_v1, 16 }
 0x177   : > { %v7201_v6 = vadd.f32 %v3134_v61, %v2528_v59  ;;  %v2143_v13 = vpop.f32.mrf.mxu2  ;;  %v3048_v56 = vpack.c.b16 %v3027_v41, %v3026_v26  ;;  %v2889_v59 = vshll.u32 %v2592_v12, 16  ;;  %v6114_v61 = vld [vmem:[%s7915_s3 + $0x188] sm:$0xff]  ;;  %v6199_v12 = vunpack.c.l.bf16 %v6295_v44 }
 0x178   : > { %v2216_v8 = vadd.f32 %v2143_v13, %v7175_v10  ;;  %v2886_v10 = vor.u32 %v2885_v31, %v7204_v15  ;;  %3865 = vmatpush.bf16.msra.mxu2 %v6114_v61  ;;  %v1968_v13 = vsel %vm6914_vm8, %v5513_v0, %v1967_v34  ;;  %v6090_v26 = vld [vmem:[%s7915_s3 + $0x148] sm:$0xff]  ;;  %v2907_v0 = vshrl.u32 %v2594_v19, 16 }
 0x179   : > { %2494 = vmatmul.bf16.gmra.mxu3 %v6067_v60  ;;  %v1969_v60 = vrot.slane %v1967_v34, 4  ;;  %3550 = vmatpush.bf16.msra.mxu1 %v6090_v26 }
 0x17a   : > { %v2887_v41 = vrot.slane %v2886_v10, 4  ;;  %v6068_v10 = vld [vmem:[#allocation2 + $0x90] sm:$0xff] }
 0x17b   : > { %v7206_v33 = vpop.f32.mrf.mxu1  ;;  %v1971_v31 = vsel %vm6914_vm8, %v1969_v60, %v1970_v5  ;;  %v6366_v60 = vld [vmem:[%s7913_s1] ss:$0 sm:$0xff] }
 0x17c   : > { %v2455_v38 = vpop.f32.mrf.mxu3  ;;  %2185 = vmatmul.bf16.gmra.mxu2 %v2053_v24  ;;  %v3137_v53 = vpop.f32.mrf.mxu0  ;;  %v2891_v24 = vrot.slane %v2889_v59, 5  ;;  %v2035_v59 = vunpack.c.l.b16 %v1971_v31  ;;  %v335_v62 = vmul.f32 %v6366_v60, %v6199_v12  ;;  %v2909_v12 = vrot.slane %v2907_v0, 4 }
 0x17d   : > { %v2529_v43 = vadd.f32 %v2455_v38, %v2215_v37  ;;  %v2877_v37 = vrot.slane %v2876_v17, 4  ;;  %v6200_v38 = vunpack.c.h.bf16 %v6295_v44 }
 0x17e   : > { %1809 = vmatmul.bf16.gmra.mxu1 %v6029_v25  ;;  %v2903_v25 = vshll.u32 %v2594_v19, 16 }
 0x17f   : > { %v7212_v47 = vadd.f32 %v3137_v53, %v2529_v43  ;;  %v2146_v50 = vpop.f32.mrf.mxu2  ;;  %3176 = vmatmul.bf16.gmra.mxu0 %v3048_v56  ;;  %v2882_v56 = vsel %vm6535_vm5, %v2877_v37, %v7204_v15  ;;  %v2034_v43 = vunpack.c.l.b16 %v1968_v13  ;;  %v336_v5 = vmul.f32 %v6366_v60, %v6200_v38  ;;  %v6130_v15 = vld [vmem:[%s7915_s3 + $0x208] sm:$0xff]  ;;  %v6368_v60 = vld [vmem:[#allocation2 + $0xa0] sm:$0xf] }
 0x180   : > { %v2217_v21 = vadd.f32 %v2146_v50, %v7185_v39  ;;  %v2897_v39 = vshll.u32 %v2593_v1, 16  ;;  %v2892_v1 = vsel %vm6535_vm5, %v2887_v41, %v2891_v24  ;;  %v2896_v50 = vrot.slane %v2894_v11, 4  ;;  %4973 = vmatpush.bf16.msra.mxu0 %v6130_v15 }
 0x181   : > { %7925 = vst [vmem:[#allocation4_spill] sm:$0xff] %v7212_v47  ;;  %v3028_v26 = vunpack.c.l.b16 %v2882_v56  ;;  %v7244_v44 = vrot.slane %v2903_v25, 5  ;;  %v3029_v41 = vunpack.c.l.b16 %v2892_v1  ;;  %v2054_v11 = vpack.c.b16 %v2035_v59, %v2034_v43 }
 0x182   : > { %v2899_v37 = vrot.slane %v2897_v39, 5  ;;  %v2595_v39 = vld [vmem:[#allocation2 + $0xa4] sm:$0x1]  ;;  %v1974_v47 = vrot.slane %v6368_v60, 5 }
 0x183   : > { %v7226_v34 = vpop.f32.mrf.mxu1  ;;  %v2910_v25 = vor.u32 %v2909_v12, %v7244_v44 }
 0x184   : > { %v2457_v17 = vpop.f32.mrf.mxu3  ;;  %v3139_v61 = vpop.f32.mrf.mxu0 }
 0x185   : > { %v2530_v53 = vadd.f32 %v2457_v17, %v2216_v8  ;;  %v6367_v8 = vld [vmem:[%s7914_s2] ss:$0 sm:$0xff]  ;;  %v1843_v17 = vld [vmem:[#allocation2 + $0x9c] sm:$0xe] }
 0x186   : > { %v371_v13 = vadd.f32 %v6367_v8, %v335_v62  ;;  %v372_v19 = vadd.f32 %v6367_v8, %v336_v5  ;;  %v2900_v5 = vor.u32 %v2899_v37, %v2896_v50  ;;  %v5514_v43 = vrot.slane %v1843_v17, 9  ;;  %v2597_v17 = vld [vmem:[#allocation2 + $0xac] sm:$0xf] }
 0x187   : > { %v7242_v27 = vadd.f32 %v3139_v61, %v2530_v53  ;;  %v2148_v31 = vpop.f32.mrf.mxu2  ;;  %v2913_v61 = vshll.u32 %v2595_v39, 16  ;;  %v1976_v8 = vrot.slane %v1974_v47, 4  ;;  %v1771_v50 = vadd.f32 %v7206_v33, %v6988_v49 }
 0x188   : > { %v2218_v24 = vadd.f32 %v2148_v31, %v7195_v54  ;;  %v403_v38 = vmax.f32 %v371_v13, 0.0  ;;  %v404_v62 = vmax.f32 %v372_v19, 0.0  ;;  %v6030_v54 = vld [vmem:[#allocation2 + $0x9c] sm:$0xff]  ;;  %v6369_v13 = vld [vmem:[#allocation2 + $0xa4] sm:$0x1]  ;;  %v2901_v12 = vrot.slane %v2900_v5, 4 }
 0x189   : > { %2499 = vmatmul.bf16.gmra.mxu3 %v6068_v10  ;;  %v3049_v10 = vpack.c.b16 %v3029_v41, %v3028_v26  ;;  %v1977_v31 = vrot.slane %v6369_v13, 5  ;;  %v2911_v39 = vrot.slane %v2910_v25, 4 }
 0x18a   : > { %v435_v0 = vpack.c.bf16 %v403_v38, %v403_v38  ;;  %v436_v15 = vpack.c.bf16 %v404_v62, %v404_v62  ;;  %v2915_v38 = vrot.slane %v2913_v61, 5  ;;  %v1975_v62 = vsel %vm6914_vm8, %v5514_v43, %v1974_v47  ;;  %v6069_v43 = vld [vmem:[#allocation2 + $0x9c] sm:$0xff] }
 0x18b   : > { %v7247_v53 = vpop.f32.mrf.mxu1  ;;  %v2906_v61 = vsel %vm6535_vm5, %v2901_v12, %v7244_v44 }
 0x18c   : > { %v2460_v56 = vpop.f32.mrf.mxu3  ;;  %2190 = vmatmul.bf16.gmra.mxu2 %v2054_v11  ;;  %v3142_v59 = vpop.f32.mrf.mxu0  ;;  %v499_v60 = vunpack.c.l.b16 %v435_v0  ;;  %v500_v19 = vunpack.c.l.b16 %v436_v15  ;;  %v3030_v44 = vunpack.c.l.b16 %v2906_v61  ;;  %v1776_v18 = vadd.f32 %v7247_v53, %v7014_v42  ;;  %v6089_v42 = vld [vmem:[%s7915_s3 + $0x140] sm:$0xff] }
 0x18d   : > { %v2531_v1 = vadd.f32 %v2460_v56, %v2217_v21  ;;  %v2596_v21 = vld [vmem:[#allocation2 + $0xa8] sm:$0xf]  ;;  %v1978_v56 = vsel %vm6914_vm8, %v1976_v8, %v1977_v31  ;;  %3551 = vmatpush.bf16.msra.mxu1 %v6089_v42  ;;  %v1845_v42 = vld [vmem:[#allocation2 + $0xb4] sm:$0xe] }
 0x18e   : > { %1814 = vmatmul.bf16.gmra.mxu1 %v6030_v54  ;;  %v516_v41 = vpack.c.b16 %v500_v19, %v499_v60  ;;  %v2918_v49 = vshrl.u32 %v2596_v21, 16  ;;  %v2921_v33 = vshll.u32 %v2596_v21, 16  ;;  %v2931_v54 = vshrl.u32 %v2597_v17, 16 }
 0x18f   : > { %v7252_v37 = vadd.f32 %v3142_v59, %v2531_v1  ;;  %v2151_v26 = vpop.f32.mrf.mxu2  ;;  %3181 = vmatmul.bf16.gmra.mxu0 %v3049_v10  ;;  %v2916_v10 = vsel %vm6535_vm5, %v2911_v39, %v2915_v38  ;;  %v2927_v1 = vshll.u32 %v2597_v17, 16  ;;  %v2036_v59 = vunpack.c.l.b16 %v1975_v62  ;;  %v2598_v62 = vld [vmem:[#allocation2 + $0xb0] sm:$0x1] }
 0x190   : > { %v2219_v11 = vadd.f32 %v2151_v26, %v1771_v50  ;;  %v623_v0 = vshrl.u32 %v516_v41, 16  ;;  %v626_v5 = vshll.u32 %v516_v41, 16  ;;  %v2037_v8 = vunpack.c.l.b16 %v1978_v56  ;;  %v6370_v56 = vld [vmem:[#allocation2 + $0xac] sm:$0xf] }
 0x191   : > { %v1773_v60 = vadd.f32 %v7226_v34, %v7006_v14  ;;  %v2920_v19 = vrot.slane %v2918_v49, 4  ;;  %v2923_v50 = vrot.slane %v2921_v33, 5  ;;  %v3031_v12 = vunpack.c.l.b16 %v2916_v10  ;;  %v1844_v34 = vld [vmem:[#allocation2 + $0xa8] sm:$0xe] }
 0x192   : > { %v625_v13 = vrot.slane %v623_v0, 7  ;;  %v7269_v39 = vrot.slane %v2927_v1, 5  ;;  %v2933_v38 = vrot.slane %v2931_v54, 4  ;;  %v2055_v17 = vpack.c.b16 %v2037_v8, %v2036_v59  ;;  %v6031_v59 = vld [vmem:[#allocation2 + $0xa8] sm:$0xff] }
 0x193   : > { %v7258_v15 = vpop.f32.mrf.mxu1  ;;  %v1981_v0 = vrot.slane %v6370_v56, 5  ;;  %v2924_v33 = vor.u32 %v2923_v50, %v2920_v19  ;;  %v2937_v10 = vshll.u32 %v2598_v62, 16  ;;  %v5515_v8 = vrot.slane %v1844_v34, 9  ;;  %v6113_v19 = vld [vmem:[%s7915_s3 + $0x180] sm:$0xff]  ;;  %v2599_v56 = vld [vmem:[#allocation2 + $0xb4] sm:$0xf] }
 0x194   : > { %v2462_v25 = vpop.f32.mrf.mxu3  ;;  %v3144_v31 = vpop.f32.mrf.mxu0  ;;  %v628_v26 = vor.u32 %v626_v5, %v625_v13  ;;  %v2934_v61 = vor.u32 %v2933_v38, %v7269_v39  ;;  %v695_v1 = vsel %vm6521_vm4, %v625_v13, 0  ;;  %3866 = vmatpush.bf16.msra.mxu2 %v6113_v19  ;;  %v1778_v19 = vadd.f32 %v7258_v15, %v7026_v9 }
 0x195   : > { %v2532_v47 = vadd.f32 %v2462_v25, %v2218_v24  ;;  %v775_v62 = vunpack.c.l.b16 %v695_v1  ;;  %v2925_v13 = vrot.slane %v2924_v33, 4  ;;  %v1982_v53 = vsel %vm6914_vm8, %v5515_v8, %v1981_v0  ;;  %v6070_v8 = vld [vmem:[#allocation2 + $0xa8] sm:$0xff] }
 0x196   : > { %v679_v14 = vsel %vm6521_vm4, 0, %v628_v26  ;;  %v6371_v26 = vld [vmem:[#allocation2 + $0xb0] sm:$0x1] }
 0x197   : > { %v7267_v21 = vadd.f32 %v3144_v31, %v2532_v47  ;;  %v2153_v41 = vpop.f32.mrf.mxu2  ;;  %v773_v49 = vunpack.c.l.b16 %v679_v14  ;;  %v774_v54 = vunpack.c.h.b16 %v679_v14  ;;  %v3050_v47 = vpack.c.b16 %v3031_v12, %v3030_v44 }
 0x198   : > { %v2220_v24 = vadd.f32 %v2153_v41, %v1773_v60  ;;  %v1983_v31 = vrot.slane %v1981_v0, 4  ;;  %v1984_v41 = vrot.slane %v6371_v26, 5  ;;  %v2935_v44 = vrot.slane %v2934_v61, 4 }
 0x199   : > { %2504 = vmatmul.bf16.gmra.mxu3 %v6069_v43  ;;  %v821_v50 = vpack.c.b16 %v773_v49, %v773_v49  ;;  %v822_v38 = vpack.c.b16 %v774_v54, %v774_v54  ;;  %v2939_v12 = vrot.slane %v2937_v10, 5  ;;  %v823_v14 = vpack.c.b16 %v775_v62, %v775_v62  ;;  %v6121_v49 = vld [vmem:[%s7915_s3 + $0x1c0] sm:$0xff] }
 0x19a   : > { %v1985_v33 = vsel %vm6914_vm8, %v1983_v31, %v1984_v41  ;;  %v2930_v61 = vsel %vm6535_vm5, %v2925_v13, %v7269_v39  ;;  %4548 = vmatpush.bf16.msra.mxu3 %v6121_v49  ;;  %v6129_v39 = vld [vmem:[%s7915_s3 + $0x200] sm:$0xff] }
 0x19b   : > { %v7273_v5 = vpop.f32.mrf.mxu1  ;;  %918 = vst [vmem:[#allocation2 + $0xc0] sm:$0xf] %v821_v50  ;;  %v2940_v54 = vsel %vm6535_vm5, %v2935_v44, %v2939_v12  ;;  %v2039_v31 = vunpack.c.l.b16 %v1985_v33  ;;  %4974 = vmatpush.bf16.msra.mxu0 %v6129_v39 }
 0x19c   : > { %v2465_v25 = vpop.f32.mrf.mxu3  ;;  %2195 = vmatmul.bf16.gmra.mxu2 %v2055_v17  ;;  %v3147_v60 = vpop.f32.mrf.mxu0  ;;  %919 = vst [vmem:[#allocation2 + $0xc4] sm:$0xf] %v822_v38  ;;  %v3032_v38 = vunpack.c.l.b16 %v2930_v61  ;;  %v3033_v62 = vunpack.c.l.b16 %v2940_v54 }
 0x19d   : > { %v2533_v43 = vadd.f32 %v2465_v25, %v2219_v11  ;;  %v2600_v25 = vld [vmem:[#allocation2 + $0xb8] sm:$0xf]  ;;  %920 = vst [vmem:[#allocation2 + $0xc8] sm:$0x1] %v823_v14  ;;  %v2601_v14 = vld [vmem:[#allocation2 + $0xbc] sm:$0x1] }
 0x19e   : > { %1819 = vmatmul.bf16.gmra.mxu1 %v6031_v59  ;;  %v2951_v59 = vshll.u32 %v2600_v25, 16  ;;  %v2955_v26 = vshrl.u32 %v2600_v25, 16  ;;  %v6372_v25 = vld [vmem:[#allocation2 + $0xb8] sm:$0xf]  ;;  %v3051_v15 = vpack.c.b16 %v3033_v62, %v3032_v38  ;;  %v2961_v54 = vshll.u32 %v2601_v14, 16 }
 0x19f   : > { %v7283_v11 = vadd.f32 %v3147_v60, %v2533_v43  ;;  %v2156_v17 = vpop.f32.mrf.mxu2  ;;  %3186 = vmatmul.bf16.gmra.mxu0 %v3050_v47  ;;  %v2942_v47 = vshrl.u32 %v2599_v56, 16  ;;  %v2945_v43 = vshll.u32 %v2599_v56, 16  ;;  %v2038_v60 = vunpack.c.l.b16 %v1982_v53 }
 0x1a0   : > { %v2221_v34 = vadd.f32 %v2156_v17, %v1776_v18  ;;  %v2953_v17 = vrot.slane %v2951_v59, 5  ;;  %v2957_v56 = vrot.slane %v2955_v26, 4  ;;  %v1988_v49 = vrot.slane %v6372_v25, 5 }
 0x1a1   : > { %v2944_v13 = vrot.slane %v2942_v47, 4  ;;  %v2947_v44 = vrot.slane %v2945_v43, 5  ;;  %v2056_v12 = vpack.c.b16 %v2039_v31, %v2038_v60  ;;  %v6032_v47 = vld [vmem:[#allocation2 + $0xb4] sm:$0xff]  ;;  %v6373_v60 = vld [vmem:[#allocation2 + $0xbc] sm:$0x1]  ;;  %v1781_v31 = vadd.f32 %v7273_v5, %v7039_v45 }
 0x1a2   : > { %v1991_v59 = vrot.slane %v6373_v60, 5  ;;  %v2602_v62 = vld [vmem:[#allocation2 + $0xc0] sm:$0xf] }
 0x1a3   : > { %v7298_v10 = vpop.f32.mrf.mxu1  ;;  %v2948_v33 = vor.u32 %v2947_v44, %v2944_v13  ;;  %v2966_v14 = vshrl.u32 %v2602_v62, 16  ;;  %v2969_v25 = vshll.u32 %v2602_v62, 16 }
 0x1a4   : > { %v2467_v1 = vpop.f32.mrf.mxu3  ;;  %v3149_v41 = vpop.f32.mrf.mxu0 }
 0x1a5   : > { %v2534_v0 = vadd.f32 %v2467_v1, %v2220_v24  ;;  %v2958_v1 = vor.u32 %v2957_v56, %v2953_v17  ;;  %v2603_v56 = vld [vmem:[#allocation2 + $0xc4] sm:$0xf]  ;;  %v2971_v62 = vrot.slane %v2969_v25, 5 }
 0x1a7   : > { %v7307_v50 = vadd.f32 %v3149_v41, %v2534_v0  ;;  %v2158_v18 = vpop.f32.mrf.mxu2  ;;  %v5516_v0 = vrot.slane %v1845_v42, 9  ;;  %v2949_v41 = vrot.slane %v2948_v33, 4  ;;  %v6071_v33 = vld [vmem:[#allocation2 + $0xb4] sm:$0xff] }
 0x1a8   : > { %v2222_v24 = vadd.f32 %v2158_v18, %v1778_v19  ;;  %v2959_v19 = vrot.slane %v2958_v1, 4  ;;  %v6374_v18 = vld [vmem:[#allocation2 + $0x10] sm:$0xf] }
 0x1a9   : > { %2509 = vmatmul.bf16.gmra.mxu3 %v6070_v8  ;;  %v1990_v8 = vrot.slane %v1988_v49, 4  ;;  %v3305_v13 = vrot.slane %v6374_v18, 5  ;;  %v1989_v44 = vsel %vm6914_vm8, %v5516_v0, %v1988_v49  ;;  %v2954_v5 = vsel %vm6535_vm5, %v2949_v41, %v2953_v17 }
 0x1aa   : > { %v2975_v0 = vshll.u32 %v2603_v56, 16  ;;  %v3034_v60 = vunpack.c.l.b16 %v2954_v5  ;;  %v1783_v17 = vadd.f32 %v7298_v10, %v7058_v4  ;;  %v3980_v4 = vld [vmem:[#allocation2 + $0x18] sm:$0xf]  ;;  %v2604_v10 = vld [vmem:[#allocation2 + $0xc8] sm:$0x1] }
 0x1ab   : > { %v7309_v9 = vpop.f32.mrf.mxu1  ;;  %v3307_v49 = vrot.slane %v3305_v13, 4 }
 0x1ac   : > { %v2470_v53 = vpop.f32.mrf.mxu3  ;;  %2200 = vmatmul.bf16.gmra.mxu2 %v2056_v12  ;;  %v3152_v43 = vpop.f32.mrf.mxu0  ;;  %v1992_v12 = vsel %vm6914_vm8, %v1990_v8, %v1991_v59  ;;  %v2979_v8 = vshrl.u32 %v2603_v56, 16  ;;  %v3239_v59 = vld [vmem:[#allocation2 + $0xc] sm:$0xe] }
 0x1ad   : > { %v2535_v61 = vadd.f32 %v2470_v53, %v2221_v34  ;;  %v2963_v34 = vrot.slane %v2961_v54, 5  ;;  %v2041_v1 = vunpack.c.l.b16 %v1992_v12  ;;  %v6375_v54 = vld [vmem:[#allocation2 + $0x14] sm:$0x1] }
 0x1ae   : > { %1824 = vmatmul.bf16.gmra.mxu1 %v6032_v47  ;;  %v3308_v47 = vrot.slane %v6375_v54, 5  ;;  %v2981_v12 = vrot.slane %v2979_v8, 4 }
 0x1af   : > { %v7313_v26 = vadd.f32 %v3152_v43, %v2535_v61  ;;  %v2161_v39 = vpop.f32.mrf.mxu2  ;;  %3191 = vmatmul.bf16.gmra.mxu0 %v3051_v15  ;;  %v2964_v15 = vsel %vm6535_vm5, %v2959_v19, %v2963_v34  ;;  %v2040_v61 = vunpack.c.l.b16 %v1989_v44  ;;  %v5725_v19 = vrot.slane %v3239_v59, 9 }
 0x1b0   : > { %v2223_v38 = vadd.f32 %v2161_v39, %v1781_v31  ;;  %v2968_v39 = vrot.slane %v2966_v14, 4  ;;  %v2977_v44 = vrot.slane %v2975_v0, 5  ;;  %v4032_v0 = vshll.u32 %v3980_v4, 16 }
 0x1b1   : > { %v2057_v18 = vpack.c.b16 %v2041_v1, %v2040_v61  ;;  %v3306_v56 = vsel %vm6914_vm8, %v5725_v19, %v3305_v13  ;;  %v1786_v59 = vadd.f32 %v7309_v9, %v7069_v23  ;;  %v6072_v23 = vld [vmem:[#allocation2 + $0xc0] sm:$0xff] }
 0x1b2   : > { %v3432_v5 = vunpack.c.l.b16 %v3306_v56  ;;  %v2972_v54 = vor.u32 %v2971_v62, %v2968_v39  ;;  %v2982_v8 = vor.u32 %v2981_v12, %v2977_v44  ;;  %v4034_v62 = vrot.slane %v4032_v0, 5 }
 0x1b3   : > { %v7321_v42 = vpop.f32.mrf.mxu1 }
 0x1b4   : > { %v2472_v45 = vpop.f32.mrf.mxu3  ;;  %v3154_v43 = vpop.f32.mrf.mxu0  ;;  %v2983_v19 = vrot.slane %v2982_v8, 4  ;;  %v1788_v0 = vadd.f32 %v7321_v42, %v7082_v48 }
 0x1b5   : > { %v2536_v53 = vadd.f32 %v2472_v45, %v2222_v24  ;;  %v3035_v24 = vunpack.c.l.b16 %v2964_v15  ;;  %v3309_v45 = vsel %vm6914_vm8, %v3307_v49, %v3308_v47  ;;  %v7333_v15 = vld [vmem:[#allocation2 + $0x1c] sm:$0xf] }
 0x1b6   : > { %v4038_v49 = vshll.u32 %v7333_v15, 16  ;;  %v4042_v47 = vshrl.u32 %v7333_v15, 16 }
 0x1b7   : > { %v7327_v31 = vadd.f32 %v3154_v43, %v2536_v53  ;;  %v2163_v41 = vpop.f32.mrf.mxu2  ;;  %v3433_v53 = vunpack.c.l.b16 %v3309_v45  ;;  %v3052_v14 = vpack.c.b16 %v3035_v24, %v3034_v60  ;;  %v4029_v43 = vshrl.u32 %v3980_v4, 16  ;;  %v7343_v45 = vld [vmem:[#allocation2 + $0x20] sm:$0x1] }
 0x1b8   : > { %v2224_v34 = vadd.f32 %v2163_v41, %v1783_v17  ;;  %v2985_v17 = vshll.u32 %v2604_v10, 16  ;;  %v4040_v12 = vrot.slane %v4038_v49, 5  ;;  %v4044_v56 = vrot.slane %v4042_v47, 4 }
 0x1b9   : > { %2514 = vmatmul.bf16.gmra.mxu3 %v6071_v33  ;;  %v3464_v1 = vpack.c.b16 %v3433_v53, %v3432_v5  ;;  %v4031_v39 = vrot.slane %v4029_v43, 4 }
 0x1bb   : > { %v7335_v33 = vpop.f32.mrf.mxu1  ;;  %v4035_v53 = vor.u32 %v4034_v62, %v4031_v39  ;;  %v6097_v39 = vld [vmem:[#allocation2 + $0x18] sm:$0xff] }
 0x1bc   : > { %v2475_v25 = vpop.f32.mrf.mxu3  ;;  %2205 = vmatmul.bf16.gmra.mxu2 %v2057_v18  ;;  %v3157_v13 = vpop.f32.mrf.mxu0  ;;  %v2987_v18 = vrot.slane %v2985_v17, 5 }
 0x1bd   : > { %v2537_v61 = vadd.f32 %v2475_v25, %v2223_v38  ;;  %v2973_v38 = vrot.slane %v2972_v54, 4  ;;  %v4045_v54 = vor.u32 %v4044_v56, %v4040_v12  ;;  %v4036_v62 = vrot.slane %v4035_v53, 4 }
 0x1be   : > { %3552 = vmatmul.bf16.vlgmr.msra.gmra.mxu1 %v3464_v1  ;;  %v2988_v25 = vsel %vm6535_vm5, %v2983_v19, %v2987_v18  ;;  %v6376_v1 = vld [vmem:[#allocation2 + $0x1c] sm:$0xf]  ;;  %v3983_v19 = vld [vmem:[#allocation2 + $0x24] sm:$0xf] }
 0x1bf   : > { %v7341_v60 = vadd.f32 %v3157_v13, %v2537_v61  ;;  %v2166_v24 = vpop.f32.mrf.mxu2  ;;  %3196 = vmatmul.bf16.gmra.mxu0 %v3052_v14  ;;  %v2978_v9 = vsel %vm6535_vm5, %v2973_v38, %v2977_v44  ;;  %v4048_v61 = vshll.u32 %v7343_v45, 16  ;;  %v3312_v43 = vrot.slane %v6376_v1, 5  ;;  %v3240_v13 = vld [vmem:[#allocation2 + $0x18] sm:$0xe]  ;;  %v6377_v44 = vld [vmem:[#allocation2 + $0x20] sm:$0x1] }
 0x1c0   : > { %v2225_v41 = vadd.f32 %v2166_v24, %v1786_v59  ;;  %v5726_v17 = vrot.slane %v3240_v13, 9  ;;  %v3315_v47 = vrot.slane %v6377_v44, 5  ;;  %v3036_v59 = vunpack.c.l.b16 %v2978_v9 }
 0x1c1   : > { %v3314_v49 = vrot.slane %v3312_v43, 4  ;;  %v3037_v24 = vunpack.c.l.b16 %v2988_v25  ;;  %v4046_v18 = vrot.slane %v4045_v54, 4  ;;  %v4050_v56 = vrot.slane %v4048_v61, 5 }
 0x1c2   : > { %v3313_v48 = vsel %vm6914_vm8, %v5726_v17, %v3312_v43  ;;  %v4728_v9 = vrot.slane %v7333_v15, 5  ;;  %v4053_v53 = vshrl.u32 %v3983_v19, 16  ;;  %v1791_v15 = vadd.f32 %v7335_v33, %v7010_v22 }
 0x1c3   : > { %v7345_v10 = vpop.f32.mrf.mxu1  ;;  %v3316_v42 = vsel %vm6914_vm8, %v3314_v49, %v3315_v47  ;;  %v3053_v54 = vpack.c.b16 %v3037_v24, %v3036_v59  ;;  %v4051_v17 = vsel %vm6535_vm5, %v4046_v18, %v4050_v56  ;;  %v4731_v24 = vrot.slane %v7343_v45, 5 }
 0x1c4   : > { %v2477_v4 = vpop.f32.mrf.mxu3  ;;  %v3159_v14 = vpop.f32.mrf.mxu0  ;;  %v4430_v18 = vunpack.c.l.b16 %v4051_v17 }
 0x1c5   : > { %v2538_v5 = vadd.f32 %v2477_v4, %v2224_v34  ;;  %v3434_v4 = vunpack.c.l.b16 %v3313_v48 }
 0x1c7   : > { %v7354_v8 = vadd.f32 %v3159_v14, %v2538_v5  ;;  %v2168_v34 = vpop.f32.mrf.mxu2  ;;  %v3435_v5 = vunpack.c.l.b16 %v3316_v42  ;;  %v7360_v14 = vld [vmem:[#allocation2 + $0x28] sm:$0xf] }
 0x1c8   : > { %v2226_v38 = vadd.f32 %v2168_v34, %v1788_v0  ;;  %v4056_v0 = vshll.u32 %v3983_v19, 16  ;;  %v4041_v34 = vsel %vm6535_vm5, %v4036_v62, %v4040_v12  ;;  %v4062_v49 = vshll.u32 %v7360_v14, 16 }
 0x1c9   : > { %2519 = vmatmul.bf16.gmra.mxu3 %v6072_v23  ;;  %v4662_v23 = vld [vmem:[#allocation2 + $0x18] sm:$0xe]  ;;  %v3465_v13 = vpack.c.b16 %v3435_v5, %v3434_v4  ;;  %v4066_v44 = vshrl.u32 %v7360_v14, 16  ;;  %v4055_v19 = vrot.slane %v4053_v53, 4  ;;  %v4429_v62 = vunpack.c.l.b16 %v4041_v34  ;;  %v7376_v4 = vld [vmem:[#allocation2 + $0x2c] sm:$0x1] }
 0x1ca   : > { %v5949_v47 = vrot.slane %v4662_v23, 9  ;;  %v4058_v12 = vrot.slane %v4056_v0, 5  ;;  %v4064_v48 = vrot.slane %v4062_v49, 5  ;;  %v1793_v49 = vadd.f32 %v7345_v10, %v7016_v7  ;;  %v3986_v10 = vld [vmem:[#allocation2 + $0x30] sm:$0xf] }
 0x1cb   : > { %v7363_v25 = vpop.f32.mrf.mxu1  ;;  %v4068_v42 = vrot.slane %v4066_v44, 4  ;;  %v4461_v53 = vpack.c.b16 %v4430_v18, %v4429_v62 }
 0x1cc   : > { %v2480_v1 = vpop.f32.mrf.mxu3  ;;  %3867 = vmatmul.bf16.vlgmr.msra.gmra.mxu2 %v6097_v39  ;;  %v3162_v43 = vpop.f32.mrf.mxu0  ;;  %v4729_v22 = vsel %vm6914_vm8, %v5949_v47, %v4728_v9 }
 0x1cd   : > { %v2539_v61 = vadd.f32 %v2480_v1, %v2225_v41  ;;  %v4730_v41 = vrot.slane %v4728_v9, 4  ;;  %v4059_v1 = vor.u32 %v4058_v12, %v4055_v19  ;;  %v4855_v34 = vunpack.c.l.b16 %v4729_v22  ;;  %v3241_v9 = vld [vmem:[#allocation2 + $0x24] sm:$0xe] }
 0x1ce   : > { %3557 = vmatmul.bf16.gmra.mxu1 %v3465_v13  ;;  %v6378_v13 = vld [vmem:[#allocation2 + $0x28] sm:$0xf] }
 0x1cf   : > { %v7373_v59 = vadd.f32 %v3162_v43, %v2539_v61  ;;  %v2171_v39 = vpop.f32.mrf.mxu2  ;;  %3201 = vmatmul.bf16.gmra.mxu0 %v3053_v54  ;;  %v4732_v33 = vsel %vm6914_vm8, %v4730_v41, %v4731_v24  ;;  %v4069_v54 = vor.u32 %v4068_v42, %v4064_v48  ;;  %v4072_v61 = vshll.u32 %v7376_v4, 16  ;;  %v6098_v12 = vld [vmem:[#allocation2 + $0x24] sm:$0xff] }
 0x1d0   : > { %v2227_v56 = vadd.f32 %v2171_v39, %v1791_v15  ;;  %v3319_v43 = vrot.slane %v6378_v13, 5  ;;  %v4856_v17 = vunpack.c.l.b16 %v4732_v33  ;;  %v4060_v47 = vrot.slane %v4059_v1, 4  ;;  %v7393_v33 = vld [vmem:[#allocation2 + $0x34] sm:$0xf] }
 0x1d1   : > { %v5727_v41 = vrot.slane %v3241_v9, 9  ;;  %v4070_v62 = vrot.slane %v4069_v54, 4  ;;  %v4074_v18 = vrot.slane %v4072_v61, 5  ;;  %v4663_v61 = vld [vmem:[#allocation2 + $0x24] sm:$0xe] }
 0x1d2   : > { %v3321_v24 = vrot.slane %v3319_v43, 4  ;;  %v4887_v1 = vpack.c.b16 %v4856_v17, %v4855_v34  ;;  %v4086_v34 = vshll.u32 %v7393_v33, 16  ;;  %v4090_v17 = vshrl.u32 %v7393_v33, 16 }
 0x1d3   : > { %v7382_v45 = vpop.f32.mrf.mxu1  ;;  %v3320_v42 = vsel %vm6914_vm8, %v5727_v41, %v3319_v43  ;;  %v4077_v43 = vshrl.u32 %v3986_v10, 16  ;;  %v4735_v41 = vrot.slane %v7360_v14, 5  ;;  %v4738_v14 = vrot.slane %v7376_v4, 5 }
 0x1d4   : > { %v2482_v5 = vpop.f32.mrf.mxu3  ;;  %v3164_v0 = vpop.f32.mrf.mxu0 }
 0x1d5   : > { %v2540_v23 = vadd.f32 %v2482_v5, %v2226_v38  ;;  %v6379_v38 = vld [vmem:[#allocation2 + $0x2c] sm:$0x1]  ;;  %v3436_v5 = vunpack.c.l.b16 %v3320_v42  ;;  %v4079_v42 = vrot.slane %v4077_v43, 4  ;;  %v6380_v43 = vld [vmem:[#allocation2 + $0x34] sm:$0xf] }
 0x1d6   : > { %v3322_v39 = vrot.slane %v6379_v38, 5 }
 0x1d7   : > { %v7387_v44 = vadd.f32 %v3164_v0, %v2540_v23  ;;  %v2173_v15 = vpop.f32.mrf.mxu2 }
 0x1d8   : > { %v2228_v19 = vadd.f32 %v2173_v15, %v1793_v49  ;;  %v3323_v7 = vsel %vm6914_vm8, %v3321_v24, %v3322_v39  ;;  %v4080_v49 = vshll.u32 %v3986_v10, 16  ;;  %v4075_v15 = vsel %vm6535_vm5, %v4070_v62, %v4074_v18 }
 0x1d9   : > { %4549 = vmatmul.bf16.vlgmr.msra.gmra.mxu3 %v4461_v53  ;;  %v3437_v22 = vunpack.c.l.b16 %v3323_v7  ;;  %v4065_v53 = vsel %vm6535_vm5, %v4060_v47, %v4064_v48  ;;  %v1796_v48 = vadd.f32 %v7363_v25, %v7032_v58  ;;  %v5950_v24 = vrot.slane %v4663_v61, 9 }
 0x1da   : > { %v4431_v47 = vunpack.c.l.b16 %v4065_v53  ;;  %v4432_v39 = vunpack.c.l.b16 %v4075_v15  ;;  %v4082_v62 = vrot.slane %v4080_v49, 5  ;;  %v4737_v18 = vrot.slane %v4735_v41, 4  ;;  %v3242_v15 = vld [vmem:[#allocation2 + $0x30] sm:$0xe] }
 0x1db   : > { %v7397_v0 = vpop.f32.mrf.mxu1  ;;  %v3466_v13 = vpack.c.b16 %v3437_v22, %v3436_v5  ;;  %v4088_v7 = vrot.slane %v4086_v34, 5  ;;  %v4092_v10 = vrot.slane %v4090_v17, 4  ;;  %v7409_v5 = vld [vmem:[#allocation2 + $0x38] sm:$0x1]  ;;  %v4736_v53 = vsel %vm6914_vm8, %v5950_v24, %v4735_v41 }
 0x1dc   : > { %v2485_v23 = vpop.f32.mrf.mxu3  ;;  %3872 = vmatmul.bf16.gmra.mxu2 %v6098_v12  ;;  %v3167_v9 = vpop.f32.mrf.mxu0  ;;  %v4739_v61 = vsel %vm6914_vm8, %v4737_v18, %v4738_v14  ;;  %v4096_v4 = vshll.u32 %v7409_v5, 16  ;;  %v3326_v49 = vrot.slane %v6380_v43, 5  ;;  %v5728_v17 = vrot.slane %v3242_v15, 9  ;;  %v6381_v41 = vld [vmem:[#allocation2 + $0x38] sm:$0x1] }
 0x1dd   : > { %v2541_v54 = vadd.f32 %v2485_v23, %v2227_v56  ;;  %v4462_v23 = vpack.c.b16 %v4432_v39, %v4431_v47  ;;  %v3329_v47 = vrot.slane %v6381_v41, 5  ;;  %v4857_v24 = vunpack.c.l.b16 %v4736_v53  ;;  %v3989_v18 = vld [vmem:[#allocation2 + $0x3c] sm:$0xf] }
 0x1de   : > { %3562 = vmatmul.bf16.gmra.mxu1 %v3466_v13  ;;  %v4093_v13 = vor.u32 %v4092_v10, %v4088_v7  ;;  %v4098_v10 = vrot.slane %v4096_v4, 5  ;;  %v4742_v53 = vrot.slane %v7393_v33, 5  ;;  %v1801_v33 = vadd.f32 %v7397_v0, %v7071_v3 }
 0x1df   : > { %v7406_v56 = vadd.f32 %v3167_v9, %v2541_v54  ;;  %v2176_v38 = vpop.f32.mrf.mxu2  ;;  %4975 = vmatmul.bf16.vlgmr.msra.gmra.mxu0 %v4887_v1  ;;  %v4083_v1 = vor.u32 %v4082_v62, %v4079_v42  ;;  %v1798_v9 = vadd.f32 %v7382_v45, %v7052_v51  ;;  %v6099_v42 = vld [vmem:[#allocation2 + $0x30] sm:$0xff]  ;;  %v3327_v51 = vsel %vm6914_vm8, %v5728_v17, %v3326_v49 }
 0x1e0   : > { %v2229_v12 = vadd.f32 %v2176_v38, %v1796_v48  ;;  %v3328_v48 = vrot.slane %v3326_v49, 4  ;;  %v4858_v38 = vunpack.c.l.b16 %v4739_v61  ;;  %v4094_v14 = vrot.slane %v4093_v13, 4 }
 0x1e1   : > { %v4084_v62 = vrot.slane %v4083_v1, 4  ;;  %v4101_v1 = vshrl.u32 %v3989_v18, 16 }
 0x1e2   : > { %v3330_v45 = vsel %vm6914_vm8, %v3328_v48, %v3329_v47  ;;  %v4888_v13 = vpack.c.b16 %v4858_v38, %v4857_v24  ;;  %v4099_v17 = vsel %vm6535_vm5, %v4094_v14, %v4098_v10  ;;  %v4745_v38 = vrot.slane %v7409_v5, 5 }
 0x1e3   : > { %v7411_v58 = vpop.f32.mrf.mxu1  ;;  %v4434_v14 = vunpack.c.l.b16 %v4099_v17 }
 0x1e4   : > { %v2487_v22 = vpop.f32.mrf.mxu3  ;;  %v3169_v54 = vpop.f32.mrf.mxu0 }
 0x1e5   : > { %v2542_v25 = vadd.f32 %v2487_v22, %v2228_v19  ;;  %v3438_v22 = vunpack.c.l.b16 %v3327_v51 }
 0x1e7   : > { %v7420_v34 = vadd.f32 %v3169_v54, %v2542_v25  ;;  %v2178_v19 = vpop.f32.mrf.mxu2  ;;  %v3439_v25 = vunpack.c.l.b16 %v3330_v45  ;;  %v7426_v54 = vld [vmem:[#allocation2 + $0x40] sm:$0xf] }
 0x1e8   : > { %v2230_v39 = vadd.f32 %v2178_v19, %v1798_v9  ;;  %v4104_v9 = vshll.u32 %v3989_v18, 16  ;;  %v4089_v19 = vsel %vm6535_vm5, %v4084_v62, %v4088_v7  ;;  %v4110_v48 = vshll.u32 %v7426_v54, 16 }
 0x1e9   : > { %4554 = vmatmul.bf16.gmra.mxu3 %v4462_v23  ;;  %v4664_v23 = vld [vmem:[#allocation2 + $0x30] sm:$0xe]  ;;  %v3467_v15 = vpack.c.b16 %v3439_v25, %v3438_v22  ;;  %v4114_v41 = vshrl.u32 %v7426_v54, 16  ;;  %v4103_v18 = vrot.slane %v4101_v1, 4  ;;  %v4433_v62 = vunpack.c.l.b16 %v4089_v19  ;;  %v7442_v22 = vld [vmem:[#allocation2 + $0x44] sm:$0x1] }
 0x1ea   : > { %v5951_v47 = vrot.slane %v4664_v23, 9  ;;  %v4106_v7 = vrot.slane %v4104_v9, 5  ;;  %v4112_v51 = vrot.slane %v4110_v48, 5  ;;  %v1803_v48 = vadd.f32 %v7411_v58, %v7088_v63  ;;  %v3992_v58 = vld [vmem:[#allocation2 + $0x48] sm:$0xf] }
 0x1eb   : > { %v7429_v61 = vpop.f32.mrf.mxu1  ;;  %v4116_v45 = vrot.slane %v4114_v41, 4  ;;  %v4463_v1 = vpack.c.b16 %v4434_v14, %v4433_v62 }
 0x1ec   : > { %v2490_v43 = vpop.f32.mrf.mxu3  ;;  %3877 = vmatmul.bf16.gmra.mxu2 %v6099_v42  ;;  %v3172_v49 = vpop.f32.mrf.mxu0  ;;  %v4743_v3 = vsel %vm6914_vm8, %v5951_v47, %v4742_v53 }
 0x1ed   : > { %v2543_v4 = vadd.f32 %v2490_v43, %v2229_v12  ;;  %v4744_v12 = vrot.slane %v4742_v53, 4  ;;  %v4107_v43 = vor.u32 %v4106_v7, %v4103_v18  ;;  %v4859_v19 = vunpack.c.l.b16 %v4743_v3  ;;  %v3243_v53 = vld [vmem:[#allocation2 + $0x3c] sm:$0xe] }
 0x1ee   : > { %3567 = vmatmul.bf16.gmra.mxu1 %v3467_v15  ;;  %v6382_v15 = vld [vmem:[#allocation2 + $0x40] sm:$0xf] }
 0x1ef   : > { %v7439_v24 = vadd.f32 %v3172_v49, %v2543_v4  ;;  %v2181_v42 = vpop.f32.mrf.mxu2  ;;  %4980 = vmatmul.bf16.gmra.mxu0 %v4888_v13  ;;  %v4746_v0 = vsel %vm6914_vm8, %v4744_v12, %v4745_v38  ;;  %v4117_v13 = vor.u32 %v4116_v45, %v4112_v51  ;;  %v4120_v4 = vshll.u32 %v7442_v22, 16  ;;  %v6100_v7 = vld [vmem:[#allocation2 + $0x3c] sm:$0xff] }
 0x1f0   : > { %v2231_v10 = vadd.f32 %v2181_v42, %v1801_v33  ;;  %v3333_v49 = vrot.slane %v6382_v15, 5  ;;  %v4860_v17 = vunpack.c.l.b16 %v4746_v0  ;;  %v4108_v47 = vrot.slane %v4107_v43, 4  ;;  %v7459_v0 = vld [vmem:[#allocation2 + $0x4c] sm:$0xf] }
 0x1f1   : > { %v5729_v12 = vrot.slane %v3243_v53, 9  ;;  %v4118_v62 = vrot.slane %v4117_v13, 4  ;;  %v4122_v14 = vrot.slane %v4120_v4, 5  ;;  %v4665_v4 = vld [vmem:[#allocation2 + $0x3c] sm:$0xe] }
 0x1f2   : > { %v3335_v38 = vrot.slane %v3333_v49, 4  ;;  %v4889_v43 = vpack.c.b16 %v4860_v17, %v4859_v19  ;;  %v4134_v19 = vshll.u32 %v7459_v0, 16  ;;  %v4138_v17 = vshrl.u32 %v7459_v0, 16 }
 0x1f3   : > { %v7448_v5 = vpop.f32.mrf.mxu1  ;;  %v3334_v45 = vsel %vm6914_vm8, %v5729_v12, %v3333_v49  ;;  %v4125_v49 = vshrl.u32 %v3992_v58, 16  ;;  %v4749_v12 = vrot.slane %v7426_v54, 5  ;;  %v4752_v54 = vrot.slane %v7442_v22, 5 }
 0x1f4   : > { %v2492_v25 = vpop.f32.mrf.mxu3  ;;  %v3174_v9 = vpop.f32.mrf.mxu0 }
 0x1f5   : > { %v2544_v23 = vadd.f32 %v2492_v25, %v2230_v39  ;;  %v6383_v39 = vld [vmem:[#allocation2 + $0x44] sm:$0x1]  ;;  %v3440_v25 = vunpack.c.l.b16 %v3334_v45  ;;  %v4127_v45 = vrot.slane %v4125_v49, 4  ;;  %v6384_v49 = vld [vmem:[#allocation2 + $0x4c] sm:$0xf] }
 0x1f6   : > { %v3336_v42 = vrot.slane %v6383_v39, 5 }
 0x1f7   : > { %v7453_v41 = vadd.f32 %v3174_v9, %v2544_v23  ;;  %v2183_v33 = vpop.f32.mrf.mxu2 }
 0x1f8   : > { %v2232_v18 = vadd.f32 %v2183_v33, %v1803_v48  ;;  %v3337_v63 = vsel %vm6914_vm8, %v3335_v38, %v3336_v42  ;;  %v4128_v48 = vshll.u32 %v3992_v58, 16  ;;  %v4123_v33 = vsel %vm6535_vm5, %v4118_v62, %v4122_v14 }
 0x1f9   : > { %4559 = vmatmul.bf16.gmra.mxu3 %v4463_v1  ;;  %v3441_v3 = vunpack.c.l.b16 %v3337_v63  ;;  %v4113_v1 = vsel %vm6535_vm5, %v4108_v47, %v4112_v51  ;;  %v1806_v51 = vadd.f32 %v7429_v61, %v7100_v40  ;;  %v5952_v38 = vrot.slane %v4665_v4, 9 }
 0x1fa   : > { %v4435_v47 = vunpack.c.l.b16 %v4113_v1  ;;  %v4436_v42 = vunpack.c.l.b16 %v4123_v33  ;;  %v4130_v62 = vrot.slane %v4128_v48, 5  ;;  %v4751_v14 = vrot.slane %v4749_v12, 4  ;;  %v3244_v33 = vld [vmem:[#allocation2 + $0x48] sm:$0xe] }
 0x1fb   : > { %v7463_v9 = vpop.f32.mrf.mxu1  ;;  %v3468_v15 = vpack.c.b16 %v3441_v3, %v3440_v25  ;;  %v4136_v63 = vrot.slane %v4134_v19, 5  ;;  %v4140_v58 = vrot.slane %v4138_v17, 4  ;;  %v7475_v25 = vld [vmem:[#allocation2 + $0x50] sm:$0x1]  ;;  %v4750_v1 = vsel %vm6914_vm8, %v5952_v38, %v4749_v12 }
 0x1fc   : > { %v2495_v23 = vpop.f32.mrf.mxu3  ;;  %3882 = vmatmul.bf16.gmra.mxu2 %v6100_v7  ;;  %v3177_v53 = vpop.f32.mrf.mxu0  ;;  %v4753_v4 = vsel %vm6914_vm8, %v4751_v14, %v4752_v54  ;;  %v4144_v22 = vshll.u32 %v7475_v25, 16  ;;  %v3340_v48 = vrot.slane %v6384_v49, 5  ;;  %v5730_v17 = vrot.slane %v3244_v33, 9  ;;  %v6385_v12 = vld [vmem:[#allocation2 + $0x50] sm:$0x1] }
 0x1fd   : > { %v2545_v13 = vadd.f32 %v2495_v23, %v2231_v10  ;;  %v4464_v23 = vpack.c.b16 %v4436_v42, %v4435_v47  ;;  %v3343_v47 = vrot.slane %v6385_v12, 5  ;;  %v4861_v38 = vunpack.c.l.b16 %v4750_v1  ;;  %v3995_v14 = vld [vmem:[#allocation2 + $0x54] sm:$0xf] }
 0x1fe   : > { %3572 = vmatmul.bf16.gmra.mxu1 %v3468_v15  ;;  %v4141_v15 = vor.u32 %v4140_v58, %v4136_v63  ;;  %v4146_v58 = vrot.slane %v4144_v22, 5  ;;  %v4756_v1 = vrot.slane %v7459_v0, 5  ;;  %v1811_v0 = vadd.f32 %v7463_v9, %v7018_v55 }
 0x1ff   : > { %v7472_v10 = vadd.f32 %v3177_v53, %v2545_v13  ;;  %v2186_v39 = vpop.f32.mrf.mxu2  ;;  %4985 = vmatmul.bf16.gmra.mxu0 %v4889_v43  ;;  %v4131_v43 = vor.u32 %v4130_v62, %v4127_v45  ;;  %v1808_v53 = vadd.f32 %v7448_v5, %v7125_v20  ;;  %v6101_v45 = vld [vmem:[#allocation2 + $0x48] sm:$0xff]  ;;  %v3341_v20 = vsel %vm6914_vm8, %v5730_v17, %v3340_v48 }
 0x200   : > { %v2233_v7 = vadd.f32 %v2186_v39, %v1806_v51  ;;  %v3342_v51 = vrot.slane %v3340_v48, 4  ;;  %v4862_v39 = vunpack.c.l.b16 %v4753_v4  ;;  %v4142_v54 = vrot.slane %v4141_v15, 4 }
 0x201   : > { %v4132_v62 = vrot.slane %v4131_v43, 4  ;;  %v4149_v43 = vshrl.u32 %v3995_v14, 16 }
 0x202   : > { %v3344_v5 = vsel %vm6914_vm8, %v3342_v51, %v3343_v47  ;;  %v4890_v15 = vpack.c.b16 %v4862_v39, %v4861_v38  ;;  %v4147_v17 = vsel %vm6535_vm5, %v4142_v54, %v4146_v58  ;;  %v4759_v39 = vrot.slane %v7475_v25, 5 }
 0x203   : > { %v7477_v40 = vpop.f32.mrf.mxu1  ;;  %v4438_v54 = vunpack.c.l.b16 %v4147_v17 }
 0x204   : > { %v2497_v3 = vpop.f32.mrf.mxu3  ;;  %v3179_v13 = vpop.f32.mrf.mxu0 }
 0x205   : > { %v2546_v61 = vadd.f32 %v2497_v3, %v2232_v18  ;;  %v3442_v3 = vunpack.c.l.b16 %v3341_v20 }
 0x207   : > { %v7486_v19 = vadd.f32 %v3179_v13, %v2546_v61  ;;  %v2188_v18 = vpop.f32.mrf.mxu2  ;;  %v3443_v61 = vunpack.c.l.b16 %v3344_v5  ;;  %v7492_v13 = vld [vmem:[#allocation2 + $0x58] sm:$0xf] }
 0x208   : > { %v2234_v42 = vadd.f32 %v2188_v18, %v1808_v53  ;;  %v4152_v53 = vshll.u32 %v3995_v14, 16  ;;  %v4137_v18 = vsel %vm6535_vm5, %v4132_v62, %v4136_v63  ;;  %v4158_v51 = vshll.u32 %v7492_v13, 16 }
 0x209   : > { %4564 = vmatmul.bf16.gmra.mxu3 %v4464_v23  ;;  %v4666_v23 = vld [vmem:[#allocation2 + $0x48] sm:$0xe]  ;;  %v3469_v33 = vpack.c.b16 %v3443_v61, %v3442_v3  ;;  %v4162_v12 = vshrl.u32 %v7492_v13, 16  ;;  %v4151_v14 = vrot.slane %v4149_v43, 4  ;;  %v4437_v62 = vunpack.c.l.b16 %v4137_v18  ;;  %v7508_v3 = vld [vmem:[#allocation2 + $0x5c] sm:$0x1] }
 0x20a   : > { %v5953_v47 = vrot.slane %v4666_v23, 9  ;;  %v4154_v63 = vrot.slane %v4152_v53, 5  ;;  %v4160_v20 = vrot.slane %v4158_v51, 5  ;;  %v1813_v51 = vadd.f32 %v7477_v40, %v7037_v35  ;;  %v7525_v40 = vld [vmem:[#allocation2 + $0x64] sm:$0xf] }
 0x20b   : > { %v7495_v4 = vpop.f32.mrf.mxu1  ;;  %v4164_v5 = vrot.slane %v4162_v12, 4  ;;  %v4465_v43 = vpack.c.b16 %v4438_v54, %v4437_v62  ;;  %v3998_v62 = vld [vmem:[#allocation2 + $0x60] sm:$0xf] }
 0x20c   : > { %v2500_v49 = vpop.f32.mrf.mxu3  ;;  %3887 = vmatmul.bf16.gmra.mxu2 %v6101_v45  ;;  %v3182_v48 = vpop.f32.mrf.mxu0  ;;  %v4757_v55 = vsel %vm6914_vm8, %v5953_v47, %v4756_v1 }
 0x20d   : > { %v2547_v22 = vadd.f32 %v2500_v49, %v2233_v7  ;;  %v4758_v7 = vrot.slane %v4756_v1, 4  ;;  %v4155_v49 = vor.u32 %v4154_v63, %v4151_v14  ;;  %v4863_v18 = vunpack.c.l.b16 %v4757_v55  ;;  %v3245_v1 = vld [vmem:[#allocation2 + $0x54] sm:$0xe] }
 0x20e   : > { %3577 = vmatmul.bf16.gmra.mxu1 %v3469_v33  ;;  %v6386_v33 = vld [vmem:[#allocation2 + $0x58] sm:$0xf] }
 0x20f   : > { %v7505_v38 = vadd.f32 %v3182_v48, %v2547_v22  ;;  %v2191_v45 = vpop.f32.mrf.mxu2  ;;  %4990 = vmatmul.bf16.gmra.mxu0 %v4890_v15  ;;  %v4760_v9 = vsel %vm6914_vm8, %v4758_v7, %v4759_v39  ;;  %v4165_v15 = vor.u32 %v4164_v5, %v4160_v20  ;;  %v4168_v22 = vshll.u32 %v7508_v3, 16  ;;  %v6102_v63 = vld [vmem:[#allocation2 + $0x54] sm:$0xff] }
 0x210   : > { %v2235_v58 = vadd.f32 %v2191_v45, %v1811_v0  ;;  %v3347_v48 = vrot.slane %v6386_v33, 5  ;;  %v4864_v17 = vunpack.c.l.b16 %v4760_v9  ;;  %v4156_v47 = vrot.slane %v4155_v49, 4 }
 0x211   : > { %v5731_v7 = vrot.slane %v3245_v1, 9  ;;  %v4166_v54 = vrot.slane %v4165_v15, 4  ;;  %v4170_v5 = vrot.slane %v4168_v22, 5  ;;  %v4763_v33 = vrot.slane %v7492_v13, 5 }
 0x212   : > { %v3349_v39 = vrot.slane %v3347_v48, 4  ;;  %v4891_v55 = vpack.c.b16 %v4864_v17, %v4863_v18  ;;  %v4173_v22 = vshrl.u32 %v3998_v62, 16  ;;  %v4186_v18 = vshrl.u32 %v7525_v40, 16 }
 0x213   : > { %v7514_v25 = vpop.f32.mrf.mxu1 }
 0x214   : > { %v2502_v61 = vpop.f32.mrf.mxu3  ;;  %v3184_v53 = vpop.f32.mrf.mxu0 }
 0x215   : > { %v2548_v23 = vadd.f32 %v2502_v61, %v2234_v42  ;;  %v6387_v42 = vld [vmem:[#allocation2 + $0x5c] sm:$0x1]  ;;  %v3348_v61 = vsel %vm6914_vm8, %v5731_v7, %v3347_v48  ;;  %v4171_v7 = vsel %vm6535_vm5, %v4166_v54, %v4170_v5  ;;  %v4188_v54 = vrot.slane %v4186_v18, 4  ;;  %v7543_v5 = vld [vmem:[#allocation2 + $0x68] sm:$0x1] }
 0x216   : > { %v3350_v45 = vrot.slane %v6387_v42, 5  ;;  %v3444_v9 = vunpack.c.l.b16 %v3348_v61  ;;  %v4765_v42 = vrot.slane %v4763_v33, 4  ;;  %v4440_v61 = vunpack.c.l.b16 %v4171_v7  ;;  %v4001_v7 = vld [vmem:[#allocation2 + $0x6c] sm:$0xf] }
 0x217   : > { %v7519_v12 = vadd.f32 %v3184_v53, %v2548_v23  ;;  %v2193_v0 = vpop.f32.mrf.mxu2  ;;  %v4667_v53 = vld [vmem:[#allocation2 + $0x54] sm:$0xe] }
 0x218   : > { %v2236_v14 = vadd.f32 %v2193_v0, %v1813_v51  ;;  %v3351_v35 = vsel %vm6914_vm8, %v3349_v39, %v3350_v45  ;;  %v4176_v51 = vshll.u32 %v3998_v62, 16  ;;  %v4182_v0 = vshll.u32 %v7525_v40, 16 }
 0x219   : > { %4569 = vmatmul.bf16.gmra.mxu3 %v4465_v43  ;;  %v3445_v49 = vunpack.c.l.b16 %v3351_v35  ;;  %v4161_v43 = vsel %vm6535_vm5, %v4156_v47, %v4160_v20  ;;  %v1816_v20 = vadd.f32 %v7495_v4, %v7062_v57  ;;  %v5954_v13 = vrot.slane %v4667_v53, 9 }
 0x21a   : > { %v4439_v47 = vunpack.c.l.b16 %v4161_v43  ;;  %v4178_v62 = vrot.slane %v4176_v51, 5 }
 0x21b   : > { %v7530_v15 = vpop.f32.mrf.mxu1  ;;  %v3470_v1 = vpack.c.b16 %v3445_v49, %v3444_v9  ;;  %v7541_v9 = vrot.slane %v4182_v0, 5  ;;  %v4764_v4 = vsel %vm6914_vm8, %v5954_v13, %v4763_v33  ;;  %v1818_v33 = vadd.f32 %v7514_v25, %v7073_v32  ;;  %v4668_v32 = vld [vmem:[#allocation2 + $0x60] sm:$0xe] }
 0x21c   : > { %v2505_v23 = vpop.f32.mrf.mxu3  ;;  %3892 = vmatmul.bf16.gmra.mxu2 %v6102_v63  ;;  %v3187_v17 = vpop.f32.mrf.mxu0  ;;  %v4175_v63 = vrot.slane %v4173_v22, 4  ;;  %v4466_v53 = vpack.c.b16 %v4440_v61, %v4439_v47  ;;  %v4192_v22 = vshll.u32 %v7543_v5, 16  ;;  %v4865_v0 = vunpack.c.l.b16 %v4764_v4  ;;  %v6103_v61 = vld [vmem:[#allocation2 + $0x60] sm:$0xff] }
 0x21d   : > { %v2549_v48 = vadd.f32 %v2505_v23, %v2235_v58  ;;  %v4766_v58 = vrot.slane %v7508_v3, 5  ;;  %v4770_v4 = vrot.slane %v7525_v40, 5 }
 0x21e   : > { %3582 = vmatmul.bf16.gmra.mxu1 %v3470_v1  ;;  %v4179_v23 = vor.u32 %v4178_v62, %v4175_v63  ;;  %v7557_v63 = vld [vmem:[#allocation2 + $0x70] sm:$0xf] }
 0x21f   : > { %v7538_v39 = vadd.f32 %v3187_v17, %v2549_v48  ;;  %v2196_v45 = vpop.f32.mrf.mxu2  ;;  %4995 = vmatmul.bf16.gmra.mxu0 %v4891_v55  ;;  %v4767_v49 = vsel %vm6914_vm8, %v4765_v42, %v4766_v58  ;;  %v4189_v55 = vor.u32 %v4188_v54, %v7541_v9  ;;  %v6388_v48 = vld [vmem:[#allocation2 + $0x64] sm:$0xf]  ;;  %v3246_v17 = vld [vmem:[#allocation2 + $0x60] sm:$0xe]  ;;  %v6389_v58 = vld [vmem:[#allocation2 + $0x68] sm:$0x1] }
 0x220   : > { %v2237_v35 = vadd.f32 %v2196_v45, %v1816_v20  ;;  %v3354_v1 = vrot.slane %v6388_v48, 5  ;;  %v4866_v18 = vunpack.c.l.b16 %v4767_v49  ;;  %v4180_v42 = vrot.slane %v4179_v23, 4 }
 0x221   : > { %v3357_v45 = vrot.slane %v6389_v58, 5  ;;  %v4190_v54 = vrot.slane %v4189_v55, 4  ;;  %v4197_v23 = vshrl.u32 %v4001_v7, 16  ;;  %v1821_v58 = vadd.f32 %v7530_v15, %v7090_v28 }
 0x222   : > { %v3356_v47 = vrot.slane %v3354_v1, 4  ;;  %v4185_v40 = vsel %vm6535_vm5, %v4180_v42, %v7541_v9 }
 0x223   : > { %v7549_v3 = vpop.f32.mrf.mxu1 }
 0x224   : > { %v2507_v57 = vpop.f32.mrf.mxu3  ;;  %v3189_v51 = vpop.f32.mrf.mxu0  ;;  %v3358_v49 = vsel %vm6914_vm8, %v3356_v47, %v3357_v45  ;;  %v4772_v45 = vrot.slane %v4770_v4, 4 }
 0x225   : > { %v2550_v43 = vadd.f32 %v2507_v57, %v2236_v14  ;;  %v5732_v14 = vrot.slane %v3246_v17, 9  ;;  %v4194_v57 = vrot.slane %v4192_v22, 5  ;;  %v3447_v48 = vunpack.c.l.b16 %v3358_v49 }
 0x226   : > { %v4206_v17 = vshll.u32 %v7557_v63, 16 }
 0x227   : > { %v7555_v20 = vadd.f32 %v3189_v51, %v2550_v43  ;;  %v2198_v13 = vpop.f32.mrf.mxu2  ;;  %v3355_v25 = vsel %vm6914_vm8, %v5732_v14, %v3354_v1  ;;  %v4200_v43 = vshll.u32 %v4001_v7, 16  ;;  %v5955_v7 = vrot.slane %v4668_v32, 9  ;;  %v7578_v32 = vld [vmem:[#allocation2 + $0x74] sm:$0x1] }
 0x228   : > { %v2238_v62 = vadd.f32 %v2198_v13, %v1818_v33  ;;  %v3446_v51 = vunpack.c.l.b16 %v3355_v25  ;;  %v4892_v33 = vpack.c.b16 %v4866_v18, %v4865_v0  ;;  %v4195_v13 = vsel %vm6535_vm5, %v4190_v54, %v4194_v57 }
 0x229   : > { %4574 = vmatmul.bf16.gmra.mxu3 %v4466_v53  ;;  %v4210_v53 = vshrl.u32 %v7557_v63, 16  ;;  %v4773_v0 = vrot.slane %v7543_v5, 5  ;;  %v4199_v18 = vrot.slane %v4197_v23, 4  ;;  %v4202_v25 = vrot.slane %v4200_v43, 5 }
 0x22a   : > { %v3471_v14 = vpack.c.b16 %v3447_v48, %v3446_v51  ;;  %v4208_v9 = vrot.slane %v4206_v17, 5  ;;  %v4442_v54 = vunpack.c.l.b16 %v4195_v13  ;;  %v4771_v28 = vsel %vm6914_vm8, %v5955_v7, %v4770_v4 }
 0x22b   : > { %v7569_v22 = vpop.f32.mrf.mxu1  ;;  %v4212_v42 = vrot.slane %v4210_v53, 4  ;;  %v4774_v15 = vsel %vm6914_vm8, %v4772_v45, %v4773_v0  ;;  %v4203_v5 = vor.u32 %v4202_v25, %v4199_v18  ;;  %v4216_v51 = vshll.u32 %v7578_v32, 16 }
 0x22c   : > { %v2510_v55 = vpop.f32.mrf.mxu3  ;;  %3897 = vmatmul.bf16.gmra.mxu2 %v6103_v61  ;;  %v3192_v47 = vpop.f32.mrf.mxu0  ;;  %v4441_v61 = vunpack.c.l.b16 %v4185_v40  ;;  %v4868_v40 = vunpack.c.l.b16 %v4774_v15  ;;  %v1823_v4 = vadd.f32 %v7549_v3, %v7108_v52  ;;  %v4004_v3 = vld [vmem:[#allocation2 + $0x78] sm:$0xf] }
 0x22d   : > { %v2551_v1 = vadd.f32 %v2510_v55, %v2237_v35  ;;  %v4213_v23 = vor.u32 %v4212_v42, %v4208_v9  ;;  %v4867_v55 = vunpack.c.l.b16 %v4771_v28  ;;  %v4204_v7 = vrot.slane %v4203_v5, 4  ;;  %v6391_v42 = vld [vmem:[#allocation2 + $0x74] sm:$0x1]  ;;  %v7595_v5 = vld [vmem:[#allocation2 + $0x7c] sm:$0xf] }
 0x22e   : > { %3587 = vmatmul.bf16.gmra.mxu1 %v3471_v14  ;;  %v4467_v53 = vpack.c.b16 %v4442_v54, %v4441_v61  ;;  %v4218_v0 = vrot.slane %v4216_v51, 5  ;;  %v6104_v61 = vld [vmem:[#allocation2 + $0x6c] sm:$0xff] }
 0x22f   : > { %v7576_v49 = vadd.f32 %v3192_v47, %v2551_v1  ;;  %v2201_v35 = vpop.f32.mrf.mxu2  ;;  %5000 = vmatmul.bf16.gmra.mxu0 %v4892_v33  ;;  %v6390_v1 = vld [vmem:[#allocation2 + $0x70] sm:$0xf]  ;;  %v4214_v14 = vrot.slane %v4213_v23, 4  ;;  %v3247_v47 = vld [vmem:[#allocation2 + $0x6c] sm:$0xe]  ;;  %v4893_v23 = vpack.c.b16 %v4868_v40, %v4867_v55  ;;  %v4209_v51 = vsel %vm6535_vm5, %v4204_v7, %v4208_v9 }
 0x230   : > { %v2239_v57 = vadd.f32 %v2201_v35, %v1821_v58  ;;  %v3361_v13 = vrot.slane %v6390_v1, 5  ;;  %v5733_v18 = vrot.slane %v3247_v47, 9  ;;  %v4221_v47 = vshrl.u32 %v4004_v3, 16 }
 0x231   : > { %v4230_v55 = vshll.u32 %v7595_v5, 16  ;;  %v4234_v40 = vshrl.u32 %v7595_v5, 16  ;;  %v1826_v9 = vadd.f32 %v7569_v22, %v7127_v30 }
 0x232   : > { %v3363_v25 = vrot.slane %v3361_v13, 4  ;;  %v3362_v54 = vsel %vm6914_vm8, %v5733_v18, %v3361_v13  ;;  %v4669_v13 = vld [vmem:[#allocation2 + $0x6c] sm:$0xe] }
 0x233   : > { %v7585_v48 = vpop.f32.mrf.mxu1  ;;  %v3448_v28 = vunpack.c.l.b16 %v3362_v54 }
 0x234   : > { %v2512_v43 = vpop.f32.mrf.mxu3  ;;  %v3194_v33 = vpop.f32.mrf.mxu0 }
 0x235   : > { %v2552_v17 = vadd.f32 %v2512_v43, %v2238_v62  ;;  %v3364_v62 = vrot.slane %v6391_v42, 5  ;;  %v4780_v42 = vrot.slane %v7578_v32, 5 }
 0x237   : > { %v7589_v58 = vadd.f32 %v3194_v33, %v2552_v17  ;;  %v2203_v45 = vpop.f32.mrf.mxu2  ;;  %v3365_v52 = vsel %vm6914_vm8, %v3363_v25, %v3364_v62  ;;  %v4219_v17 = vsel %vm6535_vm5, %v4214_v14, %v4218_v0  ;;  %v5956_v0 = vrot.slane %v4669_v13, 9 }
 0x238   : > { %v2240_v35 = vadd.f32 %v2203_v45, %v1823_v4  ;;  %v3449_v15 = vunpack.c.l.b16 %v3365_v52  ;;  %v4224_v45 = vshll.u32 %v4004_v3, 16  ;;  %v4444_v14 = vunpack.c.l.b16 %v4219_v17 }
 0x239   : > { %4579 = vmatmul.bf16.gmra.mxu3 %v4467_v53  ;;  %v4777_v53 = vrot.slane %v7557_v63, 5  ;;  %v4443_v63 = vunpack.c.l.b16 %v4209_v51  ;;  %v4232_v52 = vrot.slane %v4230_v55, 5  ;;  %v4236_v3 = vrot.slane %v4234_v40, 4  ;;  %v3248_v40 = vld [vmem:[#allocation2 + $0x78] sm:$0xe] }
 0x23a   : > { %v3472_v4 = vpack.c.b16 %v3449_v15, %v3448_v28  ;;  %v4226_v54 = vrot.slane %v4224_v45, 5  ;;  %v7611_v28 = vld [vmem:[#allocation2 + $0x80] sm:$0x1] }
 0x23b   : > { %v7602_v33 = vpop.f32.mrf.mxu1  ;;  %v4778_v30 = vsel %vm6914_vm8, %v5956_v0, %v4777_v53  ;;  %v4468_v51 = vpack.c.b16 %v4444_v14, %v4443_v63  ;;  %v4240_v13 = vshll.u32 %v7611_v28, 16  ;;  %v5734_v63 = vrot.slane %v3248_v40, 9  ;;  %v6393_v0 = vld [vmem:[#allocation2 + $0x80] sm:$0x1]  ;;  %v4670_v40 = vld [vmem:[#allocation2 + $0x78] sm:$0xe] }
 0x23c   : > { %v2515_v43 = vpop.f32.mrf.mxu3  ;;  %3902 = vmatmul.bf16.gmra.mxu2 %v6104_v61  ;;  %v3197_v18 = vpop.f32.mrf.mxu0  ;;  %v4223_v61 = vrot.slane %v4221_v47, 4  ;;  %v4869_v45 = vunpack.c.l.b16 %v4778_v30 }
 0x23d   : > { %v2553_v1 = vadd.f32 %v2515_v43, %v2239_v57  ;;  %v4779_v57 = vrot.slane %v4777_v53, 4 }
 0x23e   : > { %3592 = vmatmul.bf16.gmra.mxu1 %v3472_v4  ;;  %v4227_v17 = vor.u32 %v4226_v54, %v4223_v61  ;;  %v6392_v4 = vld [vmem:[#allocation2 + $0x7c] sm:$0xf]  ;;  %v4007_v54 = vld [vmem:[#allocation2 + $0x84] sm:$0xf] }
 0x23f   : > { %v7608_v7 = vadd.f32 %v3197_v18, %v2553_v1  ;;  %v2206_v25 = vpop.f32.mrf.mxu2  ;;  %5005 = vmatmul.bf16.gmra.mxu0 %v4893_v23  ;;  %v4781_v23 = vsel %vm6914_vm8, %v4779_v57, %v4780_v42  ;;  %v4237_v1 = vor.u32 %v4236_v3, %v4232_v52  ;;  %v3368_v47 = vrot.slane %v6392_v4, 5  ;;  %v7927_v18 = vld [vmem:[#allocation3_spill] sm:$0xff] }
 0x240   : > { %v2241_v62 = vadd.f32 %v2206_v25, %v1826_v9  ;;  %v1828_v55 = vadd.f32 %v7585_v48, %v7927_v18  ;;  %v4870_v9 = vunpack.c.l.b16 %v4781_v23  ;;  %v3371_v57 = vrot.slane %v6393_v0, 5  ;;  %v6105_v42 = vld [vmem:[#allocation2 + $0x78] sm:$0xff] }
 0x241   : > { %7926 = vst [vmem:[#allocation5_spill] sm:$0xff] %v7608_v7  ;;  %v3370_v14 = vrot.slane %v3368_v47, 4  ;;  %v4228_v61 = vrot.slane %v4227_v17, 4  ;;  %v4238_v3 = vrot.slane %v4237_v1, 4  ;;  %v3369_v30 = vsel %vm6914_vm8, %v5734_v63, %v3368_v47 }
 0x242   : > { %v3450_v23 = vunpack.c.l.b16 %v3369_v30  ;;  %v4894_v4 = vpack.c.b16 %v4870_v9, %v4869_v45  ;;  %v4245_v17 = vshrl.u32 %v4007_v54, 16  ;;  %v4248_v1 = vshll.u32 %v4007_v54, 16 }
 0x243   : > { %v7615_v22 = vpop.f32.mrf.mxu1  ;;  %v3372_v48 = vsel %vm6914_vm8, %v3370_v14, %v3371_v57  ;;  %v4233_v0 = vsel %vm6535_vm5, %v4228_v61, %v4232_v52  ;;  %v5957_v9 = vrot.slane %v4670_v40, 9  ;;  %v7644_v52 = vld [vmem:[#allocation2 + $0x8c] sm:$0x1] }
 0x244   : > { %v2517_v15 = vpop.f32.mrf.mxu3  ;;  %v3199_v32 = vpop.f32.mrf.mxu0  ;;  %v4247_v54 = vrot.slane %v4245_v17, 4  ;;  %v4250_v30 = vrot.slane %v4248_v1, 5 }
 0x245   : > { %v2554_v43 = vadd.f32 %v2517_v15, %v2240_v35  ;;  %v4242_v15 = vrot.slane %v4240_v13, 5 }
 0x246   : > { %v4251_v40 = vor.u32 %v4250_v30, %v4247_v54 }
 0x247   : > { %v7622_v53 = vadd.f32 %v3199_v32, %v2554_v43  ;;  %v2208_v35 = vpop.f32.mrf.mxu2  ;;  %v7628_v43 = vld [vmem:[#allocation2 + $0x88] sm:$0xf]  ;;  %v3451_v32 = vunpack.c.l.b16 %v3372_v48  ;;  %v4243_v45 = vsel %vm6535_vm5, %v4238_v3, %v4242_v15  ;;  %v4445_v48 = vunpack.c.l.b16 %v4233_v0 }
 0x248   : > { %v2242_v25 = vadd.f32 %v2208_v35, %v1828_v55  ;;  %v4254_v47 = vshll.u32 %v7628_v43, 16  ;;  %v4258_v63 = vshrl.u32 %v7628_v43, 16  ;;  %v4252_v54 = vrot.slane %v4251_v40, 4 }
 0x249   : > { %7928 = vst [vmem:[#allocation3_spill] sm:$0xff] %v7622_v53  ;;  %4584 = vmatmul.bf16.gmra.mxu3 %v4468_v51  ;;  %v4784_v51 = vrot.slane %v7595_v5, 5  ;;  %v3473_v35 = vpack.c.b16 %v3451_v32, %v3450_v23  ;;  %v4446_v23 = vunpack.c.l.b16 %v4243_v45  ;;  %v3249_v45 = vld [vmem:[#allocation2 + $0x84] sm:$0xe] }
 0x24a   : > { %v7642_v32 = vrot.slane %v4254_v47, 5  ;;  %v6394_v47 = vld [vmem:[#allocation2 + $0x88] sm:$0xf] }
 0x24b   : > { %v7631_v55 = vpop.f32.mrf.mxu1  ;;  %v4786_v57 = vrot.slane %v4784_v51, 4  ;;  %v4785_v3 = vsel %vm6914_vm8, %v5957_v9, %v4784_v51  ;;  %v4469_v1 = vpack.c.b16 %v4446_v23, %v4445_v48  ;;  %v4010_v9 = vld [vmem:[#allocation2 + $0x90] sm:$0xf]  ;;  %v6395_v48 = vld [vmem:[#allocation2 + $0x8c] sm:$0x1] }
 0x24c   : > { %v2520_v18 = vpop.f32.mrf.mxu3  ;;  %3907 = vmatmul.bf16.gmra.mxu2 %v6105_v42  ;;  %v3202_v14 = vpop.f32.mrf.mxu0  ;;  %v4871_v0 = vunpack.c.l.b16 %v4785_v3  ;;  %v3378_v23 = vrot.slane %v6395_v48, 5  ;;  %v4269_v40 = vshrl.u32 %v4010_v9, 16 }
 0x24d   : > { %v2555_v13 = vadd.f32 %v2520_v18, %v2241_v62  ;;  %v4787_v62 = vrot.slane %v7611_v28, 5  ;;  %v4260_v18 = vrot.slane %v4258_v63, 4  ;;  %v3375_v63 = vrot.slane %v6394_v47, 5  ;;  %v6106_v47 = vld [vmem:[#allocation2 + $0x84] sm:$0xff] }
 0x24e   : > { %3597 = vmatmul.bf16.gmra.mxu1 %v3473_v35 }
 0x24f   : > { %v7639_v5 = vadd.f32 %v3202_v14, %v2555_v13  ;;  %v3868_v42 = vpop.f32.mrf.mxu2  ;;  %5010 = vmatmul.bf16.gmra.mxu0 %v4894_v4  ;;  %v4788_v15 = vsel %vm6914_vm8, %v4786_v57, %v4787_v62  ;;  %v4261_v4 = vor.u32 %v4260_v18, %v7642_v32  ;;  %v4264_v13 = vshll.u32 %v7644_v52, 16  ;;  %v7658_v18 = vld [vmem:[#allocation2 + $0x94] sm:$0xf] }
 0x250   : > { %v3633_v14 = vadd.f32 %v7602_v33, %v7157_v46  ;;  %v4872_v51 = vunpack.c.l.b16 %v4788_v15  ;;  %v3377_v30 = vrot.slane %v3375_v63, 4  ;;  %v4791_v46 = vrot.slane %v7628_v43, 5  ;;  %v4671_v33 = vld [vmem:[#allocation2 + $0x84] sm:$0xe] }
 0x251   : > { %7929 = vst [vmem:[#allocation6_spill] sm:$0xff] %v7639_v5  ;;  %v4262_v5 = vrot.slane %v4261_v4, 4  ;;  %v4266_v53 = vrot.slane %v4264_v13, 5  ;;  %v4278_v48 = vshll.u32 %v7658_v18, 16  ;;  %v3634_v43 = vadd.f32 %v7615_v22, %v7182_v2 }
 0x252   : > { %v3379_v15 = vsel %vm6914_vm8, %v3377_v30, %v3378_v23  ;;  %v4793_v23 = vrot.slane %v4791_v46, 4 }
 0x253   : > { %v7650_v28 = vpop.f32.mrf.mxu1  ;;  %v4267_v30 = vsel %vm6535_vm5, %v4262_v5, %v4266_v53 }
 0x254   : > { %v2522_v61 = vpop.f32.mrf.mxu3  ;;  %v3204_v35 = vpop.f32.mrf.mxu0 }
 0x255   : > { %v2556_v17 = vadd.f32 %v2522_v61, %v2242_v25  ;;  %v5735_v25 = vrot.slane %v3249_v45, 9  ;;  %v3948_v61 = vadd.f32 %v3868_v42, %v3633_v14  ;;  %v3453_v45 = vunpack.c.l.b16 %v3379_v15 }
 0x256   : > { %v4282_v42 = vshrl.u32 %v7658_v18, 16  ;;  %v5958_v14 = vrot.slane %v4671_v33, 9  ;;  %v4794_v15 = vrot.slane %v7644_v52, 5  ;;  %v4448_v33 = vunpack.c.l.b16 %v4267_v30 }
 0x257   : > { %v7656_v57 = vadd.f32 %v3204_v35, %v2556_v17  ;;  %v3870_v62 = vpop.f32.mrf.mxu2  ;;  %v3376_v3 = vsel %vm6914_vm8, %v5735_v25, %v3375_v63  ;;  %v4272_v17 = vshll.u32 %v4010_v9, 16  ;;  %v4257_v63 = vsel %vm6535_vm5, %v4252_v54, %v7642_v32 }
 0x258   : > { %v3452_v35 = vunpack.c.l.b16 %v3376_v3  ;;  %v4271_v3 = vrot.slane %v4269_v40, 4  ;;  %v4284_v2 = vrot.slane %v4282_v42, 4  ;;  %v3949_v32 = vadd.f32 %v3870_v62, %v3634_v43 }
 0x259   : > { %7930 = vst [vmem:[#allocation7_spill] sm:$0xff] %v7656_v57  ;;  %4589 = vmatmul.bf16.gmra.mxu3 %v4469_v1  ;;  %v4895_v1 = vpack.c.b16 %v4872_v51, %v4871_v0  ;;  %v4274_v0 = vrot.slane %v4272_v17, 5  ;;  %v7677_v57 = vrot.slane %v4278_v48, 5  ;;  %v4447_v54 = vunpack.c.l.b16 %v4257_v63  ;;  %v6396_v63 = vld [vmem:[#allocation2 + $0x94] sm:$0xf] }
 0x25a   : > { %v3474_v9 = vpack.c.b16 %v3453_v45, %v3452_v35  ;;  %v4792_v53 = vsel %vm6914_vm8, %v5958_v14, %v4791_v46  ;;  %v3635_v62 = vadd.f32 %v7631_v55, %v7187_v16  ;;  %v3382_v14 = vrot.slane %v6396_v63, 5 }
 0x25b   : > { %v7667_v13 = vpop.f32.mrf.mxu1  ;;  %v4275_v5 = vor.u32 %v4274_v0, %v4271_v3  ;;  %v4285_v52 = vor.u32 %v4284_v2, %v7677_v57  ;;  %v4470_v42 = vpack.c.b16 %v4448_v33, %v4447_v54  ;;  %v4873_v46 = vunpack.c.l.b16 %v4792_v53  ;;  %v3250_v0 = vld [vmem:[#allocation2 + $0x90] sm:$0xe] }
 0x25c   : > { %v4550_v4 = vpop.f32.mrf.mxu3  ;;  %3912 = vmatmul.bf16.gmra.mxu2 %v6106_v47  ;;  %v4976_v25 = vpop.f32.mrf.mxu0  ;;  %v7679_v47 = vld [vmem:[#allocation2 + $0x98] sm:$0x1]  ;;  %v3384_v2 = vrot.slane %v3382_v14, 4 }
 0x25d   : > { %v4630_v51 = vadd.f32 %v4550_v4, %v3948_v61  ;;  %v4795_v61 = vsel %vm6914_vm8, %v4793_v23, %v4794_v15  ;;  %v4288_v17 = vshll.u32 %v7679_v47, 16  ;;  %v4276_v43 = vrot.slane %v4275_v5, 4 }
 0x25e   : > { %3602 = vmatmul.bf16.gmra.mxu1 %v3474_v9  ;;  %v4874_v4 = vunpack.c.l.b16 %v4795_v61  ;;  %v4013_v9 = vld [vmem:[#allocation2 + $0x9c] sm:$0xf]  ;;  %v4286_v23 = vrot.slane %v4285_v52, 4  ;;  %v5736_v15 = vrot.slane %v3250_v0, 9  ;;  %v6107_v61 = vld [vmem:[#allocation2 + $0x90] sm:$0xff] }
 0x25f   : > { %v3873_v22 = vpop.f32.mrf.mxu2  ;;  %5015 = vmatmul.bf16.gmra.mxu0 %v4895_v1  ;;  %v5056_v40 = vadd.f32 %v4976_v25, %v4630_v51  ;;  %v4290_v3 = vrot.slane %v4288_v17, 5  ;;  %v7691_v51 = vld [vmem:[#allocation2 + $0xa0] sm:$0xf]  ;;  %v4293_v52 = vshrl.u32 %v4013_v9, 16 }
 0x260   : > { %v3950_v16 = vadd.f32 %v3873_v22, %v3635_v62  ;;  %v3383_v17 = vsel %vm6914_vm8, %v5736_v15, %v3382_v14  ;;  %v4302_v22 = vshll.u32 %v7691_v51, 16  ;;  %v4306_v0 = vshrl.u32 %v7691_v51, 16 }
 0x261   : > { %v5189_v25 = vmul.f32 %v5056_v40, %v5056_v40  ;;  %v4896_v7 = vpack.c.b16 %v4874_v4, %v4873_v46 }
 0x262   : > { %v7717_v46 = vrot.slane %v4302_v22, 5  ;;  %v4308_v4 = vrot.slane %v4306_v0, 4 }
 0x263   : > { %v7687_v45 = vpop.f32.mrf.mxu1 }
 0x264   : > { %v4552_v35 = vpop.f32.mrf.mxu3  ;;  %v4978_v1 = vpop.f32.mrf.mxu0  ;;  %v4309_v22 = vor.u32 %v4308_v4, %v7717_v46  ;;  %v7732_v4 = vld [vmem:[#allocation2 + $0xac] sm:$0xf] }
 0x265   : > { %v4631_v48 = vadd.f32 %v4552_v35, %v3949_v32  ;;  %v6397_v32 = vld [vmem:[#allocation2 + $0x98] sm:$0x1] }
 0x266   : > { %v3385_v54 = vrot.slane %v6397_v32, 5 }
 0x267   : > { %v5057_v30 = vadd.f32 %v4978_v1, %v4631_v48  ;;  %v3875_v55 = vpop.f32.mrf.mxu2  ;;  %v4296_v48 = vshll.u32 %v4013_v9, 16  ;;  %v3454_v1 = vunpack.c.l.b16 %v3383_v17  ;;  %v4281_v9 = vsel %vm6535_vm5, %v4276_v43, %v7677_v57 }
 0x268   : > { %v3386_v35 = vsel %vm6914_vm8, %v3384_v2, %v3385_v54  ;;  %v4291_v54 = vsel %vm6535_vm5, %v4286_v23, %v4290_v3  ;;  %v4801_v57 = vrot.slane %v7679_v47, 5 }
 0x269   : > { %v6204_v33 = vpack.c.bf16 %v5057_v30, %v5056_v40  ;;  %v5152_v53 = vadd.f32 %v5057_v30, %v5056_v40  ;;  %v5190_v5 = vmul.f32 %v5057_v30, %v5057_v30  ;;  %4594 = vmatmul.bf16.gmra.mxu3 %v4470_v42  ;;  %v3455_v63 = vunpack.c.l.b16 %v3386_v35  ;;  %v4672_v30 = vld [vmem:[#allocation2 + $0x90] sm:$0xe]  ;;  %v7720_v35 = vld [vmem:[#allocation2 + $0xa4] sm:$0x1] }
 0x26a   : > { %v4798_v42 = vrot.slane %v7658_v18, 5  ;;  %v5959_v17 = vrot.slane %v4672_v30, 9  ;;  %v4450_v23 = vunpack.c.l.b16 %v4291_v54 }
 0x26b   : > { %6205 = vst [vmem:[%s7698_s9] sm:$0xff] %v6204_v33   ;;  %v5221_v62 = vadd.f32 %v5190_v5, %v5189_v25  ;;  %v7708_v32 = vpop.f32.mrf.mxu1  ;;  %v3475_v15 = vpack.c.b16 %v3455_v63, %v3454_v1  ;;  %v3636_v25 = vadd.f32 %v7650_v28, %v7201_v6  ;;  %v4295_v33 = vrot.slane %v4293_v52, 4 }
 0x26c   : > { %v4555_v40 = vpop.f32.mrf.mxu3  ;;  %3917 = vmatmul.bf16.gmra.mxu2 %v6107_v61  ;;  %v4981_v2 = vpop.f32.mrf.mxu0  ;;  %v4298_v5 = vrot.slane %v4296_v48, 5  ;;  %v4800_v61 = vrot.slane %v4798_v42, 4  ;;  %v4799_v48 = vsel %vm6914_vm8, %v5959_v17, %v4798_v42  ;;  %v4312_v63 = vshll.u32 %v7720_v35, 16  ;;  %v3251_v17 = vld [vmem:[#allocation2 + $0x9c] sm:$0xe] }
 0x26d   : > { %v4632_v14 = vadd.f32 %v4555_v40, %v3950_v16  ;;  %v4449_v16 = vunpack.c.l.b16 %v4281_v9  ;;  %v3951_v1 = vadd.f32 %v3875_v55, %v3636_v25  ;;  %v7931_v55 = vld [vmem:[#allocation4_spill] sm:$0xff] }
 0x26e   : > { %3607 = vmatmul.bf16.gmra.mxu1 %v3475_v15  ;;  %v4299_v3 = vor.u32 %v4298_v5, %v4295_v33  ;;  %v4802_v47 = vsel %vm6914_vm8, %v4800_v61, %v4801_v57  ;;  %v6398_v15 = vld [vmem:[#allocation2 + $0xa0] sm:$0xf]  ;;  %v4310_v33 = vrot.slane %v4309_v22, 4  ;;  %v4314_v5 = vrot.slane %v4312_v63, 5 }
 0x26f   : > { %v5058_v18 = vadd.f32 %v4981_v2, %v4632_v14  ;;  %v3878_v43 = vpop.f32.mrf.mxu2  ;;  %5020 = vmatmul.bf16.gmra.mxu0 %v4896_v7  ;;  %v3637_v14 = vadd.f32 %v7667_v13, %v7931_v55  ;;  %v3389_v42 = vrot.slane %v6398_v15, 5  ;;  %v4016_v2 = vld [vmem:[#allocation2 + $0xa8] sm:$0xf]  ;;  %v4876_v54 = vunpack.c.l.b16 %v4802_v47  ;;  %v4673_v15 = vld [vmem:[#allocation2 + $0x9c] sm:$0xe] }
 0x270   : > { %v4300_v9 = vrot.slane %v4299_v3, 4  ;;  %v4317_v55 = vshrl.u32 %v4016_v2, 16  ;;  %v4320_v47 = vshll.u32 %v4016_v2, 16 }
 0x271   : > { %v5153_v6 = vadd.f32 %v5152_v53, %v5058_v18  ;;  %v5191_v28 = vmul.f32 %v5058_v18, %v5058_v18  ;;  %v4471_v53 = vpack.c.b16 %v4450_v23, %v4449_v16  ;;  %v3952_v61 = vadd.f32 %v3878_v43, %v3637_v14 }
 0x272   : > { %v5737_v16 = vrot.slane %v3251_v17, 9  ;;  %v4326_v43 = vshll.u32 %v7732_v4, 16  ;;  %v4305_v2 = vsel %vm6535_vm5, %v4300_v9, %v7717_v46  ;;  %v4808_v46 = vrot.slane %v7720_v35, 5 }
 0x273   : > { %v5222_v52 = vadd.f32 %v5221_v62, %v5191_v28  ;;  %v7728_v40 = vpop.f32.mrf.mxu1  ;;  %v4875_v62 = vunpack.c.l.b16 %v4799_v48  ;;  %v3391_v28 = vrot.slane %v3389_v42, 4 }
 0x274   : > { %v4557_v0 = vpop.f32.mrf.mxu3  ;;  %v4983_v30 = vpop.f32.mrf.mxu0  ;;  %v3390_v22 = vsel %vm6914_vm8, %v5737_v16, %v3389_v42 }
 0x275   : > { %v4633_v7 = vadd.f32 %v4557_v0, %v3951_v1  ;;  %v6399_v1 = vld [vmem:[#allocation2 + $0xa4] sm:$0x1]  ;;  %v6108_v0 = vld [vmem:[#allocation2 + $0x9c] sm:$0xff]  ;;  %v4897_v17 = vpack.c.b16 %v4876_v54, %v4875_v62  ;;  %v7751_v62 = vrot.slane %v4326_v43, 5 }
 0x276   : > { %v3392_v23 = vrot.slane %v6399_v1, 5  ;;  %v4315_v1 = vsel %vm6535_vm5, %v4310_v33, %v4314_v5 }
 0x277   : > { %v5059_v25 = vadd.f32 %v4983_v30, %v4633_v7  ;;  %v3880_v57 = vpop.f32.mrf.mxu2  ;;  %v3456_v30 = vunpack.c.l.b16 %v3390_v22  ;;  %v7754_v22 = vld [vmem:[#allocation2 + $0xb0] sm:$0x1]  ;;  %v4452_v33 = vunpack.c.l.b16 %v4315_v1 }
 0x278   : > { %v3393_v63 = vsel %vm6914_vm8, %v3391_v28, %v3392_v23  ;;  %v4319_v23 = vrot.slane %v4317_v55, 4 }
 0x279   : > { %v6209_v13 = vpack.c.bf16 %v5059_v25, %v5058_v18  ;;  %v5154_v48 = vadd.f32 %v5153_v6, %v5059_v25  ;;  %v5192_v3 = vmul.f32 %v5059_v25, %v5059_v25  ;;  %4599 = vmatmul.bf16.gmra.mxu3 %v4471_v53  ;;  %v3457_v14 = vunpack.c.l.b16 %v3393_v63 }
 0x27a   : > { %v4330_v18 = vshrl.u32 %v7732_v4, 16  ;;  %v4805_v53 = vrot.slane %v7691_v51, 5 }
 0x27b   : > { %6296 = vst [vmem:[%s7698_s9 + $0x8] sm:$0xff] %v6209_v13   ;;  %v5223_v7 = vadd.f32 %v5222_v52, %v5192_v3  ;;  %v7742_v25 = vpop.f32.mrf.mxu1  ;;  %v3476_v16 = vpack.c.b16 %v3457_v14, %v3456_v30  ;;  %v3638_v52 = vadd.f32 %v7687_v45, %v7242_v27  ;;  %v4322_v13 = vrot.slane %v4320_v47, 5 }
 0x27c   : > { %v4560_v6 = vpop.f32.mrf.mxu3  ;;  %3922 = vmatmul.bf16.gmra.mxu2 %v6108_v0  ;;  %v4986_v28 = vpop.f32.mrf.mxu0  ;;  %v5960_v3 = vrot.slane %v4673_v15, 9  ;;  %v4332_v54 = vrot.slane %v4330_v18, 4  ;;  %v4807_v0 = vrot.slane %v4805_v53, 4  ;;  %v4336_v30 = vshll.u32 %v7754_v22, 16 }
 0x27d   : > { %v4634_v42 = vadd.f32 %v4560_v6, %v3952_v61  ;;  %v4451_v61 = vunpack.c.l.b16 %v4305_v2  ;;  %v3953_v63 = vadd.f32 %v3880_v57, %v3638_v52  ;;  %v4323_v5 = vor.u32 %v4322_v13, %v4319_v23  ;;  %v4019_v2 = vld [vmem:[#allocation2 + $0xb4] sm:$0xf]  ;;  %v3252_v23 = vld [vmem:[#allocation2 + $0xa8] sm:$0xe]  ;;  %v7766_v13 = vld [vmem:[#allocation2 + $0xb8] sm:$0xf] }
 0x27e   : > { %3612 = vmatmul.bf16.gmra.mxu1 %v3476_v16  ;;  %v4806_v47 = vsel %vm6914_vm8, %v5960_v3, %v4805_v53  ;;  %v4333_v43 = vor.u32 %v4332_v54, %v7751_v62  ;;  %v4809_v35 = vsel %vm6914_vm8, %v4807_v0, %v4808_v46  ;;  %v3639_v57 = vadd.f32 %v7708_v32, %v7252_v37  ;;  %v6401_v46 = vld [vmem:[#allocation2 + $0xb0] sm:$0x1] }
 0x27f   : > { %v5060_v51 = vadd.f32 %v4986_v28, %v4634_v42  ;;  %v3883_v9 = vpop.f32.mrf.mxu2  ;;  %5025 = vmatmul.bf16.gmra.mxu0 %v4897_v17  ;;  %v4324_v17 = vrot.slane %v4323_v5, 4  ;;  %v6400_v42 = vld [vmem:[#allocation2 + $0xac] sm:$0xf]  ;;  %v4878_v28 = vunpack.c.l.b16 %v4809_v35  ;;  %v4338_v1 = vrot.slane %v4336_v30, 5 }
 0x280   : > { %v3396_v53 = vrot.slane %v6400_v42, 5  ;;  %v4334_v52 = vrot.slane %v4333_v43, 4  ;;  %v3954_v3 = vadd.f32 %v3883_v9, %v3639_v57  ;;  %v4341_v5 = vshrl.u32 %v4019_v2, 16 }
 0x281   : > { %v5155_v27 = vadd.f32 %v5154_v48, %v5060_v51  ;;  %v5193_v45 = vmul.f32 %v5060_v51, %v5060_v51  ;;  %v4472_v48 = vpack.c.b16 %v4452_v33, %v4451_v61  ;;  %v5738_v61 = vrot.slane %v3252_v23, 9  ;;  %v6109_v33 = vld [vmem:[#allocation2 + $0xa8] sm:$0xff] }
 0x282   : > { %v3398_v0 = vrot.slane %v3396_v53, 4  ;;  %v4344_v30 = vshll.u32 %v4019_v2, 16  ;;  %v4350_v9 = vshll.u32 %v7766_v13, 16  ;;  %v4329_v2 = vsel %vm6535_vm5, %v4324_v17, %v7751_v62 }
 0x283   : > { %v5224_v55 = vadd.f32 %v5223_v7, %v5193_v45  ;;  %v7762_v18 = vpop.f32.mrf.mxu1  ;;  %v4877_v7 = vunpack.c.l.b16 %v4806_v47  ;;  %v3399_v45 = vrot.slane %v6401_v46, 5  ;;  %v3397_v47 = vsel %vm6914_vm8, %v5738_v61, %v3396_v53 }
 0x284   : > { %v4562_v14 = vpop.f32.mrf.mxu3  ;;  %v4988_v15 = vpop.f32.mrf.mxu0  ;;  %v3458_v35 = vunpack.c.l.b16 %v3397_v47  ;;  %v4339_v61 = vsel %vm6535_vm5, %v4334_v52, %v4338_v1  ;;  %v4346_v46 = vrot.slane %v4344_v30, 5  ;;  %v4815_v62 = vrot.slane %v7754_v22, 5 }
 0x285   : > { %v4635_v6 = vadd.f32 %v4562_v14, %v3953_v63  ;;  %v3400_v43 = vsel %vm6914_vm8, %v3398_v0, %v3399_v45  ;;  %v4898_v42 = vpack.c.b16 %v4878_v28, %v4877_v7  ;;  %v4343_v0 = vrot.slane %v4341_v5, 4 }
 0x286   : > { %v7785_v7 = vrot.slane %v4350_v9, 5  ;;  %v4454_v52 = vunpack.c.l.b16 %v4339_v61  ;;  %v7800_v61 = vld [vmem:[#allocation2 + $0xc4] sm:$0xf] }
 0x287   : > { %v5061_v16 = vadd.f32 %v4988_v15, %v4635_v6  ;;  %v3885_v54 = vpop.f32.mrf.mxu2  ;;  %v3459_v6 = vunpack.c.l.b16 %v3400_v43  ;;  %v4674_v15 = vld [vmem:[#allocation2 + $0xa8] sm:$0xe]  ;;  %v4347_v1 = vor.u32 %v4346_v46, %v4343_v0 }
 0x288   : > { %v5961_v45 = vrot.slane %v4674_v15, 9  ;;  %v6402_v15 = vld [vmem:[#allocation2 + $0xb8] sm:$0xf] }
 0x289   : > { %v6214_v37 = vpack.c.bf16 %v5061_v16, %v5060_v51  ;;  %v5156_v32 = vadd.f32 %v5155_v27, %v5061_v16  ;;  %v5194_v63 = vmul.f32 %v5061_v16, %v5061_v16  ;;  %4604 = vmatmul.bf16.gmra.mxu3 %v4472_v48  ;;  %v4354_v51 = vshrl.u32 %v7766_v13, 16 }
 0x28a   : > { %v4812_v48 = vrot.slane %v7732_v4, 5  ;;  %v3477_v16 = vpack.c.b16 %v3459_v6, %v3458_v35 }
 0x28b   : > { %6297 = vst [vmem:[%s7698_s9 + $0x10] sm:$0xff] %v6214_v37   ;;  %v5225_v14 = vadd.f32 %v5224_v55, %v5194_v63  ;;  %v7776_v57 = vpop.f32.mrf.mxu1  ;;  %v3640_v55 = vadd.f32 %v7728_v40, %v7267_v21  ;;  %v4356_v28 = vrot.slane %v4354_v51, 4  ;;  %v7788_v63 = vld [vmem:[#allocation2 + $0xbc] sm:$0x1] }
 0x28c   : > { %v4565_v27 = vpop.f32.mrf.mxu3  ;;  %3927 = vmatmul.bf16.gmra.mxu2 %v6109_v33  ;;  %v4991_v23 = vpop.f32.mrf.mxu0  ;;  %v4814_v37 = vrot.slane %v4812_v48, 4  ;;  %v4813_v47 = vsel %vm6914_vm8, %v5961_v45, %v4812_v48  ;;  %v4360_v30 = vshll.u32 %v7788_v63, 16  ;;  %v3403_v48 = vrot.slane %v6402_v15, 5  ;;  %v4675_v15 = vld [vmem:[#allocation2 + $0xb4] sm:$0xe] }
 0x28d   : > { %v4636_v53 = vadd.f32 %v4565_v27, %v3954_v3  ;;  %v4453_v3 = vunpack.c.l.b16 %v4329_v2  ;;  %v3955_v33 = vadd.f32 %v3885_v54, %v3640_v55  ;;  %v4357_v43 = vor.u32 %v4356_v28, %v7785_v7  ;;  %v3253_v55 = vld [vmem:[#allocation2 + $0xb4] sm:$0xe] }
 0x28e   : > { %3617 = vmatmul.bf16.gmra.mxu1 %v3477_v16  ;;  %v4816_v22 = vsel %vm6914_vm8, %v4814_v37, %v4815_v62  ;;  %v3641_v54 = vadd.f32 %v7742_v25, %v7283_v11  ;;  %v4348_v27 = vrot.slane %v4347_v1, 4  ;;  %v5739_v45 = vrot.slane %v3253_v55, 9 }
 0x28f   : > { %v5062_v4 = vadd.f32 %v4991_v23, %v4636_v53  ;;  %v3888_v17 = vpop.f32.mrf.mxu2  ;;  %5030 = vmatmul.bf16.gmra.mxu0 %v4898_v42  ;;  %v4022_v42 = vld [vmem:[#allocation2 + $0xc0] sm:$0xf]  ;;  %v4880_v2 = vunpack.c.l.b16 %v4816_v22  ;;  %v4358_v16 = vrot.slane %v4357_v43, 4  ;;  %v4362_v23 = vrot.slane %v4360_v30, 5 }
 0x290   : > { %v3956_v0 = vadd.f32 %v3888_v17, %v3641_v54  ;;  %v3405_v28 = vrot.slane %v3403_v48, 4  ;;  %v4374_v17 = vshll.u32 %v7800_v61, 16 }
 0x291   : > { %v5157_v21 = vadd.f32 %v5156_v32, %v5062_v4  ;;  %v5195_v40 = vmul.f32 %v5062_v4, %v5062_v4  ;;  %v4473_v32 = vpack.c.b16 %v4454_v52, %v4453_v3  ;;  %v6403_v3 = vld [vmem:[#allocation2 + $0xbc] sm:$0x1]  ;;  %v3404_v52 = vsel %vm6914_vm8, %v5739_v45, %v3403_v48 }
 0x292   : > { %v3406_v37 = vrot.slane %v6403_v3, 5  ;;  %v3460_v30 = vunpack.c.l.b16 %v3404_v52  ;;  %v4363_v54 = vsel %vm6535_vm5, %v4358_v16, %v4362_v23  ;;  %v4822_v16 = vrot.slane %v7788_v63, 5  ;;  %v7822_v3 = vld [vmem:[#allocation2 + $0xc8] sm:$0x1] }
 0x293   : > { %v5226_v5 = vadd.f32 %v5225_v14, %v5195_v40  ;;  %v7796_v35 = vpop.f32.mrf.mxu1  ;;  %v4879_v14 = vunpack.c.l.b16 %v4813_v47  ;;  %v6110_v40 = vld [vmem:[#allocation2 + $0xb4] sm:$0xff]  ;;  %v4368_v47 = vshll.u32 %v4022_v42, 16  ;;  %v4456_v45 = vunpack.c.l.b16 %v4363_v54  ;;  %v3254_v54 = vld [vmem:[#allocation2 + $0xc0] sm:$0xe] }
 0x294   : > { %v4567_v9 = vpop.f32.mrf.mxu3  ;;  %v4993_v51 = vpop.f32.mrf.mxu0  ;;  %v3407_v1 = vsel %vm6914_vm8, %v3405_v28, %v3406_v37  ;;  %v5962_v28 = vrot.slane %v4675_v15, 9 }
 0x295   : > { %v4637_v6 = vadd.f32 %v4567_v9, %v3955_v33  ;;  %v4365_v33 = vshrl.u32 %v4022_v42, 16  ;;  %v3461_v9 = vunpack.c.l.b16 %v3407_v1  ;;  %v4370_v55 = vrot.slane %v4368_v47, 5 }
 0x297   : > { %v5063_v53 = vadd.f32 %v4993_v51, %v4637_v6  ;;  %v3890_v46 = vpop.f32.mrf.mxu2  ;;  %v4353_v6 = vsel %vm6535_vm5, %v4348_v27, %v7785_v7  ;;  %v3478_v48 = vpack.c.b16 %v3461_v9, %v3460_v30  ;;  %v7819_v7 = vrot.slane %v4374_v17, 5  ;;  %v6404_v9 = vld [vmem:[#allocation2 + $0xc4] sm:$0xf] }
 0x299   : > { %v6219_v11 = vpack.c.bf16 %v5063_v53, %v5062_v4  ;;  %v5158_v25 = vadd.f32 %v5157_v21, %v5063_v53  ;;  %v5196_v62 = vmul.f32 %v5063_v53, %v5063_v53  ;;  %4609 = vmatmul.bf16.gmra.mxu3 %v4473_v32  ;;  %v4378_v4 = vshrl.u32 %v7800_v61, 16 }
 0x29a   : > { %v4899_v21 = vpack.c.b16 %v4880_v2, %v4879_v14  ;;  %v4367_v53 = vrot.slane %v4365_v33, 4  ;;  %v3642_v2 = vadd.f32 %v7762_v18, %v7307_v50  ;;  %v4384_v18 = vshll.u32 %v7822_v3, 16 }
 0x29b   : > { %6298 = vst [vmem:[%s7698_s9 + $0x18] sm:$0xff] %v6219_v11   ;;  %v5227_v43 = vadd.f32 %v5226_v5, %v5196_v62  ;;  %v7812_v32 = vpop.f32.mrf.mxu1  ;;  %v4819_v5 = vrot.slane %v7766_v13, 5  ;;  %v4380_v27 = vrot.slane %v4378_v4, 4  ;;  %v3410_v4 = vrot.slane %v6404_v9, 5 }
 0x29c   : > { %v4570_v22 = vpop.f32.mrf.mxu3  ;;  %3932 = vmatmul.bf16.gmra.mxu2 %v6110_v40  ;;  %v4996_v42 = vpop.f32.mrf.mxu0  ;;  %v3957_v11 = vadd.f32 %v3890_v46, %v3642_v2  ;;  %v4371_v40 = vor.u32 %v4370_v55, %v4367_v53  ;;  %v3643_v46 = vadd.f32 %v7776_v57, %v7313_v26  ;;  %v6405_v53 = vld [vmem:[#allocation2 + $0xc8] sm:$0x1]  ;;  %v6111_v57 = vld [vmem:[#allocation2 + $0xc0] sm:$0xff] }
 0x29d   : > { %v4638_v51 = vadd.f32 %v4570_v22, %v3956_v0  ;;  %v4455_v0 = vunpack.c.l.b16 %v4353_v6  ;;  %v4821_v62 = vrot.slane %v4819_v5, 4  ;;  %v4381_v50 = vor.u32 %v4380_v27, %v7819_v7 }
 0x29e   : > { %3622 = vmatmul.bf16.gmra.mxu1 %v3478_v48  ;;  %v4820_v1 = vsel %vm6914_vm8, %v5962_v28, %v4819_v5  ;;  %v5740_v48 = vrot.slane %v3254_v54, 9  ;;  %v3413_v55 = vrot.slane %v6405_v53, 5  ;;  %v7834_v28 = vld [vmem:[#allocation2 + $0xd0] sm:$0xf] }
 0x29f   : > { %v5064_v14 = vadd.f32 %v4996_v42, %v4638_v51  ;;  %v3893_v23 = vpop.f32.mrf.mxu2  ;;  %5035 = vmatmul.bf16.gmra.mxu0 %v4899_v21  ;;  %v4474_v17 = vpack.c.b16 %v4456_v45, %v4455_v0  ;;  %v4881_v22 = vunpack.c.l.b16 %v4820_v1  ;;  %v4382_v6 = vrot.slane %v4381_v50, 4  ;;  %v4025_v45 = vld [vmem:[#allocation2 + $0xcc] sm:$0xf]  ;;  %v4676_v50 = vld [vmem:[#allocation2 + $0xc0] sm:$0xe] }
 0x2a0   : > { %v4386_v51 = vrot.slane %v4384_v18, 5  ;;  %v3412_v42 = vrot.slane %v3410_v4, 4  ;;  %v3958_v26 = vadd.f32 %v3893_v23, %v3643_v46  ;;  %v4392_v1 = vshll.u32 %v4025_v45, 16 }
 0x2a1   : > { %v5159_v13 = vadd.f32 %v5158_v25, %v5064_v14  ;;  %v5197_v37 = vmul.f32 %v5064_v14, %v5064_v14  ;;  %v4823_v25 = vsel %vm6914_vm8, %v4821_v62, %v4822_v16 }
 0x2a2   : > { %v4882_v15 = vunpack.c.l.b16 %v4823_v25 }
 0x2a3   : > { %v5228_v33 = vadd.f32 %v5227_v43, %v5197_v37  ;;  %v7828_v47 = vpop.f32.mrf.mxu1  ;;  %v4372_v43 = vrot.slane %v4371_v40, 4  ;;  %v3411_v37 = vsel %vm6914_vm8, %v5740_v48, %v3410_v4 }
 0x2a4   : > { %v4572_v52 = vpop.f32.mrf.mxu3  ;;  %v4998_v30 = vpop.f32.mrf.mxu0  ;;  %v3462_v23 = vunpack.c.l.b16 %v3411_v37 }
 0x2a5   : > { %v4639_v63 = vadd.f32 %v4572_v52, %v3957_v11  ;;  %v4377_v16 = vsel %vm6535_vm5, %v4372_v43, %v7819_v7  ;;  %v3414_v11 = vsel %vm6914_vm8, %v3412_v42, %v3413_v55  ;;  %v4389_v52 = vshrl.u32 %v4025_v45, 16 }
 0x2a6   : > { %v3463_v62 = vunpack.c.l.b16 %v3414_v11  ;;  %v4398_v7 = vshll.u32 %v7834_v28, 16  ;;  %v3644_v43 = vadd.f32 %v7796_v35, %v7327_v31  ;;  %v4457_v9 = vunpack.c.l.b16 %v4377_v16 }
 0x2a7   : > { %v5065_v21 = vadd.f32 %v4998_v30, %v4639_v63  ;;  %v3895_v5 = vpop.f32.mrf.mxu2  ;;  %v4402_v63 = vshrl.u32 %v7834_v28, 16  ;;  %v4391_v48 = vrot.slane %v4389_v52, 4  ;;  %v4394_v42 = vrot.slane %v4392_v1, 5 }
 0x2a8   : > { %v3479_v30 = vpack.c.b16 %v3463_v62, %v3462_v23  ;;  %v3959_v55 = vadd.f32 %v3895_v5, %v3644_v43 }
 0x2a9   : > { %v6224_v2 = vpack.c.bf16 %v5065_v21, %v5064_v14  ;;  %v5160_v27 = vadd.f32 %v5159_v13, %v5065_v21  ;;  %v5198_v0 = vmul.f32 %v5065_v21, %v5065_v21  ;;  %4614 = vmatmul.bf16.gmra.mxu3 %v4474_v17  ;;  %v4387_v13 = vsel %vm6535_vm5, %v4382_v6, %v4386_v51 }
 0x2aa   : > { %v4900_v17 = vpack.c.b16 %v4882_v15, %v4881_v22  ;;  %v4458_v21 = vunpack.c.l.b16 %v4387_v13  ;;  %v5963_v6 = vrot.slane %v4676_v50, 9  ;;  %v4829_v51 = vrot.slane %v7822_v3, 5 }
 0x2ab   : > { %6299 = vst [vmem:[%s7698_s9 + $0x20] sm:$0xff] %v6224_v2   ;;  %v5229_v14 = vadd.f32 %v5228_v33, %v5198_v0  ;;  %v7846_v18 = vpop.f32.mrf.mxu1  ;;  %v4826_v33 = vrot.slane %v7800_v61, 5  ;;  %v4400_v22 = vrot.slane %v4398_v7, 5  ;;  %v4404_v15 = vrot.slane %v4402_v63, 4  ;;  %v4027_v0 = vld [vmem:[#allocation2 + $0xd4] sm:$0x1] }
 0x2ac   : > { %v4575_v40 = vpop.f32.mrf.mxu3  ;;  %3937 = vmatmul.bf16.gmra.mxu2 %v6111_v57  ;;  %v5001_v46 = vpop.f32.mrf.mxu0  ;;  %v4395_v57 = vor.u32 %v4394_v42, %v4391_v48  ;;  %v4408_v3 = vshll.u32 %v4027_v0, 16  ;;  %v4475_v11 = vpack.c.b16 %v4458_v21, %v4457_v9 }
 0x2ad   : > { %v4640_v25 = vadd.f32 %v4575_v40, %v3958_v26  ;;  %v4828_v2 = vrot.slane %v4826_v33, 4  ;;  %v4827_v35 = vsel %vm6914_vm8, %v5963_v6, %v4826_v33  ;;  %v4405_v45 = vor.u32 %v4404_v15, %v4400_v22  ;;  %v6112_v33 = vld [vmem:[#allocation2 + $0xcc] sm:$0xff] }
 0x2ae   : > { %3627 = vmatmul.bf16.gmra.mxu1 %v3479_v30  ;;  %v4883_v23 = vunpack.c.l.b16 %v4827_v35  ;;  %v4396_v50 = vrot.slane %v4395_v57, 4  ;;  %v4410_v1 = vrot.slane %v4408_v3, 5  ;;  %v4677_v6 = vld [vmem:[#allocation2 + $0xcc] sm:$0xe] }
 0x2af   : > { %v5066_v4 = vadd.f32 %v5001_v46, %v4640_v25  ;;  %v3898_v54 = vpop.f32.mrf.mxu2  ;;  %5040 = vmatmul.bf16.gmra.mxu0 %v4900_v17  ;;  %v4830_v13 = vsel %vm6914_vm8, %v4828_v2, %v4829_v51  ;;  %v4406_v52 = vrot.slane %v4405_v45, 4 }
 0x2b0   : > { %v4884_v62 = vunpack.c.l.b16 %v4830_v13 }
 0x2b1   : > { %v5161_v53 = vadd.f32 %v5160_v27, %v5066_v4  ;;  %v5199_v61 = vmul.f32 %v5066_v4, %v5066_v4 }
 0x2b2   : > { %v4901_v46 = vpack.c.b16 %v4884_v62, %v4883_v23 }
 0x2b3   : > { %v5230_v26 = vadd.f32 %v5229_v14, %v5199_v61  ;;  %v7856_v16 = vpop.f32.mrf.mxu1  ;;  %v3645_v14 = vadd.f32 %v7812_v32, %v7341_v60  ;;  %v4401_v60 = vsel %vm6535_vm5, %v4396_v50, %v4400_v22  ;;  %v4411_v32 = vsel %vm6535_vm5, %v4406_v52, %v4410_v1 }
 0x2b4   : > { %v4577_v31 = vpop.f32.mrf.mxu3  ;;  %v5003_v27 = vpop.f32.mrf.mxu0  ;;  %v4459_v42 = vunpack.c.l.b16 %v4401_v60  ;;  %v4460_v15 = vunpack.c.l.b16 %v4411_v32  ;;  %v4836_v61 = vrot.slane %v4027_v0, 5 }
 0x2b5   : > { %v4641_v37 = vadd.f32 %v4577_v31, %v3959_v55  ;;  %v3960_v25 = vadd.f32 %v3898_v54, %v3645_v14  ;;  %v3646_v54 = vadd.f32 %v7828_v47, %v7354_v8 }
 0x2b6   : > { %v4476_v45 = vpack.c.b16 %v4460_v15, %v4459_v42 }
 0x2b7   : > { %v5067_v5 = vadd.f32 %v5003_v27, %v4641_v37  ;;  %v3900_v40 = vpop.f32.mrf.mxu2  ;;  %v3647_v37 = vadd.f32 %v7846_v18, %v7373_v59 }
 0x2b8   : > { %v3961_v22 = vadd.f32 %v3900_v40, %v3646_v54 }
 0x2b9   : > { %v6229_v7 = vpack.c.bf16 %v5067_v5, %v5066_v4  ;;  %v5162_v63 = vadd.f32 %v5161_v53, %v5067_v5  ;;  %v5200_v17 = vmul.f32 %v5067_v5, %v5067_v5  ;;  %4619 = vmatmul.bf16.gmra.mxu3 %v4475_v11  ;;  %v4833_v4 = vrot.slane %v7834_v28, 5 }
 0x2ba   : > { %v5964_v53 = vrot.slane %v4677_v6, 9 }
 0x2bb   : > { %6300 = vst [vmem:[%s7698_s9 + $0x28] sm:$0xff] %v6229_v7   ;;  %v5231_v30 = vadd.f32 %v5230_v26, %v5200_v17  ;;  %v3593_v9 = vpop.f32.mrf.mxu1  ;;  %v4835_v31 = vrot.slane %v4833_v4, 4  ;;  %v3648_v17 = vadd.f32 %v7856_v16, %v7387_v44 }
 0x2bc   : > { %v4580_v43 = vpop.f32.mrf.mxu3  ;;  %3942 = vmatmul.bf16.gmra.mxu2 %v6112_v33  ;;  %v5006_v51 = vpop.f32.mrf.mxu0  ;;  %v4834_v3 = vsel %vm6914_vm8, %v5964_v53, %v4833_v4  ;;  %v3649_v6 = vadd.f32 %v3593_v9, %v7406_v56 }
 0x2bd   : > { %v4642_v21 = vadd.f32 %v4580_v43, %v3960_v25  ;;  %v4837_v8 = vsel %vm6914_vm8, %v4835_v31, %v4836_v61  ;;  %v4885_v11 = vunpack.c.l.b16 %v4834_v3 }
 0x2be   : > { %v4886_v13 = vunpack.c.l.b16 %v4837_v8 }
 0x2bf   : > { %v5068_v48 = vadd.f32 %v5006_v51, %v4642_v21  ;;  %v3903_v55 = vpop.f32.mrf.mxu2  ;;  %5045 = vmatmul.bf16.gmra.mxu0 %v4901_v46 }
 0x2c0   : > { %v3962_v62 = vadd.f32 %v3903_v55, %v3647_v37  ;;  %v4902_v1 = vpack.c.b16 %v4886_v13, %v4885_v11 }
 0x2c1   : > { %v5163_v2 = vadd.f32 %v5162_v63, %v5068_v48  ;;  %v5201_v26 = vmul.f32 %v5068_v48, %v5068_v48 }
 0x2c3   : > { %v5232_v29 = vadd.f32 %v5231_v30, %v5201_v26  ;;  %v3595_v57 = vpop.f32.mrf.mxu1 }
 0x2c4   : > { %v4582_v35 = vpop.f32.mrf.mxu3  ;;  %v5008_v47 = vpop.f32.mrf.mxu0 }
 0x2c5   : > { %v4643_v28 = vadd.f32 %v4582_v35, %v3961_v22 }
 0x2c7   : > { %v5069_v0 = vadd.f32 %v5008_v47, %v4643_v28  ;;  %v3905_v27 = vpop.f32.mrf.mxu2 }
 0x2c8   : > { %v3963_v33 = vadd.f32 %v3905_v27, %v3648_v17 }
 0x2c9   : > { %v6234_v5 = vpack.c.bf16 %v5069_v0, %v5068_v48  ;;  %v5164_v14 = vadd.f32 %v5163_v2, %v5069_v0  ;;  %v5202_v23 = vmul.f32 %v5069_v0, %v5069_v0  ;;  %4624 = vmatmul.bf16.gmra.mxu3 %v4476_v45  ;;  %v3650_v2 = vadd.f32 %v3595_v57, %v7420_v34 }
 0x2cb   : > { %6301 = vst [vmem:[%s7698_s9 + $0x30] sm:$0xff] %v6234_v5   ;;  %v5233_v40 = vadd.f32 %v5232_v29, %v5202_v23  ;;  %v3598_v52 = vpop.f32.mrf.mxu1 }
 0x2cc   : > { %v4585_v50 = vpop.f32.mrf.mxu3  ;;  %v5011_v7 = vpop.f32.mrf.mxu0  ;;  %v3651_v3 = vadd.f32 %v3598_v52, %v7439_v24 }
 0x2cd   : > { %v4644_v36 = vadd.f32 %v4585_v50, %v3962_v62 }
 0x2cf   : > { %v5070_v63 = vadd.f32 %v5011_v7, %v4644_v36  ;;  %v3908_v59 = vpop.f32.mrf.mxu2  ;;  %5050 = vmatmul.bf16.gmra.mxu0 %v4902_v1 }
 0x2d0   : > { %v3964_v42 = vadd.f32 %v3908_v59, %v3649_v6 }
 0x2d1   : > { %v5165_v18 = vadd.f32 %v5164_v14, %v5070_v63  ;;  %v5203_v25 = vmul.f32 %v5070_v63, %v5070_v63 }
 0x2d3   : > { %v5234_v30 = vadd.f32 %v5233_v40, %v5203_v25  ;;  %v3600_v43 = vpop.f32.mrf.mxu1 }
 0x2d4   : > { %v4587_v46 = vpop.f32.mrf.mxu3  ;;  %v5013_v60 = vpop.f32.mrf.mxu0  ;;  %v3652_v23 = vadd.f32 %v3600_v43, %v7453_v41 }
 0x2d5   : > { %v4645_v21 = vadd.f32 %v4587_v46, %v3963_v33 }
 0x2d7   : > { %v5071_v32 = vadd.f32 %v5013_v60, %v4645_v21  ;;  %v3910_v4 = vpop.f32.mrf.mxu2 }
 0x2d8   : > { %v3965_v29 = vadd.f32 %v3910_v4, %v3650_v2 }
 0x2d9   : > { %v6239_v51 = vpack.c.bf16 %v5071_v32, %v5070_v63  ;;  %v5166_v48 = vadd.f32 %v5165_v18, %v5071_v32  ;;  %v5204_v54 = vmul.f32 %v5071_v32, %v5071_v32 }
 0x2db   : > { %6302 = vst [vmem:[%s7698_s9 + $0x38] sm:$0xff] %v6239_v51   ;;  %v5235_v44 = vadd.f32 %v5234_v30, %v5204_v54  ;;  %v3603_v61 = vpop.f32.mrf.mxu1 }
 0x2dc   : > { %v4590_v16 = vpop.f32.mrf.mxu3  ;;  %v5016_v53 = vpop.f32.mrf.mxu0  ;;  %v3653_v59 = vadd.f32 %v3603_v61, %v7472_v10 }
 0x2dd   : > { %v4646_v15 = vadd.f32 %v4590_v16, %v3964_v42 }
 0x2df   : > { %v5072_v55 = vadd.f32 %v5016_v53, %v4646_v15  ;;  %v3913_v26 = vpop.f32.mrf.mxu2 }
 0x2e0   : > { %v3966_v13 = vadd.f32 %v3913_v26, %v3651_v3 }
 0x2e1   : > { %v5167_v22 = vadd.f32 %v5166_v48, %v5072_v55  ;;  %v5205_v31 = vmul.f32 %v5072_v55, %v5072_v55 }
 0x2e3   : > { %v5236_v56 = vadd.f32 %v5235_v44, %v5205_v31  ;;  %v3605_v47 = vpop.f32.mrf.mxu1 }
 0x2e4   : > { %v4592_v9 = vpop.f32.mrf.mxu3  ;;  %v5018_v28 = vpop.f32.mrf.mxu0  ;;  %v3654_v4 = vadd.f32 %v3605_v47, %v7486_v19 }
 0x2e5   : > { %v4647_v35 = vadd.f32 %v4592_v9, %v3965_v29 }
 0x2e7   : > { %v5073_v45 = vadd.f32 %v5018_v28, %v4647_v35  ;;  %v3915_v8 = vpop.f32.mrf.mxu2 }
 0x2e8   : > { %v3967_v1 = vadd.f32 %v3915_v8, %v3652_v23 }
 0x2e9   : > { %v6244_v0 = vpack.c.bf16 %v5073_v45, %v5072_v55  ;;  %v5168_v37 = vadd.f32 %v5167_v22, %v5073_v45  ;;  %v5206_v11 = vmul.f32 %v5073_v45, %v5073_v45 }
 0x2eb   : > { %6303 = vst [vmem:[%s7698_s9 + $0x40] sm:$0xff] %v6244_v0   ;;  %v5237_v34 = vadd.f32 %v5236_v56, %v5206_v11  ;;  %v3608_v24 = vpop.f32.mrf.mxu1 }
 0x2ec   : > { %v4595_v57 = vpop.f32.mrf.mxu3  ;;  %v5021_v5 = vpop.f32.mrf.mxu0  ;;  %v3655_v55 = vadd.f32 %v3608_v24, %v7505_v38 }
 0x2ed   : > { %v4648_v27 = vadd.f32 %v4595_v57, %v3966_v13 }
 0x2ef   : > { %v5074_v14 = vadd.f32 %v5021_v5, %v4648_v27  ;;  %v3918_v62 = vpop.f32.mrf.mxu2 }
 0x2f0   : > { %v3968_v46 = vadd.f32 %v3918_v62, %v3653_v59 }
 0x2f1   : > { %v5169_v40 = vadd.f32 %v5168_v37, %v5074_v14  ;;  %v5207_v50 = vmul.f32 %v5074_v14, %v5074_v14 }
 0x2f3   : > { %v5238_v52 = vadd.f32 %v5237_v34, %v5207_v50  ;;  %v3610_v21 = vpop.f32.mrf.mxu1 }
 0x2f4   : > { %v4597_v36 = vpop.f32.mrf.mxu3  ;;  %v5023_v63 = vpop.f32.mrf.mxu0  ;;  %v3656_v45 = vadd.f32 %v3610_v21, %v7519_v12 }
 0x2f5   : > { %v4649_v7 = vadd.f32 %v4597_v36, %v3967_v1 }
 0x2f7   : > { %v5075_v17 = vadd.f32 %v5023_v63, %v4649_v7  ;;  %v3920_v18 = vpop.f32.mrf.mxu2 }
 0x2f8   : > { %v3969_v42 = vadd.f32 %v3920_v18, %v3654_v4 }
 0x2f9   : > { %v6249_v25 = vpack.c.bf16 %v5075_v17, %v5074_v14  ;;  %v5170_v33 = vadd.f32 %v5169_v40, %v5075_v17  ;;  %v5208_v30 = vmul.f32 %v5075_v17, %v5075_v17 }
 0x2fb   : > { %6304 = vst [vmem:[%s7698_s9 + $0x48] sm:$0xff] %v6249_v25   ;;  %v5239_v41 = vadd.f32 %v5238_v52, %v5208_v30  ;;  %v3613_v53 = vpop.f32.mrf.mxu1 }
 0x2fc   : > { %v4600_v43 = vpop.f32.mrf.mxu3  ;;  %v5026_v32 = vpop.f32.mrf.mxu0  ;;  %v3657_v27 = vadd.f32 %v3613_v53, %v7538_v39 }
 0x2fd   : > { %v4650_v60 = vadd.f32 %v4600_v43, %v3968_v46 }
 0x2ff   : > { %v5076_v6 = vadd.f32 %v5026_v32, %v4650_v60  ;;  %v3923_v51 = vpop.f32.mrf.mxu2 }
 0x300   : > { %v3970_v29 = vadd.f32 %v3923_v51, %v3655_v55 }
 0x301   : > { %v5171_v48 = vadd.f32 %v5170_v33, %v5076_v6  ;;  %v5209_v54 = vmul.f32 %v5076_v6, %v5076_v6 }
 0x303   : > { %v5240_v10 = vadd.f32 %v5239_v41, %v5209_v54  ;;  %v3615_v8 = vpop.f32.mrf.mxu1 }
 0x304   : > { %v4602_v44 = vpop.f32.mrf.mxu3  ;;  %v5028_v15 = vpop.f32.mrf.mxu0  ;;  %v3658_v7 = vadd.f32 %v3615_v8, %v7555_v20 }
 0x305   : > { %v4651_v16 = vadd.f32 %v4602_v44, %v3969_v42 }
 0x307   : > { %v5077_v61 = vadd.f32 %v5028_v15, %v4651_v16  ;;  %v3925_v2 = vpop.f32.mrf.mxu2 }
 0x308   : > { %v3971_v37 = vadd.f32 %v3925_v2, %v3656_v45 }
 0x309   : > { %v6254_v26 = vpack.c.bf16 %v5077_v61, %v5076_v6  ;;  %v5172_v22 = vadd.f32 %v5171_v48, %v5077_v61  ;;  %v5210_v31 = vmul.f32 %v5077_v61, %v5077_v61 }
 0x30b   : > { %6305 = vst [vmem:[%s7698_s9 + $0x50] sm:$0xff] %v6254_v26   ;;  %v5241_v19 = vadd.f32 %v5240_v10, %v5210_v31  ;;  %v3618_v50 = vpop.f32.mrf.mxu1  ;;  %v7932_v31 = vld [vmem:[#allocation5_spill] sm:$0xff] }
 0x30c   : > { %v4605_v56 = vpop.f32.mrf.mxu3  ;;  %v5031_v35 = vpop.f32.mrf.mxu0  ;;  %v3659_v43 = vadd.f32 %v3618_v50, %v7576_v49  ;;  %v7934_v50 = vld [vmem:[#allocation6_spill] sm:$0xff] }
 0x30d   : > { %v4652_v9 = vadd.f32 %v4605_v56, %v3970_v29 }
 0x30f   : > { %v5078_v28 = vadd.f32 %v5031_v35, %v4652_v9  ;;  %v3928_v3 = vpop.f32.mrf.mxu2 }
 0x310   : > { %v3972_v40 = vadd.f32 %v3928_v3, %v3657_v27 }
 0x311   : > { %v5173_v47 = vadd.f32 %v5172_v22, %v5078_v28  ;;  %v5211_v0 = vmul.f32 %v5078_v28, %v5078_v28 }
 0x313   : > { %v5242_v38 = vadd.f32 %v5241_v19, %v5211_v0  ;;  %v3620_v33 = vpop.f32.mrf.mxu1 }
 0x314   : > { %v4607_v11 = vpop.f32.mrf.mxu3  ;;  %v5033_v34 = vpop.f32.mrf.mxu0  ;;  %v3660_v44 = vadd.f32 %v3620_v33, %v7589_v58  ;;  %v7935_v33 = vld [vmem:[#allocation7_spill] sm:$0xff] }
 0x315   : > { %v4653_v13 = vadd.f32 %v4607_v11, %v3971_v37  ;;  %v7933_v37 = vld [vmem:[#allocation3_spill] sm:$0xff] }
 0x317   : > { %v5079_v57 = vadd.f32 %v5033_v34, %v4653_v13  ;;  %v3930_v5 = vpop.f32.mrf.mxu2 }
 0x318   : > { %v3973_v18 = vadd.f32 %v3930_v5, %v3658_v7 }
 0x319   : > { %v6259_v14 = vpack.c.bf16 %v5079_v57, %v5078_v28  ;;  %v5174_v23 = vadd.f32 %v5173_v47, %v5079_v57  ;;  %v5212_v62 = vmul.f32 %v5079_v57, %v5079_v57 }
 0x31b   : > { %6306 = vst [vmem:[%s7698_s9 + $0x58] sm:$0xff] %v6259_v14   ;;  %v5243_v12 = vadd.f32 %v5242_v38, %v5212_v62  ;;  %v3623_v42 = vpop.f32.mrf.mxu1 }
 0x31c   : > { %v4610_v1 = vpop.f32.mrf.mxu3  ;;  %v5036_v52 = vpop.f32.mrf.mxu0  ;;  %v3661_v29 = vadd.f32 %v3623_v42, %v7932_v31 }
 0x31d   : > { %v4654_v24 = vadd.f32 %v4610_v1, %v3972_v40 }
 0x31f   : > { %v5080_v36 = vadd.f32 %v5036_v52, %v4654_v24  ;;  %v3933_v63 = vpop.f32.mrf.mxu2 }
 0x320   : > { %v3974_v4 = vadd.f32 %v3933_v63, %v3659_v43 }
 0x321   : > { %v5175_v17 = vadd.f32 %v5174_v23, %v5080_v36  ;;  %v5213_v59 = vmul.f32 %v5080_v36, %v5080_v36 }
 0x323   : > { %v5244_v39 = vadd.f32 %v5243_v12, %v5213_v59  ;;  %v3625_v19 = vpop.f32.mrf.mxu1 }
 0x324   : > { %v4612_v25 = vpop.f32.mrf.mxu3  ;;  %v5038_v46 = vpop.f32.mrf.mxu0  ;;  %v3662_v38 = vadd.f32 %v3625_v19, %v7933_v37 }
 0x325   : > { %v4655_v30 = vadd.f32 %v4612_v25, %v3973_v18 }
 0x327   : > { %v5081_v41 = vadd.f32 %v5038_v46, %v4655_v30  ;;  %v3935_v21 = vpop.f32.mrf.mxu2 }
 0x328   : > { %v3975_v61 = vadd.f32 %v3935_v21, %v3660_v44 }
 0x329   : > { %v6264_v60 = vpack.c.bf16 %v5081_v41, %v5080_v36  ;;  %v5176_v32 = vadd.f32 %v5175_v17, %v5081_v41  ;;  %v5214_v6 = vmul.f32 %v5081_v41, %v5081_v41 }
 0x32b   : > { %6307 = vst [vmem:[%s7698_s9 + $0x60] sm:$0xff] %v6264_v60   ;;  %v5245_v20 = vadd.f32 %v5244_v39, %v5214_v6  ;;  %v3628_v57 = vpop.f32.mrf.mxu1 }
 0x32c   : > { %v4615_v51 = vpop.f32.mrf.mxu3  ;;  %v5041_v54 = vpop.f32.mrf.mxu0  ;;  %v3663_v12 = vadd.f32 %v3628_v57, %v7934_v50 }
 0x32d   : > { %v4656_v48 = vadd.f32 %v4615_v51, %v3974_v4 }
 0x32f   : > { %v5082_v10 = vadd.f32 %v5041_v54, %v4656_v48  ;;  %v3938_v16 = vpop.f32.mrf.mxu2 }
 0x330   : > { %v3976_v28 = vadd.f32 %v3938_v16, %v3661_v29 }
 0x331   : > { %v5177_v15 = vadd.f32 %v5176_v32, %v5082_v10  ;;  %v5215_v53 = vmul.f32 %v5082_v10, %v5082_v10 }
 0x333   : > { %v5246_v49 = vadd.f32 %v5245_v20, %v5215_v53  ;;  %v3630_v17 = vpop.f32.mrf.mxu1 }
 0x334   : > { %v4617_v55 = vpop.f32.mrf.mxu3  ;;  %v5043_v26 = vpop.f32.mrf.mxu0  ;;  %v3664_v30 = vadd.f32 %v3630_v17, %v7935_v33 }
 0x335   : > { %v4657_v2 = vadd.f32 %v4617_v55, %v3975_v61 }
 0x337   : > { %v5083_v22 = vadd.f32 %v5043_v26, %v4657_v2  ;;  %v3940_v45 = vpop.f32.mrf.mxu2 }
 0x338   : > { %v3977_v34 = vadd.f32 %v3940_v45, %v3662_v38 }
 0x339   : > { %v6269_v56 = vpack.c.bf16 %v5083_v22, %v5082_v10  ;;  %v5178_v9 = vadd.f32 %v5177_v15, %v5083_v22  ;;  %v5216_v35 = vmul.f32 %v5083_v22, %v5083_v22 }
 0x33b   : > { %6308 = vst [vmem:[%s7698_s9 + $0x68] sm:$0xff] %v6269_v56   ;;  %v5247_v58 = vadd.f32 %v5246_v49, %v5216_v35 }
 0x33c   : > { %v4620_v3 = vpop.f32.mrf.mxu3  ;;  %v5046_v47 = vpop.f32.mrf.mxu0 }
 0x33d   : > { %v4658_v8 = vadd.f32 %v4620_v3, %v3976_v28 }
 0x33f   : > { %v5084_v0 = vadd.f32 %v5046_v47, %v4658_v8  ;;  %v3943_v14 = vpop.f32.mrf.mxu2 }
 0x340   : > { %v3978_v36 = vadd.f32 %v3943_v14, %v3663_v12 }
 0x341   : > { %v5179_v11 = vadd.f32 %v5178_v9, %v5084_v0  ;;  %v5217_v13 = vmul.f32 %v5084_v0, %v5084_v0 }
 0x343   : > { %v5248_v27 = vadd.f32 %v5247_v58, %v5217_v13 }
 0x344   : > { %v4622_v5 = vpop.f32.mrf.mxu3  ;;  %v5048_v62 = vpop.f32.mrf.mxu0 }
 0x345   : > { %v4659_v23 = vadd.f32 %v4622_v5, %v3977_v34 }
 0x347   : > { %v5085_v40 = vadd.f32 %v5048_v62, %v4659_v23  ;;  %v3945_v39 = vpop.f32.mrf.mxu2 }
 0x348   : > { %v3979_v43 = vadd.f32 %v3945_v39, %v3664_v30 }
 0x349   : > { %v6274_v1 = vpack.c.bf16 %v5085_v40, %v5084_v0  ;;  %v5180_v24 = vadd.f32 %v5179_v11, %v5085_v40  ;;  %v5218_v52 = vmul.f32 %v5085_v40, %v5085_v40 }
 0x34b   : > { %6309 = vst [vmem:[%s7698_s9 + $0x70] sm:$0xff] %v6274_v1   ;;  %v5249_v7 = vadd.f32 %v5248_v27, %v5218_v52 }
 0x34c   : > { %v4625_v63 = vpop.f32.mrf.mxu3  ;;  %v5051_v18 = vpop.f32.mrf.mxu0 }
 0x34d   : > { %v4660_v59 = vadd.f32 %v4625_v63, %v3978_v36 }
 0x34f   : > { %v5086_v25 = vadd.f32 %v5051_v18, %v4660_v59 }
 0x351   : > { %v5181_v46 = vadd.f32 %v5180_v24, %v5086_v25  ;;  %v5219_v41 = vmul.f32 %v5086_v25, %v5086_v25 }
 0x353   : > { %v5250_v21 = vadd.f32 %v5249_v7, %v5219_v41 }
 0x354   : > { %v4627_v60 = vpop.f32.mrf.mxu3  ;;  %v5053_v6 = vpop.f32.mrf.mxu0 }
 0x355   : > { %v4661_v32 = vadd.f32 %v4627_v60, %v3979_v43 }
 0x357   : > { %v5087_v4 = vadd.f32 %v5053_v6, %v4661_v32 }
 0x359   : > { %v6279_v20 = vpack.c.bf16 %v5087_v4, %v5086_v25  ;;  %v5182_v51 = vadd.f32 %v5181_v46, %v5087_v4  ;;  %v5220_v48 = vmul.f32 %v5087_v4, %v5087_v4 }
 0x35b   : > { %6310 = vst [vmem:[%s7698_s9 + $0x78] sm:$0xff] %v6279_v20   ;;  %v5183_v54 = vrot.slane %v5182_v51, 4  ;;  %v5251_v42 = vadd.f32 %v5250_v21, %v5220_v48 }
 0x35d   : > { %v5184_v10 = vadd.f32 %v5183_v54, %v5182_v51  ;;  %v5252_v44 = vrot.slane %v5251_v42, 4 }
 0x35f   : > { %v5185_v16 = vrot.slane %v5184_v10, 2  ;;  %v5253_v15 = vadd.f32 %v5252_v44, %v5251_v42 }
 0x361   : > { %v5186_v53 = vadd.f32 %v5185_v16, %v5184_v10  ;;  %v5254_v61 = vrot.slane %v5253_v15, 2 }
 0x363   : > { %v5187_v49 = vrot.slane %v5186_v53, 1  ;;  %v5255_v55 = vadd.f32 %v5254_v61, %v5253_v15 }
 0x365   : > { %v5256_v2 = vrot.slane %v5255_v55, 1  ;;  %v5188_v26 = vadd.f32 %v5187_v49, %v5186_v53 }
 0x367   : > { %v5257_v22 = vadd.f32 %v5256_v2, %v5255_v55 }
 0x369   : > { %v5259_v31 = vsel %vm661_vm0, %v5188_v26, %v5257_v22 }
 0x36a   : > { %5260 = vst [vmem:[%s235_s12] sm:$0x3] %v5259_v31 }
 0x36b PF: > { %s16_s18 = sadd.s32 1, %s6412_s18  }
 0x36c   : > { %p13_p4 = scmp.ge.s32.totalorder %s16_s18, 4  }
 0x36e   :  { %15 = sbr.rel (!%p13_p4) target bundleno = 1 (0x1), region = 89 }

</bundles_post_ra>
